<compile_context>
chip_gen: v5e
topology: v5e:2x2
jax: 0.10.0
libtpu: 0.0.40
codegen_flags: <defaults>
</compile_context>

<pallas_src>
from functools import partial

import jax
import jax.numpy as jnp
from jax.experimental import pallas as pl
from jax.experimental.pallas import tpu as pltpu

_LN_EPS = 1e-5


# ----------------------------------------------------------------- helpers
def _parallel(n):
    return pltpu.CompilerParams(dimension_semantics=("parallel",) * n)


def _row_tile(m, cap=256):
    """Largest legal row tile (multiple of 8, or full extent) dividing m."""
    if m <= cap:
        return m
    for t in range(cap - cap % 8, 7, -8):
        if m % t == 0:
            return t
    return m


def _ln(x, g, b):
    mu = jnp.mean(x, axis=-1, keepdims=True)
    var = jnp.mean(jnp.square(x - mu), axis=-1, keepdims=True)
    return (x - mu) * jax.lax.rsqrt(var + _LN_EPS) * g + b


def _gelu(y):
    # exact (erf-based) GELU, matching torch.nn.GELU default
    return 0.5 * y * (1.0 + jax.lax.erf(y * 0.7071067811865476))


# ----------------------------------------------------------------- kernels
def _ln_kernel(x_ref, g_ref, b_ref, o_ref):
    o_ref[...] = _ln(x_ref[...], g_ref[...], b_ref[...])


def _patch_embed_kernel(p_ref, w_ref, b_ref, g_ref, bn_ref, o_ref):
    y = jnp.dot(p_ref[...].astype(jnp.bfloat16), w_ref[...],
                preferred_element_type=jnp.float32) + b_ref[...]
    o_ref[...] = _ln(y, g_ref[...], bn_ref[...])


def _spatial_window_kernel(*refs, ws, apply_ln):
    # one (ws, ws, C) window per grid step
    if apply_ln:
        x_ref, g_ref, b_ref, w_ref, be_ref, o_ref = refs
    else:
        x_ref, w_ref, be_ref, o_ref = refs
    x = x_ref[...]                                  # (ws, ws, C)
    if apply_ln:
        x = _ln(x, g_ref[...], b_ref[...])
    # grouped Conv1d (heads groups) == per-channel spatial mixing:
    #   out[a, b, c] = bias[c] + sum_j w[j, a, b, c] * x[j // ws, j % ws, c]
    acc = be_ref[...]                               # (ws, ws, C)
    for j in range(ws * ws):
        a, b = j // ws, j % ws
        acc = acc + w_ref[j] * x[a:a + 1, b:b + 1, :]
    o_ref[...] = acc


def _resid_mlp_kernel(s_ref, y_ref, g_ref, b_ref, w1_ref, b1_ref,
                      w2_ref, b2_ref, o_ref):
    x = s_ref[...] + y_ref[...]                     # residual 1
    h = _ln(x, g_ref[...], b_ref[...])
    h = jnp.dot(h.astype(jnp.bfloat16), w1_ref[...],
                preferred_element_type=jnp.float32) + b1_ref[...]
    h = _gelu(h)
    h = jnp.dot(h.astype(jnp.bfloat16), w2_ref[...],
                preferred_element_type=jnp.float32) + b2_ref[...]
    o_ref[...] = x + h                              # residual 2


def _merge_kernel(x_ref, g_ref, b_ref, w_ref, o_ref):
    xn = _ln(x_ref[...], g_ref[...], b_ref[...])
    o_ref[...] = jnp.dot(xn.astype(jnp.bfloat16), w_ref[...],
                         preferred_element_type=jnp.float32)


def _head_kernel(x_ref, g_ref, b_ref, w_ref, hb_ref, o_ref):
    xn = _ln(x_ref[...], g_ref[...], b_ref[...])    # (L, Cf)
    feat = jnp.mean(xn, axis=0, keepdims=True)      # (1, Cf)
    o_ref[...] = jnp.dot(feat.astype(jnp.bfloat16), w_ref[...],
                         preferred_element_type=jnp.float32) + hb_ref[...]


# ------------------------------------------------------------ pallas wrappers
def pallas_layernorm_rows(x2, g, b):
    M, C = x2.shape
    tm = _row_tile(M)
    return pl.pallas_call(
        _ln_kernel,
        grid=(M // tm,),
        in_specs=[pl.BlockSpec((tm, C), lambda i: (i, 0)),
                  pl.BlockSpec((1, C), lambda i: (0, 0)),
                  pl.BlockSpec((1, C), lambda i: (0, 0))],
        out_specs=pl.BlockSpec((tm, C), lambda i: (i, 0)),
        out_shape=jax.ShapeDtypeStruct((M, C), jnp.float32),
        compiler_params=_parallel(1),
    )(x2, g, b)


def pallas_patch_embed(patches, w, b, g, bn):
    M, K = patches.shape
    E = w.shape[1]
    tm = _row_tile(M)
    c = lambda shp: pl.BlockSpec(shp, lambda i: (0,) * len(shp))
    return pl.pallas_call(
        _patch_embed_kernel,
        grid=(M // tm,),
        in_specs=[pl.BlockSpec((tm, K), lambda i: (i, 0)),
                  c((K, E)), c((1, E)), c((1, E)), c((1, E))],
        out_specs=pl.BlockSpec((tm, E), lambda i: (i, 0)),
        out_shape=jax.ShapeDtypeStruct((M, E), jnp.float32),
        compiler_params=_parallel(1),
    )(patches, w, b, g, bn)


def pallas_spatial_windows(x6, wexp, bexp, g=None, b=None):
    """x6: (B, nWh, ws, nWw, ws, C) windowed view; optional fused LayerNorm."""
    B, nWh, ws, nWw, _, C = x6.shape
    W2 = ws * ws
    apply_ln = g is not None
    win_spec = pl.BlockSpec((None, None, ws, None, ws, C),
                            lambda bb, i, j: (bb, i, 0, j, 0, 0))
    const = lambda shp: pl.BlockSpec(shp, lambda bb, i, j: (0,) * len(shp))
    in_specs = [win_spec]
    args = [x6]
    if apply_ln:
        in_specs += [const((1, C)), const((1, C))]
        args += [g, b]
    in_specs += [const((W2, ws, ws, C)), const((ws, ws, C))]
    args += [wexp, bexp]
    return pl.pallas_call(
        partial(_spatial_window_kernel, ws=ws, apply_ln=apply_ln),
        grid=(B, nWh, nWw),
        in_specs=in_specs,
        out_specs=win_spec,
        out_shape=jax.ShapeDtypeStruct(x6.shape, jnp.float32),
        compiler_params=_parallel(3),
    )(*args)


def pallas_resid_mlp(shortcut2, y2, g, b, w1, b1, w2, b2):
    M, C = shortcut2.shape
    hid = w1.shape[1]
    tm = _row_tile(M)
    row = pl.BlockSpec((tm, C), lambda i: (i, 0))
    c = lambda shp: pl.BlockSpec(shp, lambda i: (0,) * len(shp))
    return pl.pallas_call(
        _resid_mlp_kernel,
        grid=(M // tm,),
        in_specs=[row, row, c((1, C)), c((1, C)),
                  c((C, hid)), c((1, hid)), c((hid, C)), c((1, C))],
        out_specs=row,
        out_shape=jax.ShapeDtypeStruct((M, C), jnp.float32),
        compiler_params=_parallel(1),
    )(shortcut2, y2, g, b, w1, b1, w2, b2)


def pallas_patch_merge(xc, g, b, w):
    M, C4 = xc.shape
    C2 = w.shape[1]
    tm = _row_tile(M)
    c = lambda shp: pl.BlockSpec(shp, lambda i: (0,) * len(shp))
    return pl.pallas_call(
        _merge_kernel,
        grid=(M // tm,),
        in_specs=[pl.BlockSpec((tm, C4), lambda i: (i, 0)),
                  c((1, C4)), c((1, C4)), c((C4, C2))],
        out_specs=pl.BlockSpec((tm, C2), lambda i: (i, 0)),
        out_shape=jax.ShapeDtypeStruct((M, C2), jnp.float32),
        compiler_params=_parallel(1),
    )(xc, g, b, w)


def pallas_norm_pool_head(x, g, b, hw, hb):
    B, L, Cf = x.shape
    nc = hw.shape[1]
    c = lambda shp: pl.BlockSpec(shp, lambda i: (0,) * len(shp))
    out = pl.pallas_call(
        _head_kernel,
        grid=(B,),
        in_specs=[pl.BlockSpec((None, L, Cf), lambda i: (i, 0, 0)),
                  c((1, Cf)), c((1, Cf)), c((Cf, nc)), c((1, nc))],
        out_specs=pl.BlockSpec((None, 1, nc), lambda i: (i, 0, 0)),
        out_shape=jax.ShapeDtypeStruct((B, 1, nc), jnp.float32),
        compiler_params=_parallel(1),
    )(x, g, b, hw, hb)
    return out.reshape(B, nc)


# ------------------------------------------------------------ param builders
class _KeyGen:
    def __init__(self, key):
        self._key = key

    def __call__(self):
        self._key, sub = jax.random.split(self._key)
        return sub


def trunc_normal(key, shape, std=0.02):
    return jnp.clip(jax.random.normal(key, shape) * std,
                    -2.0 * std, 2.0 * std).astype(jnp.float32)


def stage_geometry(cfg):
    Hp = cfg["img_size"] // cfg["patch_size"]
    Wp = cfg["img_size"] // cfg["patch_size"]
    stages = []
    for li, depth in enumerate(cfg["depths"]):
        dim = cfg["embed_dim"] * (2 ** li)
        H, W = Hp // (2 ** li), Wp // (2 ** li)
        blocks = []
        for bi in range(depth):
            ws = cfg["window_size"]
            shift = 0 if bi % 2 == 0 else ws // 2
            if min(H, W) <= ws:               # same rule as SwinMLPBlock.__init__
                shift = 0
                ws = min(H, W)
            blocks.append(dict(ws=ws, shift=shift))
        stages.append(dict(dim=dim, H=H, W=W, heads=cfg["num_heads"][li],
                           blocks=blocks,
                           downsample=(li < len(cfg["depths"]) - 1)))
    return stages


def _expand_spatial(w, b, ws, C, heads):
    """Expand grouped Conv1d weights to per-channel form for VPU FMAs.

    w: (heads, W2, W2), b: (heads, W2)
    wexp[j, a, b, c] = w[c // Ch, a*ws + b, j]
    bexp[a, b, c]    = b[c // Ch, a*ws + b]
    """
    W2 = ws * ws
    Ch = C // heads
    w_e = jnp.repeat(jnp.transpose(w, (1, 2, 0)), Ch, axis=-1)     # (W2, W2, C)
    wexp = jnp.transpose(w_e, (1, 0, 2)).reshape(W2, ws, ws, C)
    bexp = jnp.repeat(jnp.transpose(b, (1, 0)), Ch, axis=-1).reshape(ws, ws, C)
    return wexp.astype(jnp.float32), bexp.astype(jnp.float32)


def build_params(key, cfg):
    kg = _KeyGen(key)
    ps, Cin, E = cfg["patch_size"], cfg["in_chans"], cfg["embed_dim"]
    K = Cin * ps * ps
    params = dict(patch_embed=dict(
        w=trunc_normal(kg(), (K, E)).astype(jnp.bfloat16),
        b=jnp.zeros((1, E), jnp.float32),
        g=jnp.ones((1, E), jnp.float32),
        bn=jnp.zeros((1, E), jnp.float32),
    ))

    layers = []
    for st in stage_geometry(cfg):
        dim, heads = st["dim"], st["heads"]
        blocks = []
        for geom in st["blocks"]:
            ws = geom["ws"]
            W2 = ws * ws
            hidden = int(dim * cfg["mlp_ratio"])
            sw = trunc_normal(kg(), (heads, W2, W2))
            sb = jnp.zeros((heads, W2), jnp.float32)
            wexp, bexp = _expand_spatial(sw, sb, ws, dim, heads)
            blocks.append(dict(
                norm1_g=jnp.ones((1, dim), jnp.float32),
                norm1_b=jnp.zeros((1, dim), jnp.float32),
                wexp=wexp, bexp=bexp,
                norm2_g=jnp.ones((1, dim), jnp.float32),
                norm2_b=jnp.zeros((1, dim), jnp.float32),
                fc1_w=trunc_normal(kg(), (dim, hidden)).astype(jnp.bfloat16),
                fc1_b=jnp.zeros((1, hidden), jnp.float32),
                fc2_w=trunc_normal(kg(), (hidden, dim)).astype(jnp.bfloat16),
                fc2_b=jnp.zeros((1, dim), jnp.float32),
            ))
        down = None
        if st["downsample"]:
            down = dict(
                norm_g=jnp.ones((1, 4 * dim), jnp.float32),
                norm_b=jnp.zeros((1, 4 * dim), jnp.float32),
                red_w=trunc_normal(kg(), (4 * dim, 2 * dim)).astype(jnp.bfloat16),
            )
        layers.append(dict(blocks=blocks, downsample=down))
    params["layers"] = layers

    nf = cfg["embed_dim"] * (2 ** (len(cfg["depths"]) - 1))
    params["norm_g"] = jnp.ones((1, nf), jnp.float32)
    params["norm_b"] = jnp.zeros((1, nf), jnp.float32)
    params["head_w"] = trunc_normal(kg(), (nf, cfg["num_classes"])).astype(jnp.bfloat16)
    params["head_b"] = jnp.zeros((1, cfg["num_classes"]), jnp.float32)
    return params


# --------------------------------------------------------------- forward pass
def swin_block_forward(x, p, geom, H, W):
    B, L, C = x.shape
    ws, shift = geom["ws"], geom["shift"]

    if shift == 0:
        # window partition is a pure metadata reshape; LN1 + spatial MLP fused
        x6 = x.reshape(B, H // ws, ws, W // ws, ws, C)
        y6 = pallas_spatial_windows(x6, p["wexp"], p["bexp"],
                                    p["norm1_g"], p["norm1_b"])
        y = y6.reshape(B, L, C)
    else:
        # LN must precede zero-padding (pad tokens stay exact zeros)
        xn = pallas_layernorm_rows(x.reshape(B * L, C),
                                   p["norm1_g"], p["norm1_b"]).reshape(B, H, W, C)
        P_l, P_r, P_t, P_b = ws - shift, shift, ws - shift, shift
        xs = jnp.pad(xn, ((0, 0), (P_t, P_b), (P_l, P_r), (0, 0)))
        _H, _W = H + ws, W + ws
        x6 = xs.reshape(B, _H // ws, ws, _W // ws, ws, C)
        y6 = pallas_spatial_windows(x6, p["wexp"], p["bexp"])
        ys = y6.reshape(B, _H, _W, C)[:, P_t:_H - P_b, P_l:_W - P_r, :]
        y = ys.reshape(B, L, C)

    # residual + LN2 + fc1 + GELU + fc2 + residual, all fused (hidden in VMEM)
    out = pallas_resid_mlp(x.reshape(B * L, C), y.reshape(B * L, C),
                           p["norm2_g"], p["norm2_b"],
                           p["fc1_w"], p["fc1_b"], p["fc2_w"], p["fc2_b"])
    return out.reshape(B, L, C)


def patch_merging_forward(x, p, H, W):
    B, L, C = x.shape
    xv = x.reshape(B, H, W, C)
    x0 = xv[:, 0::2, 0::2, :]
    x1 = xv[:, 1::2, 0::2, :]
    x2 = xv[:, 0::2, 1::2, :]
    x3 = xv[:, 1::2, 1::2, :]
    xc = jnp.concatenate([x0, x1, x2, x3], axis=-1).reshape(-1, 4 * C)
    out = pallas_patch_merge(xc, p["norm_g"], p["norm_b"], p["red_w"])
    return out.reshape(B, (H // 2) * (W // 2), 2 * C)


def swin_mlp_forward(x_nchw, params, cfg):
    B, Cin, Himg, Wimg = x_nchw.shape
    ps, E = cfg["patch_size"], cfg["embed_dim"]
    Hp, Wp = Himg // ps, Wimg // ps

    # PatchEmbed: Conv2d(k=stride=patch) == per-patch linear (im2col in XLA)
    patches = x_nchw.reshape(B, Cin, Hp, ps, Wp, ps)
    patches = patches.transpose(0, 2, 4, 1, 3, 5).reshape(B * Hp * Wp,
                                                          Cin * ps * ps)
    pe = params["patch_embed"]
    tok = pallas_patch_embed(patches, pe["w"], pe["b"], pe["g"], pe["bn"])
    x = tok.reshape(B, Hp * Wp, E)

    H, W = Hp, Wp
    for st, layer in zip(stage_geometry(cfg), params["layers"]):
        for geom, bp in zip(st["blocks"], layer["blocks"]):
            x = swin_block_forward(x, bp, geom, H, W)
        if layer["downsample"] is not None:
            x = patch_merging_forward(x, layer["downsample"], H, W)
            H, W = H // 2, W // 2

    # final LN + AdaptiveAvgPool1d(1) + head in one kernel
    return pallas_norm_pool_head(x, params["norm_g"], params["norm_b"],
                                 params["head_w"], params["head_b"])


# --------------------------------------------------------------------- main
if __name__ == "__main__":
    cfg = dict(
        img_size=32, patch_size=4, in_chans=3, num_classes=10,
        embed_dim=16, depths=(2, 2), num_heads=(2, 4),
        window_size=2, mlp_ratio=4.0,
    )

    key = jax.random.PRNGKey(0)
    k_params, k_input = jax.random.split(key)
    params = build_params(k_params, cfg)
    x = jax.random.normal(
        k_input, (2, cfg["in_chans"], cfg["img_size"], cfg["img_size"]),
        dtype=jnp.float32)

    fwd = jax.jit(lambda xx, pp: swin_mlp_forward(xx, pp, cfg))
    logits = jax.block_until_ready(fwd(x, params))
    assert logits.shape == (2, cfg["num_classes"])
    assert bool(jnp.all(jnp.isfinite(logits)))
    print("KERNEL_OK")
</pallas_src>

<mosaic_0001>
module attributes {stable_mosaic.version = 11 : i64} {
  func.func @_spatial_window_kernel(%arg0: i32, %arg1: i32, %arg2: i32, %arg3: memref<1x1x2x1x2x16xf32, #tpu.memory_space<vmem>>, %arg4: memref<1x16xf32, #tpu.memory_space<vmem>>, %arg5: memref<1x16xf32, #tpu.memory_space<vmem>>, %arg6: memref<4x2x2x16xf32, #tpu.memory_space<vmem>>, %arg7: memref<2x2x16xf32, #tpu.memory_space<vmem>>, %arg8: memref<1x1x2x1x2x16xf32, #tpu.memory_space<vmem>>) attributes {dimension_semantics = [#tpu.dimension_semantics<parallel>, #tpu.dimension_semantics<parallel>, #tpu.dimension_semantics<parallel>], iteration_bounds = array<i64: 2, 4, 4>, scalar_prefetch = 0 : i64, scratch_operands = 0 : i64, tpu.core_type = #tpu.core_type<tc>, window_params = [{transform_indices = @transform_0, window_bounds = array<i64: 1, 1, 2, 1, 2, 16>}, {pipeline_mode = #tpu.pipeline_mode<synchronous>, transform_indices = @transform_1, window_bounds = array<i64: 1, 16>}, {pipeline_mode = #tpu.pipeline_mode<synchronous>, transform_indices = @transform_2, window_bounds = array<i64: 1, 16>}, {pipeline_mode = #tpu.pipeline_mode<synchronous>, transform_indices = @transform_3, window_bounds = array<i64: 4, 2, 2, 16>}, {pipeline_mode = #tpu.pipeline_mode<synchronous>, transform_indices = @transform_4, window_bounds = array<i64: 2, 2, 16>}, {transform_indices = @transform_5, window_bounds = array<i64: 1, 1, 2, 1, 2, 16>}]} {
    %c0 = arith.constant 0 : index
    %c0_0 = arith.constant 0 : index
    %c0_1 = arith.constant 0 : index
    %c0_2 = arith.constant 0 : index
    %c0_3 = arith.constant 0 : index
    %c0_4 = arith.constant 0 : index
    %0 = vector.load %arg3[%c0, %c0_0, %c0_1, %c0_2, %c0_3, %c0_4] : memref<1x1x2x1x2x16xf32, #tpu.memory_space<vmem>>, vector<1x1x2x1x2x16xf32>
    %1 = vector.shape_cast %0 : vector<1x1x2x1x2x16xf32> to vector<2x2x16xf32>
    %c0_5 = arith.constant 0 : index
    %c0_6 = arith.constant 0 : index
    %2 = vector.load %arg4[%c0_5, %c0_6] : memref<1x16xf32, #tpu.memory_space<vmem>>, vector<1x16xf32>
    %c0_7 = arith.constant 0 : index
    %c0_8 = arith.constant 0 : index
    %3 = vector.load %arg5[%c0_7, %c0_8] : memref<1x16xf32, #tpu.memory_space<vmem>>, vector<1x16xf32>
    %cst = arith.constant dense<0.000000e+00> : vector<2x2xf32>
    %4 = vector.multi_reduction <add>, %1, %cst [2] : vector<2x2x16xf32> to vector<2x2xf32>
    %5 = vector.shape_cast %4 : vector<2x2xf32> to vector<2x2x1xf32>
    %cst_9 = arith.constant 1.600000e+01 : f32
    %6 = vector.broadcast %cst_9 : f32 to vector<2x2x1xf32>
    %7 = arith.divf %5, %6 : vector<2x2x1xf32>
    %8 = vector.broadcast %7 : vector<2x2x1xf32> to vector<2x2x16xf32>
    %9 = arith.subf %1, %8 : vector<2x2x16xf32>
    %10 = arith.mulf %9, %9 : vector<2x2x16xf32>
    %cst_10 = arith.constant dense<0.000000e+00> : vector<2x2xf32>
    %11 = vector.multi_reduction <add>, %10, %cst_10 [2] : vector<2x2x16xf32> to vector<2x2xf32>
    %12 = vector.shape_cast %11 : vector<2x2xf32> to vector<2x2x1xf32>
    %cst_11 = arith.constant 1.600000e+01 : f32
    %13 = vector.broadcast %cst_11 : f32 to vector<2x2x1xf32>
    %14 = arith.divf %12, %13 : vector<2x2x1xf32>
    %15 = vector.broadcast %7 : vector<2x2x1xf32> to vector<2x2x16xf32>
    %16 = arith.subf %1, %15 : vector<2x2x16xf32>
    %cst_12 = arith.constant 9.99999974E-6 : f32
    %17 = vector.broadcast %cst_12 : f32 to vector<2x2x1xf32>
    %18 = arith.addf %14, %17 : vector<2x2x1xf32>
    %19 = math.rsqrt %18 : vector<2x2x1xf32>
    %20 = vector.broadcast %19 : vector<2x2x1xf32> to vector<2x2x16xf32>
    %21 = arith.mulf %16, %20 : vector<2x2x16xf32>
    %22 = vector.shape_cast %2 : vector<1x16xf32> to vector<1x1x16xf32>
    %23 = vector.broadcast %22 : vector<1x1x16xf32> to vector<2x2x16xf32>
    %24 = arith.mulf %21, %23 : vector<2x2x16xf32>
    %25 = vector.shape_cast %3 : vector<1x16xf32> to vector<1x1x16xf32>
    %26 = vector.broadcast %25 : vector<1x1x16xf32> to vector<2x2x16xf32>
    %27 = arith.addf %24, %26 : vector<2x2x16xf32>
    %c0_13 = arith.constant 0 : index
    %c0_14 = arith.constant 0 : index
    %c0_15 = arith.constant 0 : index
    %28 = vector.load %arg7[%c0_13, %c0_14, %c0_15] : memref<2x2x16xf32, #tpu.memory_space<vmem>>, vector<2x2x16xf32>
    %c0_16 = arith.constant 0 : index
    %c0_17 = arith.constant 0 : index
    %c0_18 = arith.constant 0 : index
    %c0_19 = arith.constant 0 : index
    %29 = vector.load %arg6[%c0_16, %c0_17, %c0_18, %c0_19] : memref<4x2x2x16xf32, #tpu.memory_space<vmem>>, vector<1x2x2x16xf32>
    %30 = vector.shape_cast %29 : vector<1x2x2x16xf32> to vector<2x2x16xf32>
    %31 = vector.extract_strided_slice %27 {offsets = [0, 0, 0], sizes = [1, 1, 16], strides = [1, 1, 1]} : vector<2x2x16xf32> to vector<1x1x16xf32>
    %32 = vector.broadcast %31 : vector<1x1x16xf32> to vector<2x2x16xf32>
    %33 = arith.mulf %30, %32 : vector<2x2x16xf32>
    %34 = arith.addf %28, %33 : vector<2x2x16xf32>
    %c1 = arith.constant 1 : index
    %c0_20 = arith.constant 0 : index
    %c0_21 = arith.constant 0 : index
    %c0_22 = arith.constant 0 : index
    %35 = vector.load %arg6[%c1, %c0_20, %c0_21, %c0_22] : memref<4x2x2x16xf32, #tpu.memory_space<vmem>>, vector<1x2x2x16xf32>
    %36 = vector.shape_cast %35 : vector<1x2x2x16xf32> to vector<2x2x16xf32>
    %37 = vector.extract_strided_slice %27 {offsets = [0, 1, 0], sizes = [1, 1, 16], strides = [1, 1, 1]} : vector<2x2x16xf32> to vector<1x1x16xf32>
    %38 = vector.broadcast %37 : vector<1x1x16xf32> to vector<2x2x16xf32>
    %39 = arith.mulf %36, %38 : vector<2x2x16xf32>
    %40 = arith.addf %34, %39 : vector<2x2x16xf32>
    %c2 = arith.constant 2 : index
    %c0_23 = arith.constant 0 : index
    %c0_24 = arith.constant 0 : index
    %c0_25 = arith.constant 0 : index
    %41 = vector.load %arg6[%c2, %c0_23, %c0_24, %c0_25] : memref<4x2x2x16xf32, #tpu.memory_space<vmem>>, vector<1x2x2x16xf32>
    %42 = vector.shape_cast %41 : vector<1x2x2x16xf32> to vector<2x2x16xf32>
    %43 = vector.extract_strided_slice %27 {offsets = [1, 0, 0], sizes = [1, 1, 16], strides = [1, 1, 1]} : vector<2x2x16xf32> to vector<1x1x16xf32>
    %44 = vector.broadcast %43 : vector<1x1x16xf32> to vector<2x2x16xf32>
    %45 = arith.mulf %42, %44 : vector<2x2x16xf32>
    %46 = arith.addf %40, %45 : vector<2x2x16xf32>
    %c3 = arith.constant 3 : index
    %c0_26 = arith.constant 0 : index
    %c0_27 = arith.constant 0 : index
    %c0_28 = arith.constant 0 : index
    %47 = vector.load %arg6[%c3, %c0_26, %c0_27, %c0_28] : memref<4x2x2x16xf32, #tpu.memory_space<vmem>>, vector<1x2x2x16xf32>
    %48 = vector.shape_cast %47 : vector<1x2x2x16xf32> to vector<2x2x16xf32>
    %49 = vector.extract_strided_slice %27 {offsets = [1, 1, 0], sizes = [1, 1, 16], strides = [1, 1, 1]} : vector<2x2x16xf32> to vector<1x1x16xf32>
    %50 = vector.broadcast %49 : vector<1x1x16xf32> to vector<2x2x16xf32>
    %51 = arith.mulf %48, %50 : vector<2x2x16xf32>
    %52 = arith.addf %46, %51 : vector<2x2x16xf32>
    %c0_29 = arith.constant 0 : index
    %c0_30 = arith.constant 0 : index
    %c0_31 = arith.constant 0 : index
    %c0_32 = arith.constant 0 : index
    %c0_33 = arith.constant 0 : index
    %c0_34 = arith.constant 0 : index
    %53 = vector.load %arg8[%c0_29, %c0_30, %c0_31, %c0_32, %c0_33, %c0_34] : memref<1x1x2x1x2x16xf32, #tpu.memory_space<vmem>>, vector<1x1x2x1x2x16xf32>
    %54 = vector.shape_cast %53 : vector<1x1x2x1x2x16xf32> to vector<2x2x16xf32>
    %55 = vector.shape_cast %52 : vector<2x2x16xf32> to vector<1x1x2x1x2x16xf32>
    tpu.vector_store %arg8[%c0_29, %c0_30, %c0_31, %c0_32, %c0_33, %c0_34], %55 {strides = array<i32>} : memref<1x1x2x1x2x16xf32, #tpu.memory_space<vmem>>, vector<1x1x2x1x2x16xf32>,
    return
  }
  func.func @transform_0(%arg0: i32, %arg1: i32, %arg2: i32) -> (i32, i32, i32, i32, i32, i32) {
    %c0_i32 = arith.constant 0 : i32
    %c0_i32_0 = arith.constant 0 : i32
    %c0_i32_1 = arith.constant 0 : i32
    %c0_i32_2 = arith.constant 0 : i32
    return %arg0, %arg1, %c0_i32, %arg2, %c0_i32_0, %c0_i32_1 : i32, i32, i32, i32, i32, i32
  }
  func.func @transform_1(%arg0: i32, %arg1: i32, %arg2: i32) -> (i32, i32) {
    %c0_i32 = arith.constant 0 : i32
    %c0_i32_0 = arith.constant 0 : i32
    %c0_i32_1 = arith.constant 0 : i32
    return %c0_i32, %c0_i32_0 : i32, i32
  }
  func.func @transform_2(%arg0: i32, %arg1: i32, %arg2: i32) -> (i32, i32) {
    %c0_i32 = arith.constant 0 : i32
    %c0_i32_0 = arith.constant 0 : i32
    %c0_i32_1 = arith.constant 0 : i32
    return %c0_i32, %c0_i32_0 : i32, i32
  }
  func.func @transform_3(%arg0: i32, %arg1: i32, %arg2: i32) -> (i32, i32, i32, i32) {
    %c0_i32 = arith.constant 0 : i32
    %c0_i32_0 = arith.constant 0 : i32
    %c0_i32_1 = arith.constant 0 : i32
    %c0_i32_2 = arith.constant 0 : i32
    %c0_i32_3 = arith.constant 0 : i32
    return %c0_i32, %c0_i32_0, %c0_i32_1, %c0_i32_2 : i32, i32, i32, i32
  }
  func.func @transform_4(%arg0: i32, %arg1: i32, %arg2: i32) -> (i32, i32, i32) {
    %c0_i32 = arith.constant 0 : i32
    %c0_i32_0 = arith.constant 0 : i32
    %c0_i32_1 = arith.constant 0 : i32
    %c0_i32_2 = arith.constant 0 : i32
    return %c0_i32, %c0_i32_0, %c0_i32_1 : i32, i32, i32
  }
  func.func @transform_5(%arg0: i32, %arg1: i32, %arg2: i32) -> (i32, i32, i32, i32, i32, i32) {
    %c0_i32 = arith.constant 0 : i32
    %c0_i32_0 = arith.constant 0 : i32
    %c0_i32_1 = arith.constant 0 : i32
    %c0_i32_2 = arith.constant 0 : i32
    return %arg0, %arg1, %c0_i32, %arg2, %c0_i32_0, %c0_i32_1 : i32, i32, i32, i32, i32, i32
  }
}

module attributes {stable_mosaic.version = 11 : i64} {
  func.func @_patch_embed_kernel(%arg0: i32, %arg1: memref<128x48xf32, #tpu.memory_space<vmem>>, %arg2: memref<48x16xbf16, #tpu.memory_space<vmem>>, %arg3: memref<1x16xf32, #tpu.memory_space<vmem>>, %arg4: memref<1x16xf32, #tpu.memory_space<vmem>>, %arg5: memref<1x16xf32, #tpu.memory_space<vmem>>, %arg6: memref<128x16xf32, #tpu.memory_space<vmem>>) attributes {dimension_semantics = [#tpu.dimension_semantics<parallel>], iteration_bounds = array<i64: 1>, scalar_prefetch = 0 : i64, scratch_operands = 0 : i64, tpu.core_type = #tpu.core_type<tc>, window_params = [{transform_indices = @transform_0, window_bounds = array<i64: 128, 48>}, {pipeline_mode = #tpu.pipeline_mode<synchronous>, transform_indices = @transform_1, window_bounds = array<i64: 48, 16>}, {pipeline_mode = #tpu.pipeline_mode<synchronous>, transform_indices = @transform_2, window_bounds = array<i64: 1, 16>}, {pipeline_mode = #tpu.pipeline_mode<synchronous>, transform_indices = @transform_3, window_bounds = array<i64: 1, 16>}, {pipeline_mode = #tpu.pipeline_mode<synchronous>, transform_indices = @transform_4, window_bounds = array<i64: 1, 16>}, {transform_indices = @transform_5, window_bounds = array<i64: 128, 16>}]} {
    %c0 = arith.constant 0 : index
    %c0_0 = arith.constant 0 : index
    %0 = vector.load %arg1[%c0, %c0_0] : memref<128x48xf32, #tpu.memory_space<vmem>>, vector<128x48xf32>
    %1 = arith.truncf %0 : vector<128x48xf32> to vector<128x48xbf16>
    %c0_1 = arith.constant 0 : index
    %c0_2 = arith.constant 0 : index
    %2 = vector.load %arg2[%c0_1, %c0_2] : memref<48x16xbf16, #tpu.memory_space<vmem>>, vector<48x16xbf16>
    %cst = arith.constant dense<0.000000e+00> : vector<128x16xf32>
    %3 = tpu.matmul %1, %2, %cst {dimension_numbers = #tpu.dot_dimension_numbers<[1], [0], [0], [1], [0, 0, 1, 1], [], []>} : vector<128x48xbf16>, vector<48x16xbf16>, vector<128x16xf32> -> vector<128x16xf32>
    %c0_3 = arith.constant 0 : index
    %c0_4 = arith.constant 0 : index
    %4 = vector.load %arg3[%c0_3, %c0_4] : memref<1x16xf32, #tpu.memory_space<vmem>>, vector<1x16xf32>
    %5 = vector.broadcast %4 : vector<1x16xf32> to vector<128x16xf32>
    %6 = arith.addf %3, %5 : vector<128x16xf32>
    %c0_5 = arith.constant 0 : index
    %c0_6 = arith.constant 0 : index
    %7 = vector.load %arg4[%c0_5, %c0_6] : memref<1x16xf32, #tpu.memory_space<vmem>>, vector<1x16xf32>
    %c0_7 = arith.constant 0 : index
    %c0_8 = arith.constant 0 : index
    %8 = vector.load %arg5[%c0_7, %c0_8] : memref<1x16xf32, #tpu.memory_space<vmem>>, vector<1x16xf32>
    %cst_9 = arith.constant dense<0.000000e+00> : vector<128xf32>
    %9 = vector.multi_reduction <add>, %6, %cst_9 [1] : vector<128x16xf32> to vector<128xf32>
    %10 = vector.shape_cast %9 : vector<128xf32> to vector<128x1xf32>
    %cst_10 = arith.constant 1.600000e+01 : f32
    %11 = vector.broadcast %cst_10 : f32 to vector<128x1xf32>
    %12 = arith.divf %10, %11 : vector<128x1xf32>
    %13 = vector.broadcast %12 : vector<128x1xf32> to vector<128x16xf32>
    %14 = arith.subf %6, %13 : vector<128x16xf32>
    %15 = arith.mulf %14, %14 : vector<128x16xf32>
    %cst_11 = arith.constant dense<0.000000e+00> : vector<128xf32>
    %16 = vector.multi_reduction <add>, %15, %cst_11 [1] : vector<128x16xf32> to vector<128xf32>
    %17 = vector.shape_cast %16 : vector<128xf32> to vector<128x1xf32>
    %cst_12 = arith.constant 1.600000e+01 : f32
    %18 = vector.broadcast %cst_12 : f32 to vector<128x1xf32>
    %19 = arith.divf %17, %18 : vector<128x1xf32>
    %20 = vector.broadcast %12 : vector<128x1xf32> to vector<128x16xf32>
    %21 = arith.subf %6, %20 : vector<128x16xf32>
    %cst_13 = arith.constant 9.99999974E-6 : f32
    %22 = vector.broadcast %cst_13 : f32 to vector<128x1xf32>
    %23 = arith.addf %19, %22 : vector<128x1xf32>
    %24 = math.rsqrt %23 : vector<128x1xf32>
    %25 = vector.broadcast %24 : vector<128x1xf32> to vector<128x16xf32>
    %26 = arith.mulf %21, %25 : vector<128x16xf32>
    %27 = vector.broadcast %7 : vector<1x16xf32> to vector<128x16xf32>
    %28 = arith.mulf %26, %27 : vector<128x16xf32>
    %29 = vector.broadcast %8 : vector<1x16xf32> to vector<128x16xf32>
    %30 = arith.addf %28, %29 : vector<128x16xf32>
    %c0_14 = arith.constant 0 : index
    %c0_15 = arith.constant 0 : index
    %31 = vector.load %arg6[%c0_14, %c0_15] : memref<128x16xf32, #tpu.memory_space<vmem>>, vector<128x16xf32>
    tpu.vector_store %arg6[%c0_14, %c0_15], %30 {strides = array<i32>} : memref<128x16xf32, #tpu.memory_space<vmem>>, vector<128x16xf32>,
    return
  }
  func.func @transform_0(%arg0: i32) -> (i32, i32) {
    %c0_i32 = arith.constant 0 : i32
    %c0_i32_0 = arith.constant 0 : i32
    return %arg0, %c0_i32 : i32, i32
  }
  func.func @transform_1(%arg0: i32) -> (i32, i32) {
    %c0_i32 = arith.constant 0 : i32
    %c0_i32_0 = arith.constant 0 : i32
    %c0_i32_1 = arith.constant 0 : i32
    return %c0_i32, %c0_i32_0 : i32, i32
  }
  func.func @transform_2(%arg0: i32) -> (i32, i32) {
    %c0_i32 = arith.constant 0 : i32
    %c0_i32_0 = arith.constant 0 : i32
    %c0_i32_1 = arith.constant 0 : i32
    return %c0_i32, %c0_i32_0 : i32, i32
  }
  func.func @transform_3(%arg0: i32) -> (i32, i32) {
    %c0_i32 = arith.constant 0 : i32
    %c0_i32_0 = arith.constant 0 : i32
    %c0_i32_1 = arith.constant 0 : i32
    return %c0_i32, %c0_i32_0 : i32, i32
  }
  func.func @transform_4(%arg0: i32) -> (i32, i32) {
    %c0_i32 = arith.constant 0 : i32
    %c0_i32_0 = arith.constant 0 : i32
    %c0_i32_1 = arith.constant 0 : i32
    return %c0_i32, %c0_i32_0 : i32, i32
  }
  func.func @transform_5(%arg0: i32) -> (i32, i32) {
    %c0_i32 = arith.constant 0 : i32
    %c0_i32_0 = arith.constant 0 : i32
    return %arg0, %c0_i32 : i32, i32
  }
}

module attributes {stable_mosaic.version = 11 : i64} {
  func.func @_resid_mlp_kernel(%arg0: i32, %arg1: memref<128x16xf32, #tpu.memory_space<vmem>>, %arg2: memref<128x16xf32, #tpu.memory_space<vmem>>, %arg3: memref<1x16xf32, #tpu.memory_space<vmem>>, %arg4: memref<1x16xf32, #tpu.memory_space<vmem>>, %arg5: memref<16x64xbf16, #tpu.memory_space<vmem>>, %arg6: memref<1x64xf32, #tpu.memory_space<vmem>>, %arg7: memref<64x16xbf16, #tpu.memory_space<vmem>>, %arg8: memref<1x16xf32, #tpu.memory_space<vmem>>, %arg9: memref<128x16xf32, #tpu.memory_space<vmem>>) attributes {dimension_semantics = [#tpu.dimension_semantics<parallel>], iteration_bounds = array<i64: 1>, scalar_prefetch = 0 : i64, scratch_operands = 0 : i64, tpu.core_type = #tpu.core_type<tc>, window_params = [{transform_indices = @transform_0, window_bounds = array<i64: 128, 16>}, {transform_indices = @transform_1, window_bounds = array<i64: 128, 16>}, {pipeline_mode = #tpu.pipeline_mode<synchronous>, transform_indices = @transform_2, window_bounds = array<i64: 1, 16>}, {pipeline_mode = #tpu.pipeline_mode<synchronous>, transform_indices = @transform_3, window_bounds = array<i64: 1, 16>}, {pipeline_mode = #tpu.pipeline_mode<synchronous>, transform_indices = @transform_4, window_bounds = array<i64: 16, 64>}, {pipeline_mode = #tpu.pipeline_mode<synchronous>, transform_indices = @transform_5, window_bounds = array<i64: 1, 64>}, {pipeline_mode = #tpu.pipeline_mode<synchronous>, transform_indices = @transform_6, window_bounds = array<i64: 64, 16>}, {pipeline_mode = #tpu.pipeline_mode<synchronous>, transform_indices = @transform_7, window_bounds = array<i64: 1, 16>}, {transform_indices = @transform_8, window_bounds = array<i64: 128, 16>}]} {
    %c0 = arith.constant 0 : index
    %c0_0 = arith.constant 0 : index
    %0 = vector.load %arg1[%c0, %c0_0] : memref<128x16xf32, #tpu.memory_space<vmem>>, vector<128x16xf32>
    %c0_1 = arith.constant 0 : index
    %c0_2 = arith.constant 0 : index
    %1 = vector.load %arg2[%c0_1, %c0_2] : memref<128x16xf32, #tpu.memory_space<vmem>>, vector<128x16xf32>
    %2 = arith.addf %0, %1 : vector<128x16xf32>
    %c0_3 = arith.constant 0 : index
    %c0_4 = arith.constant 0 : index
    %3 = vector.load %arg3[%c0_3, %c0_4] : memref<1x16xf32, #tpu.memory_space<vmem>>, vector<1x16xf32>
    %c0_5 = arith.constant 0 : index
    %c0_6 = arith.constant 0 : index
    %4 = vector.load %arg4[%c0_5, %c0_6] : memref<1x16xf32, #tpu.memory_space<vmem>>, vector<1x16xf32>
    %cst = arith.constant dense<0.000000e+00> : vector<128xf32>
    %5 = vector.multi_reduction <add>, %2, %cst [1] : vector<128x16xf32> to vector<128xf32>
    %6 = vector.shape_cast %5 : vector<128xf32> to vector<128x1xf32>
    %cst_7 = arith.constant 1.600000e+01 : f32
    %7 = vector.broadcast %cst_7 : f32 to vector<128x1xf32>
    %8 = arith.divf %6, %7 : vector<128x1xf32>
    %9 = vector.broadcast %8 : vector<128x1xf32> to vector<128x16xf32>
    %10 = arith.subf %2, %9 : vector<128x16xf32>
    %11 = arith.mulf %10, %10 : vector<128x16xf32>
    %cst_8 = arith.constant dense<0.000000e+00> : vector<128xf32>
    %12 = vector.multi_reduction <add>, %11, %cst_8 [1] : vector<128x16xf32> to vector<128xf32>
    %13 = vector.shape_cast %12 : vector<128xf32> to vector<128x1xf32>
    %cst_9 = arith.constant 1.600000e+01 : f32
    %14 = vector.broadcast %cst_9 : f32 to vector<128x1xf32>
    %15 = arith.divf %13, %14 : vector<128x1xf32>
    %16 = vector.broadcast %8 : vector<128x1xf32> to vector<128x16xf32>
    %17 = arith.subf %2, %16 : vector<128x16xf32>
    %cst_10 = arith.constant 9.99999974E-6 : f32
    %18 = vector.broadcast %cst_10 : f32 to vector<128x1xf32>
    %19 = arith.addf %15, %18 : vector<128x1xf32>
    %20 = math.rsqrt %19 : vector<128x1xf32>
    %21 = vector.broadcast %20 : vector<128x1xf32> to vector<128x16xf32>
    %22 = arith.mulf %17, %21 : vector<128x16xf32>
    %23 = vector.broadcast %3 : vector<1x16xf32> to vector<128x16xf32>
    %24 = arith.mulf %22, %23 : vector<128x16xf32>
    %25 = vector.broadcast %4 : vector<1x16xf32> to vector<128x16xf32>
    %26 = arith.addf %24, %25 : vector<128x16xf32>
    %27 = arith.truncf %26 : vector<128x16xf32> to vector<128x16xbf16>
    %c0_11 = arith.constant 0 : index
    %c0_12 = arith.constant 0 : index
    %28 = vector.load %arg5[%c0_11, %c0_12] : memref<16x64xbf16, #tpu.memory_space<vmem>>, vector<16x64xbf16>
    %cst_13 = arith.constant dense<0.000000e+00> : vector<128x64xf32>
    %29 = tpu.matmul %27, %28, %cst_13 {dimension_numbers = #tpu.dot_dimension_numbers<[1], [0], [0], [1], [0, 0, 1, 1], [], []>} : vector<128x16xbf16>, vector<16x64xbf16>, vector<128x64xf32> -> vector<128x64xf32>
    %c0_14 = arith.constant 0 : index
    %c0_15 = arith.constant 0 : index
    %30 = vector.load %arg6[%c0_14, %c0_15] : memref<1x64xf32, #tpu.memory_space<vmem>>, vector<1x64xf32>
    %31 = vector.broadcast %30 : vector<1x64xf32> to vector<128x64xf32>
    %32 = arith.addf %29, %31 : vector<128x64xf32>
    %cst_16 = arith.constant 5.000000e-01 : f32
    %33 = vector.broadcast %cst_16 : f32 to vector<128x64xf32>
    %34 = arith.mulf %33, %32 : vector<128x64xf32>
    %cst_17 = arith.constant 0.707106769 : f32
    %35 = vector.broadcast %cst_17 : f32 to vector<128x64xf32>
    %36 = arith.mulf %32, %35 : vector<128x64xf32>
    %37 = math.erf %36 : vector<128x64xf32>
    %cst_18 = arith.constant 1.000000e+00 : f32
    %38 = vector.broadcast %cst_18 : f32 to vector<128x64xf32>
    %39 = arith.addf %38, %37 : vector<128x64xf32>
    %40 = arith.mulf %34, %39 : vector<128x64xf32>
    %41 = arith.truncf %40 : vector<128x64xf32> to vector<128x64xbf16>
    %c0_19 = arith.constant 0 : index
    %c0_20 = arith.constant 0 : index
    %42 = vector.load %arg7[%c0_19, %c0_20] : memref<64x16xbf16, #tpu.memory_space<vmem>>, vector<64x16xbf16>
    %cst_21 = arith.constant dense<0.000000e+00> : vector<128x16xf32>
    %43 = tpu.matmul %41, %42, %cst_21 {dimension_numbers = #tpu.dot_dimension_numbers<[1], [0], [0], [1], [0, 0, 1, 1], [], []>} : vector<128x64xbf16>, vector<64x16xbf16>, vector<128x16xf32> -> vector<128x16xf32>
    %c0_22 = arith.constant 0 : index
    %c0_23 = arith.constant 0 : index
    %44 = vector.load %arg8[%c0_22, %c0_23] : memref<1x16xf32, #tpu.memory_space<vmem>>, vector<1x16xf32>
    %45 = vector.broadcast %44 : vector<1x16xf32> to vector<128x16xf32>
    %46 = arith.addf %43, %45 : vector<128x16xf32>
    %47 = arith.addf %2, %46 : vector<128x16xf32>
    %c0_24 = arith.constant 0 : index
    %c0_25 = arith.constant 0 : index
    %48 = vector.load %arg9[%c0_24, %c0_25] : memref<128x16xf32, #tpu.memory_space<vmem>>, vector<128x16xf32>
    tpu.vector_store %arg9[%c0_24, %c0_25], %47 {strides = array<i32>} : memref<128x16xf32, #tpu.memory_space<vmem>>, vector<128x16xf32>,
    return
  }
  func.func @transform_0(%arg0: i32) -> (i32, i32) {
    %c0_i32 = arith.constant 0 : i32
    %c0_i32_0 = arith.constant 0 : i32
    return %arg0, %c0_i32 : i32, i32
  }
  func.func @transform_1(%arg0: i32) -> (i32, i32) {
    %c0_i32 = arith.constant 0 : i32
    %c0_i32_0 = arith.constant 0 : i32
    return %arg0, %c0_i32 : i32, i32
  }
  func.func @transform_2(%arg0: i32) -> (i32, i32) {
    %c0_i32 = arith.constant 0 : i32
    %c0_i32_0 = arith.constant 0 : i32
    %c0_i32_1 = arith.constant 0 : i32
    return %c0_i32, %c0_i32_0 : i32, i32
  }
  func.func @transform_3(%arg0: i32) -> (i32, i32) {
    %c0_i32 = arith.constant 0 : i32
    %c0_i32_0 = arith.constant 0 : i32
    %c0_i32_1 = arith.constant 0 : i32
    return %c0_i32, %c0_i32_0 : i32, i32
  }
  func.func @transform_4(%arg0: i32) -> (i32, i32) {
    %c0_i32 = arith.constant 0 : i32
    %c0_i32_0 = arith.constant 0 : i32
    %c0_i32_1 = arith.constant 0 : i32
    return %c0_i32, %c0_i32_0 : i32, i32
  }
  func.func @transform_5(%arg0: i32) -> (i32, i32) {
    %c0_i32 = arith.constant 0 : i32
    %c0_i32_0 = arith.constant 0 : i32
    %c0_i32_1 = arith.constant 0 : i32
    return %c0_i32, %c0_i32_0 : i32, i32
  }
  func.func @transform_6(%arg0: i32) -> (i32, i32) {
    %c0_i32 = arith.constant 0 : i32
    %c0_i32_0 = arith.constant 0 : i32
    %c0_i32_1 = arith.constant 0 : i32
    return %c0_i32, %c0_i32_0 : i32, i32
  }
  func.func @transform_7(%arg0: i32) -> (i32, i32) {
    %c0_i32 = arith.constant 0 : i32
    %c0_i32_0 = arith.constant 0 : i32
    %c0_i32_1 = arith.constant 0 : i32
    return %c0_i32, %c0_i32_0 : i32, i32
  }
  func.func @transform_8(%arg0: i32) -> (i32, i32) {
    %c0_i32 = arith.constant 0 : i32
    %c0_i32_0 = arith.constant 0 : i32
    return %arg0, %c0_i32 : i32, i32
  }
}

module attributes {stable_mosaic.version = 11 : i64} {
  func.func @_ln_kernel(%arg0: i32, %arg1: memref<128x16xf32, #tpu.memory_space<vmem>>, %arg2: memref<1x16xf32, #tpu.memory_space<vmem>>, %arg3: memref<1x16xf32, #tpu.memory_space<vmem>>, %arg4: memref<128x16xf32, #tpu.memory_space<vmem>>) attributes {dimension_semantics = [#tpu.dimension_semantics<parallel>], iteration_bounds = array<i64: 1>, scalar_prefetch = 0 : i64, scratch_operands = 0 : i64, tpu.core_type = #tpu.core_type<tc>, window_params = [{transform_indices = @transform_0, window_bounds = array<i64: 128, 16>}, {pipeline_mode = #tpu.pipeline_mode<synchronous>, transform_indices = @transform_1, window_bounds = array<i64: 1, 16>}, {pipeline_mode = #tpu.pipeline_mode<synchronous>, transform_indices = @transform_2, window_bounds = array<i64: 1, 16>}, {transform_indices = @transform_3, window_bounds = array<i64: 128, 16>}]} {
    %c0 = arith.constant 0 : index
    %c0_0 = arith.constant 0 : index
    %0 = vector.load %arg1[%c0, %c0_0] : memref<128x16xf32, #tpu.memory_space<vmem>>, vector<128x16xf32>
    %c0_1 = arith.constant 0 : index
    %c0_2 = arith.constant 0 : index
    %1 = vector.load %arg2[%c0_1, %c0_2] : memref<1x16xf32, #tpu.memory_space<vmem>>, vector<1x16xf32>
    %c0_3 = arith.constant 0 : index
    %c0_4 = arith.constant 0 : index
    %2 = vector.load %arg3[%c0_3, %c0_4] : memref<1x16xf32, #tpu.memory_space<vmem>>, vector<1x16xf32>
    %cst = arith.constant dense<0.000000e+00> : vector<128xf32>
    %3 = vector.multi_reduction <add>, %0, %cst [1] : vector<128x16xf32> to vector<128xf32>
    %4 = vector.shape_cast %3 : vector<128xf32> to vector<128x1xf32>
    %cst_5 = arith.constant 1.600000e+01 : f32
    %5 = vector.broadcast %cst_5 : f32 to vector<128x1xf32>
    %6 = arith.divf %4, %5 : vector<128x1xf32>
    %7 = vector.broadcast %6 : vector<128x1xf32> to vector<128x16xf32>
    %8 = arith.subf %0, %7 : vector<128x16xf32>
    %9 = arith.mulf %8, %8 : vector<128x16xf32>
    %cst_6 = arith.constant dense<0.000000e+00> : vector<128xf32>
    %10 = vector.multi_reduction <add>, %9, %cst_6 [1] : vector<128x16xf32> to vector<128xf32>
    %11 = vector.shape_cast %10 : vector<128xf32> to vector<128x1xf32>
    %cst_7 = arith.constant 1.600000e+01 : f32
    %12 = vector.broadcast %cst_7 : f32 to vector<128x1xf32>
    %13 = arith.divf %11, %12 : vector<128x1xf32>
    %14 = vector.broadcast %6 : vector<128x1xf32> to vector<128x16xf32>
    %15 = arith.subf %0, %14 : vector<128x16xf32>
    %cst_8 = arith.constant 9.99999974E-6 : f32
    %16 = vector.broadcast %cst_8 : f32 to vector<128x1xf32>
    %17 = arith.addf %13, %16 : vector<128x1xf32>
    %18 = math.rsqrt %17 : vector<128x1xf32>
    %19 = vector.broadcast %18 : vector<128x1xf32> to vector<128x16xf32>
    %20 = arith.mulf %15, %19 : vector<128x16xf32>
    %21 = vector.broadcast %1 : vector<1x16xf32> to vector<128x16xf32>
    %22 = arith.mulf %20, %21 : vector<128x16xf32>
    %23 = vector.broadcast %2 : vector<1x16xf32> to vector<128x16xf32>
    %24 = arith.addf %22, %23 : vector<128x16xf32>
    %c0_9 = arith.constant 0 : index
    %c0_10 = arith.constant 0 : index
    %25 = vector.load %arg4[%c0_9, %c0_10] : memref<128x16xf32, #tpu.memory_space<vmem>>, vector<128x16xf32>
    tpu.vector_store %arg4[%c0_9, %c0_10], %24 {strides = array<i32>} : memref<128x16xf32, #tpu.memory_space<vmem>>, vector<128x16xf32>,
    return
  }
  func.func @transform_0(%arg0: i32) -> (i32, i32) {
    %c0_i32 = arith.constant 0 : i32
    %c0_i32_0 = arith.constant 0 : i32
    return %arg0, %c0_i32 : i32, i32
  }
  func.func @transform_1(%arg0: i32) -> (i32, i32) {
    %c0_i32 = arith.constant 0 : i32
    %c0_i32_0 = arith.constant 0 : i32
    %c0_i32_1 = arith.constant 0 : i32
    return %c0_i32, %c0_i32_0 : i32, i32
  }
  func.func @transform_2(%arg0: i32) -> (i32, i32) {
    %c0_i32 = arith.constant 0 : i32
    %c0_i32_0 = arith.constant 0 : i32
    %c0_i32_1 = arith.constant 0 : i32
    return %c0_i32, %c0_i32_0 : i32, i32
  }
  func.func @transform_3(%arg0: i32) -> (i32, i32) {
    %c0_i32 = arith.constant 0 : i32
    %c0_i32_0 = arith.constant 0 : i32
    return %arg0, %c0_i32 : i32, i32
  }
}

module attributes {stable_mosaic.version = 11 : i64} {
  func.func @_spatial_window_kernel(%arg0: i32, %arg1: i32, %arg2: i32, %arg3: memref<1x1x2x1x2x16xf32, #tpu.memory_space<vmem>>, %arg4: memref<4x2x2x16xf32, #tpu.memory_space<vmem>>, %arg5: memref<2x2x16xf32, #tpu.memory_space<vmem>>, %arg6: memref<1x1x2x1x2x16xf32, #tpu.memory_space<vmem>>) attributes {dimension_semantics = [#tpu.dimension_semantics<parallel>, #tpu.dimension_semantics<parallel>, #tpu.dimension_semantics<parallel>], iteration_bounds = array<i64: 2, 5, 5>, scalar_prefetch = 0 : i64, scratch_operands = 0 : i64, tpu.core_type = #tpu.core_type<tc>, window_params = [{transform_indices = @transform_0, window_bounds = array<i64: 1, 1, 2, 1, 2, 16>}, {pipeline_mode = #tpu.pipeline_mode<synchronous>, transform_indices = @transform_1, window_bounds = array<i64: 4, 2, 2, 16>}, {pipeline_mode = #tpu.pipeline_mode<synchronous>, transform_indices = @transform_2, window_bounds = array<i64: 2, 2, 16>}, {transform_indices = @transform_3, window_bounds = array<i64: 1, 1, 2, 1, 2, 16>}]} {
    %c0 = arith.constant 0 : index
    %c0_0 = arith.constant 0 : index
    %c0_1 = arith.constant 0 : index
    %c0_2 = arith.constant 0 : index
    %c0_3 = arith.constant 0 : index
    %c0_4 = arith.constant 0 : index
    %0 = vector.load %arg3[%c0, %c0_0, %c0_1, %c0_2, %c0_3, %c0_4] : memref<1x1x2x1x2x16xf32, #tpu.memory_space<vmem>>, vector<1x1x2x1x2x16xf32>
    %1 = vector.shape_cast %0 : vector<1x1x2x1x2x16xf32> to vector<2x2x16xf32>
    %c0_5 = arith.constant 0 : index
    %c0_6 = arith.constant 0 : index
    %c0_7 = arith.constant 0 : index
    %2 = vector.load %arg5[%c0_5, %c0_6, %c0_7] : memref<2x2x16xf32, #tpu.memory_space<vmem>>, vector<2x2x16xf32>
    %c0_8 = arith.constant 0 : index
    %c0_9 = arith.constant 0 : index
    %c0_10 = arith.constant 0 : index
    %c0_11 = arith.constant 0 : index
    %3 = vector.load %arg4[%c0_8, %c0_9, %c0_10, %c0_11] : memref<4x2x2x16xf32, #tpu.memory_space<vmem>>, vector<1x2x2x16xf32>
    %4 = vector.shape_cast %3 : vector<1x2x2x16xf32> to vector<2x2x16xf32>
    %5 = vector.extract_strided_slice %1 {offsets = [0, 0, 0], sizes = [1, 1, 16], strides = [1, 1, 1]} : vector<2x2x16xf32> to vector<1x1x16xf32>
    %6 = vector.broadcast %5 : vector<1x1x16xf32> to vector<2x2x16xf32>
    %7 = arith.mulf %4, %6 : vector<2x2x16xf32>
    %8 = arith.addf %2, %7 : vector<2x2x16xf32>
    %c1 = arith.constant 1 : index
    %c0_12 = arith.constant 0 : index
    %c0_13 = arith.constant 0 : index
    %c0_14 = arith.constant 0 : index
    %9 = vector.load %arg4[%c1, %c0_12, %c0_13, %c0_14] : memref<4x2x2x16xf32, #tpu.memory_space<vmem>>, vector<1x2x2x16xf32>
    %10 = vector.shape_cast %9 : vector<1x2x2x16xf32> to vector<2x2x16xf32>
    %11 = vector.extract_strided_slice %1 {offsets = [0, 1, 0], sizes = [1, 1, 16], strides = [1, 1, 1]} : vector<2x2x16xf32> to vector<1x1x16xf32>
    %12 = vector.broadcast %11 : vector<1x1x16xf32> to vector<2x2x16xf32>
    %13 = arith.mulf %10, %12 : vector<2x2x16xf32>
    %14 = arith.addf %8, %13 : vector<2x2x16xf32>
    %c2 = arith.constant 2 : index
    %c0_15 = arith.constant 0 : index
    %c0_16 = arith.constant 0 : index
    %c0_17 = arith.constant 0 : index
    %15 = vector.load %arg4[%c2, %c0_15, %c0_16, %c0_17] : memref<4x2x2x16xf32, #tpu.memory_space<vmem>>, vector<1x2x2x16xf32>
    %16 = vector.shape_cast %15 : vector<1x2x2x16xf32> to vector<2x2x16xf32>
    %17 = vector.extract_strided_slice %1 {offsets = [1, 0, 0], sizes = [1, 1, 16], strides = [1, 1, 1]} : vector<2x2x16xf32> to vector<1x1x16xf32>
    %18 = vector.broadcast %17 : vector<1x1x16xf32> to vector<2x2x16xf32>
    %19 = arith.mulf %16, %18 : vector<2x2x16xf32>
    %20 = arith.addf %14, %19 : vector<2x2x16xf32>
    %c3 = arith.constant 3 : index
    %c0_18 = arith.constant 0 : index
    %c0_19 = arith.constant 0 : index
    %c0_20 = arith.constant 0 : index
    %21 = vector.load %arg4[%c3, %c0_18, %c0_19, %c0_20] : memref<4x2x2x16xf32, #tpu.memory_space<vmem>>, vector<1x2x2x16xf32>
    %22 = vector.shape_cast %21 : vector<1x2x2x16xf32> to vector<2x2x16xf32>
    %23 = vector.extract_strided_slice %1 {offsets = [1, 1, 0], sizes = [1, 1, 16], strides = [1, 1, 1]} : vector<2x2x16xf32> to vector<1x1x16xf32>
    %24 = vector.broadcast %23 : vector<1x1x16xf32> to vector<2x2x16xf32>
    %25 = arith.mulf %22, %24 : vector<2x2x16xf32>
    %26 = arith.addf %20, %25 : vector<2x2x16xf32>
    %c0_21 = arith.constant 0 : index
    %c0_22 = arith.constant 0 : index
    %c0_23 = arith.constant 0 : index
    %c0_24 = arith.constant 0 : index
    %c0_25 = arith.constant 0 : index
    %c0_26 = arith.constant 0 : index
    %27 = vector.load %arg6[%c0_21, %c0_22, %c0_23, %c0_24, %c0_25, %c0_26] : memref<1x1x2x1x2x16xf32, #tpu.memory_space<vmem>>, vector<1x1x2x1x2x16xf32>
    %28 = vector.shape_cast %27 : vector<1x1x2x1x2x16xf32> to vector<2x2x16xf32>
    %29 = vector.shape_cast %26 : vector<2x2x16xf32> to vector<1x1x2x1x2x16xf32>
    tpu.vector_store %arg6[%c0_21, %c0_22, %c0_23, %c0_24, %c0_25, %c0_26], %29 {strides = array<i32>} : memref<1x1x2x1x2x16xf32, #tpu.memory_space<vmem>>, vector<1x1x2x1x2x16xf32>,
    return
  }
  func.func @transform_0(%arg0: i32, %arg1: i32, %arg2: i32) -> (i32, i32, i32, i32, i32, i32) {
    %c0_i32 = arith.constant 0 : i32
    %c0_i32_0 = arith.constant 0 : i32
    %c0_i32_1 = arith.constant 0 : i32
    %c0_i32_2 = arith.constant 0 : i32
    return %arg0, %arg1, %c0_i32, %arg2, %c0_i32_0, %c0_i32_1 : i32, i32, i32, i32, i32, i32
  }
  func.func @transform_1(%arg0: i32, %arg1: i32, %arg2: i32) -> (i32, i32, i32, i32) {
    %c0_i32 = arith.constant 0 : i32
    %c0_i32_0 = arith.constant 0 : i32
    %c0_i32_1 = arith.constant 0 : i32
    %c0_i32_2 = arith.constant 0 : i32
    %c0_i32_3 = arith.constant 0 : i32
    return %c0_i32, %c0_i32_0, %c0_i32_1, %c0_i32_2 : i32, i32, i32, i32
  }
  func.func @transform_2(%arg0: i32, %arg1: i32, %arg2: i32) -> (i32, i32, i32) {
    %c0_i32 = arith.constant 0 : i32
    %c0_i32_0 = arith.constant 0 : i32
    %c0_i32_1 = arith.constant 0 : i32
    %c0_i32_2 = arith.constant 0 : i32
    return %c0_i32, %c0_i32_0, %c0_i32_1 : i32, i32, i32
  }
  func.func @transform_3(%arg0: i32, %arg1: i32, %arg2: i32) -> (i32, i32, i32, i32, i32, i32) {
    %c0_i32 = arith.constant 0 : i32
    %c0_i32_0 = arith.constant 0 : i32
    %c0_i32_1 = arith.constant 0 : i32
    %c0_i32_2 = arith.constant 0 : i32
    return %arg0, %arg1, %c0_i32, %arg2, %c0_i32_0, %c0_i32_1 : i32, i32, i32, i32, i32, i32
  }
}

module attributes {stable_mosaic.version = 11 : i64} {
  func.func @_merge_kernel(%arg0: i32, %arg1: memref<32x64xf32, #tpu.memory_space<vmem>>, %arg2: memref<1x64xf32, #tpu.memory_space<vmem>>, %arg3: memref<1x64xf32, #tpu.memory_space<vmem>>, %arg4: memref<64x32xbf16, #tpu.memory_space<vmem>>, %arg5: memref<32x32xf32, #tpu.memory_space<vmem>>) attributes {dimension_semantics = [#tpu.dimension_semantics<parallel>], iteration_bounds = array<i64: 1>, scalar_prefetch = 0 : i64, scratch_operands = 0 : i64, tpu.core_type = #tpu.core_type<tc>, window_params = [{transform_indices = @transform_0, window_bounds = array<i64: 32, 64>}, {pipeline_mode = #tpu.pipeline_mode<synchronous>, transform_indices = @transform_1, window_bounds = array<i64: 1, 64>}, {pipeline_mode = #tpu.pipeline_mode<synchronous>, transform_indices = @transform_2, window_bounds = array<i64: 1, 64>}, {pipeline_mode = #tpu.pipeline_mode<synchronous>, transform_indices = @transform_3, window_bounds = array<i64: 64, 32>}, {transform_indices = @transform_4, window_bounds = array<i64: 32, 32>}]} {
    %c0 = arith.constant 0 : index
    %c0_0 = arith.constant 0 : index
    %0 = vector.load %arg1[%c0, %c0_0] : memref<32x64xf32, #tpu.memory_space<vmem>>, vector<32x64xf32>
    %c0_1 = arith.constant 0 : index
    %c0_2 = arith.constant 0 : index
    %1 = vector.load %arg2[%c0_1, %c0_2] : memref<1x64xf32, #tpu.memory_space<vmem>>, vector<1x64xf32>
    %c0_3 = arith.constant 0 : index
    %c0_4 = arith.constant 0 : index
    %2 = vector.load %arg3[%c0_3, %c0_4] : memref<1x64xf32, #tpu.memory_space<vmem>>, vector<1x64xf32>
    %cst = arith.constant dense<0.000000e+00> : vector<32xf32>
    %3 = vector.multi_reduction <add>, %0, %cst [1] : vector<32x64xf32> to vector<32xf32>
    %4 = vector.shape_cast %3 : vector<32xf32> to vector<32x1xf32>
    %cst_5 = arith.constant 6.400000e+01 : f32
    %5 = vector.broadcast %cst_5 : f32 to vector<32x1xf32>
    %6 = arith.divf %4, %5 : vector<32x1xf32>
    %7 = vector.broadcast %6 : vector<32x1xf32> to vector<32x64xf32>
    %8 = arith.subf %0, %7 : vector<32x64xf32>
    %9 = arith.mulf %8, %8 : vector<32x64xf32>
    %cst_6 = arith.constant dense<0.000000e+00> : vector<32xf32>
    %10 = vector.multi_reduction <add>, %9, %cst_6 [1] : vector<32x64xf32> to vector<32xf32>
    %11 = vector.shape_cast %10 : vector<32xf32> to vector<32x1xf32>
    %cst_7 = arith.constant 6.400000e+01 : f32
    %12 = vector.broadcast %cst_7 : f32 to vector<32x1xf32>
    %13 = arith.divf %11, %12 : vector<32x1xf32>
    %14 = vector.broadcast %6 : vector<32x1xf32> to vector<32x64xf32>
    %15 = arith.subf %0, %14 : vector<32x64xf32>
    %cst_8 = arith.constant 9.99999974E-6 : f32
    %16 = vector.broadcast %cst_8 : f32 to vector<32x1xf32>
    %17 = arith.addf %13, %16 : vector<32x1xf32>
    %18 = math.rsqrt %17 : vector<32x1xf32>
    %19 = vector.broadcast %18 : vector<32x1xf32> to vector<32x64xf32>
    %20 = arith.mulf %15, %19 : vector<32x64xf32>
    %21 = vector.broadcast %1 : vector<1x64xf32> to vector<32x64xf32>
    %22 = arith.mulf %20, %21 : vector<32x64xf32>
    %23 = vector.broadcast %2 : vector<1x64xf32> to vector<32x64xf32>
    %24 = arith.addf %22, %23 : vector<32x64xf32>
    %25 = arith.truncf %24 : vector<32x64xf32> to vector<32x64xbf16>
    %c0_9 = arith.constant 0 : index
    %c0_10 = arith.constant 0 : index
    %26 = vector.load %arg4[%c0_9, %c0_10] : memref<64x32xbf16, #tpu.memory_space<vmem>>, vector<64x32xbf16>
    %cst_11 = arith.constant dense<0.000000e+00> : vector<32x32xf32>
    %27 = tpu.matmul %25, %26, %cst_11 {dimension_numbers = #tpu.dot_dimension_numbers<[1], [0], [0], [1], [0, 0, 1, 1], [], []>} : vector<32x64xbf16>, vector<64x32xbf16>, vector<32x32xf32> -> vector<32x32xf32>
    %c0_12 = arith.constant 0 : index
    %c0_13 = arith.constant 0 : index
    %28 = vector.load %arg5[%c0_12, %c0_13] : memref<32x32xf32, #tpu.memory_space<vmem>>, vector<32x32xf32>
    tpu.vector_store %arg5[%c0_12, %c0_13], %27 {strides = array<i32>} : memref<32x32xf32, #tpu.memory_space<vmem>>, vector<32x32xf32>,
    return
  }
  func.func @transform_0(%arg0: i32) -> (i32, i32) {
    %c0_i32 = arith.constant 0 : i32
    %c0_i32_0 = arith.constant 0 : i32
    return %arg0, %c0_i32 : i32, i32
  }
  func.func @transform_1(%arg0: i32) -> (i32, i32) {
    %c0_i32 = arith.constant 0 : i32
    %c0_i32_0 = arith.constant 0 : i32
    %c0_i32_1 = arith.constant 0 : i32
    return %c0_i32, %c0_i32_0 : i32, i32
  }
  func.func @transform_2(%arg0: i32) -> (i32, i32) {
    %c0_i32 = arith.constant 0 : i32
    %c0_i32_0 = arith.constant 0 : i32
    %c0_i32_1 = arith.constant 0 : i32
    return %c0_i32, %c0_i32_0 : i32, i32
  }
  func.func @transform_3(%arg0: i32) -> (i32, i32) {
    %c0_i32 = arith.constant 0 : i32
    %c0_i32_0 = arith.constant 0 : i32
    %c0_i32_1 = arith.constant 0 : i32
    return %c0_i32, %c0_i32_0 : i32, i32
  }
  func.func @transform_4(%arg0: i32) -> (i32, i32) {
    %c0_i32 = arith.constant 0 : i32
    %c0_i32_0 = arith.constant 0 : i32
    return %arg0, %c0_i32 : i32, i32
  }
}

module attributes {stable_mosaic.version = 11 : i64} {
  func.func @_ln_kernel(%arg0: i32, %arg1: memref<32x32xf32, #tpu.memory_space<vmem>>, %arg2: memref<1x32xf32, #tpu.memory_space<vmem>>, %arg3: memref<1x32xf32, #tpu.memory_space<vmem>>, %arg4: memref<32x32xf32, #tpu.memory_space<vmem>>) attributes {dimension_semantics = [#tpu.dimension_semantics<parallel>], iteration_bounds = array<i64: 1>, scalar_prefetch = 0 : i64, scratch_operands = 0 : i64, tpu.core_type = #tpu.core_type<tc>, window_params = [{transform_indices = @transform_0, window_bounds = array<i64: 32, 32>}, {pipeline_mode = #tpu.pipeline_mode<synchronous>, transform_indices = @transform_1, window_bounds = array<i64: 1, 32>}, {pipeline_mode = #tpu.pipeline_mode<synchronous>, transform_indices = @transform_2, window_bounds = array<i64: 1, 32>}, {transform_indices = @transform_3, window_bounds = array<i64: 32, 32>}]} {
    %c0 = arith.constant 0 : index
    %c0_0 = arith.constant 0 : index
    %0 = vector.load %arg1[%c0, %c0_0] : memref<32x32xf32, #tpu.memory_space<vmem>>, vector<32x32xf32>
    %c0_1 = arith.constant 0 : index
    %c0_2 = arith.constant 0 : index
    %1 = vector.load %arg2[%c0_1, %c0_2] : memref<1x32xf32, #tpu.memory_space<vmem>>, vector<1x32xf32>
    %c0_3 = arith.constant 0 : index
    %c0_4 = arith.constant 0 : index
    %2 = vector.load %arg3[%c0_3, %c0_4] : memref<1x32xf32, #tpu.memory_space<vmem>>, vector<1x32xf32>
    %cst = arith.constant dense<0.000000e+00> : vector<32xf32>
    %3 = vector.multi_reduction <add>, %0, %cst [1] : vector<32x32xf32> to vector<32xf32>
    %4 = vector.shape_cast %3 : vector<32xf32> to vector<32x1xf32>
    %cst_5 = arith.constant 3.200000e+01 : f32
    %5 = vector.broadcast %cst_5 : f32 to vector<32x1xf32>
    %6 = arith.divf %4, %5 : vector<32x1xf32>
    %7 = vector.broadcast %6 : vector<32x1xf32> to vector<32x32xf32>
    %8 = arith.subf %0, %7 : vector<32x32xf32>
    %9 = arith.mulf %8, %8 : vector<32x32xf32>
    %cst_6 = arith.constant dense<0.000000e+00> : vector<32xf32>
    %10 = vector.multi_reduction <add>, %9, %cst_6 [1] : vector<32x32xf32> to vector<32xf32>
    %11 = vector.shape_cast %10 : vector<32xf32> to vector<32x1xf32>
    %cst_7 = arith.constant 3.200000e+01 : f32
    %12 = vector.broadcast %cst_7 : f32 to vector<32x1xf32>
    %13 = arith.divf %11, %12 : vector<32x1xf32>
    %14 = vector.broadcast %6 : vector<32x1xf32> to vector<32x32xf32>
    %15 = arith.subf %0, %14 : vector<32x32xf32>
    %cst_8 = arith.constant 9.99999974E-6 : f32
    %16 = vector.broadcast %cst_8 : f32 to vector<32x1xf32>
    %17 = arith.addf %13, %16 : vector<32x1xf32>
    %18 = math.rsqrt %17 : vector<32x1xf32>
    %19 = vector.broadcast %18 : vector<32x1xf32> to vector<32x32xf32>
    %20 = arith.mulf %15, %19 : vector<32x32xf32>
    %21 = vector.broadcast %1 : vector<1x32xf32> to vector<32x32xf32>
    %22 = arith.mulf %20, %21 : vector<32x32xf32>
    %23 = vector.broadcast %2 : vector<1x32xf32> to vector<32x32xf32>
    %24 = arith.addf %22, %23 : vector<32x32xf32>
    %c0_9 = arith.constant 0 : index
    %c0_10 = arith.constant 0 : index
    %25 = vector.load %arg4[%c0_9, %c0_10] : memref<32x32xf32, #tpu.memory_space<vmem>>, vector<32x32xf32>
    tpu.vector_store %arg4[%c0_9, %c0_10], %24 {strides = array<i32>} : memref<32x32xf32, #tpu.memory_space<vmem>>, vector<32x32xf32>,
    return
  }
  func.func @transform_0(%arg0: i32) -> (i32, i32) {
    %c0_i32 = arith.constant 0 : i32
    %c0_i32_0 = arith.constant 0 : i32
    return %arg0, %c0_i32 : i32, i32
  }
  func.func @transform_1(%arg0: i32) -> (i32, i32) {
    %c0_i32 = arith.constant 0 : i32
    %c0_i32_0 = arith.constant 0 : i32
    %c0_i32_1 = arith.constant 0 : i32
    return %c0_i32, %c0_i32_0 : i32, i32
  }
  func.func @transform_2(%arg0: i32) -> (i32, i32) {
    %c0_i32 = arith.constant 0 : i32
    %c0_i32_0 = arith.constant 0 : i32
    %c0_i32_1 = arith.constant 0 : i32
    return %c0_i32, %c0_i32_0 : i32, i32
  }
  func.func @transform_3(%arg0: i32) -> (i32, i32) {
    %c0_i32 = arith.constant 0 : i32
    %c0_i32_0 = arith.constant 0 : i32
    return %arg0, %c0_i32 : i32, i32
  }
}

module attributes {stable_mosaic.version = 11 : i64} {
  func.func @_spatial_window_kernel(%arg0: i32, %arg1: i32, %arg2: i32, %arg3: memref<1x1x2x1x2x32xf32, #tpu.memory_space<vmem>>, %arg4: memref<1x32xf32, #tpu.memory_space<vmem>>, %arg5: memref<1x32xf32, #tpu.memory_space<vmem>>, %arg6: memref<4x2x2x32xf32, #tpu.memory_space<vmem>>, %arg7: memref<2x2x32xf32, #tpu.memory_space<vmem>>, %arg8: memref<1x1x2x1x2x32xf32, #tpu.memory_space<vmem>>) attributes {dimension_semantics = [#tpu.dimension_semantics<parallel>, #tpu.dimension_semantics<parallel>, #tpu.dimension_semantics<parallel>], iteration_bounds = array<i64: 2, 2, 2>, scalar_prefetch = 0 : i64, scratch_operands = 0 : i64, tpu.core_type = #tpu.core_type<tc>, window_params = [{transform_indices = @transform_0, window_bounds = array<i64: 1, 1, 2, 1, 2, 32>}, {pipeline_mode = #tpu.pipeline_mode<synchronous>, transform_indices = @transform_1, window_bounds = array<i64: 1, 32>}, {pipeline_mode = #tpu.pipeline_mode<synchronous>, transform_indices = @transform_2, window_bounds = array<i64: 1, 32>}, {pipeline_mode = #tpu.pipeline_mode<synchronous>, transform_indices = @transform_3, window_bounds = array<i64: 4, 2, 2, 32>}, {pipeline_mode = #tpu.pipeline_mode<synchronous>, transform_indices = @transform_4, window_bounds = array<i64: 2, 2, 32>}, {transform_indices = @transform_5, window_bounds = array<i64: 1, 1, 2, 1, 2, 32>}]} {
    %c0 = arith.constant 0 : index
    %c0_0 = arith.constant 0 : index
    %c0_1 = arith.constant 0 : index
    %c0_2 = arith.constant 0 : index
    %c0_3 = arith.constant 0 : index
    %c0_4 = arith.constant 0 : index
    %0 = vector.load %arg3[%c0, %c0_0, %c0_1, %c0_2, %c0_3, %c0_4] : memref<1x1x2x1x2x32xf32, #tpu.memory_space<vmem>>, vector<1x1x2x1x2x32xf32>
    %1 = vector.shape_cast %0 : vector<1x1x2x1x2x32xf32> to vector<2x2x32xf32>
    %c0_5 = arith.constant 0 : index
    %c0_6 = arith.constant 0 : index
    %2 = vector.load %arg4[%c0_5, %c0_6] : memref<1x32xf32, #tpu.memory_space<vmem>>, vector<1x32xf32>
    %c0_7 = arith.constant 0 : index
    %c0_8 = arith.constant 0 : index
    %3 = vector.load %arg5[%c0_7, %c0_8] : memref<1x32xf32, #tpu.memory_space<vmem>>, vector<1x32xf32>
    %cst = arith.constant dense<0.000000e+00> : vector<2x2xf32>
    %4 = vector.multi_reduction <add>, %1, %cst [2] : vector<2x2x32xf32> to vector<2x2xf32>
    %5 = vector.shape_cast %4 : vector<2x2xf32> to vector<2x2x1xf32>
    %cst_9 = arith.constant 3.200000e+01 : f32
    %6 = vector.broadcast %cst_9 : f32 to vector<2x2x1xf32>
    %7 = arith.divf %5, %6 : vector<2x2x1xf32>
    %8 = vector.broadcast %7 : vector<2x2x1xf32> to vector<2x2x32xf32>
    %9 = arith.subf %1, %8 : vector<2x2x32xf32>
    %10 = arith.mulf %9, %9 : vector<2x2x32xf32>
    %cst_10 = arith.constant dense<0.000000e+00> : vector<2x2xf32>
    %11 = vector.multi_reduction <add>, %10, %cst_10 [2] : vector<2x2x32xf32> to vector<2x2xf32>
    %12 = vector.shape_cast %11 : vector<2x2xf32> to vector<2x2x1xf32>
    %cst_11 = arith.constant 3.200000e+01 : f32
    %13 = vector.broadcast %cst_11 : f32 to vector<2x2x1xf32>
    %14 = arith.divf %12, %13 : vector<2x2x1xf32>
    %15 = vector.broadcast %7 : vector<2x2x1xf32> to vector<2x2x32xf32>
    %16 = arith.subf %1, %15 : vector<2x2x32xf32>
    %cst_12 = arith.constant 9.99999974E-6 : f32
    %17 = vector.broadcast %cst_12 : f32 to vector<2x2x1xf32>
    %18 = arith.addf %14, %17 : vector<2x2x1xf32>
    %19 = math.rsqrt %18 : vector<2x2x1xf32>
    %20 = vector.broadcast %19 : vector<2x2x1xf32> to vector<2x2x32xf32>
    %21 = arith.mulf %16, %20 : vector<2x2x32xf32>
    %22 = vector.shape_cast %2 : vector<1x32xf32> to vector<1x1x32xf32>
    %23 = vector.broadcast %22 : vector<1x1x32xf32> to vector<2x2x32xf32>
    %24 = arith.mulf %21, %23 : vector<2x2x32xf32>
    %25 = vector.shape_cast %3 : vector<1x32xf32> to vector<1x1x32xf32>
    %26 = vector.broadcast %25 : vector<1x1x32xf32> to vector<2x2x32xf32>
    %27 = arith.addf %24, %26 : vector<2x2x32xf32>
    %c0_13 = arith.constant 0 : index
    %c0_14 = arith.constant 0 : index
    %c0_15 = arith.constant 0 : index
    %28 = vector.load %arg7[%c0_13, %c0_14, %c0_15] : memref<2x2x32xf32, #tpu.memory_space<vmem>>, vector<2x2x32xf32>
    %c0_16 = arith.constant 0 : index
    %c0_17 = arith.constant 0 : index
    %c0_18 = arith.constant 0 : index
    %c0_19 = arith.constant 0 : index
    %29 = vector.load %arg6[%c0_16, %c0_17, %c0_18, %c0_19] : memref<4x2x2x32xf32, #tpu.memory_space<vmem>>, vector<1x2x2x32xf32>
    %30 = vector.shape_cast %29 : vector<1x2x2x32xf32> to vector<2x2x32xf32>
    %31 = vector.extract_strided_slice %27 {offsets = [0, 0, 0], sizes = [1, 1, 32], strides = [1, 1, 1]} : vector<2x2x32xf32> to vector<1x1x32xf32>
    %32 = vector.broadcast %31 : vector<1x1x32xf32> to vector<2x2x32xf32>
    %33 = arith.mulf %30, %32 : vector<2x2x32xf32>
    %34 = arith.addf %28, %33 : vector<2x2x32xf32>
    %c1 = arith.constant 1 : index
    %c0_20 = arith.constant 0 : index
    %c0_21 = arith.constant 0 : index
    %c0_22 = arith.constant 0 : index
    %35 = vector.load %arg6[%c1, %c0_20, %c0_21, %c0_22] : memref<4x2x2x32xf32, #tpu.memory_space<vmem>>, vector<1x2x2x32xf32>
    %36 = vector.shape_cast %35 : vector<1x2x2x32xf32> to vector<2x2x32xf32>
    %37 = vector.extract_strided_slice %27 {offsets = [0, 1, 0], sizes = [1, 1, 32], strides = [1, 1, 1]} : vector<2x2x32xf32> to vector<1x1x32xf32>
    %38 = vector.broadcast %37 : vector<1x1x32xf32> to vector<2x2x32xf32>
    %39 = arith.mulf %36, %38 : vector<2x2x32xf32>
    %40 = arith.addf %34, %39 : vector<2x2x32xf32>
    %c2 = arith.constant 2 : index
    %c0_23 = arith.constant 0 : index
    %c0_24 = arith.constant 0 : index
    %c0_25 = arith.constant 0 : index
    %41 = vector.load %arg6[%c2, %c0_23, %c0_24, %c0_25] : memref<4x2x2x32xf32, #tpu.memory_space<vmem>>, vector<1x2x2x32xf32>
    %42 = vector.shape_cast %41 : vector<1x2x2x32xf32> to vector<2x2x32xf32>
    %43 = vector.extract_strided_slice %27 {offsets = [1, 0, 0], sizes = [1, 1, 32], strides = [1, 1, 1]} : vector<2x2x32xf32> to vector<1x1x32xf32>
    %44 = vector.broadcast %43 : vector<1x1x32xf32> to vector<2x2x32xf32>
    %45 = arith.mulf %42, %44 : vector<2x2x32xf32>
    %46 = arith.addf %40, %45 : vector<2x2x32xf32>
    %c3 = arith.constant 3 : index
    %c0_26 = arith.constant 0 : index
    %c0_27 = arith.constant 0 : index
    %c0_28 = arith.constant 0 : index
    %47 = vector.load %arg6[%c3, %c0_26, %c0_27, %c0_28] : memref<4x2x2x32xf32, #tpu.memory_space<vmem>>, vector<1x2x2x32xf32>
    %48 = vector.shape_cast %47 : vector<1x2x2x32xf32> to vector<2x2x32xf32>
    %49 = vector.extract_strided_slice %27 {offsets = [1, 1, 0], sizes = [1, 1, 32], strides = [1, 1, 1]} : vector<2x2x32xf32> to vector<1x1x32xf32>
    %50 = vector.broadcast %49 : vector<1x1x32xf32> to vector<2x2x32xf32>
    %51 = arith.mulf %48, %50 : vector<2x2x32xf32>
    %52 = arith.addf %46, %51 : vector<2x2x32xf32>
    %c0_29 = arith.constant 0 : index
    %c0_30 = arith.constant 0 : index
    %c0_31 = arith.constant 0 : index
    %c0_32 = arith.constant 0 : index
    %c0_33 = arith.constant 0 : index
    %c0_34 = arith.constant 0 : index
    %53 = vector.load %arg8[%c0_29, %c0_30, %c0_31, %c0_32, %c0_33, %c0_34] : memref<1x1x2x1x2x32xf32, #tpu.memory_space<vmem>>, vector<1x1x2x1x2x32xf32>
    %54 = vector.shape_cast %53 : vector<1x1x2x1x2x32xf32> to vector<2x2x32xf32>
    %55 = vector.shape_cast %52 : vector<2x2x32xf32> to vector<1x1x2x1x2x32xf32>
    tpu.vector_store %arg8[%c0_29, %c0_30, %c0_31, %c0_32, %c0_33, %c0_34], %55 {strides = array<i32>} : memref<1x1x2x1x2x32xf32, #tpu.memory_space<vmem>>, vector<1x1x2x1x2x32xf32>,
    return
  }
  func.func @transform_0(%arg0: i32, %arg1: i32, %arg2: i32) -> (i32, i32, i32, i32, i32, i32) {
    %c0_i32 = arith.constant 0 : i32
    %c0_i32_0 = arith.constant 0 : i32
    %c0_i32_1 = arith.constant 0 : i32
    %c0_i32_2 = arith.constant 0 : i32
    return %arg0, %arg1, %c0_i32, %arg2, %c0_i32_0, %c0_i32_1 : i32, i32, i32, i32, i32, i32
  }
  func.func @transform_1(%arg0: i32, %arg1: i32, %arg2: i32) -> (i32, i32) {
    %c0_i32 = arith.constant 0 : i32
    %c0_i32_0 = arith.constant 0 : i32
    %c0_i32_1 = arith.constant 0 : i32
    return %c0_i32, %c0_i32_0 : i32, i32
  }
  func.func @transform_2(%arg0: i32, %arg1: i32, %arg2: i32) -> (i32, i32) {
    %c0_i32 = arith.constant 0 : i32
    %c0_i32_0 = arith.constant 0 : i32
    %c0_i32_1 = arith.constant 0 : i32
    return %c0_i32, %c0_i32_0 : i32, i32
  }
  func.func @transform_3(%arg0: i32, %arg1: i32, %arg2: i32) -> (i32, i32, i32, i32) {
    %c0_i32 = arith.constant 0 : i32
    %c0_i32_0 = arith.constant 0 : i32
    %c0_i32_1 = arith.constant 0 : i32
    %c0_i32_2 = arith.constant 0 : i32
    %c0_i32_3 = arith.constant 0 : i32
    return %c0_i32, %c0_i32_0, %c0_i32_1, %c0_i32_2 : i32, i32, i32, i32
  }
  func.func @transform_4(%arg0: i32, %arg1: i32, %arg2: i32) -> (i32, i32, i32) {
    %c0_i32 = arith.constant 0 : i32
    %c0_i32_0 = arith.constant 0 : i32
    %c0_i32_1 = arith.constant 0 : i32
    %c0_i32_2 = arith.constant 0 : i32
    return %c0_i32, %c0_i32_0, %c0_i32_1 : i32, i32, i32
  }
  func.func @transform_5(%arg0: i32, %arg1: i32, %arg2: i32) -> (i32, i32, i32, i32, i32, i32) {
    %c0_i32 = arith.constant 0 : i32
    %c0_i32_0 = arith.constant 0 : i32
    %c0_i32_1 = arith.constant 0 : i32
    %c0_i32_2 = arith.constant 0 : i32
    return %arg0, %arg1, %c0_i32, %arg2, %c0_i32_0, %c0_i32_1 : i32, i32, i32, i32, i32, i32
  }
}

module attributes {stable_mosaic.version = 11 : i64} {
  func.func @_resid_mlp_kernel(%arg0: i32, %arg1: memref<32x32xf32, #tpu.memory_space<vmem>>, %arg2: memref<32x32xf32, #tpu.memory_space<vmem>>, %arg3: memref<1x32xf32, #tpu.memory_space<vmem>>, %arg4: memref<1x32xf32, #tpu.memory_space<vmem>>, %arg5: memref<32x128xbf16, #tpu.memory_space<vmem>>, %arg6: memref<1x128xf32, #tpu.memory_space<vmem>>, %arg7: memref<128x32xbf16, #tpu.memory_space<vmem>>, %arg8: memref<1x32xf32, #tpu.memory_space<vmem>>, %arg9: memref<32x32xf32, #tpu.memory_space<vmem>>) attributes {dimension_semantics = [#tpu.dimension_semantics<parallel>], iteration_bounds = array<i64: 1>, scalar_prefetch = 0 : i64, scratch_operands = 0 : i64, tpu.core_type = #tpu.core_type<tc>, window_params = [{transform_indices = @transform_0, window_bounds = array<i64: 32, 32>}, {transform_indices = @transform_1, window_bounds = array<i64: 32, 32>}, {pipeline_mode = #tpu.pipeline_mode<synchronous>, transform_indices = @transform_2, window_bounds = array<i64: 1, 32>}, {pipeline_mode = #tpu.pipeline_mode<synchronous>, transform_indices = @transform_3, window_bounds = array<i64: 1, 32>}, {pipeline_mode = #tpu.pipeline_mode<synchronous>, transform_indices = @transform_4, window_bounds = array<i64: 32, 128>}, {pipeline_mode = #tpu.pipeline_mode<synchronous>, transform_indices = @transform_5, window_bounds = array<i64: 1, 128>}, {pipeline_mode = #tpu.pipeline_mode<synchronous>, transform_indices = @transform_6, window_bounds = array<i64: 128, 32>}, {pipeline_mode = #tpu.pipeline_mode<synchronous>, transform_indices = @transform_7, window_bounds = array<i64: 1, 32>}, {transform_indices = @transform_8, window_bounds = array<i64: 32, 32>}]} {
    %c0 = arith.constant 0 : index
    %c0_0 = arith.constant 0 : index
    %0 = vector.load %arg1[%c0, %c0_0] : memref<32x32xf32, #tpu.memory_space<vmem>>, vector<32x32xf32>
    %c0_1 = arith.constant 0 : index
    %c0_2 = arith.constant 0 : index
    %1 = vector.load %arg2[%c0_1, %c0_2] : memref<32x32xf32, #tpu.memory_space<vmem>>, vector<32x32xf32>
    %2 = arith.addf %0, %1 : vector<32x32xf32>
    %c0_3 = arith.constant 0 : index
    %c0_4 = arith.constant 0 : index
    %3 = vector.load %arg3[%c0_3, %c0_4] : memref<1x32xf32, #tpu.memory_space<vmem>>, vector<1x32xf32>
    %c0_5 = arith.constant 0 : index
    %c0_6 = arith.constant 0 : index
    %4 = vector.load %arg4[%c0_5, %c0_6] : memref<1x32xf32, #tpu.memory_space<vmem>>, vector<1x32xf32>
    %cst = arith.constant dense<0.000000e+00> : vector<32xf32>
    %5 = vector.multi_reduction <add>, %2, %cst [1] : vector<32x32xf32> to vector<32xf32>
    %6 = vector.shape_cast %5 : vector<32xf32> to vector<32x1xf32>
    %cst_7 = arith.constant 3.200000e+01 : f32
    %7 = vector.broadcast %cst_7 : f32 to vector<32x1xf32>
    %8 = arith.divf %6, %7 : vector<32x1xf32>
    %9 = vector.broadcast %8 : vector<32x1xf32> to vector<32x32xf32>
    %10 = arith.subf %2, %9 : vector<32x32xf32>
    %11 = arith.mulf %10, %10 : vector<32x32xf32>
    %cst_8 = arith.constant dense<0.000000e+00> : vector<32xf32>
    %12 = vector.multi_reduction <add>, %11, %cst_8 [1] : vector<32x32xf32> to vector<32xf32>
    %13 = vector.shape_cast %12 : vector<32xf32> to vector<32x1xf32>
    %cst_9 = arith.constant 3.200000e+01 : f32
    %14 = vector.broadcast %cst_9 : f32 to vector<32x1xf32>
    %15 = arith.divf %13, %14 : vector<32x1xf32>
    %16 = vector.broadcast %8 : vector<32x1xf32> to vector<32x32xf32>
    %17 = arith.subf %2, %16 : vector<32x32xf32>
    %cst_10 = arith.constant 9.99999974E-6 : f32
    %18 = vector.broadcast %cst_10 : f32 to vector<32x1xf32>
    %19 = arith.addf %15, %18 : vector<32x1xf32>
    %20 = math.rsqrt %19 : vector<32x1xf32>
    %21 = vector.broadcast %20 : vector<32x1xf32> to vector<32x32xf32>
    %22 = arith.mulf %17, %21 : vector<32x32xf32>
    %23 = vector.broadcast %3 : vector<1x32xf32> to vector<32x32xf32>
    %24 = arith.mulf %22, %23 : vector<32x32xf32>
    %25 = vector.broadcast %4 : vector<1x32xf32> to vector<32x32xf32>
    %26 = arith.addf %24, %25 : vector<32x32xf32>
    %27 = arith.truncf %26 : vector<32x32xf32> to vector<32x32xbf16>
    %c0_11 = arith.constant 0 : index
    %c0_12 = arith.constant 0 : index
    %28 = vector.load %arg5[%c0_11, %c0_12] : memref<32x128xbf16, #tpu.memory_space<vmem>>, vector<32x128xbf16>
    %cst_13 = arith.constant dense<0.000000e+00> : vector<32x128xf32>
    %29 = tpu.matmul %27, %28, %cst_13 {dimension_numbers = #tpu.dot_dimension_numbers<[1], [0], [0], [1], [0, 0, 1, 1], [], []>} : vector<32x32xbf16>, vector<32x128xbf16>, vector<32x128xf32> -> vector<32x128xf32>
    %c0_14 = arith.constant 0 : index
    %c0_15 = arith.constant 0 : index
    %30 = vector.load %arg6[%c0_14, %c0_15] : memref<1x128xf32, #tpu.memory_space<vmem>>, vector<1x128xf32>
    %31 = vector.broadcast %30 : vector<1x128xf32> to vector<32x128xf32>
    %32 = arith.addf %29, %31 : vector<32x128xf32>
    %cst_16 = arith.constant 5.000000e-01 : f32
    %33 = vector.broadcast %cst_16 : f32 to vector<32x128xf32>
    %34 = arith.mulf %33, %32 : vector<32x128xf32>
    %cst_17 = arith.constant 0.707106769 : f32
    %35 = vector.broadcast %cst_17 : f32 to vector<32x128xf32>
    %36 = arith.mulf %32, %35 : vector<32x128xf32>
    %37 = math.erf %36 : vector<32x128xf32>
    %cst_18 = arith.constant 1.000000e+00 : f32
    %38 = vector.broadcast %cst_18 : f32 to vector<32x128xf32>
    %39 = arith.addf %38, %37 : vector<32x128xf32>
    %40 = arith.mulf %34, %39 : vector<32x128xf32>
    %41 = arith.truncf %40 : vector<32x128xf32> to vector<32x128xbf16>
    %c0_19 = arith.constant 0 : index
    %c0_20 = arith.constant 0 : index
    %42 = vector.load %arg7[%c0_19, %c0_20] : memref<128x32xbf16, #tpu.memory_space<vmem>>, vector<128x32xbf16>
    %cst_21 = arith.constant dense<0.000000e+00> : vector<32x32xf32>
    %43 = tpu.matmul %41, %42, %cst_21 {dimension_numbers = #tpu.dot_dimension_numbers<[1], [0], [0], [1], [0, 0, 1, 1], [], []>} : vector<32x128xbf16>, vector<128x32xbf16>, vector<32x32xf32> -> vector<32x32xf32>
    %c0_22 = arith.constant 0 : index
    %c0_23 = arith.constant 0 : index
    %44 = vector.load %arg8[%c0_22, %c0_23] : memref<1x32xf32, #tpu.memory_space<vmem>>, vector<1x32xf32>
    %45 = vector.broadcast %44 : vector<1x32xf32> to vector<32x32xf32>
    %46 = arith.addf %43, %45 : vector<32x32xf32>
    %47 = arith.addf %2, %46 : vector<32x32xf32>
    %c0_24 = arith.constant 0 : index
    %c0_25 = arith.constant 0 : index
    %48 = vector.load %arg9[%c0_24, %c0_25] : memref<32x32xf32, #tpu.memory_space<vmem>>, vector<32x32xf32>
    tpu.vector_store %arg9[%c0_24, %c0_25], %47 {strides = array<i32>} : memref<32x32xf32, #tpu.memory_space<vmem>>, vector<32x32xf32>,
    return
  }
  func.func @transform_0(%arg0: i32) -> (i32, i32) {
    %c0_i32 = arith.constant 0 : i32
    %c0_i32_0 = arith.constant 0 : i32
    return %arg0, %c0_i32 : i32, i32
  }
  func.func @transform_1(%arg0: i32) -> (i32, i32) {
    %c0_i32 = arith.constant 0 : i32
    %c0_i32_0 = arith.constant 0 : i32
    return %arg0, %c0_i32 : i32, i32
  }
  func.func @transform_2(%arg0: i32) -> (i32, i32) {
    %c0_i32 = arith.constant 0 : i32
    %c0_i32_0 = arith.constant 0 : i32
    %c0_i32_1 = arith.constant 0 : i32
    return %c0_i32, %c0_i32_0 : i32, i32
  }
  func.func @transform_3(%arg0: i32) -> (i32, i32) {
    %c0_i32 = arith.constant 0 : i32
    %c0_i32_0 = arith.constant 0 : i32
    %c0_i32_1 = arith.constant 0 : i32
    return %c0_i32, %c0_i32_0 : i32, i32
  }
  func.func @transform_4(%arg0: i32) -> (i32, i32) {
    %c0_i32 = arith.constant 0 : i32
    %c0_i32_0 = arith.constant 0 : i32
    %c0_i32_1 = arith.constant 0 : i32
    return %c0_i32, %c0_i32_0 : i32, i32
  }
  func.func @transform_5(%arg0: i32) -> (i32, i32) {
    %c0_i32 = arith.constant 0 : i32
    %c0_i32_0 = arith.constant 0 : i32
    %c0_i32_1 = arith.constant 0 : i32
    return %c0_i32, %c0_i32_0 : i32, i32
  }
  func.func @transform_6(%arg0: i32) -> (i32, i32) {
    %c0_i32 = arith.constant 0 : i32
    %c0_i32_0 = arith.constant 0 : i32
    %c0_i32_1 = arith.constant 0 : i32
    return %c0_i32, %c0_i32_0 : i32, i32
  }
  func.func @transform_7(%arg0: i32) -> (i32, i32) {
    %c0_i32 = arith.constant 0 : i32
    %c0_i32_0 = arith.constant 0 : i32
    %c0_i32_1 = arith.constant 0 : i32
    return %c0_i32, %c0_i32_0 : i32, i32
  }
  func.func @transform_8(%arg0: i32) -> (i32, i32) {
    %c0_i32 = arith.constant 0 : i32
    %c0_i32_0 = arith.constant 0 : i32
    return %arg0, %c0_i32 : i32, i32
  }
}

module attributes {stable_mosaic.version = 11 : i64} {
  func.func @_spatial_window_kernel(%arg0: i32, %arg1: i32, %arg2: i32, %arg3: memref<1x1x2x1x2x32xf32, #tpu.memory_space<vmem>>, %arg4: memref<4x2x2x32xf32, #tpu.memory_space<vmem>>, %arg5: memref<2x2x32xf32, #tpu.memory_space<vmem>>, %arg6: memref<1x1x2x1x2x32xf32, #tpu.memory_space<vmem>>) attributes {dimension_semantics = [#tpu.dimension_semantics<parallel>, #tpu.dimension_semantics<parallel>, #tpu.dimension_semantics<parallel>], iteration_bounds = array<i64: 2, 3, 3>, scalar_prefetch = 0 : i64, scratch_operands = 0 : i64, tpu.core_type = #tpu.core_type<tc>, window_params = [{transform_indices = @transform_0, window_bounds = array<i64: 1, 1, 2, 1, 2, 32>}, {pipeline_mode = #tpu.pipeline_mode<synchronous>, transform_indices = @transform_1, window_bounds = array<i64: 4, 2, 2, 32>}, {pipeline_mode = #tpu.pipeline_mode<synchronous>, transform_indices = @transform_2, window_bounds = array<i64: 2, 2, 32>}, {transform_indices = @transform_3, window_bounds = array<i64: 1, 1, 2, 1, 2, 32>}]} {
    %c0 = arith.constant 0 : index
    %c0_0 = arith.constant 0 : index
    %c0_1 = arith.constant 0 : index
    %c0_2 = arith.constant 0 : index
    %c0_3 = arith.constant 0 : index
    %c0_4 = arith.constant 0 : index
    %0 = vector.load %arg3[%c0, %c0_0, %c0_1, %c0_2, %c0_3, %c0_4] : memref<1x1x2x1x2x32xf32, #tpu.memory_space<vmem>>, vector<1x1x2x1x2x32xf32>
    %1 = vector.shape_cast %0 : vector<1x1x2x1x2x32xf32> to vector<2x2x32xf32>
    %c0_5 = arith.constant 0 : index
    %c0_6 = arith.constant 0 : index
    %c0_7 = arith.constant 0 : index
    %2 = vector.load %arg5[%c0_5, %c0_6, %c0_7] : memref<2x2x32xf32, #tpu.memory_space<vmem>>, vector<2x2x32xf32>
    %c0_8 = arith.constant 0 : index
    %c0_9 = arith.constant 0 : index
    %c0_10 = arith.constant 0 : index
    %c0_11 = arith.constant 0 : index
    %3 = vector.load %arg4[%c0_8, %c0_9, %c0_10, %c0_11] : memref<4x2x2x32xf32, #tpu.memory_space<vmem>>, vector<1x2x2x32xf32>
    %4 = vector.shape_cast %3 : vector<1x2x2x32xf32> to vector<2x2x32xf32>
    %5 = vector.extract_strided_slice %1 {offsets = [0, 0, 0], sizes = [1, 1, 32], strides = [1, 1, 1]} : vector<2x2x32xf32> to vector<1x1x32xf32>
    %6 = vector.broadcast %5 : vector<1x1x32xf32> to vector<2x2x32xf32>
    %7 = arith.mulf %4, %6 : vector<2x2x32xf32>
    %8 = arith.addf %2, %7 : vector<2x2x32xf32>
    %c1 = arith.constant 1 : index
    %c0_12 = arith.constant 0 : index
    %c0_13 = arith.constant 0 : index
    %c0_14 = arith.constant 0 : index
    %9 = vector.load %arg4[%c1, %c0_12, %c0_13, %c0_14] : memref<4x2x2x32xf32, #tpu.memory_space<vmem>>, vector<1x2x2x32xf32>
    %10 = vector.shape_cast %9 : vector<1x2x2x32xf32> to vector<2x2x32xf32>
    %11 = vector.extract_strided_slice %1 {offsets = [0, 1, 0], sizes = [1, 1, 32], strides = [1, 1, 1]} : vector<2x2x32xf32> to vector<1x1x32xf32>
    %12 = vector.broadcast %11 : vector<1x1x32xf32> to vector<2x2x32xf32>
    %13 = arith.mulf %10, %12 : vector<2x2x32xf32>
    %14 = arith.addf %8, %13 : vector<2x2x32xf32>
    %c2 = arith.constant 2 : index
    %c0_15 = arith.constant 0 : index
    %c0_16 = arith.constant 0 : index
    %c0_17 = arith.constant 0 : index
    %15 = vector.load %arg4[%c2, %c0_15, %c0_16, %c0_17] : memref<4x2x2x32xf32, #tpu.memory_space<vmem>>, vector<1x2x2x32xf32>
    %16 = vector.shape_cast %15 : vector<1x2x2x32xf32> to vector<2x2x32xf32>
    %17 = vector.extract_strided_slice %1 {offsets = [1, 0, 0], sizes = [1, 1, 32], strides = [1, 1, 1]} : vector<2x2x32xf32> to vector<1x1x32xf32>
    %18 = vector.broadcast %17 : vector<1x1x32xf32> to vector<2x2x32xf32>
    %19 = arith.mulf %16, %18 : vector<2x2x32xf32>
    %20 = arith.addf %14, %19 : vector<2x2x32xf32>
    %c3 = arith.constant 3 : index
    %c0_18 = arith.constant 0 : index
    %c0_19 = arith.constant 0 : index
    %c0_20 = arith.constant 0 : index
    %21 = vector.load %arg4[%c3, %c0_18, %c0_19, %c0_20] : memref<4x2x2x32xf32, #tpu.memory_space<vmem>>, vector<1x2x2x32xf32>
    %22 = vector.shape_cast %21 : vector<1x2x2x32xf32> to vector<2x2x32xf32>
    %23 = vector.extract_strided_slice %1 {offsets = [1, 1, 0], sizes = [1, 1, 32], strides = [1, 1, 1]} : vector<2x2x32xf32> to vector<1x1x32xf32>
    %24 = vector.broadcast %23 : vector<1x1x32xf32> to vector<2x2x32xf32>
    %25 = arith.mulf %22, %24 : vector<2x2x32xf32>
    %26 = arith.addf %20, %25 : vector<2x2x32xf32>
    %c0_21 = arith.constant 0 : index
    %c0_22 = arith.constant 0 : index
    %c0_23 = arith.constant 0 : index
    %c0_24 = arith.constant 0 : index
    %c0_25 = arith.constant 0 : index
    %c0_26 = arith.constant 0 : index
    %27 = vector.load %arg6[%c0_21, %c0_22, %c0_23, %c0_24, %c0_25, %c0_26] : memref<1x1x2x1x2x32xf32, #tpu.memory_space<vmem>>, vector<1x1x2x1x2x32xf32>
    %28 = vector.shape_cast %27 : vector<1x1x2x1x2x32xf32> to vector<2x2x32xf32>
    %29 = vector.shape_cast %26 : vector<2x2x32xf32> to vector<1x1x2x1x2x32xf32>
    tpu.vector_store %arg6[%c0_21, %c0_22, %c0_23, %c0_24, %c0_25, %c0_26], %29 {strides = array<i32>} : memref<1x1x2x1x2x32xf32, #tpu.memory_space<vmem>>, vector<1x1x2x1x2x32xf32>,
    return
  }
  func.func @transform_0(%arg0: i32, %arg1: i32, %arg2: i32) -> (i32, i32, i32, i32, i32, i32) {
    %c0_i32 = arith.constant 0 : i32
    %c0_i32_0 = arith.constant 0 : i32
    %c0_i32_1 = arith.constant 0 : i32
    %c0_i32_2 = arith.constant 0 : i32
    return %arg0, %arg1, %c0_i32, %arg2, %c0_i32_0, %c0_i32_1 : i32, i32, i32, i32, i32, i32
  }
  func.func @transform_1(%arg0: i32, %arg1: i32, %arg2: i32) -> (i32, i32, i32, i32) {
    %c0_i32 = arith.constant 0 : i32
    %c0_i32_0 = arith.constant 0 : i32
    %c0_i32_1 = arith.constant 0 : i32
    %c0_i32_2 = arith.constant 0 : i32
    %c0_i32_3 = arith.constant 0 : i32
    return %c0_i32, %c0_i32_0, %c0_i32_1, %c0_i32_2 : i32, i32, i32, i32
  }
  func.func @transform_2(%arg0: i32, %arg1: i32, %arg2: i32) -> (i32, i32, i32) {
    %c0_i32 = arith.constant 0 : i32
    %c0_i32_0 = arith.constant 0 : i32
    %c0_i32_1 = arith.constant 0 : i32
    %c0_i32_2 = arith.constant 0 : i32
    return %c0_i32, %c0_i32_0, %c0_i32_1 : i32, i32, i32
  }
  func.func @transform_3(%arg0: i32, %arg1: i32, %arg2: i32) -> (i32, i32, i32, i32, i32, i32) {
    %c0_i32 = arith.constant 0 : i32
    %c0_i32_0 = arith.constant 0 : i32
    %c0_i32_1 = arith.constant 0 : i32
    %c0_i32_2 = arith.constant 0 : i32
    return %arg0, %arg1, %c0_i32, %arg2, %c0_i32_0, %c0_i32_1 : i32, i32, i32, i32, i32, i32
  }
}

module attributes {stable_mosaic.version = 11 : i64} {
  func.func @_head_kernel(%arg0: i32, %arg1: memref<1x16x32xf32, #tpu.memory_space<vmem>>, %arg2: memref<1x32xf32, #tpu.memory_space<vmem>>, %arg3: memref<1x32xf32, #tpu.memory_space<vmem>>, %arg4: memref<32x10xbf16, #tpu.memory_space<vmem>>, %arg5: memref<1x10xf32, #tpu.memory_space<vmem>>, %arg6: memref<1x1x10xf32, #tpu.memory_space<vmem>>) attributes {dimension_semantics = [#tpu.dimension_semantics<parallel>], iteration_bounds = array<i64: 2>, scalar_prefetch = 0 : i64, scratch_operands = 0 : i64, tpu.core_type = #tpu.core_type<tc>, window_params = [{transform_indices = @transform_0, window_bounds = array<i64: 1, 16, 32>}, {pipeline_mode = #tpu.pipeline_mode<synchronous>, transform_indices = @transform_1, window_bounds = array<i64: 1, 32>}, {pipeline_mode = #tpu.pipeline_mode<synchronous>, transform_indices = @transform_2, window_bounds = array<i64: 1, 32>}, {pipeline_mode = #tpu.pipeline_mode<synchronous>, transform_indices = @transform_3, window_bounds = array<i64: 32, 10>}, {pipeline_mode = #tpu.pipeline_mode<synchronous>, transform_indices = @transform_4, window_bounds = array<i64: 1, 10>}, {transform_indices = @transform_5, window_bounds = array<i64: 1, 1, 10>}]} {
    %c0 = arith.constant 0 : index
    %c0_0 = arith.constant 0 : index
    %c0_1 = arith.constant 0 : index
    %0 = vector.load %arg1[%c0, %c0_0, %c0_1] : memref<1x16x32xf32, #tpu.memory_space<vmem>>, vector<1x16x32xf32>
    %1 = vector.shape_cast %0 : vector<1x16x32xf32> to vector<16x32xf32>
    %c0_2 = arith.constant 0 : index
    %c0_3 = arith.constant 0 : index
    %2 = vector.load %arg2[%c0_2, %c0_3] : memref<1x32xf32, #tpu.memory_space<vmem>>, vector<1x32xf32>
    %c0_4 = arith.constant 0 : index
    %c0_5 = arith.constant 0 : index
    %3 = vector.load %arg3[%c0_4, %c0_5] : memref<1x32xf32, #tpu.memory_space<vmem>>, vector<1x32xf32>
    %cst = arith.constant dense<0.000000e+00> : vector<16xf32>
    %4 = vector.multi_reduction <add>, %1, %cst [1] : vector<16x32xf32> to vector<16xf32>
    %5 = vector.shape_cast %4 : vector<16xf32> to vector<16x1xf32>
    %cst_6 = arith.constant 3.200000e+01 : f32
    %6 = vector.broadcast %cst_6 : f32 to vector<16x1xf32>
    %7 = arith.divf %5, %6 : vector<16x1xf32>
    %8 = vector.broadcast %7 : vector<16x1xf32> to vector<16x32xf32>
    %9 = arith.subf %1, %8 : vector<16x32xf32>
    %10 = arith.mulf %9, %9 : vector<16x32xf32>
    %cst_7 = arith.constant dense<0.000000e+00> : vector<16xf32>
    %11 = vector.multi_reduction <add>, %10, %cst_7 [1] : vector<16x32xf32> to vector<16xf32>
    %12 = vector.shape_cast %11 : vector<16xf32> to vector<16x1xf32>
    %cst_8 = arith.constant 3.200000e+01 : f32
    %13 = vector.broadcast %cst_8 : f32 to vector<16x1xf32>
    %14 = arith.divf %12, %13 : vector<16x1xf32>
    %15 = vector.broadcast %7 : vector<16x1xf32> to vector<16x32xf32>
    %16 = arith.subf %1, %15 : vector<16x32xf32>
    %cst_9 = arith.constant 9.99999974E-6 : f32
    %17 = vector.broadcast %cst_9 : f32 to vector<16x1xf32>
    %18 = arith.addf %14, %17 : vector<16x1xf32>
    %19 = math.rsqrt %18 : vector<16x1xf32>
    %20 = vector.broadcast %19 : vector<16x1xf32> to vector<16x32xf32>
    %21 = arith.mulf %16, %20 : vector<16x32xf32>
    %22 = vector.broadcast %2 : vector<1x32xf32> to vector<16x32xf32>
    %23 = arith.mulf %21, %22 : vector<16x32xf32>
    %24 = vector.broadcast %3 : vector<1x32xf32> to vector<16x32xf32>
    %25 = arith.addf %23, %24 : vector<16x32xf32>
    %cst_10 = arith.constant dense<0.000000e+00> : vector<32xf32>
    %26 = vector.multi_reduction <add>, %25, %cst_10 [0] : vector<16x32xf32> to vector<32xf32>
    %27 = vector.shape_cast %26 : vector<32xf32> to vector<1x32xf32>
    %cst_11 = arith.constant 1.600000e+01 : f32
    %28 = vector.broadcast %cst_11 : f32 to vector<1x32xf32>
    %29 = arith.divf %27, %28 : vector<1x32xf32>
    %30 = arith.truncf %29 : vector<1x32xf32> to vector<1x32xbf16>
    %c0_12 = arith.constant 0 : index
    %c0_13 = arith.constant 0 : index
    %31 = vector.load %arg4[%c0_12, %c0_13] : memref<32x10xbf16, #tpu.memory_space<vmem>>, vector<32x10xbf16>
    %cst_14 = arith.constant dense<0.000000e+00> : vector<1x10xf32>
    %32 = tpu.matmul %30, %31, %cst_14 {dimension_numbers = #tpu.dot_dimension_numbers<[1], [0], [0], [1], [0, 0, 1, 1], [], []>} : vector<1x32xbf16>, vector<32x10xbf16>, vector<1x10xf32> -> vector<1x10xf32>
    %c0_15 = arith.constant 0 : index
    %c0_16 = arith.constant 0 : index
    %33 = vector.load %arg5[%c0_15, %c0_16] : memref<1x10xf32, #tpu.memory_space<vmem>>, vector<1x10xf32>
    %34 = arith.addf %32, %33 : vector<1x10xf32>
    %c0_17 = arith.constant 0 : index
    %c0_18 = arith.constant 0 : index
    %c0_19 = arith.constant 0 : index
    %35 = vector.load %arg6[%c0_17, %c0_18, %c0_19] : memref<1x1x10xf32, #tpu.memory_space<vmem>>, vector<1x1x10xf32>
    %36 = vector.shape_cast %35 : vector<1x1x10xf32> to vector<1x10xf32>
    %37 = vector.shape_cast %34 : vector<1x10xf32> to vector<1x1x10xf32>
    tpu.vector_store %arg6[%c0_17, %c0_18, %c0_19], %37 {strides = array<i32>} : memref<1x1x10xf32, #tpu.memory_space<vmem>>, vector<1x1x10xf32>,
    return
  }
  func.func @transform_0(%arg0: i32) -> (i32, i32, i32) {
    %c0_i32 = arith.constant 0 : i32
    %c0_i32_0 = arith.constant 0 : i32
    %c0_i32_1 = arith.constant 0 : i32
    return %arg0, %c0_i32, %c0_i32_0 : i32, i32, i32
  }
  func.func @transform_1(%arg0: i32) -> (i32, i32) {
    %c0_i32 = arith.constant 0 : i32
    %c0_i32_0 = arith.constant 0 : i32
    %c0_i32_1 = arith.constant 0 : i32
    return %c0_i32, %c0_i32_0 : i32, i32
  }
  func.func @transform_2(%arg0: i32) -> (i32, i32) {
    %c0_i32 = arith.constant 0 : i32
    %c0_i32_0 = arith.constant 0 : i32
    %c0_i32_1 = arith.constant 0 : i32
    return %c0_i32, %c0_i32_0 : i32, i32
  }
  func.func @transform_3(%arg0: i32) -> (i32, i32) {
    %c0_i32 = arith.constant 0 : i32
    %c0_i32_0 = arith.constant 0 : i32
    %c0_i32_1 = arith.constant 0 : i32
    return %c0_i32, %c0_i32_0 : i32, i32
  }
  func.func @transform_4(%arg0: i32) -> (i32, i32) {
    %c0_i32 = arith.constant 0 : i32
    %c0_i32_0 = arith.constant 0 : i32
    %c0_i32_1 = arith.constant 0 : i32
    return %c0_i32, %c0_i32_0 : i32, i32
  }
  func.func @transform_5(%arg0: i32) -> (i32, i32, i32) {
    %c0_i32 = arith.constant 0 : i32
    %c0_i32_0 = arith.constant 0 : i32
    %c0_i32_1 = arith.constant 0 : i32
    return %arg0, %c0_i32, %c0_i32_0 : i32, i32, i32
  }
}

</mosaic_0001>

<bundles_post_ra>
// kernel: _lambda_.14
= control target key start
LH: loop header
LB: loop body
LE: loop exit
PB: predicated region body
PF: predicated region fallthrough
CT: control target
= control target key end

     0   :  { %s729_s18 = smov 0   ;;  %s731_s19 = smov 0   ;;  %s901_s0 = inlined_call_operand.vmem [shape: f32[2,4,2,4,2,16], index: 0, kind: input, shape index: {}]   ;;  %s902_s1 = inlined_call_operand.vmem [shape: f32[1,16], index: 1, kind: input, shape index: {}]   ;;  %s903_s2 = inlined_call_operand.vmem [shape: f32[1,16], index: 2, kind: input, shape index: {}]   ;;  %s904_s3 = inlined_call_operand.vmem [shape: f32[4,2,2,16], index: 3, kind: input, shape index: {}]   ;;  %s905_s4 = inlined_call_operand.vmem [shape: f32[2,2,16], index: 4, kind: input, shape index: {}]   ;;  %s906_s5 = inlined_call_operand.vmem [shape: f32[2,4,2,4,2,16], index: 5, kind: output, shape index: {}]  }
   0x1   :  { %s733_s20 = smov 0   ;;  %s735_s21 = smov 0  }
   0x2   :  { %s737_s22 = smov 0   ;;  %s739_s23 = smov 0  }
   0x3   :  { %s741_s24 = smov 0   ;;  %s743_s25 = smov 0  }
   0x4   :  { %s745_s26 = smov 0  }
   0x5 LB: > { %s27_s27 = sadd.s32 1, %s684_s23  ;;  %s30_s28 = sadd.s32 1, %s688_s24  ;;  %s696_s26 = sphi %s745_s26, %s15_s26   ;;  %s692_s25 = sphi %s743_s25, %s919_s25   ;;  %s688_s24 = sphi %s741_s24, %s918_s24   ;;  %s684_s23 = sphi %s739_s23, %s917_s23   ;;  %s680_s22 = sphi %s737_s22, %s916_s22   ;;  %s676_s21 = sphi %s735_s21, %s915_s21   ;;  %s672_s20 = sphi %s733_s20, %s914_s20   ;;  %s668_s19 = sphi %s731_s19, %s913_s19   ;;  %s664_s18 = sphi %s729_s18, %s912_s18  }
   0x6   : > { %p28_p0 = scmp.ge.s32.totalorder %s27_s27, 4  ;;  %s522_s29 = sadd.s32 4294967295, %s696_s26  }
   0x7   : > { %s34_s30 = sadd.s32 1, %s692_s25  ;;  %p52_p1 = scmp.ne.s32.totalorder %s668_s19, %s664_s18 }
   0x8   : > { %s921_s27 = smov (%p28_p0, %s27_s27), 0  ;;  %s923_s28 = smov (!%p28_p0, %s30_s28), %s688_s24 }
   0x9   : > { %p32_p2 = scmp.ge.s32.totalorder %s923_s28, 4  ;;  %p53_p3 = scmp.eq.s32.totalorder %s696_s26, 0 }
   0xa   : > { %p170_p4 = scmp.eq.s32.totalorder %s522_s29, 31  ;;  %s41_s9 = ssub.s32 %s684_s23, %s921_s27 }
   0xb   : > { %s925_s28 = smov (%p32_p2, %s923_s28), 0  ;;  %s927_s30 = smov (!%p32_p2, %s34_s30), %s692_s25 }
   0xc   : > { %p787_p5 = por %p53_p3, %p52_p1  ;;  %p36_p6 = scmp.ge.s32.totalorder %s927_s30, 2 }
   0xd   : > { %p791_p7 = por %p170_p4, %p52_p1  ;;  %s39_s8 = ssub.s32 %s688_s24, %s925_s28 }
   0xe   : > { %s929_s30 = smov (%p36_p6, %s927_s30), 0  ;;  %s45_s13 = sadd.s32 1, %s668_s19 }
   0xf   : > { %910 = sst [smem:[#allocation4_spill]] %s929_s30  ;;  %s38_s10 = ssub.s32 %s692_s25, %s929_s30 }
  0x10   : > { %s40_s11 = sor.u32 %s39_s8, %s38_s10  ;;  %p525_p9 = scmp.ge.s32.totalorder %s696_s26, 32 }
  0x11   : > { %s42_s12 = sor.u32 %s41_s9, %s40_s11 }
  0x12   : > { %p43_p8 = scmp.eq.s32.totalorder %s42_s12, 0  ;;  %204 = sbr.rel (%p525_p9) target bundleno = 32 (0x20), region = 32 }
  0x14   : > { %s805_s14 = scalar_select %p43_p8, %s668_s19, %s45_s13  }
  0x17   : > { %207 = sbr.rel (!%p787_p5) target bundleno = 32 (0x20), region = 36  ;;  %s209_s15 = sand.u32 (%p787_p5), 1, %s668_s19  }
  0x18   : > { %s527_s16 = sshll.u32 (%p787_p5), %s688_s24, 3  ;;  %s526_s17 = sshll.u32 (%p787_p5), %s209_s15, 2 }
  0x19   : > { %s213_s29 = sadd.s32 (%p787_p5), %s684_s23, %s527_s16  ;;  %s528_s8 = sshll.u32 (%p787_p5), %s692_s25, 5 }
  0x1a   : > { %s215_s9 = sadd.s32 (%p787_p5), %s528_s8, %s213_s29  ;;  %s211_s30 = scalar_lea.vmem (%p787_p5), [#allocation2], %s526_s17 }
  0x1b   : > { %s529_s10 = sshll.u32 (%p787_p5), %s215_s9, 1 }
  0x1c   : > { %s217_s13 = scalar_lea.vmem %s901_s0, %s529_s10 }
  0x1d   : > { %v234_v0 = vld [vmem:[%s217_s13] sm:$0x3]  ;;  %v236_v1 = vld [vmem:[%s217_s13 + $0x8] sm:$0x3] }
  0x1e   : > { %235 = vst [vmem:[%s211_s30] sm:$0x3] %v234_v0 }
  0x1f   : > { %237 = vst [vmem:[%s211_s30 + $0x2] sm:$0x3] %v236_v1 }
  0x20 PF: > { %p530_p10 = scmp.ge.s32.totalorder %s696_s26, 1  ;;  %p256_p11 = scmp.lt.s32.totalorder %s696_s26, 33 }
  0x22   : > { %p257_p12 = pnand %p530_p10, %p256_p11 }
  0x23   : > { %s263_s6 = sand.u32 (!%p257_p12), 1, %s664_s18  }
  0x24   : > { %260 = sbr.rel (%p257_p12) target bundleno = 336 (0x150), region = 70  ;;  %s820_s15 = sshll.u32 (!%p257_p12), %s263_s6, 2 }
  0x25   : > { %s265_s16 = scalar_lea.vmem (!%p257_p12), [#allocation2], %s820_s15  ;;  %s288_s18 = scalar_lea.vmem (!%p257_p12), [#allocation3], %s820_s15 }
  0x29   : > { %vm293_vm0 = vcmask 123904   ;;  %v289_v2 = vld [vmem:[%s265_s16] sm:$0x3]  ;;  %v290_v4 = vld [vmem:[%s265_s16 + $0x2] sm:$0x3]  ;;  %v698_v6 = vmov 16.0  }
  0x2a   : > { %v294_v3 = vsel %vm293_vm0, %v289_v2, 0.0  ;;  %v297_v5 = vsel %vm293_vm0, %v290_v4, 0.0  ;;  %620 = vrcp.f32 %v698_v6  ;;  %v618_v37 = vld [vmem:[%s902_s1] ss:$0 sm:$0xff]  ;;  %v358_v48 = vld [vmem:[%s904_s3 + $0x2] sm:$0x3] }
  0x2b   : > { %295 = vadd.xlane.f32.xlu0 %v294_v3  ;;  %v619_v40 = vld [vmem:[%s903_s2] ss:$0 sm:$0xff]  ;;  %v356_v55 = vld [vmem:[%s905_s4 + $0x2] sm:$0x3]  ;;  %v533_v58 = vld [vmem:[%s904_s3 + $0x4] sm:$0x3] }
  0x2c   : > { %v357_v47 = vld [vmem:[%s904_s3] sm:$0x3]  ;;  %v534_v59 = vld [vmem:[%s904_s3 + $0x6] sm:$0x3]  ;;  %v535_v63 = vld [vmem:[%s904_s3 + $0x8] sm:$0x3] }
  0x2d   : > { %v355_v54 = vld [vmem:[%s905_s4] sm:$0x3]  ;;  %v536_v0 = vld [vmem:[%s904_s3 + $0xa] sm:$0x3]  ;;  %v538_v6 = vld [vmem:[%s904_s3 + $0xe] sm:$0x3] }
  0x2e   : > { %s540_s30 = sshll.u32 (%p791_p7), %s676_s21, 3  ;;  %s541_s17 = sshll.u32 (%p791_p7), %s680_s22, 5 }
  0x2f   : > { %s398_s29 = sadd.s32 (%p791_p7), %s672_s20, %s540_s30 }
  0x30   : > { %v621_v7 = vpop.eup %620  ;;  %s400_s8 = sadd.s32 (%p791_p7), %s541_s17, %s398_s29 }
  0x31   : > { %v301_v8 = vmul.f32 16.0, %v621_v7  ;;  %vm305_vm1 = vweird.f32 %v621_v7  ;;  %s542_s9 = sshll.u32 (%p791_p7), %s400_s8, 1 }
  0x32   : > { %s402_s15 = scalar_lea.vmem (%p791_p7), %s906_s5, %s542_s9 }
  0x33   : > { %298 = vadd.xlane.f32.xlu0 %v297_v5  ;;  %v302_v9 = vsub.f32 1.0, %v301_v8  ;;  %v537_v5 = vld [vmem:[%s904_s3 + $0xc] sm:$0x3] }
  0x35   : > { %v303_v10 = vmul.f32 %v621_v7, %v302_v9 }
  0x37   : > { %v304_v11 = vadd.f32 %v621_v7, %v303_v10 }
  0x39   : > { %v306_v12 = vsel %vm305_vm1, %v621_v7, %v304_v11 }
  0x9e   : > { %v296_v13 = vpop.xlane.xlu0 %295 }
  0x9f   : > { %v307_v14 = vmul.f32 %v306_v12, %v296_v13 }
  0xa1   : > { %v309_v15 = vsub.f32 %v289_v2, %v307_v14 }
  0xa3   : > { %v311_v16 = vmul.f32 %v309_v15, %v309_v15 }
  0xa5   : > { %v313_v17 = vsel %vm293_vm0, %v311_v16, 0.0 }
  0xa6   : > { %314 = vadd.xlane.f32.xlu1 %v313_v17  ;;  %v299_v18 = vpop.xlane.xlu0 %298 }
  0xa7   : > { %v308_v19 = vmul.f32 %v306_v12, %v299_v18 }
  0xa9   : > { %v310_v20 = vsub.f32 %v290_v4, %v308_v19 }
  0xab   : > { %v312_v21 = vmul.f32 %v310_v20, %v310_v20 }
  0xad   : > { %v316_v22 = vsel %vm293_vm0, %v312_v21, 0.0 }
  0xae   : > { %317 = vadd.xlane.f32.xlu1 %v316_v22 }
 0x119   : > { %v315_v23 = vpop.xlane.xlu1 %314 }
 0x11a   : > { %v319_v24 = vmul.f32 %v315_v23, %v306_v12 }
 0x11c   : > { %v321_v25 = vadd.f32 1e-05, %v319_v24 }
 0x11e   : > { %622 = vrsqrt.f32 %v321_v25  ;;  %vm329_vm3 = vweird.f32 %v321_v25 }
 0x121   : > { %v318_v26 = vpop.xlane.xlu1 %317 }
 0x122   : > { %v320_v27 = vmul.f32 %v318_v26, %v306_v12 }
 0x124   : > { %v623_v28 = vpop.eup %622  ;;  %v322_v29 = vadd.f32 1e-05, %v320_v27 }
 0x125   : > { %v324_v30 = vmul.f32 %v623_v28, %v321_v25  ;;  %vm330_vm2 = vweird.f32 %v623_v28 }
 0x126   : > { %624 = vrsqrt.f32 %v322_v29  ;;  %vm331_vm4 = vmor %vm329_vm3, %vm330_vm2  ;;  %vm339_vm6 = vweird.f32 %v322_v29 }
 0x127   : > { %v325_v31 = vmul.f32 %v623_v28, %v324_v30 }
 0x129   : > { %v326_v32 = vmul.f32 0.5, %v325_v31 }
 0x12b   : > { %v327_v33 = vsub.f32 1.5, %v326_v32 }
 0x12c   : > { %v625_v34 = vpop.eup %624 }
 0x12d   : > { %v328_v35 = vmul.f32 %v623_v28, %v327_v33  ;;  %v334_v36 = vmul.f32 %v625_v34, %v322_v29  ;;  %vm340_vm5 = vweird.f32 %v625_v34 }
 0x12e   : > { %vm341_vm7 = vmor %vm339_vm6, %vm340_vm5 }
 0x12f   : > { %v332_v38 = vsel %vm331_vm4, %v623_v28, %v328_v35  ;;  %v335_v39 = vmul.f32 %v625_v34, %v334_v36 }
 0x130   : > { %v343_v41 = vmul.f32 %v332_v38, %v309_v15 }
 0x131   : > { %v336_v42 = vmul.f32 0.5, %v335_v39 }
 0x132   : > { %v348_v43 = vmul.f32 %v618_v37, %v343_v41 }
 0x133   : > { %v337_v44 = vsub.f32 1.5, %v336_v42 }
 0x134   : > { %v353_v45 = vadd.f32 %v619_v40, %v348_v43 }
 0x135   : > { %v338_v46 = vmul.f32 %v625_v34, %v337_v44 }
 0x136   : > { %v359_v49 = vperm.slane %v353_v45, 0  ;;  %v367_v56 = vperm.slane %v353_v45, 1 }
 0x137   : > { %v342_v50 = vsel %vm341_vm7, %v625_v34, %v338_v46 }
 0x138   : > { %v360_v51 = vmul.f32 %v359_v49, %v357_v47  ;;  %v361_v52 = vmul.f32 %v359_v49, %v358_v48  ;;  %v344_v53 = vmul.f32 %v342_v50, %v310_v20  ;;  %v368_v1 = vmul.f32 %v533_v58, %v367_v56 }
 0x139   : > { %v369_v2 = vmul.f32 %v534_v59, %v367_v56 }
 0x13a   : > { %v349_v57 = vmul.f32 %v618_v37, %v344_v53  ;;  %v362_v60 = vadd.f32 %v360_v51, %v355_v54  ;;  %v363_v61 = vadd.f32 %v361_v52, %v356_v55 }
 0x13c   : > { %v354_v62 = vadd.f32 %v619_v40, %v349_v57  ;;  %v370_v7 = vadd.f32 %v368_v1, %v362_v60  ;;  %v371_v8 = vadd.f32 %v369_v2, %v363_v61 }
 0x13e   : > { %v375_v3 = vperm.slane %v354_v62, 0  ;;  %v383_v4 = vperm.slane %v354_v62, 1 }
 0x140   : > { %v376_v9 = vmul.f32 %v535_v63, %v375_v3  ;;  %v377_v10 = vmul.f32 %v536_v0, %v375_v3  ;;  %v384_v13 = vmul.f32 %v537_v5, %v383_v4  ;;  %v385_v14 = vmul.f32 %v538_v6, %v383_v4 }
 0x142   : > { %v378_v11 = vadd.f32 %v376_v9, %v370_v7  ;;  %v379_v12 = vadd.f32 %v377_v10, %v371_v8 }
 0x143   : > { %396 = sbr.rel (!%p791_p7) target bundleno = 336 (0x150), region = 78 }
 0x144   : > { %v386_v15 = vadd.f32 %v384_v13, %v378_v11  ;;  %v387_v16 = vadd.f32 %v385_v14, %v379_v12 }
 0x146   : > { %388 = vst.msk [vmem:[%s288_s18] sm:$0x3] %vm293_vm0, %v386_v15 }
 0x147   : > { %389 = vst.msk [vmem:[%s288_s18 + $0x2] sm:$0x3] %vm293_vm0, %v387_v16 }
 0x14d   : > { %v419_v17 = vld [vmem:[%s288_s18] sm:$0x3] }
 0x14e   : > { %v421_v18 = vld [vmem:[%s288_s18 + $0x2] sm:$0x3]  ;;  %420 = vst [vmem:[%s402_s15] sm:$0x3] %v419_v17 }
 0x14f   : > { %422 = vst [vmem:[%s402_s15 + $0x8] sm:$0x3] %v421_v18 }
 0x150 PF: > { %s15_s26 = sadd.s32 1, %s696_s26   ;;  %s911_s7 = sld [smem:[#allocation4_spill]] }
 0x151   : > { %p12_p13 = scmp.ge.s32.totalorder %s15_s26, 34   ;;  %s912_s18 = smov %s668_s19 }
 0x152   : > { %s913_s19 = smov %s805_s14  ;;  %s914_s20 = smov %s684_s23 }
 0x153   : > { %s915_s21 = smov %s688_s24  ;;  %s916_s22 = smov %s692_s25 }
 0x154   : > { %s917_s23 = smov %s921_s27  ;;  %s918_s24 = smov %s925_s28 }
 0x155   :  { %14 = sbr.rel (!%p12_p13) target bundleno = 5 (0x5), region = 146 }
 0x156   : > { %s919_s25 = smov %s911_s7 }

// kernel: _lambda_.13
= control target key start
LH: loop header
LB: loop body
LE: loop exit
PB: predicated region body
PF: predicated region fallthrough
CT: control target
= control target key end

     0   :  { %vm73_vm0 = vcmask 392192   ;;  %vm149_vm1 = vcmask 130048   ;;  %s1160_s1 = inlined_call_operand.vmem [shape: bf16[48,16], index: 1, kind: input, shape index: {}]   ;;  %s1161_s0 = inlined_call_operand.vmem [shape: f32[128,48], index: 0, kind: input, shape index: {}]   ;;  %s1162_s2 = inlined_call_operand.vmem [shape: f32[1,16], index: 2, kind: input, shape index: {}]   ;;  %s1163_s3 = inlined_call_operand.vmem [shape: f32[1,16], index: 3, kind: input, shape index: {}]   ;;  %s1164_s4 = inlined_call_operand.vmem [shape: f32[1,16], index: 4, kind: input, shape index: {}]   ;;  %s1165_s5 = inlined_call_operand.vmem [shape: f32[128,16], index: 5, kind: output, shape index: {}]  }
   0x1   :  { %v589_v0 = vld [vmem:[%s1160_s1 + $0x10] sm:$0xff]  ;;  %v588_v1 = vld [vmem:[%s1160_s1 + $0x8] sm:$0xff]  ;;  %v587_v2 = vld [vmem:[%s1160_s1] sm:$0xff] }
   0x2   :  { %103 = vmatpush.bf16.msra.mxu0 %v589_v0  ;;  %590 = vmatpush.bf16.msra.mxu1 %v589_v0  ;;  %v21_v3 = vld [vmem:[%s1161_s0] sm:$0xff]  ;;  %v22_v4 = vld [vmem:[%s1161_s0 + $0x8] sm:$0xff]  ;;  %v23_v15 = vld [vmem:[%s1161_s0 + $0x10] sm:$0xff] }
   0x3   :  { %591 = vmatpush.bf16.msra.mxu2 %v589_v0  ;;  %592 = vmatpush.bf16.msra.mxu3 %v589_v0  ;;  %v25_v5 = vld [vmem:[%s1161_s0 + $0x20] sm:$0xff]  ;;  %v26_v6 = vld [vmem:[%s1161_s0 + $0x28] sm:$0xff]  ;;  %v37_v11 = vpack.c.bf16 %v22_v4, %v21_v3  ;;  %v24_v16 = vld [vmem:[%s1161_s0 + $0x18] sm:$0xff] }
   0x4   :  { %v29_v7 = vld [vmem:[%s1161_s0 + $0x40] sm:$0xff]  ;;  %v30_v8 = vld [vmem:[%s1161_s0 + $0x48] sm:$0xff]  ;;  %v39_v12 = vpack.c.bf16 %v26_v6, %v25_v5  ;;  %v31_v17 = vld [vmem:[%s1161_s0 + $0x50] sm:$0xff]  ;;  %v38_v23 = vpack.c.bf16 %v24_v16, %v23_v15 }
   0x5   :  { %v33_v9 = vld [vmem:[%s1161_s0 + $0x60] sm:$0xff]  ;;  %v34_v10 = vld [vmem:[%s1161_s0 + $0x68] sm:$0xff]  ;;  %v41_v13 = vpack.c.bf16 %v30_v8, %v29_v7  ;;  %v27_v18 = vld [vmem:[%s1161_s0 + $0x30] sm:$0xff] }
   0x6   :  { %104 = vmatpush.bf16.msra.mxu0 %v588_v1  ;;  %593 = vmatpush.bf16.msra.mxu1 %v588_v1  ;;  %v43_v14 = vpack.c.bf16 %v34_v10, %v33_v9  ;;  %v28_v19 = vld [vmem:[%s1161_s0 + $0x38] sm:$0xff]  ;;  %v35_v21 = vld [vmem:[%s1161_s0 + $0x70] sm:$0xff]  ;;  %v736_v27 = vld [vmem:[%s1162_s2] ss:$0 sm:$0xff] }
   0x7   :  { %594 = vmatpush.bf16.msra.mxu2 %v588_v1  ;;  %595 = vmatpush.bf16.msra.mxu3 %v588_v1  ;;  %v32_v20 = vld [vmem:[%s1161_s0 + $0x58] sm:$0xff]  ;;  %v40_v24 = vpack.c.bf16 %v28_v19, %v27_v18 }
   0x8   :  { %v36_v22 = vld [vmem:[%s1161_s0 + $0x78] sm:$0xff]  ;;  %v42_v25 = vpack.c.bf16 %v32_v20, %v31_v17 }
   0x9   :  { %v44_v26 = vpack.c.bf16 %v36_v22, %v35_v21 }
   0xa   :  { %105 = vmatpush.bf16.msra.mxu0 %v587_v2  ;;  %596 = vmatpush.bf16.msra.mxu1 %v587_v2 }
   0xb   :  { %597 = vmatpush.bf16.msra.mxu2 %v587_v2  ;;  %598 = vmatpush.bf16.msra.mxu3 %v587_v2 }
   0xd   :  { %579 = vmatmul.msk.bf16.vlgmr.msra.gmra.mxu0 %vm73_vm0, %v37_v11  ;;  %581 = vmatmul.msk.bf16.vlgmr.msra.gmra.mxu1 %vm73_vm0, %v39_v12  ;;  %v637_v12 = vmov 16.0  }
   0xe   :  { %583 = vmatmul.msk.bf16.vlgmr.msra.gmra.mxu2 %vm73_vm0, %v41_v13  ;;  %585 = vmatmul.msk.bf16.vlgmr.msra.gmra.mxu3 %vm73_vm0, %v43_v14  ;;  %603 = vrcp.f32 %v637_v12 }
  0x14   :  { %v604_v13 = vpop.eup %603 }
  0x15   :  { %v199_v14 = vmul.f32 16.0, %v604_v13  ;;  %vm203_vm2 = vweird.f32 %v604_v13 }
  0x17   :  { %v200_v15 = vsub.f32 1.0, %v199_v14 }
  0x19   :  { %v201_v16 = vmul.f32 %v604_v13, %v200_v15 }
  0x1b   :  { %v202_v17 = vadd.f32 %v604_v13, %v201_v16 }
  0x1d   :  { %580 = vmatmul.msk.bf16.gmra.mxu0 %vm73_vm0, %v38_v23  ;;  %582 = vmatmul.msk.bf16.gmra.mxu1 %vm73_vm0, %v40_v24  ;;  %v818_v18 = vsel %vm203_vm2, %v604_v13, %v202_v17 }
  0x1e   :  { %584 = vmatmul.msk.bf16.gmra.mxu2 %vm73_vm0, %v42_v25  ;;  %586 = vmatmul.msk.bf16.gmra.mxu3 %vm73_vm0, %v44_v26 }
  0x8a   :  { %v107_v28 = vpop.f32.mrf.mxu0  ;;  %v117_v29 = vpop.f32.mrf.mxu1 }
  0x8b   :  { %v739_v30 = vadd.f32 %v736_v27, %v107_v28  ;;  %v742_v31 = vadd.f32 %v736_v27, %v117_v29 }
  0x8d   :  { %v162_v32 = vsel %vm149_vm1, %v742_v31, 0.0  ;;  %v150_v33 = vsel %vm149_vm1, %v739_v30, 0.0 }
  0x8e   :  { %163 = vadd.xlane.f32.xlu2 %v162_v32  ;;  %151 = vadd.xlane.f32.xlu0 %v150_v33 }
  0x91   :  { %v127_v34 = vpop.f32.mrf.mxu2  ;;  %v137_v35 = vpop.f32.mrf.mxu3 }
  0x92   :  { %v749_v36 = vadd.f32 %v736_v27, %v127_v34  ;;  %v752_v37 = vadd.f32 %v736_v27, %v137_v35  ;;  %v109_v38 = vpop.f32.mrf.mxu0  ;;  %v119_v41 = vpop.f32.mrf.mxu1 }
  0x93   :  { %v759_v42 = vadd.f32 %v736_v27, %v109_v38  ;;  %v762_v43 = vadd.f32 %v736_v27, %v119_v41 }
  0x94   :  { %v174_v39 = vsel %vm149_vm1, %v749_v36, 0.0  ;;  %v186_v40 = vsel %vm149_vm1, %v752_v37, 0.0 }
  0x95   :  { %v165_v49 = vsel %vm149_vm1, %v762_v43, 0.0  ;;  %v153_v50 = vsel %vm149_vm1, %v759_v42, 0.0 }
  0x96   :  { %175 = vadd.xlane.f32.xlu2 %v174_v39  ;;  %187 = vadd.xlane.f32.xlu0 %v186_v40 }
  0x99   :  { %v129_v44 = vpop.f32.mrf.mxu2  ;;  %v139_v45 = vpop.f32.mrf.mxu3 }
  0x9a   :  { %v765_v46 = vadd.f32 %v736_v27, %v139_v45  ;;  %v112_v48 = vpop.f32.mrf.mxu0  ;;  %v777_v52 = vadd.f32 %v736_v27, %v129_v44  ;;  %v122_v58 = vpop.f32.mrf.mxu1 }
  0x9b   :  { %v774_v51 = vadd.f32 %v736_v27, %v112_v48  ;;  %v787_v59 = vadd.f32 %v736_v27, %v122_v58 }
  0x9c   :  { %v189_v47 = vsel %vm149_vm1, %v765_v46, 0.0  ;;  %v177_v56 = vsel %vm149_vm1, %v777_v52, 0.0 }
  0x9d   :  { %190 = vadd.xlane.f32.xlu1 %v189_v47  ;;  %v156_v54 = vsel %vm149_vm1, %v774_v51, 0.0  ;;  %v168_v63 = vsel %vm149_vm1, %v787_v59, 0.0 }
  0x9e   :  { %166 = vadd.xlane.f32.xlu2 %v165_v49  ;;  %154 = vadd.xlane.f32.xlu0 %v153_v50 }
  0xa1   :  { %v132_v53 = vpop.f32.mrf.mxu2  ;;  %v142_v55 = vpop.f32.mrf.mxu3 }
  0xa2   :  { %v784_v57 = vadd.f32 %v736_v27, %v132_v53  ;;  %v114_v2 = vpop.f32.mrf.mxu0  ;;  %v799_v3 = vadd.f32 %v736_v27, %v142_v55  ;;  %v124_v9 = vpop.f32.mrf.mxu1 }
  0xa3   :  { %v805_v5 = vadd.f32 %v736_v27, %v114_v2  ;;  %v814_v10 = vadd.f32 %v736_v27, %v124_v9 }
  0xa4   :  { %v180_v62 = vsel %vm149_vm1, %v784_v57, 0.0  ;;  %v192_v6 = vsel %vm149_vm1, %v799_v3, 0.0 }
  0xa5   :  { %157 = vadd.xlane.f32.xlu1 %v156_v54  ;;  %v159_v8 = vsel %vm149_vm1, %v805_v5, 0.0  ;;  %v171_v11 = vsel %vm149_vm1, %v814_v10, 0.0 }
  0xa6   :  { %178 = vadd.xlane.f32.xlu0 %v177_v56 }
  0xa9   :  { %v134_v60 = vpop.f32.mrf.mxu2  ;;  %v144_v1 = vpop.f32.mrf.mxu3 }
  0xaa   :  { %v790_v61 = vadd.f32 %v736_v27, %v134_v60  ;;  %v802_v4 = vadd.f32 %v736_v27, %v144_v1 }
  0xac   :  { %v183_v0 = vsel %vm149_vm1, %v790_v61, 0.0  ;;  %v195_v7 = vsel %vm149_vm1, %v802_v4, 0.0 }
  0xad   :  { %184 = vadd.xlane.f32.xlu2 %v183_v0  ;;  %181 = vadd.xlane.f32.xlu1 %v180_v62 }
  0xae   :  { %169 = vadd.xlane.f32.xlu0 %v168_v63 }
  0xb5   :  { %193 = vadd.xlane.f32.xlu2 %v192_v6  ;;  %160 = vadd.xlane.f32.xlu1 %v159_v8 }
  0xb6   :  { %196 = vadd.xlane.f32.xlu0 %v195_v7 }
  0xbd   :  { %172 = vadd.xlane.f32.xlu1 %v171_v11 }
 0x101   :  { %v164_v19 = vpop.xlane.xlu2 %163  ;;  %v152_v20 = vpop.xlane.xlu0 %151 }
 0x102   :  { %v209_v21 = vmul.f32 %v818_v18, %v164_v19  ;;  %v205_v22 = vmul.f32 %v818_v18, %v152_v20 }
 0x104   :  { %v823_v23 = vsub.f32 %v742_v31, %v209_v21  ;;  %v826_v24 = vsub.f32 %v739_v30, %v205_v22 }
 0x106   :  { %v241_v25 = vmul.f32 %v823_v23, %v823_v23  ;;  %v237_v26 = vmul.f32 %v826_v24, %v826_v24 }
 0x108   :  { %v265_v27 = vsel %vm149_vm1, %v241_v25, 0.0  ;;  %v253_v28 = vsel %vm149_vm1, %v237_v26, 0.0 }
 0x109   :  { %266 = vadd.xlane.f32.xlu2 %v265_v27  ;;  %v176_v29 = vpop.xlane.xlu2 %175  ;;  %254 = vadd.xlane.f32.xlu1 %v253_v28  ;;  %v188_v32 = vpop.xlane.xlu0 %187 }
 0x10a   :  { %v213_v31 = vmul.f32 %v818_v18, %v176_v29  ;;  %v217_v33 = vmul.f32 %v818_v18, %v188_v32 }
 0x10c   :  { %v837_v30 = vsub.f32 %v749_v36, %v213_v31  ;;  %v840_v34 = vsub.f32 %v752_v37, %v217_v33 }
 0x10e   :  { %v245_v35 = vmul.f32 %v837_v30, %v837_v30  ;;  %v249_v38 = vmul.f32 %v840_v34, %v840_v34 }
 0x110   :  { %v846_v39 = vpop.xlane.xlu1 %190  ;;  %v277_v40 = vsel %vm149_vm1, %v245_v35, 0.0  ;;  %v289_v41 = vsel %vm149_vm1, %v249_v38, 0.0 }
 0x111   :  { %v167_v44 = vpop.xlane.xlu2 %166  ;;  %278 = vadd.xlane.f32.xlu0 %v277_v40  ;;  %290 = vadd.xlane.f32.xlu1 %v289_v41  ;;  %v155_v36 = vpop.xlane.xlu0 %154 }
 0x112   :  { %v210_v45 = vmul.f32 %v818_v18, %v167_v44  ;;  %v206_v37 = vmul.f32 %v818_v18, %v155_v36 }
 0x114   :  { %v853_v47 = vsub.f32 %v762_v43, %v210_v45  ;;  %v856_v48 = vsub.f32 %v759_v42, %v206_v37 }
 0x116   :  { %v242_v49 = vmul.f32 %v853_v47, %v853_v47  ;;  %v238_v50 = vmul.f32 %v856_v48, %v856_v48 }
 0x118   :  { %v158_v53 = vpop.xlane.xlu1 %157  ;;  %v268_v54 = vsel %vm149_vm1, %v242_v49, 0.0  ;;  %v256_v55 = vsel %vm149_vm1, %v238_v50, 0.0 }
 0x119   :  { %v207_v56 = vmul.f32 %v818_v18, %v158_v53  ;;  %269 = vadd.xlane.f32.xlu0 %v268_v54  ;;  %257 = vadd.xlane.f32.xlu2 %v256_v55  ;;  %v179_v43 = vpop.xlane.xlu0 %178 }
 0x11a   :  { %v214_v58 = vmul.f32 %v818_v18, %v179_v43 }
 0x11b   :  { %v867_v42 = vsub.f32 %v774_v51, %v207_v56 }
 0x11c   :  { %v870_v60 = vsub.f32 %v777_v52, %v214_v58 }
 0x11d   :  { %v239_v62 = vmul.f32 %v867_v42, %v867_v42 }
 0x11e   :  { %v246_v63 = vmul.f32 %v870_v60, %v870_v60 }
 0x11f   :  { %v259_v2 = vsel %vm149_vm1, %v239_v62, 0.0 }
 0x120   :  { %v185_v0 = vpop.xlane.xlu2 %184  ;;  %v182_v1 = vpop.xlane.xlu1 %181  ;;  %v280_v6 = vsel %vm149_vm1, %v246_v63, 0.0 }
 0x121   :  { %v216_v7 = vmul.f32 %v818_v18, %v185_v0  ;;  %v215_v51 = vmul.f32 %v818_v18, %v182_v1  ;;  %260 = vadd.xlane.f32.xlu0 %v259_v2  ;;  %281 = vadd.xlane.f32.xlu1 %v280_v6  ;;  %v170_v52 = vpop.xlane.xlu0 %169 }
 0x122   :  { %v211_v8 = vmul.f32 %v818_v18, %v170_v52 }
 0x123   :  { %v882_v9 = vsub.f32 %v790_v61, %v216_v7  ;;  %v885_v11 = vsub.f32 %v784_v57, %v215_v51 }
 0x124   :  { %v888_v12 = vsub.f32 %v787_v59, %v211_v8 }
 0x125   :  { %v247_v13 = vmul.f32 %v885_v11, %v885_v11  ;;  %v248_v14 = vmul.f32 %v882_v9, %v882_v9 }
 0x126   :  { %v243_v15 = vmul.f32 %v888_v12, %v888_v12 }
 0x127   :  { %v283_v16 = vsel %vm149_vm1, %v247_v13, 0.0  ;;  %v286_v57 = vsel %vm149_vm1, %v248_v14, 0.0 }
 0x128   :  { %v194_v17 = vpop.xlane.xlu2 %193  ;;  %v161_v61 = vpop.xlane.xlu1 %160  ;;  %284 = vadd.xlane.f32.xlu2 %v283_v16  ;;  %v271_v19 = vsel %vm149_vm1, %v243_v15, 0.0 }
 0x129   :  { %v219_v59 = vmul.f32 %v818_v18, %v194_v17  ;;  %v208_v20 = vmul.f32 %v818_v18, %v161_v61  ;;  %287 = vadd.xlane.f32.xlu0 %v286_v57  ;;  %272 = vadd.xlane.f32.xlu1 %v271_v19  ;;  %v197_v21 = vpop.xlane.xlu0 %196 }
 0x12a   :  { %v220_v26 = vmul.f32 %v818_v18, %v197_v21  ;;  %v955_v21 = vld [vmem:[%s1163_s3] ss:$0 sm:$0xff] }
 0x12b   :  { %v902_v22 = vsub.f32 %v799_v3, %v219_v59  ;;  %v905_v25 = vsub.f32 %v805_v5, %v208_v20  ;;  %v218_v5 = vmul.f32 %v818_v18, %v846_v39 }
 0x12c   :  { %v913_v29 = vsub.f32 %v802_v4, %v220_v26 }
 0x12d   :  { %v251_v27 = vmul.f32 %v902_v22, %v902_v22  ;;  %v240_v28 = vmul.f32 %v905_v25, %v905_v25  ;;  %v928_v40 = vsub.f32 %v765_v46, %v218_v5 }
 0x12e   :  { %v252_v38 = vmul.f32 %v913_v29, %v913_v29 }
 0x12f   :  { %v295_v31 = vsel %vm149_vm1, %v251_v27, 0.0  ;;  %v262_v3 = vsel %vm149_vm1, %v240_v28, 0.0  ;;  %v250_v39 = vmul.f32 %v928_v40, %v928_v40 }
 0x130   :  { %v173_v32 = vpop.xlane.xlu1 %172  ;;  %v298_v44 = vsel %vm149_vm1, %v252_v38, 0.0 }
 0x131   :  { %v212_v33 = vmul.f32 %v818_v18, %v173_v32  ;;  %296 = vadd.xlane.f32.xlu0 %v295_v31  ;;  %263 = vadd.xlane.f32.xlu1 %v262_v3  ;;  %v963_v31 = vld [vmem:[%s1164_s4] ss:$0 sm:$0xff] }
 0x133   :  { %v921_v35 = vsub.f32 %v814_v10, %v212_v33  ;;  %v292_v10 = vsel %vm149_vm1, %v250_v39, 0.0 }
 0x135   :  { %v244_v4 = vmul.f32 %v921_v35, %v921_v35 }
 0x137   :  { %v274_v41 = vsel %vm149_vm1, %v244_v4, 0.0 }
 0x138   :  { %275 = vadd.xlane.f32.xlu2 %v274_v41 }
 0x139   :  { %299 = vadd.xlane.f32.xlu1 %v298_v44 }
 0x140   :  { %293 = vadd.xlane.f32.xlu2 %v292_v10 }
 0x17c   :  { %v267_v36 = vpop.xlane.xlu2 %266  ;;  %v255_v45 = vpop.xlane.xlu1 %254 }
 0x17d   :  { %v305_v37 = vmul.f32 %v267_v36, %v818_v18  ;;  %v301_v49 = vmul.f32 %v255_v45, %v818_v18 }
 0x17f   :  { %v321_v46 = vadd.f32 1e-05, %v305_v37  ;;  %v317_v50 = vadd.f32 1e-05, %v301_v49 }
 0x181   :  { %605 = vrsqrt.f32 %v321_v46  ;;  %vm379_vm5 = vweird.f32 %v321_v46  ;;  %vm339_vm7 = vweird.f32 %v317_v50 }
 0x182   :  { %607 = vrsqrt.f32 %v317_v50 }
 0x184   :  { %v291_v53 = vpop.xlane.xlu1 %290  ;;  %v279_v54 = vpop.xlane.xlu0 %278 }
 0x185   :  { %v313_v55 = vmul.f32 %v291_v53, %v818_v18  ;;  %v309_v56 = vmul.f32 %v279_v54, %v818_v18 }
 0x187   :  { %v606_v43 = vpop.eup %605  ;;  %v939_v58 = vadd.f32 1e-05, %v313_v55  ;;  %v941_v62 = vadd.f32 1e-05, %v309_v56 }
 0x188   :  { %v608_v63 = vpop.eup %607  ;;  %v374_v0 = vmul.f32 %v606_v43, %v321_v46  ;;  %vm380_vm3 = vweird.f32 %v606_v43 }
 0x189   :  { %v334_v1 = vmul.f32 %v608_v63, %v317_v50  ;;  %609 = vrsqrt.f32 %v939_v58  ;;  %vm340_vm4 = vweird.f32 %v608_v63  ;;  %vm381_vm6 = vmor %vm379_vm5, %vm380_vm3  ;;  %vm459_vm11 = vweird.f32 %v939_v58 }
 0x18a   :  { %v375_v2 = vmul.f32 %v606_v43, %v374_v0  ;;  %611 = vrsqrt.f32 %v941_v62  ;;  %vm341_vm8 = vmor %vm339_vm7, %vm340_vm4  ;;  %vm419_vm13 = vweird.f32 %v941_v62 }
 0x18b   :  { %v335_v6 = vmul.f32 %v608_v63, %v334_v1 }
 0x18c   :  { %v376_v7 = vmul.f32 0.5, %v375_v2  ;;  %v258_v51 = vpop.xlane.xlu2 %257  ;;  %v270_v52 = vpop.xlane.xlu0 %269 }
 0x18d   :  { %v336_v8 = vmul.f32 0.5, %v335_v6  ;;  %v302_v13 = vmul.f32 %v258_v51, %v818_v18  ;;  %v306_v14 = vmul.f32 %v270_v52, %v818_v18 }
 0x18e   :  { %v377_v15 = vsub.f32 1.5, %v376_v7 }
 0x18f   :  { %v610_v16 = vpop.eup %609  ;;  %v337_v17 = vsub.f32 1.5, %v336_v8  ;;  %v947_v61 = vadd.f32 1e-05, %v302_v13  ;;  %v949_v57 = vadd.f32 1e-05, %v306_v14 }
 0x190   :  { %v612_v19 = vpop.eup %611  ;;  %v378_v59 = vmul.f32 %v606_v43, %v377_v15  ;;  %v454_v20 = vmul.f32 %v610_v16, %v939_v58  ;;  %vm460_vm9 = vweird.f32 %v610_v16 }
 0x191   :  { %v338_v26 = vmul.f32 %v608_v63, %v337_v17  ;;  %v414_v27 = vmul.f32 %v612_v19, %v941_v62  ;;  %613 = vrsqrt.f32 %v947_v61  ;;  %vm420_vm10 = vweird.f32 %v612_v19  ;;  %vm461_vm12 = vmor %vm459_vm11, %vm460_vm9 }
 0x192   :  { %v382_v28 = vsel %vm381_vm6, %v606_v43, %v378_v59  ;;  %v455_v32 = vmul.f32 %v610_v16, %v454_v20  ;;  %615 = vrsqrt.f32 %v949_v57  ;;  %vm421_vm14 = vmor %vm419_vm13, %vm420_vm10  ;;  %vm349_vm15 = vweird.f32 %v947_v61 }
 0x193   :  { %v497_v3 = vmul.f32 %v382_v28, %v823_v23  ;;  %v342_v33 = vsel %vm341_vm8, %v608_v63, %v338_v26  ;;  %v415_v5 = vmul.f32 %v612_v19, %v414_v27  ;;  %vm389_vm4 = vweird.f32 %v949_v57 }
 0x194   :  { %v493_v38 = vmul.f32 %v342_v33, %v826_v24  ;;  %v456_v4 = vmul.f32 0.5, %v455_v32  ;;  %v282_v41 = vpop.xlane.xlu1 %281  ;;  %v261_v44 = vpop.xlane.xlu0 %260 }
 0x195   :  { %v516_v39 = vmul.f32 %v955_v21, %v497_v3  ;;  %v416_v10 = vmul.f32 0.5, %v415_v5  ;;  %v310_v36 = vmul.f32 %v282_v41, %v818_v18  ;;  %v303_v45 = vmul.f32 %v261_v44, %v818_v18 }
 0x196   :  { %v512_v37 = vmul.f32 %v955_v21, %v493_v38  ;;  %v457_v49 = vsub.f32 1.5, %v456_v4 }
 0x197   :  { %v614_v23 = vpop.eup %613  ;;  %v535_v46 = vadd.f32 %v963_v31, %v516_v39  ;;  %v417_v50 = vsub.f32 1.5, %v416_v10  ;;  %v972_v24 = vadd.f32 1e-05, %v310_v36  ;;  %v974_v53 = vadd.f32 1e-05, %v303_v45 }
 0x198   :  { %v616_v54 = vpop.eup %615  ;;  %v531_v55 = vadd.f32 %v963_v31, %v512_v37  ;;  %v458_v56 = vmul.f32 %v610_v16, %v457_v49  ;;  %v344_v43 = vmul.f32 %v614_v23, %v947_v61  ;;  %vm350_vm0 = vweird.f32 %v614_v23 }
 0x199   :  { %551 = vst.msk [vmem:[%s1165_s5 + $0x20] sm:$0xff] %vm149_vm1, %v535_v46  ;;  %v418_v63 = vmul.f32 %v612_v19, %v417_v50  ;;  %v384_v0 = vmul.f32 %v616_v54, %v949_v57  ;;  %617 = vrsqrt.f32 %v972_v24  ;;  %vm390_vm2 = vweird.f32 %v616_v54  ;;  %vm351_vm3 = vmor %vm349_vm15, %vm350_vm0 }
 0x19a   :  { %547 = vst.msk [vmem:[%s1165_s5] sm:$0xff] %vm149_vm1, %v531_v55  ;;  %v462_v58 = vsel %vm461_vm12, %v610_v16, %v458_v56  ;;  %v345_v1 = vmul.f32 %v614_v23, %v344_v43  ;;  %619 = vrsqrt.f32 %v974_v53  ;;  %vm391_vm5 = vmor %vm389_vm4, %vm390_vm2  ;;  %vm429_vm8 = vweird.f32 %v972_v24 }
 0x19b   :  { %v505_v2 = vmul.f32 %v462_v58, %v840_v34  ;;  %v422_v6 = vsel %vm421_vm14, %v612_v19, %v418_v63  ;;  %v385_v7 = vmul.f32 %v616_v54, %v384_v0  ;;  %v285_v62 = vpop.xlane.xlu2 %284  ;;  %vm359_vm10 = vweird.f32 %v974_v53 }
 0x19c   :  { %v501_v51 = vmul.f32 %v422_v6, %v837_v30  ;;  %v346_v52 = vmul.f32 0.5, %v345_v1  ;;  %v311_v8 = vmul.f32 %v285_v62, %v818_v18  ;;  %v273_v13 = vpop.xlane.xlu1 %272  ;;  %v288_v14 = vpop.xlane.xlu0 %287 }
 0x19d   :  { %v524_v15 = vmul.f32 %v955_v21, %v505_v2  ;;  %v386_v16 = vmul.f32 0.5, %v385_v7  ;;  %v307_v17 = vmul.f32 %v273_v13, %v818_v18  ;;  %v312_v59 = vmul.f32 %v288_v14, %v818_v18 }
 0x19e   :  { %v520_v34 = vmul.f32 %v955_v21, %v501_v51  ;;  %v347_v19 = vsub.f32 1.5, %v346_v52  ;;  %v1000_v20 = vadd.f32 1e-05, %v311_v8 }
 0x19f   :  { %v618_v30 = vpop.eup %617  ;;  %v543_v26 = vadd.f32 %v963_v31, %v524_v15  ;;  %v387_v27 = vsub.f32 1.5, %v386_v16  ;;  %v1003_v28 = vadd.f32 1e-05, %v307_v17  ;;  %v1007_v38 = vadd.f32 1e-05, %v312_v59 }
 0x1a0   :  { %v620_v32 = vpop.eup %619  ;;  %v539_v3 = vadd.f32 %v963_v31, %v520_v34  ;;  %v348_v33 = vmul.f32 %v614_v23, %v347_v19  ;;  %v424_v5 = vmul.f32 %v618_v30, %v972_v24  ;;  %621 = vrsqrt.f32 %v1000_v20 }
 0x1a1   :  { %559 = vst.msk [vmem:[%s1165_s5 + $0x60] sm:$0xff] %vm149_vm1, %v543_v26  ;;  %v388_v4 = vmul.f32 %v616_v54, %v387_v27  ;;  %v354_v41 = vmul.f32 %v620_v32, %v974_v53  ;;  %623 = vrsqrt.f32 %v1003_v28  ;;  %vm430_vm6 = vweird.f32 %v618_v30 }
 0x1a2   :  { %555 = vst.msk [vmem:[%s1165_s5 + $0x40] sm:$0xff] %vm149_vm1, %v539_v3  ;;  %v352_v44 = vsel %vm351_vm3, %v614_v23, %v348_v33  ;;  %v425_v39 = vmul.f32 %v618_v30, %v424_v5  ;;  %625 = vrsqrt.f32 %v1007_v38  ;;  %vm360_vm7 = vweird.f32 %v620_v32  ;;  %vm431_vm9 = vmor %vm429_vm8, %vm430_vm6 }
 0x1a3   :  { %v494_v61 = vmul.f32 %v352_v44, %v856_v48  ;;  %v392_v10 = vsel %vm391_vm5, %v616_v54, %v388_v4  ;;  %v355_v36 = vmul.f32 %v620_v32, %v354_v41  ;;  %vm361_vm11 = vmor %vm359_vm10, %vm360_vm7  ;;  %vm439_vm12 = vweird.f32 %v1000_v20 }
 0x1a4   :  { %v498_v57 = vmul.f32 %v392_v10, %v853_v47  ;;  %v426_v45 = vmul.f32 0.5, %v425_v39  ;;  %v264_v37 = vpop.xlane.xlu1 %263  ;;  %v297_v49 = vpop.xlane.xlu0 %296  ;;  %vm399_vm13 = vweird.f32 %v1003_v28  ;;  %vm449_vm4 = vweird.f32 %v1007_v38 }
 0x1a5   :  { %v513_v46 = vmul.f32 %v955_v21, %v494_v61  ;;  %v356_v50 = vmul.f32 0.5, %v355_v36  ;;  %v304_v23 = vmul.f32 %v264_v37, %v818_v18  ;;  %v315_v55 = vmul.f32 %v297_v49, %v818_v18 }
 0x1a6   :  { %v517_v56 = vmul.f32 %v955_v21, %v498_v57  ;;  %v427_v43 = vsub.f32 1.5, %v426_v45  ;;  %v1031_v48 = vpop.eup %621 }
 0x1a7   :  { %v532_v47 = vadd.f32 %v963_v31, %v513_v46  ;;  %v357_v54 = vsub.f32 1.5, %v356_v50  ;;  %v1034_v63 = vadd.f32 1e-05, %v304_v23  ;;  %v1036_v0 = vadd.f32 1e-05, %v315_v55  ;;  %v1038_v58 = vpop.eup %623 }
 0x1a8   :  { %v536_v1 = vadd.f32 %v963_v31, %v517_v56  ;;  %v428_v2 = vmul.f32 %v618_v30, %v427_v43  ;;  %v434_v6 = vmul.f32 %v1031_v48, %v1000_v20  ;;  %v394_v62 = vmul.f32 %v1038_v58, %v1003_v28  ;;  %v626_v51 = vpop.eup %625 }
 0x1a9   :  { %548 = vst.msk [vmem:[%s1165_s5 + $0x8] sm:$0xff] %vm149_vm1, %v532_v47  ;;  %v358_v7 = vmul.f32 %v620_v32, %v357_v54  ;;  %627 = vrsqrt.f32 %v1034_v63  ;;  %v444_v14 = vmul.f32 %v626_v51, %v1007_v38  ;;  %vm440_vm14 = vweird.f32 %v1031_v48 }
 0x1aa   :  { %552 = vst.msk [vmem:[%s1165_s5 + $0x28] sm:$0xff] %vm149_vm1, %v536_v1  ;;  %v432_v24 = vsel %vm431_vm9, %v618_v30, %v428_v2  ;;  %v435_v52 = vmul.f32 %v1031_v48, %v434_v6  ;;  %629 = vrsqrt.f32 %v1036_v0  ;;  %v395_v13 = vmul.f32 %v1038_v58, %v394_v62  ;;  %vm441_vm0 = vmor %vm439_vm12, %vm440_vm14 }
 0x1ab   :  { %v502_v53 = vmul.f32 %v432_v24, %v870_v60  ;;  %v362_v8 = vsel %vm361_vm11, %v620_v32, %v358_v7  ;;  %v276_v15 = vpop.xlane.xlu2 %275  ;;  %v445_v19 = vmul.f32 %v626_v51, %v444_v14  ;;  %vm400_vm15 = vweird.f32 %v1038_v58 }
 0x1ac   :  { %v495_v16 = vmul.f32 %v362_v8, %v867_v42  ;;  %v436_v17 = vmul.f32 0.5, %v435_v52  ;;  %v396_v34 = vmul.f32 0.5, %v395_v13  ;;  %v308_v30 = vmul.f32 %v276_v15, %v818_v18  ;;  %v300_v60 = vpop.xlane.xlu1 %299  ;;  %vm401_vm3 = vmor %vm399_vm13, %vm400_vm15 }
 0x1ad   :  { %v521_v59 = vmul.f32 %v955_v21, %v502_v53  ;;  %v446_v33 = vmul.f32 0.5, %v445_v19  ;;  %v316_v61 = vmul.f32 %v300_v60, %v818_v18  ;;  %vm450_vm2 = vweird.f32 %v626_v51 }
 0x1ae   :  { %v514_v26 = vmul.f32 %v955_v21, %v495_v16  ;;  %v437_v27 = vsub.f32 1.5, %v436_v17  ;;  %v397_v3 = vsub.f32 1.5, %v396_v34  ;;  %v1071_v5 = vadd.f32 1e-05, %v308_v30  ;;  %vm451_vm5 = vmor %vm449_vm4, %vm450_vm2 }
 0x1af   :  { %v628_v42 = vpop.eup %627  ;;  %v540_v32 = vadd.f32 %v963_v31, %v521_v59  ;;  %v447_v36 = vsub.f32 1.5, %v446_v33  ;;  %v332_v43 = vadd.f32 1e-05, %v316_v61  ;;  %vm369_vm8 = vweird.f32 %v1034_v63 }
 0x1b0   :  { %v630_v4 = vpop.eup %629  ;;  %v533_v41 = vadd.f32 %v963_v31, %v514_v26  ;;  %v438_v44 = vmul.f32 %v1031_v48, %v437_v27  ;;  %v364_v39 = vmul.f32 %v628_v42, %v1034_v63  ;;  %v398_v10 = vmul.f32 %v1038_v58, %v397_v3 }
 0x1b1   :  { %556 = vst.msk [vmem:[%s1165_s5 + $0x48] sm:$0xff] %vm149_vm1, %v540_v32  ;;  %v474_v57 = vmul.f32 %v630_v4, %v1036_v0  ;;  %631 = vrsqrt.f32 %v1071_v5  ;;  %v448_v46 = vmul.f32 %v626_v51, %v447_v36  ;;  %vm370_vm6 = vweird.f32 %v628_v42 }
 0x1b2   :  { %549 = vst.msk [vmem:[%s1165_s5 + $0x10] sm:$0xff] %vm149_vm1, %v533_v41  ;;  %v442_v45 = vsel %vm441_vm0, %v1031_v48, %v438_v44  ;;  %v365_v20 = vmul.f32 %v628_v42, %v364_v39  ;;  %v402_v49 = vsel %vm401_vm3, %v1038_v58, %v398_v10  ;;  %633 = vrsqrt.f32 %v332_v43  ;;  %vm371_vm9 = vmor %vm369_vm8, %vm370_vm6 }
 0x1b3   :  { %v503_v37 = vmul.f32 %v442_v45, %v885_v11  ;;  %v475_v50 = vmul.f32 %v630_v4, %v474_v57  ;;  %v294_v23 = vpop.xlane.xlu2 %293  ;;  %v499_v55 = vmul.f32 %v402_v49, %v888_v12  ;;  %v452_v38 = vsel %vm451_vm5, %v626_v51, %v448_v46 }
 0x1b4   :  { %v366_v56 = vmul.f32 0.5, %v365_v20  ;;  %v314_v28 = vmul.f32 %v294_v23, %v818_v18  ;;  %v504_v11 = vmul.f32 %v452_v38, %v882_v9  ;;  %vm480_vm7 = vweird.f32 %v630_v4 }
 0x1b5   :  { %v522_v48 = vmul.f32 %v955_v21, %v503_v37  ;;  %v476_v47 = vmul.f32 0.5, %v475_v50  ;;  %v518_v54 = vmul.f32 %v955_v21, %v499_v55  ;;  %vm479_vm10 = vweird.f32 %v1036_v0 }
 0x1b6   :  { %v367_v58 = vsub.f32 1.5, %v366_v56  ;;  %v330_v12 = vadd.f32 1e-05, %v314_v28  ;;  %v523_v18 = vmul.f32 %v955_v21, %v504_v11  ;;  %vm481_vm11 = vmor %vm479_vm10, %vm480_vm7  ;;  %vm409_vm13 = vweird.f32 %v1071_v5 }
 0x1b7   :  { %v541_v1 = vadd.f32 %v963_v31, %v522_v48  ;;  %v477_v2 = vsub.f32 1.5, %v476_v47  ;;  %v632_v6 = vpop.eup %631  ;;  %v537_v7 = vadd.f32 %v963_v31, %v518_v54  ;;  %vm489_vm0 = vweird.f32 %v332_v43 }
 0x1b8   :  { %v368_v62 = vmul.f32 %v628_v42, %v367_v58  ;;  %v404_v51 = vmul.f32 %v632_v6, %v1071_v5  ;;  %635 = vrsqrt.f32 %v330_v12  ;;  %v542_v63 = vadd.f32 %v963_v31, %v523_v18  ;;  %v634_v13 = vpop.eup %633 }
 0x1b9   :  { %557 = vst.msk [vmem:[%s1165_s5 + $0x50] sm:$0xff] %vm149_vm1, %v541_v1  ;;  %v478_v9 = vmul.f32 %v630_v4, %v477_v2  ;;  %v484_v16 = vmul.f32 %v634_v13, %v332_v43  ;;  %vm410_vm12 = vweird.f32 %v632_v6  ;;  %vm490_vm15 = vweird.f32 %v634_v13 }
 0x1ba   :  { %553 = vst.msk [vmem:[%s1165_s5 + $0x30] sm:$0xff] %vm149_vm1, %v537_v7  ;;  %v372_v24 = vsel %vm371_vm9, %v628_v42, %v368_v62  ;;  %v405_v8 = vmul.f32 %v632_v6, %v404_v51  ;;  %vm411_vm14 = vmor %vm409_vm13, %vm410_vm12  ;;  %vm469_vm4 = vweird.f32 %v330_v12 }
 0x1bb   :  { %v496_v52 = vmul.f32 %v372_v24, %v905_v25  ;;  %v482_v53 = vsel %vm481_vm11, %v630_v4, %v478_v9  ;;  %558 = vst.msk [vmem:[%s1165_s5 + $0x58] sm:$0xff] %vm149_vm1, %v542_v63  ;;  %v485_v19 = vmul.f32 %v634_v13, %v484_v16  ;;  %vm491_vm2 = vmor %vm489_vm0, %vm490_vm15 }
 0x1bc   :  { %v507_v0 = vmul.f32 %v482_v53, %v902_v22  ;;  %v406_v15 = vmul.f32 0.5, %v405_v8 }
 0x1bd   :  { %v515_v14 = vmul.f32 %v955_v21, %v496_v52  ;;  %v486_v26 = vmul.f32 0.5, %v485_v19 }
 0x1be   :  { %v526_v17 = vmul.f32 %v955_v21, %v507_v0  ;;  %v636_v59 = vpop.eup %635  ;;  %v407_v25 = vsub.f32 1.5, %v406_v15 }
 0x1bf   :  { %v534_v34 = vadd.f32 %v963_v31, %v515_v14  ;;  %v464_v60 = vmul.f32 %v636_v59, %v330_v12  ;;  %v487_v32 = vsub.f32 1.5, %v486_v26  ;;  %vm470_vm3 = vweird.f32 %v636_v59 }
 0x1c0   :  { %v545_v30 = vadd.f32 %v963_v31, %v526_v17  ;;  %v408_v22 = vmul.f32 %v632_v6, %v407_v25  ;;  %vm471_vm5 = vmor %vm469_vm4, %vm470_vm3 }
 0x1c1   :  { %550 = vst.msk [vmem:[%s1165_s5 + $0x18] sm:$0xff] %vm149_vm1, %v534_v34  ;;  %v465_v27 = vmul.f32 %v636_v59, %v464_v60  ;;  %v488_v4 = vmul.f32 %v634_v13, %v487_v32 }
 0x1c2   :  { %561 = vst.msk [vmem:[%s1165_s5 + $0x70] sm:$0xff] %vm149_vm1, %v545_v30  ;;  %v412_v42 = vsel %vm411_vm14, %v632_v6, %v408_v22 }
 0x1c3   :  { %v500_v3 = vmul.f32 %v412_v42, %v921_v35  ;;  %v466_v33 = vmul.f32 0.5, %v465_v27  ;;  %v492_v44 = vsel %vm491_vm2, %v634_v13, %v488_v4 }
 0x1c4   :  { %v508_v61 = vmul.f32 %v492_v44, %v913_v29 }
 0x1c5   :  { %v519_v41 = vmul.f32 %v955_v21, %v500_v3  ;;  %v467_v5 = vsub.f32 1.5, %v466_v33 }
 0x1c6   :  { %v527_v35 = vmul.f32 %v955_v21, %v508_v61 }
 0x1c7   :  { %v538_v39 = vadd.f32 %v963_v31, %v519_v41  ;;  %v468_v10 = vmul.f32 %v636_v59, %v467_v5 }
 0x1c8   :  { %v546_v45 = vadd.f32 %v963_v31, %v527_v35 }
 0x1c9   :  { %554 = vst.msk [vmem:[%s1165_s5 + $0x38] sm:$0xff] %vm149_vm1, %v538_v39  ;;  %v472_v36 = vsel %vm471_vm5, %v636_v59, %v468_v10 }
 0x1ca   :  { %v506_v57 = vmul.f32 %v472_v36, %v928_v40  ;;  %562 = vst.msk [vmem:[%s1165_s5 + $0x78] sm:$0xff] %vm149_vm1, %v546_v45 }
 0x1cc   :  { %v525_v20 = vmul.f32 %v955_v21, %v506_v57 }
 0x1ce   :  { %v544_v29 = vadd.f32 %v963_v31, %v525_v20 }
 0x1d0   :  { %560 = vst.msk [vmem:[%s1165_s5 + $0x68] sm:$0xff] %vm149_vm1, %v544_v29 }

// kernel: _lambda_.15
= control target key start
LH: loop header
LB: loop body
LE: loop exit
PB: predicated region body
PF: predicated region fallthrough
CT: control target
= control target key end

     0   :  { %vm80_vm0 = vcmask 130048   ;;  %v1563_v28 = vmov 16.0   ;;  %s2798_s0 = inlined_call_operand.vmem [shape: f32[128,16], index: 0, kind: input, shape index: {}]   ;;  %s2799_s1 = inlined_call_operand.vmem [shape: f32[128,16], index: 1, kind: input, shape index: {}]   ;;  %s2800_s2 = inlined_call_operand.vmem [shape: f32[1,16], index: 2, kind: input, shape index: {}]   ;;  %s2801_s3 = inlined_call_operand.vmem [shape: f32[1,16], index: 3, kind: input, shape index: {}]   ;;  %s2802_s4 = inlined_call_operand.vmem [shape: bf16[16,64], index: 4, kind: input, shape index: {}]   ;;  %s2803_s5 = inlined_call_operand.vmem [shape: f32[1,64], index: 5, kind: input, shape index: {}]   ;;  %s2804_s6 = inlined_call_operand.vmem [shape: bf16[64,16], index: 6, kind: input, shape index: {}]   ;;  %s2805_s7 = inlined_call_operand.vmem [shape: f32[1,16], index: 7, kind: input, shape index: {}]   ;;  %s2806_s8 = inlined_call_operand.vmem [shape: f32[128,16], index: 8, kind: output, shape index: {}]  }
   0x1   :  { %v32_v0 = vld [vmem:[%s2798_s0 + $0x10] sm:$0xff]  ;;  %v30_v2 = vld [vmem:[%s2798_s0] sm:$0xff]  ;;  %v33_v6 = vld [vmem:[%s2798_s0 + $0x18] sm:$0xff]  ;;  %1496 = vrcp.f32 %v1563_v28 }
   0x2   :  { %v48_v1 = vld [vmem:[%s2799_s1 + $0x10] sm:$0xff]  ;;  %v46_v4 = vld [vmem:[%s2799_s1] sm:$0xff]  ;;  %v49_v7 = vld [vmem:[%s2799_s1 + $0x18] sm:$0xff] }
   0x3   :  { %v1618_v3 = vadd.f32 %v48_v1, %v32_v0  ;;  %v1623_v5 = vadd.f32 %v46_v4, %v30_v2  ;;  %v34_v8 = vld [vmem:[%s2798_s0 + $0x20] sm:$0xff]  ;;  %v31_v10 = vld [vmem:[%s2798_s0 + $0x8] sm:$0xff]  ;;  %v1649_v15 = vadd.f32 %v49_v7, %v33_v6  ;;  %v36_v24 = vld [vmem:[%s2798_s0 + $0x30] sm:$0xff] }
   0x4   :  { %v47_v11 = vld [vmem:[%s2799_s1 + $0x8] sm:$0xff]  ;;  %v50_v12 = vld [vmem:[%s2799_s1 + $0x20] sm:$0xff]  ;;  %v52_v25 = vld [vmem:[%s2799_s1 + $0x30] sm:$0xff] }
   0x5   :  { %v87_v9 = vsel %vm80_vm0, %v1618_v3, 0.0  ;;  %v81_v13 = vsel %vm80_vm0, %v1623_v5, 0.0  ;;  %v1647_v14 = vadd.f32 %v50_v12, %v34_v8  ;;  %v35_v16 = vld [vmem:[%s2798_s0 + $0x28] sm:$0xff]  ;;  %v1657_v18 = vadd.f32 %v47_v11, %v31_v10  ;;  %v37_v41 = vld [vmem:[%s2798_s0 + $0x38] sm:$0xff]  ;;  %v40_v57 = vld [vmem:[%s2798_s0 + $0x50] sm:$0xff] }
   0x6   :  { %88 = vadd.xlane.f32.xlu1 %v87_v9  ;;  %82 = vadd.xlane.f32.xlu0 %v81_v13  ;;  %v51_v17 = vld [vmem:[%s2799_s1 + $0x28] sm:$0xff]  ;;  %v90_v21 = vsel %vm80_vm0, %v1649_v15, 0.0  ;;  %v1675_v26 = vadd.f32 %v52_v25, %v36_v24  ;;  %v53_v42 = vld [vmem:[%s2799_s1 + $0x38] sm:$0xff]  ;;  %v56_v58 = vld [vmem:[%s2799_s1 + $0x50] sm:$0xff] }
   0x7   :  { %v93_v19 = vsel %vm80_vm0, %v1647_v14, 0.0  ;;  %v1661_v20 = vadd.f32 %v51_v17, %v35_v16  ;;  %v84_v22 = vsel %vm80_vm0, %v1657_v18, 0.0  ;;  %v1497_v29 = vpop.eup %1496  ;;  %v1697_v49 = vadd.f32 %v53_v42, %v37_v41  ;;  %v38_v60 = vld [vmem:[%s2798_s0 + $0x40] sm:$0xff]  ;;  %v41_v10 = vld [vmem:[%s2798_s0 + $0x58] sm:$0xff]  ;;  %v39_v12 = vld [vmem:[%s2798_s0 + $0x48] sm:$0xff] }
   0x8   :  { %94 = vadd.xlane.f32.xlu2 %v93_v19  ;;  %v99_v27 = vsel %vm80_vm0, %v1675_v26, 0.0  ;;  %v130_v30 = vmul.f32 16.0, %v1497_v29  ;;  %vm134_vm1 = vweird.f32 %v1497_v29  ;;  %v54_v61 = vld [vmem:[%s2799_s1 + $0x40] sm:$0xff]  ;;  %v1729_v0 = vadd.f32 %v56_v58, %v40_v57  ;;  %v57_v11 = vld [vmem:[%s2799_s1 + $0x58] sm:$0xff]  ;;  %v55_v13 = vld [vmem:[%s2799_s1 + $0x48] sm:$0xff] }
   0x9   :  { %v96_v23 = vsel %vm80_vm0, %v1661_v20, 0.0  ;;  %v102_v55 = vsel %vm80_vm0, %v1697_v49, 0.0  ;;  %v1731_v1 = vadd.f32 %v54_v61, %v38_v60  ;;  %v43_v41 = vld [vmem:[%s2798_s0 + $0x68] sm:$0xff]  ;;  %v1481_v57 = vld [vmem:[%s2802_s4] sm:$0xff] }
   0xa   :  { %v131_v31 = vsub.f32 1.0, %v130_v30  ;;  %v111_v6 = vsel %vm80_vm0, %v1729_v0, 0.0  ;;  %v58_v30 = vld [vmem:[%s2799_s1 + $0x60] sm:$0xff]  ;;  %v59_v42 = vld [vmem:[%s2799_s1 + $0x68] sm:$0xff]  ;;  %529 = vmatpush.bf16.msra.mxu0 %v1481_v57  ;;  %1486 = vmatpush.bf16.msra.mxu3 %v1481_v57 }
   0xb   :  { %v105_v7 = vsel %vm80_vm0, %v1731_v1, 0.0 }
   0xc   :  { %v132_v32 = vmul.f32 %v1497_v29, %v131_v31 }
   0xe   :  { %91 = vadd.xlane.f32.xlu1 %v90_v21  ;;  %85 = vadd.xlane.f32.xlu0 %v84_v22  ;;  %v133_v33 = vadd.f32 %v1497_v29, %v132_v32  ;;  %v1759_v21 = vadd.f32 %v57_v11, %v41_v10  ;;  %v1761_v22 = vadd.f32 %v55_v13, %v39_v12 }
  0x10   :  { %97 = vadd.xlane.f32.xlu2 %v96_v23  ;;  %v1679_v34 = vsel %vm134_vm1, %v1497_v29, %v133_v33  ;;  %v108_v28 = vsel %vm80_vm0, %v1761_v22, 0.0  ;;  %v42_v29 = vld [vmem:[%s2798_s0 + $0x60] sm:$0xff] }
  0x11   :  { %v1782_v32 = vadd.f32 %v58_v30, %v42_v29 }
  0x18   :  { %100 = vadd.xlane.f32.xlu2 %v99_v27  ;;  %v114_v27 = vsel %vm80_vm0, %v1759_v21, 0.0 }
  0x79   :  { %v89_v35 = vpop.xlane.xlu1 %88  ;;  %v83_v36 = vpop.xlane.xlu0 %82 }
  0x7a   :  { %v136_v37 = vmul.f32 %v1679_v34, %v83_v36  ;;  %v138_v47 = vmul.f32 %v1679_v34, %v89_v35  ;;  %v117_v36 = vsel %vm80_vm0, %v1782_v32, 0.0 }
  0x7b   :  { %v95_v38 = vpop.xlane.xlu2 %94 }
  0x7c   :  { %v1683_v39 = vsub.f32 %v1623_v5, %v136_v37  ;;  %v1708_v54 = vsub.f32 %v1618_v3, %v138_v47  ;;  %v140_v19 = vmul.f32 %v1679_v34, %v95_v38  ;;  %v45_v38 = vld [vmem:[%s2798_s0 + $0x78] sm:$0xff]  ;;  %v44_v47 = vld [vmem:[%s2798_s0 + $0x70] sm:$0xff] }
  0x7e   :  { %v168_v40 = vmul.f32 %v1683_v39, %v1683_v39  ;;  %v170_v2 = vmul.f32 %v1708_v54, %v1708_v54  ;;  %v1768_v25 = vsub.f32 %v1647_v14, %v140_v19 }
  0x80   :  { %v184_v44 = vsel %vm80_vm0, %v168_v40, 0.0  ;;  %v190_v8 = vsel %vm80_vm0, %v170_v2, 0.0  ;;  %v172_v33 = vmul.f32 %v1768_v25, %v1768_v25  ;;  %v61_v40 = vld [vmem:[%s2799_s1 + $0x78] sm:$0xff] }
  0x81   :  { %v92_v43 = vpop.xlane.xlu1 %91  ;;  %185 = vadd.xlane.f32.xlu0 %v184_v44  ;;  %v86_v46 = vpop.xlane.xlu0 %85  ;;  %v1804_v44 = vadd.f32 %v59_v42, %v43_v41 }
  0x82   :  { %v139_v45 = vmul.f32 %v1679_v34, %v92_v43  ;;  %v137_v48 = vmul.f32 %v1679_v34, %v86_v46  ;;  %v196_v37 = vsel %vm80_vm0, %v172_v33, 0.0  ;;  %v1802_v43 = vadd.f32 %v61_v40, %v45_v38 }
  0x83   :  { %v98_v52 = vpop.xlane.xlu2 %97  ;;  %v120_v46 = vsel %vm80_vm0, %v1804_v44, 0.0 }
  0x84   :  { %v1700_v50 = vsub.f32 %v1649_v15, %v139_v45  ;;  %v1703_v51 = vsub.f32 %v1657_v18, %v137_v48  ;;  %v141_v63 = vmul.f32 %v1679_v34, %v98_v52  ;;  %v126_v45 = vsel %vm80_vm0, %v1802_v43, 0.0  ;;  %v60_v48 = vld [vmem:[%s2799_s1 + $0x70] sm:$0xff] }
  0x85   :  { %v1816_v52 = vadd.f32 %v60_v48, %v44_v47 }
  0x86   :  { %v171_v53 = vmul.f32 %v1700_v50, %v1700_v50  ;;  %v169_v56 = vmul.f32 %v1703_v51, %v1703_v51  ;;  %v1736_v4 = vsub.f32 %v1661_v20, %v141_v63 }
  0x88   :  { %v193_v59 = vsel %vm80_vm0, %v171_v53, 0.0  ;;  %v187_v62 = vsel %vm80_vm0, %v169_v56, 0.0  ;;  %v173_v17 = vmul.f32 %v1736_v4, %v1736_v4  ;;  %v123_v53 = vsel %vm80_vm0, %v1816_v52, 0.0 }
  0x89   :  { %194 = vadd.xlane.f32.xlu2 %v193_v59  ;;  %103 = vadd.xlane.f32.xlu0 %v102_v55 }
  0x8a   :  { %188 = vadd.xlane.f32.xlu1 %v187_v62  ;;  %v199_v24 = vsel %vm80_vm0, %v173_v17, 0.0 }
  0x8b   :  { %v101_v9 = vpop.xlane.xlu2 %100 }
  0x8c   :  { %v142_v16 = vmul.f32 %v1679_v34, %v101_v9 }
  0x8e   :  { %v1764_v23 = vsub.f32 %v1675_v26, %v142_v16 }
  0x90   :  { %v174_v31 = vmul.f32 %v1764_v23, %v1764_v23 }
  0x91   :  { %112 = vadd.xlane.f32.xlu2 %v111_v6  ;;  %106 = vadd.xlane.f32.xlu0 %v105_v7 }
  0x92   :  { %191 = vadd.xlane.f32.xlu1 %v190_v8  ;;  %v202_v35 = vsel %vm80_vm0, %v174_v31, 0.0 }
  0x99   :  { %200 = vadd.xlane.f32.xlu2 %v199_v24  ;;  %115 = vadd.xlane.f32.xlu0 %v114_v27 }
  0x9a   :  { %109 = vadd.xlane.f32.xlu1 %v108_v28 }
  0xa1   :  { %203 = vadd.xlane.f32.xlu2 %v202_v35  ;;  %118 = vadd.xlane.f32.xlu0 %v117_v36 }
  0xa2   :  { %197 = vadd.xlane.f32.xlu1 %v196_v37 }
  0xa9   :  { %127 = vadd.xlane.f32.xlu2 %v126_v45 }
  0xaa   :  { %121 = vadd.xlane.f32.xlu1 %v120_v46 }
  0xb2   :  { %124 = vadd.xlane.f32.xlu1 %v123_v53 }
  0xf4   :  { %v186_v55 = vpop.xlane.xlu0 %185 }
  0xf5   :  { %v232_v56 = vmul.f32 %v186_v55, %v1679_v34 }
  0xf7   :  { %v248_v58 = vadd.f32 1e-05, %v232_v56 }
  0xf9   :  { %1498 = vrsqrt.f32 %v248_v58  ;;  %vm270_vm3 = vweird.f32 %v248_v58 }
  0xfc   :  { %v195_v59 = vpop.xlane.xlu2 %194  ;;  %v104_v62 = vpop.xlane.xlu0 %103 }
  0xfd   :  { %v235_v60 = vmul.f32 %v195_v59, %v1679_v34  ;;  %v189_v61 = vpop.xlane.xlu1 %188  ;;  %v143_v2 = vmul.f32 %v1679_v34, %v104_v62 }
  0xfe   :  { %v233_v63 = vmul.f32 %v189_v61, %v1679_v34 }
  0xff   :  { %v1827_v6 = vadd.f32 1e-05, %v235_v60  ;;  %v1499_v7 = vpop.eup %1498  ;;  %v1830_v9 = vsub.f32 %v1697_v49, %v143_v2 }
 0x100   :  { %v249_v8 = vadd.f32 1e-05, %v233_v63  ;;  %v265_v10 = vmul.f32 %v1499_v7, %v248_v58  ;;  %vm271_vm2 = vweird.f32 %v1499_v7 }
 0x101   :  { %1500 = vrsqrt.f32 %v1827_v6  ;;  %v175_v11 = vmul.f32 %v1830_v9, %v1830_v9  ;;  %vm1858_vm4 = vmor %vm270_vm3, %vm271_vm2  ;;  %vm300_vm8 = vweird.f32 %v1827_v6 }
 0x102   :  { %1502 = vrsqrt.f32 %v249_v8  ;;  %v266_v12 = vmul.f32 %v1499_v7, %v265_v10  ;;  %vm280_vm6 = vweird.f32 %v249_v8 }
 0x103   :  { %v205_v16 = vsel %vm80_vm0, %v175_v11, 0.0 }
 0x104   :  { %v113_v13 = vpop.xlane.xlu2 %112  ;;  %v267_v17 = vmul.f32 0.5, %v266_v12  ;;  %206 = vadd.xlane.f32.xlu0 %v205_v16  ;;  %v107_v27 = vpop.xlane.xlu0 %106 }
 0x105   :  { %v146_v19 = vmul.f32 %v1679_v34, %v113_v13  ;;  %v192_v24 = vpop.xlane.xlu1 %191  ;;  %v144_v29 = vmul.f32 %v1679_v34, %v107_v27 }
 0x106   :  { %v234_v28 = vmul.f32 %v192_v24, %v1679_v34  ;;  %v268_v31 = vsub.f32 1.5, %v267_v17 }
 0x107   :  { %v1839_v30 = vpop.eup %1500  ;;  %v1842_v33 = vsub.f32 %v1729_v0, %v146_v19  ;;  %v1847_v37 = vsub.f32 %v1731_v1, %v144_v29  ;;  %v1882_v19 = vld [vmem:[%s2800_s2] ss:$0 sm:$0xff] }
 0x108   :  { %v1503_v35 = vpop.eup %1502  ;;  %v1844_v36 = vadd.f32 1e-05, %v234_v28  ;;  %v269_v41 = vmul.f32 %v1499_v7, %v268_v31  ;;  %v295_v42 = vmul.f32 %v1839_v30, %v1827_v6  ;;  %vm301_vm9 = vweird.f32 %v1839_v30 }
 0x109   :  { %v275_v38 = vmul.f32 %v1503_v35, %v249_v8  ;;  %v178_v40 = vmul.f32 %v1842_v33, %v1842_v33  ;;  %v176_v45 = vmul.f32 %v1847_v37, %v1847_v37  ;;  %vm281_vm5 = vweird.f32 %v1503_v35  ;;  %vm1913_vm12 = vmor %vm300_vm8, %vm301_vm9 }
 0x10a   :  { %1504 = vrsqrt.f32 %v1844_v36  ;;  %v273_v61 = vsel %vm1858_vm4, %v1499_v7, %v269_v41  ;;  %v296_v62 = vmul.f32 %v1839_v30, %v295_v42  ;;  %vm282_vm7 = vmor %vm280_vm6, %vm281_vm5  ;;  %vm290_vm11 = vweird.f32 %v1844_v36 }
 0x10b   :  { %v276_v46 = vmul.f32 %v1503_v35, %v275_v38  ;;  %v214_v47 = vsel %vm80_vm0, %v178_v40, 0.0  ;;  %v208_v53 = vsel %vm80_vm0, %v176_v45, 0.0  ;;  %v424_v7 = vmul.f32 %v273_v61, %v1683_v39 }
 0x10c   :  { %215 = vadd.xlane.f32.xlu2 %v214_v47  ;;  %v201_v48 = vpop.xlane.xlu2 %200  ;;  %209 = vadd.xlane.f32.xlu0 %v208_v53  ;;  %v116_v60 = vpop.xlane.xlu0 %115  ;;  %v297_v24 = vmul.f32 0.5, %v296_v62 }
 0x10d   :  { %v277_v56 = vmul.f32 0.5, %v276_v46  ;;  %v237_v57 = vmul.f32 %v201_v48, %v1679_v34  ;;  %v110_v59 = vpop.xlane.xlu1 %109  ;;  %v147_v63 = vmul.f32 %v1679_v34, %v116_v60  ;;  %v443_v46 = vmul.f32 %v1882_v19, %v424_v7 }
 0x10e   :  { %v145_v58 = vmul.f32 %v1679_v34, %v110_v59  ;;  %v298_v47 = vsub.f32 1.5, %v297_v24 }
 0x10f   :  { %v278_v2 = vsub.f32 1.5, %v277_v56  ;;  %v1868_v10 = vadd.f32 1e-05, %v237_v57  ;;  %v1874_v13 = vsub.f32 %v1759_v21, %v147_v63 }
 0x110   :  { %v1505_v11 = vpop.eup %1504  ;;  %v1871_v12 = vsub.f32 %v1761_v22, %v145_v58  ;;  %v299_v58 = vmul.f32 %v1839_v30, %v298_v47 }
 0x111   :  { %v279_v16 = vmul.f32 %v1503_v35, %v278_v2  ;;  %v285_v17 = vmul.f32 %v1505_v11, %v1844_v36  ;;  %1506 = vrsqrt.f32 %v1868_v10  ;;  %v179_v27 = vmul.f32 %v1874_v13, %v1874_v13 }
 0x112   :  { %v177_v8 = vmul.f32 %v1871_v12, %v1871_v12  ;;  %vm291_vm10 = vweird.f32 %v1505_v11  ;;  %vm320_vm14 = vweird.f32 %v1868_v10 }
 0x113   :  { %v283_v28 = vsel %vm282_vm7, %v1503_v35, %v279_v16  ;;  %v286_v39 = vmul.f32 %v1505_v11, %v285_v17  ;;  %v217_v40 = vsel %vm80_vm0, %v179_v27, 0.0  ;;  %v1897_v35 = vld [vmem:[%s2801_s3] ss:$0 sm:$0xff]  ;;  %vm292_vm13 = vmor %vm290_vm11, %vm291_vm10  ;;  %v303_v27 = vsel %vm1913_vm12, %v1839_v30, %v299_v58 }
 0x114   :  { %v425_v29 = vmul.f32 %v283_v28, %v1703_v51  ;;  %v1889_v31 = vpop.xlane.xlu2 %203  ;;  %v211_v38 = vsel %vm80_vm0, %v177_v8, 0.0  ;;  %218 = vadd.xlane.f32.xlu0 %v217_v40  ;;  %v119_v45 = vpop.xlane.xlu0 %118  ;;  %v462_v61 = vadd.f32 %v1897_v35, %v443_v46 }
 0x115   :  { %v287_v41 = vmul.f32 0.5, %v286_v39  ;;  %212 = vadd.xlane.f32.xlu1 %v211_v38  ;;  %v198_v42 = vpop.xlane.xlu1 %197  ;;  %v148_v48 = vmul.f32 %v1679_v34, %v119_v45 }
 0x116   :  { %v236_v51 = vmul.f32 %v198_v42, %v1679_v34  ;;  %v444_v53 = vmul.f32 %v1882_v19, %v425_v29 }
 0x117   :  { %v1902_v55 = vpop.eup %1506  ;;  %v288_v56 = vsub.f32 1.5, %v287_v41  ;;  %v1907_v59 = vsub.f32 %v1782_v32, %v148_v48  ;;  %v427_v41 = vmul.f32 %v303_v27, %v1700_v50 }
 0x118   :  { %v252_v57 = vadd.f32 1e-05, %v236_v51  ;;  %v463_v62 = vadd.f32 %v1897_v35, %v444_v53  ;;  %v315_v6 = vmul.f32 %v1902_v55, %v1868_v10  ;;  %vm321_vm15 = vweird.f32 %v1902_v55 }
 0x119   :  { %v289_v60 = vmul.f32 %v1505_v11, %v288_v56  ;;  %v180_v2 = vmul.f32 %v1907_v59, %v1907_v59  ;;  %v446_v50 = vmul.f32 %v1882_v19, %v427_v41  ;;  %vm322_vm3 = vmor %vm320_vm14, %vm321_vm15  ;;  %v238_v41 = vmul.f32 %v1889_v31, %v1679_v34 }
 0x11a   :  { %1508 = vrsqrt.f32 %v252_v57  ;;  %v478_v7 = vpack.c.bf16 %v463_v62, %v462_v61  ;;  %v316_v28 = vmul.f32 %v1902_v55, %v315_v6  ;;  %vm310_vm1 = vweird.f32 %v252_v57 }
 0x11b   :  { %v293_v36 = vsel %vm292_vm13, %v1505_v11, %v289_v60  ;;  %v220_v17 = vsel %vm80_vm0, %v180_v2, 0.0  ;;  %v465_v2 = vadd.f32 %v1897_v35, %v446_v50 }
 0x11c   :  { %v128_v16 = vpop.xlane.xlu2 %127  ;;  %1433 = vmatmul.msk.bf16.vlgmr.msra.gmra.mxu0 %vm80_vm0, %v478_v7  ;;  %v426_v29 = vmul.f32 %v293_v36, %v1708_v54  ;;  %v317_v30 = vmul.f32 0.5, %v316_v28 }
 0x11d   :  { %v151_v24 = vmul.f32 %v1679_v34, %v128_v16  ;;  %v122_v8 = vpop.xlane.xlu1 %121  ;;  %221 = vadd.xlane.f32.xlu1 %v220_v17 }
 0x11e   :  { %v149_v39 = vmul.f32 %v1679_v34, %v122_v8  ;;  %v445_v51 = vmul.f32 %v1882_v19, %v426_v29  ;;  %v318_v60 = vsub.f32 1.5, %v317_v30 }
 0x11f   :  { %v1931_v11 = vsub.f32 %v1802_v43, %v151_v24 }
 0x120   :  { %v1509_v38 = vpop.eup %1508  ;;  %v1934_v40 = vsub.f32 %v1804_v44, %v149_v39  ;;  %v464_v58 = vadd.f32 %v1897_v35, %v445_v51  ;;  %v319_v7 = vmul.f32 %v1902_v55, %v318_v60 }
 0x121   :  { %v305_v42 = vmul.f32 %v1509_v38, %v252_v57  ;;  %v183_v45 = vmul.f32 %v1931_v11, %v1931_v11  ;;  %vm311_vm2 = vweird.f32 %v1509_v38 }
 0x122   :  { %v181_v46 = vmul.f32 %v1934_v40, %v1934_v40  ;;  %vm312_vm4 = vmor %vm310_vm1, %vm311_vm2  ;;  %v479_v10 = vpack.c.bf16 %v465_v2, %v464_v58  ;;  %v323_v57 = vsel %vm322_vm3, %v1902_v55, %v319_v7 }
 0x123   :  { %v306_v47 = vmul.f32 %v1509_v38, %v305_v42  ;;  %v229_v54 = vsel %vm80_vm0, %v183_v45, 0.0  ;;  %v429_v8 = vmul.f32 %v323_v57, %v1736_v4  ;;  %v254_v42 = vadd.f32 1e-05, %v238_v41 }
 0x124   :  { %v223_v48 = vsel %vm80_vm0, %v181_v46, 0.0 }
 0x125   :  { %v307_v53 = vmul.f32 0.5, %v306_v47  ;;  %224 = vadd.xlane.f32.xlu2 %v223_v48  ;;  %v125_v56 = vpop.xlane.xlu1 %124  ;;  %230 = vadd.xlane.f32.xlu1 %v229_v54  ;;  %v448_v28 = vmul.f32 %v1882_v19, %v429_v8  ;;  %1510 = vrsqrt.f32 %v254_v42  ;;  %vm330_vm5 = vweird.f32 %v254_v42 }
 0x126   :  { %v150_v61 = vmul.f32 %v1679_v34, %v125_v56 }
 0x127   :  { %v308_v62 = vsub.f32 1.5, %v307_v53  ;;  %v467_v29 = vadd.f32 %v1897_v35, %v448_v28 }
 0x128   :  { %v1950_v63 = vsub.f32 %v1816_v52, %v150_v61 }
 0x129   :  { %v309_v6 = vmul.f32 %v1509_v38, %v308_v62 }
 0x12a   :  { %v182_v36 = vmul.f32 %v1950_v63, %v1950_v63 }
 0x12b   :  { %v313_v16 = vsel %vm312_vm4, %v1509_v38, %v309_v6  ;;  %v1511_v55 = vpop.eup %1510 }
 0x12c   :  { %v226_v17 = vsel %vm80_vm0, %v182_v36, 0.0  ;;  %1434 = vmatmul.msk.bf16.gmra.mxu0 %vm80_vm0, %v479_v10  ;;  %v428_v24 = vmul.f32 %v313_v16, %v1768_v25  ;;  %v325_v25 = vmul.f32 %v1511_v55, %v254_v42  ;;  %vm331_vm6 = vweird.f32 %v1511_v55 }
 0x12d   :  { %227 = vadd.xlane.f32.xlu0 %v226_v17  ;;  %vm1977_vm7 = vmor %vm330_vm5, %vm331_vm6 }
 0x12e   :  { %v447_v27 = vmul.f32 %v1882_v19, %v428_v24  ;;  %v326_v30 = vmul.f32 %v1511_v55, %v325_v25 }
 0x130   :  { %v466_v39 = vadd.f32 %v1897_v35, %v447_v27  ;;  %v327_v47 = vmul.f32 0.5, %v326_v30 }
 0x132   :  { %v480_v38 = vpack.c.bf16 %v467_v29, %v466_v39  ;;  %v328_v56 = vsub.f32 1.5, %v327_v47 }
 0x134   :  { %v329_v62 = vmul.f32 %v1511_v55, %v328_v56 }
 0x136   :  { %v333_v57 = vsel %vm1977_vm7, %v1511_v55, %v329_v62 }
 0x137   :  { %v430_v41 = vmul.f32 %v333_v57, %v1764_v23 }
 0x13c   :  { %1435 = vmatmul.msk.bf16.gmra.mxu0 %vm80_vm0, %v480_v38 }
 0x177   :  { %v207_v45 = vpop.xlane.xlu0 %206 }
 0x178   :  { %v239_v4 = vmul.f32 %v207_v45, %v1679_v34 }
 0x17a   :  { %v255_v46 = vadd.f32 1e-05, %v239_v4 }
 0x17c   :  { %1512 = vrsqrt.f32 %v255_v46  ;;  %vm340_vm9 = vweird.f32 %v255_v46 }
 0x17f   :  { %v216_v54 = vpop.xlane.xlu2 %215  ;;  %v210_v48 = vpop.xlane.xlu0 %209 }
 0x180   :  { %v242_v51 = vmul.f32 %v216_v54, %v1679_v34  ;;  %v240_v53 = vmul.f32 %v210_v48, %v1679_v34  ;;  %v449_v54 = vmul.f32 %v1882_v19, %v430_v41 }
 0x182   :  { %v1971_v50 = vadd.f32 1e-05, %v242_v51  ;;  %v1513_v31 = vpop.eup %1512  ;;  %v1973_v60 = vadd.f32 1e-05, %v240_v53 }
 0x183   :  { %v335_v61 = vmul.f32 %v1513_v31, %v255_v46  ;;  %vm341_vm8 = vweird.f32 %v1513_v31 }
 0x184   :  { %1514 = vrsqrt.f32 %v1971_v50  ;;  %vm342_vm10 = vmor %vm340_vm9, %vm341_vm8  ;;  %vm370_vm11 = vweird.f32 %v1971_v50  ;;  %vm350_vm13 = vweird.f32 %v1973_v60 }
 0x185   :  { %1516 = vrsqrt.f32 %v1973_v60  ;;  %v336_v58 = vmul.f32 %v1513_v31, %v335_v61 }
 0x187   :  { %v337_v2 = vmul.f32 0.5, %v336_v58  ;;  %v219_v36 = vpop.xlane.xlu0 %218  ;;  %v468_v58 = vadd.f32 %v1897_v35, %v449_v54 }
 0x188   :  { %v213_v7 = vpop.xlane.xlu1 %212  ;;  %v243_v16 = vmul.f32 %v219_v36, %v1679_v34 }
 0x189   :  { %v241_v10 = vmul.f32 %v213_v7, %v1679_v34  ;;  %v338_v24 = vsub.f32 1.5, %v337_v2 }
 0x18a   :  { %v1983_v17 = vpop.eup %1514  ;;  %v1991_v39 = vadd.f32 1e-05, %v243_v16 }
 0x18b   :  { %v1987_v8 = vpop.eup %1516  ;;  %v365_v27 = vmul.f32 %v1983_v17, %v1971_v50  ;;  %v257_v28 = vadd.f32 1e-05, %v241_v10  ;;  %v339_v29 = vmul.f32 %v1513_v31, %v338_v24  ;;  %vm371_vm12 = vweird.f32 %v1983_v17  ;;  %v2017_v10 = vld [vmem:[%s2803_s5] ss:$0 sm:$0xff] }
 0x18c   :  { %v345_v38 = vmul.f32 %v1987_v8, %v1973_v60  ;;  %vm351_vm14 = vweird.f32 %v1987_v8  ;;  %vm2020_vm15 = vmor %vm370_vm11, %vm371_vm12  ;;  %vm380_vm3 = vweird.f32 %v1991_v39 }
 0x18d   :  { %v366_v42 = vmul.f32 %v1983_v17, %v365_v27  ;;  %1518 = vrsqrt.f32 %v257_v28  ;;  %v343_v55 = vsel %vm342_vm10, %v1513_v31, %v339_v29  ;;  %vm2026_vm1 = vmor %vm350_vm13, %vm351_vm14  ;;  %vm360_vm5 = vweird.f32 %v257_v28 }
 0x18e   :  { %v346_v25 = vmul.f32 %v1987_v8, %v345_v38  ;;  %1520 = vrsqrt.f32 %v1991_v39  ;;  %v431_v45 = vmul.f32 %v343_v55, %v1830_v9 }
 0x18f   :  { %v367_v4 = vmul.f32 0.5, %v366_v42 }
 0x190   :  { %v347_v30 = vmul.f32 0.5, %v346_v25  ;;  %v222_v47 = vpop.xlane.xlu1 %221  ;;  %v450_v23 = vmul.f32 %v1882_v19, %v431_v45 }
 0x191   :  { %v244_v46 = vmul.f32 %v222_v47, %v1679_v34  ;;  %v368_v61 = vsub.f32 1.5, %v367_v4 }
 0x192   :  { %v348_v48 = vsub.f32 1.5, %v347_v30  ;;  %v469_v56 = vadd.f32 %v1897_v35, %v450_v23 }
 0x193   :  { %v1519_v51 = vpop.eup %1518  ;;  %v2003_v53 = vadd.f32 1e-05, %v244_v46  ;;  %v369_v16 = vmul.f32 %v1983_v17, %v368_v61 }
 0x194   :  { %v1521_v31 = vpop.eup %1520  ;;  %v355_v62 = vmul.f32 %v1519_v51, %v257_v28  ;;  %v349_v2 = vmul.f32 %v1987_v8, %v348_v48  ;;  %v481_v36 = vpack.c.bf16 %v469_v56, %v468_v58  ;;  %vm361_vm2 = vweird.f32 %v1519_v51 }
 0x195   :  { %v375_v9 = vmul.f32 %v1521_v31, %v1991_v39  ;;  %1522 = vrsqrt.f32 %v2003_v53  ;;  %vm381_vm4 = vweird.f32 %v1521_v31  ;;  %v373_v47 = vsel %vm2020_vm15, %v1983_v17, %v369_v16  ;;  %vm362_vm6 = vmor %vm360_vm5, %vm361_vm2 }
 0x196   :  { %v356_v6 = vmul.f32 %v1519_v51, %v355_v62  ;;  %1436 = vmatmul.msk.bf16.gmra.mxu0 %vm80_vm0, %v481_v36  ;;  %v353_v25 = vsel %vm2026_vm1, %v1987_v8, %v349_v2  ;;  %vm382_vm7 = vmor %vm380_vm3, %vm381_vm4  ;;  %v434_v28 = vmul.f32 %v373_v47, %v1842_v33  ;;  %vm390_vm8 = vweird.f32 %v2003_v53 }
 0x197   :  { %v376_v7 = vmul.f32 %v1521_v31, %v375_v9  ;;  %v432_v48 = vmul.f32 %v353_v25, %v1847_v37 }
 0x198   :  { %v357_v57 = vmul.f32 0.5, %v356_v6  ;;  %v225_v50 = vpop.xlane.xlu2 %224  ;;  %v231_v41 = vpop.xlane.xlu1 %230 }
 0x199   :  { %v377_v60 = vmul.f32 0.5, %v376_v7  ;;  %v245_v27 = vmul.f32 %v225_v50, %v1679_v34  ;;  %v531_v42 = vpop.f32.mrf.mxu0  ;;  %v247_v8 = vmul.f32 %v231_v41, %v1679_v34  ;;  %v453_v50 = vmul.f32 %v1882_v19, %v434_v28 }
 0x19a   :  { %v358_v38 = vsub.f32 1.5, %v357_v57  ;;  %v2039_v30 = vadd.f32 %v2017_v10, %v531_v42 }
 0x19b   :  { %v2031_v55 = vpop.eup %1522  ;;  %v378_v45 = vsub.f32 1.5, %v377_v60  ;;  %v2036_v4 = vadd.f32 1e-05, %v245_v27  ;;  %v2059_v37 = vadd.f32 1e-05, %v247_v8 }
 0x19c   :  { %v359_v46 = vmul.f32 %v1519_v51, %v358_v38  ;;  %v385_v54 = vmul.f32 %v2031_v55, %v2003_v53  ;;  %v2056_v9 = vmul.f32 0.70710677, %v2039_v30  ;;  %vm391_vm9 = vweird.f32 %v2031_v55 }
 0x19d   :  { %v379_v23 = vmul.f32 %v1521_v31, %v378_v45  ;;  %1524 = vrsqrt.f32 %v2036_v4  ;;  %vm2088_vm10 = vmor %vm390_vm8, %vm391_vm9  ;;  %vm400_vm11 = vweird.f32 %v2036_v4  ;;  %vm420_vm1 = vweird.f32 %v2059_v37 }
 0x19e   :  { %v363_v56 = vsel %vm362_vm6, %v1519_v51, %v359_v46  ;;  %v386_v17 = vmul.f32 %v2031_v55, %v385_v54  ;;  %v603_v39 = vmul.f32 %v2056_v9, %v2056_v9  ;;  %1526 = vrsqrt.f32 %v2059_v37 }
 0x19f   :  { %v433_v61 = vmul.f32 %v363_v56, %v1871_v12  ;;  %v383_v62 = vsel %vm382_vm7, %v1521_v31, %v379_v23  ;;  %v451_v12 = vmul.f32 %v1882_v19, %v432_v48  ;;  %v472_v54 = vadd.f32 %v1897_v35, %v453_v50 }
 0x1a0   :  { %v435_v58 = vmul.f32 %v383_v62, %v1874_v13  ;;  %v387_v6 = vmul.f32 0.5, %v386_v17  ;;  %v228_v2 = vpop.xlane.xlu0 %227  ;;  %v2068_v13 = vmin.f32 %v603_v39, 16.0 }
 0x1a1   :  { %v246_v51 = vmul.f32 %v228_v2, %v1679_v34  ;;  %v452_v7 = vmul.f32 %v1882_v19, %v433_v61  ;;  %v533_v36 = vpop.f32.mrf.mxu0  ;;  %v470_v25 = vadd.f32 %v1897_v35, %v451_v12 }
 0x1a2   :  { %v388_v33 = vsub.f32 1.5, %v387_v6  ;;  %v454_v31 = vmul.f32 %v1882_v19, %v435_v58  ;;  %v2076_v24 = vadd.f32 %v2017_v10, %v533_v36  ;;  %v605_v27 = vmul.f32 2.1237322e-06, %v2068_v13 }
 0x1a3   :  { %v1525_v16 = vpop.eup %1524  ;;  %v2070_v57 = vadd.f32 1e-05, %v246_v51  ;;  %v471_v60 = vadd.f32 %v1897_v35, %v452_v7  ;;  %v616_v29 = vmul.f32 3.8918573e-05, %v2068_v13 }
 0x1a4   :  { %v395_v34 = vmul.f32 %v1525_v16, %v2036_v4  ;;  %v473_v38 = vadd.f32 %v1897_v35, %v454_v31  ;;  %v389_v41 = vmul.f32 %v2031_v55, %v388_v33  ;;  %v606_v47 = vadd.f32 0.00028619796, %v605_v27  ;;  %v2105_v6 = vpop.eup %1526 }
 0x1a5   :  { %1528 = vrsqrt.f32 %v2070_v57  ;;  %v617_v46 = vadd.f32 0.001143296, %v616_v29  ;;  %v2094_v8 = vmul.f32 0.70710677, %v2076_v24  ;;  %v482_v48 = vpack.c.bf16 %v471_v60, %v470_v25 }
 0x1a6   :  { %v396_v42 = vmul.f32 %v1525_v16, %v395_v34  ;;  %v607_v56 = vmul.f32 %v606_v47, %v2068_v13  ;;  %v483_v53 = vpack.c.bf16 %v473_v38, %v472_v54  ;;  %v393_v28 = vsel %vm2088_vm10, %v2031_v55, %v389_v41 }
 0x1a7   :  { %v618_v17 = vmul.f32 %v617_v46, %v2068_v13  ;;  %vm401_vm12 = vweird.f32 %v1525_v16  ;;  %v643_v62 = vmul.f32 %v2094_v8, %v2094_v8  ;;  %1437 = vmatmul.msk.bf16.gmra.mxu0 %vm80_vm0, %v482_v48  ;;  %v436_v55 = vmul.f32 %v393_v28, %v1907_v59 }
 0x1a8   :  { %v397_v23 = vmul.f32 0.5, %v396_v42  ;;  %1438 = vmatmul.msk.bf16.vlgmr.msra.gmra.mxu3 %vm80_vm0, %v483_v53  ;;  %v608_v7 = vadd.f32 0.0036580483, %v607_v56  ;;  %vm402_vm13 = vmor %vm400_vm11, %vm401_vm12  ;;  %v415_v59 = vmul.f32 %v2105_v6, %v2059_v37  ;;  %vm410_vm14 = vweird.f32 %v2070_v57 }
 0x1a9   :  { %v536_v58 = vpop.f32.mrf.mxu0  ;;  %v619_v2 = vadd.f32 0.014752088, %v618_v17  ;;  %v2110_v33 = vmin.f32 %v643_v62, 16.0  ;;  %v455_v25 = vmul.f32 %v1882_v19, %v436_v55  ;;  %vm421_vm2 = vweird.f32 %v2105_v6 }
 0x1aa   :  { %v398_v61 = vsub.f32 1.5, %v397_v23  ;;  %v2117_v12 = vadd.f32 %v2017_v10, %v536_v58  ;;  %v609_v29 = vmul.f32 %v608_v7, %v2068_v13  ;;  %v416_v23 = vmul.f32 %v2105_v6, %v415_v59  ;;  %vm2197_vm4 = vmor %vm420_vm1, %vm421_vm2 }
 0x1ab   :  { %v2108_v39 = vpop.eup %1528  ;;  %v620_v36 = vmul.f32 %v619_v2, %v2068_v13  ;;  %v645_v34 = vmul.f32 2.1237322e-06, %v2110_v33  ;;  %v656_v60 = vmul.f32 3.8918573e-05, %v2110_v33  ;;  %vm1319_vm1 = vcmask 523264  }
 0x1ac   :  { %v399_v51 = vmul.f32 %v1525_v16, %v398_v61  ;;  %v405_v50 = vmul.f32 %v2108_v39, %v2070_v57  ;;  %v610_v53 = vadd.f32 0.05243302, %v609_v29  ;;  %vm411_vm15 = vweird.f32 %v2108_v39 }
 0x1ad   :  { %v621_v4 = vadd.f32 0.112945676, %v620_v36  ;;  %v646_v38 = vadd.f32 0.00028619796, %v645_v34  ;;  %v657_v41 = vadd.f32 0.001143296, %v656_v60  ;;  %vm2177_vm3 = vmor %vm410_vm14, %vm411_vm15 }
 0x1ae   :  { %v403_v31 = vsel %vm402_vm13, %v1525_v16, %v399_v51  ;;  %v2129_v16 = vmul.f32 0.70710677, %v2117_v12  ;;  %v406_v45 = vmul.f32 %v2108_v39, %v405_v50  ;;  %v474_v51 = vadd.f32 %v1897_v35, %v455_v25 }
 0x1af   :  { %v437_v27 = vmul.f32 %v403_v31, %v1934_v40  ;;  %v622_v42 = vmul.f32 %v621_v4, %v2068_v13  ;;  %v647_v47 = vmul.f32 %v646_v38, %v2110_v33  ;;  %v658_v40 = vmul.f32 %v657_v41, %v2110_v33 }
 0x1b0   :  { %v683_v56 = vmul.f32 %v2129_v16, %v2129_v16  ;;  %v407_v7 = vmul.f32 0.5, %v406_v45  ;;  %v611_v59 = vmul.f32 %v610_v53, %v2068_v13 }
 0x1b1   :  { %v538_v46 = vpop.f32.mrf.mxu0  ;;  %v456_v54 = vmul.f32 %v1882_v19, %v437_v27  ;;  %v623_v48 = vadd.f32 0.4994258, %v622_v42  ;;  %v648_v28 = vadd.f32 0.0036580483, %v647_v47  ;;  %v659_v61 = vadd.f32 0.014752088, %v658_v40 }
 0x1b2   :  { %v2140_v17 = vadd.f32 %v2017_v10, %v538_v46  ;;  %v2144_v2 = vmin.f32 %v683_v56, 16.0  ;;  %v417_v27 = vmul.f32 0.5, %v416_v23  ;;  %v408_v38 = vsub.f32 1.5, %v407_v7 }
 0x1b3   :  { %v475_v62 = vadd.f32 %v1897_v35, %v456_v54  ;;  %v624_v58 = vmul.f32 %v623_v48, %v2068_v13  ;;  %v649_v55 = vmul.f32 %v648_v28, %v2110_v33  ;;  %v660_v36 = vmul.f32 %v659_v61, %v2110_v33 }
 0x1b4   :  { %v685_v50 = vmul.f32 2.1237322e-06, %v2144_v2  ;;  %v2153_v34 = vmul.f32 0.70710677, %v2140_v17  ;;  %v696_v29 = vmul.f32 3.8918573e-05, %v2144_v2  ;;  %v409_v61 = vmul.f32 %v2108_v39, %v408_v38 }
 0x1b5   :  { %v2149_v31 = vadd.f32 1.0, %v624_v58  ;;  %v484_v60 = vpack.c.bf16 %v475_v62, %v474_v51  ;;  %v661_v4 = vadd.f32 0.112945676, %v660_v36  ;;  %v650_v25 = vadd.f32 0.05243302, %v649_v55 }
 0x1b6   :  { %v686_v45 = vadd.f32 0.00028619796, %v685_v50  ;;  %v697_v47 = vadd.f32 0.001143296, %v696_v29  ;;  %v723_v40 = vmul.f32 %v2153_v34, %v2153_v34  ;;  %v418_v46 = vsub.f32 1.5, %v417_v27 }
 0x1b7   :  { %1530 = vrcp.f32 %v2149_v31  ;;  %v662_v41 = vmul.f32 %v661_v4, %v2110_v33  ;;  %v612_v54 = vadd.f32 0.18741608, %v611_v59  ;;  %v651_v7 = vmul.f32 %v650_v25, %v2110_v33 }
 0x1b8   :  { %1439 = vmatmul.msk.bf16.gmra.mxu3 %vm80_vm0, %v484_v60  ;;  %v687_v48 = vmul.f32 %v686_v45, %v2144_v2  ;;  %v698_v56 = vmul.f32 %v697_v47, %v2144_v2  ;;  %v2166_v53 = vmin.f32 %v723_v40, 16.0  ;;  %v419_v60 = vmul.f32 %v2105_v6, %v418_v46 }
 0x1b9   :  { %v541_v42 = vpop.f32.mrf.mxu0  ;;  %v663_v23 = vadd.f32 0.4994258, %v662_v41  ;;  %v613_v27 = vmul.f32 %v612_v54, %v2068_v13  ;;  %v635_v25 = vand.u32 2147483647, %v2149_v31  ;;  %v413_v45 = vsel %vm2177_vm3, %v2108_v39, %v409_v61 }
 0x1ba   :  { %v2169_v28 = vadd.f32 %v2017_v10, %v541_v42  ;;  %v688_v55 = vadd.f32 0.0036580483, %v687_v48  ;;  %v699_v36 = vadd.f32 0.014752088, %v698_v56  ;;  %v725_v50 = vmul.f32 2.1237322e-06, %v2166_v53 }
 0x1bb   :  { %v664_v62 = vmul.f32 %v663_v23, %v2110_v33  ;;  %v736_v38 = vmul.f32 3.8918573e-05, %v2166_v53  ;;  %v637_v47 = vand.u32 2147483648, %v2149_v31  ;;  %v652_v40 = vadd.f32 0.18741608, %v651_v7 }
 0x1bc   :  { %v700_v57 = vmul.f32 %v699_v36, %v2144_v2  ;;  %v726_v29 = vadd.f32 0.00028619796, %v725_v50  ;;  %v2191_v41 = vmul.f32 0.70710677, %v2169_v28  ;;  %v689_v46 = vmul.f32 %v688_v55, %v2144_v2 }
 0x1bd   :  { %v1531_v58 = vpop.eup %1530  ;;  %v2186_v4 = vadd.f32 1.0, %v664_v62  ;;  %v737_v48 = vadd.f32 0.001143296, %v736_v38  ;;  %v423_v56 = vsel %vm2197_vm4, %v2105_v6, %v419_v60  ;;  %v614_v62 = vadd.f32 1.1283791, %v613_v27 }
 0x1be   :  { %v627_v59 = vmul.f32 %v1531_v58, %v2149_v31  ;;  %vm632_vm5 = vweird.f32 %v1531_v58  ;;  %v701_v54 = vadd.f32 0.112945676, %v700_v57  ;;  %v727_v23 = vmul.f32 %v726_v29, %v2166_v53 }
 0x1bf   :  { %1532 = vrcp.f32 %v2186_v4  ;;  %vm631_vm6 = vweird.f32 %v2149_v31  ;;  %v763_v39 = vmul.f32 %v2191_v41, %v2191_v41  ;;  %v438_v51 = vmul.f32 %v413_v45, %v1950_v63 }
 0x1c0   :  { %v628_v13 = vsub.f32 1.0, %v627_v59  ;;  %v702_v7 = vmul.f32 %v701_v54, %v2144_v2  ;;  %v738_v55 = vmul.f32 %v737_v48, %v2166_v53  ;;  %vm633_vm7 = vmor %vm631_vm6, %vm632_vm5  ;;  %vm636_vm8 = vcmp.eq.f32.partialorder %v635_v25, 8.507059e+37 }
 0x1c1   :  { %v638_v36 = vor.u32 1.1754944e-38, %v637_v47  ;;  %v653_v50 = vmul.f32 %v652_v40, %v2110_v33  ;;  %v690_v6 = vadd.f32 0.05243302, %v689_v46  ;;  %v728_v59 = vadd.f32 0.0036580483, %v727_v23  ;;  %v543_v46 = vpop.f32.mrf.mxu0 }
 0x1c2   :  { %v629_v37 = vmul.f32 %v1531_v58, %v628_v13  ;;  %v703_v31 = vadd.f32 0.4994258, %v702_v7  ;;  %v739_v57 = vadd.f32 0.014752088, %v738_v55  ;;  %v439_v29 = vmul.f32 %v423_v56, %v1931_v11  ;;  %v1485_v13 = vld [vmem:[%s2804_s6 + $0x18] sm:$0xff]  ;;  %v1484_v56 = vld [vmem:[%s2804_s6 + $0x10] sm:$0xff] }
 0x1c3   :  { %v2222_v42 = vmin.f32 %v763_v39, 16.0  ;;  %v615_v25 = vmul.f32 %v614_v62, %v2056_v9  ;;  %v677_v33 = vand.u32 2147483648, %v2186_v4  ;;  %v654_v47 = vadd.f32 1.1283791, %v653_v50  ;;  %1348 = vmatpush.bf16.msra.mxu1 %v1485_v13  ;;  %1487 = vmatpush.bf16.msra.mxu2 %v1485_v13 }
 0x1c4   :  { %v630_v61 = vadd.f32 %v1531_v58, %v629_v37  ;;  %v740_v45 = vmul.f32 %v739_v57, %v2166_v53  ;;  %v691_v11 = vmul.f32 %v690_v6, %v2144_v2  ;;  %v457_v37 = vmul.f32 %v1882_v19, %v438_v51  ;;  %v1483_v57 = vld [vmem:[%s2804_s6 + $0x8] sm:$0xff] }
 0x1c5   :  { %v1533_v60 = vpop.eup %1532  ;;  %v729_v9 = vmul.f32 %v728_v59, %v2166_v53  ;;  %v675_v39 = vand.u32 2147483647, %v2186_v4  ;;  %vm671_vm10 = vweird.f32 %v2186_v4  ;;  %v678_v51 = vor.u32 1.1754944e-38, %v677_v33 }
 0x1c6   :  { %v634_v27 = vsel %vm633_vm7, %v1531_v58, %v630_v61  ;;  %v667_v63 = vmul.f32 %v1533_v60, %v2186_v4  ;;  %v704_v58 = vmul.f32 %v703_v31, %v2144_v2  ;;  %v741_v48 = vadd.f32 0.112945676, %v740_v45 }
 0x1c7   :  { %v639_v38 = vsel %vm636_vm8, %v638_v36, %v634_v27  ;;  %vm672_vm9 = vweird.f32 %v1533_v60  ;;  %v776_v61 = vmul.f32 3.8918573e-05, %v2222_v42  ;;  %v2244_v7 = vadd.f32 %v2017_v10, %v543_v46  ;;  %1349 = vmatpush.bf16.msra.mxu1 %v1484_v56  ;;  %1488 = vmatpush.bf16.msra.mxu2 %v1484_v56 }
 0x1c8   :  { %v668_v40 = vsub.f32 1.0, %v667_v63  ;;  %v640_v54 = vmul.f32 %v639_v38, %v615_v25  ;;  %v2233_v23 = vadd.f32 1.0, %v704_v58  ;;  %v692_v36 = vadd.f32 0.18741608, %v691_v11  ;;  %vm673_vm11 = vmor %vm671_vm10, %vm672_vm9 }
 0x1c9   :  { %v742_v50 = vmul.f32 %v741_v48, %v2166_v53  ;;  %v765_v6 = vmul.f32 2.1237322e-06, %v2222_v42  ;;  %v730_v31 = vadd.f32 0.05243302, %v729_v9  ;;  %v777_v59 = vadd.f32 0.001143296, %v776_v61 }
 0x1ca   :  { %v669_v62 = vmul.f32 %v1533_v60, %v668_v40  ;;  %1534 = vrcp.f32 %v2233_v23  ;;  %v1441_v27 = vclamps-f32 %v640_v54, 1.0  ;;  %v458_v4 = vmul.f32 %v1882_v19, %v439_v29 }
 0x1cb   :  { %v655_v38 = vmul.f32 %v654_v47, %v2094_v8  ;;  %vm676_vm12 = vcmp.eq.f32.partialorder %v675_v39, 8.507059e+37  ;;  %v743_v13 = vadd.f32 0.4994258, %v742_v50  ;;  %v778_v33 = vmul.f32 %v777_v59, %v2222_v42  ;;  %1350 = vmatpush.bf16.msra.mxu1 %v1483_v57  ;;  %1489 = vmatpush.bf16.msra.mxu2 %v1483_v57 }
 0x1cc   :  { %v670_v55 = vadd.f32 %v1533_v60, %v669_v62  ;;  %v2255_v58 = vmul.f32 0.70710677, %v2244_v7  ;;  %v476_v45 = vadd.f32 %v1897_v35, %v457_v37  ;;  %v693_v19 = vmul.f32 %v692_v36, %v2144_v2  ;;  %v1482_v37 = vld [vmem:[%s2804_s6] sm:$0xff] }
 0x1cd   :  { %v744_v29 = vmul.f32 %v743_v13, %v2166_v53  ;;  %v766_v11 = vadd.f32 0.00028619796, %v765_v6  ;;  %v731_v47 = vmul.f32 %v730_v31, %v2166_v53  ;;  %v779_v46 = vadd.f32 0.014752088, %v778_v33 }
 0x1ce   :  { %v674_v63 = vsel %vm673_vm11, %v1533_v60, %v670_v55  ;;  %v1243_v60 = vadd.f32 1.0, %v1441_v27  ;;  %v803_v54 = vmul.f32 %v2255_v58, %v2255_v58  ;;  %v571_v9 = vmul.f32 0.5, %v2039_v30 }
 0x1cf   :  { %v679_v25 = vsel %vm676_vm12, %v678_v51, %v674_v63  ;;  %v477_v56 = vadd.f32 %v1897_v35, %v458_v4  ;;  %v572_v62 = vmul.f32 0.5, %v2076_v24  ;;  %v2270_v39 = vadd.f32 1.0, %v744_v29  ;;  %1351 = vmatpush.bf16.msra.mxu1 %v1482_v37  ;;  %1490 = vmatpush.bf16.msra.mxu2 %v1482_v37 }
 0x1d0   :  { %v680_v40 = vmul.f32 %v679_v25, %v655_v38  ;;  %v1535_v8 = vpop.eup %1534  ;;  %v780_v61 = vmul.f32 %v779_v46, %v2222_v42  ;;  %v2273_v51 = vmin.f32 %v803_v54, 16.0  ;;  %v694_v36 = vadd.f32 1.1283791, %v693_v19 }
 0x1d1   :  { %v707_v48 = vmul.f32 %v1535_v8, %v2233_v23  ;;  %v485_v6 = vpack.c.bf16 %v477_v56, %v476_v45  ;;  %v1259_v30 = vmul.f32 %v1243_v60, %v571_v9  ;;  %v732_v27 = vadd.f32 0.18741608, %v731_v47 }
 0x1d2   :  { %v1442_v2 = vclamps-f32 %v680_v40, 1.0  ;;  %1536 = vrcp.f32 %v2270_v39  ;;  %v767_v35 = vmul.f32 %v766_v11, %v2222_v42  ;;  %vm712_vm13 = vweird.f32 %v1535_v8 }
 0x1d3   :  { %v708_v50 = vsub.f32 1.0, %v707_v48  ;;  %v781_v59 = vadd.f32 0.112945676, %v780_v61  ;;  %1440 = vmatmul.msk.bf16.gmra.mxu3 %vm80_vm0, %v485_v6  ;;  %vm711_vm14 = vweird.f32 %v2233_v23  ;;  %v717_v4 = vand.u32 2147483648, %v2233_v23 }
 0x1d4   :  { %v1244_v55 = vadd.f32 1.0, %v1442_v2  ;;  %v805_v57 = vmul.f32 2.1237322e-06, %v2273_v51  ;;  %v816_v38 = vmul.f32 3.8918573e-05, %v2273_v51  ;;  %vm2284_vm15 = vmor %vm711_vm14, %vm712_vm13  ;;  %v733_v11 = vmul.f32 %v732_v27, %v2166_v53 }
 0x1d5   :  { %v709_v24 = vmul.f32 %v1535_v8, %v708_v50  ;;  %v715_v13 = vand.u32 2147483647, %v2233_v23  ;;  %v782_v25 = vmul.f32 %v781_v59, %v2222_v42  ;;  %v768_v60 = vadd.f32 0.0036580483, %v767_v35 }
 0x1d6   :  { %v1260_v31 = vmul.f32 %v1244_v55, %v572_v62  ;;  %v806_v40 = vadd.f32 0.00028619796, %v805_v57  ;;  %v817_v19 = vadd.f32 0.001143296, %v816_v38  ;;  %v718_v46 = vor.u32 1.1754944e-38, %v717_v4 }
 0x1d7   :  { %v710_v63 = vadd.f32 %v1535_v8, %v709_v24  ;;  %v783_v47 = vadd.f32 0.4994258, %v782_v25  ;;  %vm716_vm2 = vcmp.eq.f32.partialorder %v715_v13, 8.507059e+37  ;;  %v734_v53 = vadd.f32 1.1283791, %v733_v11 }
 0x1d8   :  { %v1275_v33 = vpack.c.bf16 %v1260_v31, %v1259_v30  ;;  %v1537_v23 = vpop.eup %1536  ;;  %v807_v54 = vmul.f32 %v806_v40, %v2273_v51  ;;  %v818_v37 = vmul.f32 %v817_v19, %v2273_v51  ;;  %v769_v61 = vmul.f32 %v768_v60, %v2222_v42 }
 0x1d9   :  { %v714_v29 = vsel %vm2284_vm15, %v1535_v8, %v710_v63  ;;  %v747_v9 = vmul.f32 %v1537_v23, %v2270_v39  ;;  %v784_v48 = vmul.f32 %v783_v47, %v2222_v42  ;;  %v695_v8 = vmul.f32 %v694_v36, %v2129_v16 }
 0x1da   :  { %1473 = vmatmul.msk.bf16.vlgmr.msra.gmra.mxu1 %vm1319_vm1, %v1275_v33  ;;  %v719_v2 = vsel %vm716_vm2, %v718_v46, %v714_v29  ;;  %v819_v56 = vadd.f32 0.014752088, %v818_v37  ;;  %v757_v55 = vand.u32 2147483648, %v2270_v39  ;;  %v808_v6 = vadd.f32 0.0036580483, %v807_v54 }
 0x1db   :  { %v748_v62 = vsub.f32 1.0, %v747_v9  ;;  %v785_v50 = vadd.f32 1.0, %v784_v48  ;;  %v720_v27 = vmul.f32 %v719_v2, %v695_v8  ;;  %vm752_vm3 = vweird.f32 %v1537_v23 }
 0x1dc   :  { %v820_v30 = vmul.f32 %v819_v56, %v2273_v51  ;;  %v755_v31 = vand.u32 2147483647, %v2270_v39  ;;  %vm751_vm4 = vweird.f32 %v2270_v39  ;;  %v770_v16 = vadd.f32 0.05243302, %v769_v61 }
 0x1dd   :  { %v749_v35 = vmul.f32 %v1537_v23, %v748_v62  ;;  %1538 = vrcp.f32 %v785_v50  ;;  %v735_v59 = vmul.f32 %v734_v53, %v2153_v34  ;;  %vm753_vm5 = vmor %vm751_vm4, %vm752_vm3  ;;  %v758_v4 = vor.u32 1.1754944e-38, %v757_v55 }
 0x1de   :  { %v821_v36 = vadd.f32 0.112945676, %v820_v30  ;;  %v809_v57 = vmul.f32 %v808_v6, %v2273_v51  ;;  %v1443_v38 = vclamps-f32 %v720_v27, 1.0  ;;  %vm756_vm6 = vcmp.eq.f32.partialorder %v755_v31, 8.507059e+37 }
 0x1df   :  { %v750_v24 = vadd.f32 %v1537_v23, %v749_v35  ;;  %v771_v45 = vmul.f32 %v770_v16, %v2222_v42  ;;  %v573_v34 = vmul.f32 0.5, %v2117_v12  ;;  %v574_v46 = vmul.f32 0.5, %v2140_v17 }
 0x1e0   :  { %v822_v13 = vmul.f32 %v821_v36, %v2273_v51  ;;  %v810_v39 = vadd.f32 0.05243302, %v809_v57  ;;  %v1245_v29 = vadd.f32 1.0, %v1443_v38  ;;  %v797_v12 = vand.u32 2147483648, %v785_v50 }
 0x1e1   :  { %v754_v63 = vsel %vm753_vm5, %v1537_v23, %v750_v24  ;;  %v772_v54 = vadd.f32 0.18741608, %v771_v45  ;;  %vm791_vm8 = vweird.f32 %v785_v50  ;;  %v795_v6 = vand.u32 2147483647, %v785_v50 }
 0x1e2   :  { %v759_v25 = vsel %vm756_vm6, %v758_v4, %v754_v63  ;;  %v823_v40 = vadd.f32 0.4994258, %v822_v13  ;;  %v811_v9 = vmul.f32 %v810_v39, %v2273_v51  ;;  %v1261_v48 = vmul.f32 %v1245_v29, %v573_v34 }
 0x1e3   :  { %v760_v33 = vmul.f32 %v759_v25, %v735_v59  ;;  %v1539_v19 = vpop.eup %1538  ;;  %v773_v53 = vmul.f32 %v772_v54, %v2222_v42  ;;  %v798_v35 = vor.u32 1.1754944e-38, %v797_v12  ;;  %vm796_vm10 = vcmp.eq.f32.partialorder %v795_v6, 8.507059e+37 }
 0x1e4   :  { %v787_v60 = vmul.f32 %v1539_v19, %v785_v50  ;;  %v824_v47 = vmul.f32 %v823_v40, %v2273_v51  ;;  %vm792_vm7 = vweird.f32 %v1539_v19  ;;  %v812_v55 = vadd.f32 0.18741608, %v811_v9 }
 0x1e5   :  { %v1444_v11 = vclamps-f32 %v760_v33, 1.0  ;;  %vm793_vm9 = vmor %vm791_vm8, %vm792_vm7  ;;  %v774_v17 = vadd.f32 1.1283791, %v773_v53  ;;  %v575_v39 = vmul.f32 0.5, %v2169_v28  ;;  %v576_v29 = vmul.f32 0.5, %v2244_v7 }
 0x1e6   :  { %v788_v37 = vsub.f32 1.0, %v787_v60  ;;  %v825_v2 = vadd.f32 1.0, %v824_v47  ;;  %v813_v31 = vmul.f32 %v812_v55, %v2273_v51 }
 0x1e7   :  { %v1246_v23 = vadd.f32 1.0, %v1444_v11  ;;  %v775_v42 = vmul.f32 %v774_v17, %v2191_v41 }
 0x1e8   :  { %v789_v8 = vmul.f32 %v1539_v19, %v788_v37  ;;  %1540 = vrcp.f32 %v825_v2  ;;  %v814_v59 = vadd.f32 1.1283791, %v813_v31  ;;  %v837_v4 = vand.u32 2147483648, %v825_v2 }
 0x1e9   :  { %v1262_v56 = vmul.f32 %v1246_v23, %v574_v46  ;;  %v835_v50 = vand.u32 2147483647, %v825_v2  ;;  %vm831_vm12 = vweird.f32 %v825_v2 }
 0x1ea   :  { %v790_v62 = vadd.f32 %v1539_v19, %v789_v8  ;;  %v838_v13 = vor.u32 1.1754944e-38, %v837_v4  ;;  %v815_v33 = vmul.f32 %v814_v59, %v2255_v58 }
 0x1eb   :  { %v1276_v61 = vpack.c.bf16 %v1262_v56, %v1261_v48  ;;  %vm836_vm14 = vcmp.eq.f32.partialorder %v835_v50, 8.507059e+37 }
 0x1ec   :  { %v794_v30 = vsel %vm793_vm9, %v1539_v19, %v790_v62 }
 0x1ed   :  { %1474 = vmatmul.msk.bf16.gmra.mxu1 %vm1319_vm1, %v1276_v61  ;;  %v799_v16 = vsel %vm796_vm10, %v798_v35, %v794_v30 }
 0x1ee   :  { %v1541_v27 = vpop.eup %1540  ;;  %v800_v57 = vmul.f32 %v799_v16, %v775_v42 }
 0x1ef   :  { %v827_v24 = vmul.f32 %v1541_v27, %v825_v2  ;;  %vm832_vm11 = vweird.f32 %v1541_v27 }
 0x1f0   :  { %vm833_vm13 = vmor %vm831_vm12, %vm832_vm11  ;;  %v1445_v25 = vclamps-f32 %v800_v57, 1.0 }
 0x1f1   :  { %v828_v36 = vsub.f32 1.0, %v827_v24 }
 0x1f2   :  { %v1247_v19 = vadd.f32 1.0, %v1445_v25 }
 0x1f3   :  { %v829_v38 = vmul.f32 %v1541_v27, %v828_v36 }
 0x1f4   :  { %v1263_v60 = vmul.f32 %v1247_v19, %v575_v39 }
 0x1f5   :  { %v830_v63 = vadd.f32 %v1541_v27, %v829_v38 }
 0x1f7   :  { %v834_v51 = vsel %vm833_vm13, %v1541_v27, %v830_v63 }
 0x1f8   :  { %v839_v45 = vsel %vm836_vm14, %v838_v13, %v834_v51 }
 0x1f9   :  { %v840_v40 = vmul.f32 %v839_v45, %v815_v33 }
 0x1fb   :  { %v1446_v41 = vclamps-f32 %v840_v40, 1.0 }
 0x1fd   :  { %v1248_v11 = vadd.f32 1.0, %v1446_v41 }
 0x1ff   :  { %v1264_v34 = vmul.f32 %v1248_v11, %v576_v29 }
 0x201   :  { %v1277_v47 = vpack.c.bf16 %v1264_v34, %v1263_v60 }
 0x203   :  { %1475 = vmatmul.msk.bf16.gmra.mxu1 %vm1319_vm1, %v1277_v47 }
 0x213   :  { %v546_v46 = vpop.f32.mrf.mxu0 }
 0x214   :  { %v2319_v23 = vadd.f32 %v2017_v10, %v546_v46 }
 0x216   :  { %v2322_v58 = vmul.f32 0.70710677, %v2319_v23 }
 0x218   :  { %v843_v54 = vmul.f32 %v2322_v58, %v2322_v58 }
 0x21a   :  { %v2326_v37 = vmin.f32 %v843_v54, 16.0 }
 0x21b   :  { %v548_v28 = vpop.f32.mrf.mxu0 }
 0x21c   :  { %v845_v7 = vmul.f32 2.1237322e-06, %v2326_v37  ;;  %v856_v9 = vmul.f32 3.8918573e-05, %v2326_v37  ;;  %v2331_v2 = vadd.f32 %v2017_v10, %v548_v28 }
 0x21e   :  { %v846_v48 = vadd.f32 0.00028619796, %v845_v7  ;;  %v857_v56 = vadd.f32 0.001143296, %v856_v9  ;;  %v2334_v8 = vmul.f32 0.70710677, %v2331_v2 }
 0x220   :  { %v858_v53 = vmul.f32 %v857_v56, %v2326_v37  ;;  %v847_v62 = vmul.f32 %v846_v48, %v2326_v37  ;;  %v883_v61 = vmul.f32 %v2334_v8, %v2334_v8 }
 0x222   :  { %v859_v12 = vadd.f32 0.014752088, %v858_v53  ;;  %v2340_v55 = vmin.f32 %v883_v61, 16.0  ;;  %v848_v30 = vadd.f32 0.0036580483, %v847_v62 }
 0x224   :  { %v860_v6 = vmul.f32 %v859_v12, %v2326_v37  ;;  %v551_v17 = vpop.f32.mrf.mxu0  ;;  %v885_v27 = vmul.f32 2.1237322e-06, %v2340_v55  ;;  %v896_v35 = vmul.f32 3.8918573e-05, %v2340_v55  ;;  %v849_v4 = vmul.f32 %v848_v30, %v2326_v37 }
 0x225   :  { %v2346_v31 = vadd.f32 %v2017_v10, %v551_v17 }
 0x226   :  { %v861_v24 = vadd.f32 0.112945676, %v860_v6  ;;  %v897_v16 = vadd.f32 0.001143296, %v896_v35  ;;  %v886_v36 = vadd.f32 0.00028619796, %v885_v27 }
 0x227   :  { %v2350_v59 = vmul.f32 0.70710677, %v2346_v31  ;;  %v850_v45 = vadd.f32 0.05243302, %v849_v4 }
 0x228   :  { %v862_v42 = vmul.f32 %v861_v24, %v2326_v37  ;;  %v898_v57 = vmul.f32 %v897_v16, %v2340_v55  ;;  %v887_v33 = vmul.f32 %v886_v36, %v2340_v55 }
 0x229   :  { %v923_v50 = vmul.f32 %v2350_v59, %v2350_v59  ;;  %v851_v46 = vmul.f32 %v850_v45, %v2326_v37 }
 0x22a   :  { %v863_v38 = vadd.f32 0.4994258, %v862_v42  ;;  %v899_v63 = vadd.f32 0.014752088, %v898_v57  ;;  %v888_v34 = vadd.f32 0.0036580483, %v887_v33 }
 0x22b   :  { %v556_v13 = vpop.f32.mrf.mxu3  ;;  %v2358_v51 = vmin.f32 %v923_v50, 16.0  ;;  %v852_v12 = vadd.f32 0.18741608, %v851_v46  ;;  %v2397_v50 = vmul.f32 0.5, %v2319_v23 }
 0x22c   :  { %v864_v25 = vmul.f32 %v863_v38, %v2326_v37  ;;  %v900_v40 = vmul.f32 %v899_v63, %v2340_v55  ;;  %v553_v19 = vpop.f32.mrf.mxu0  ;;  %v2365_v29 = vadd.f32 %v2017_v10, %v556_v13  ;;  %v889_v53 = vmul.f32 %v888_v34, %v2340_v55 }
 0x22d   :  { %v925_v39 = vmul.f32 2.1237322e-06, %v2358_v51  ;;  %v936_v60 = vmul.f32 3.8918573e-05, %v2358_v51  ;;  %v2370_v47 = vadd.f32 %v2017_v10, %v553_v19  ;;  %v2400_v13 = vmul.f32 0.5, %v2331_v2 }
 0x22e   :  { %v2361_v41 = vadd.f32 1.0, %v864_v25  ;;  %v901_v11 = vadd.f32 0.112945676, %v900_v40  ;;  %v2375_v9 = vmul.f32 0.70710677, %v2365_v29  ;;  %v853_v33 = vmul.f32 %v852_v12, %v2326_v37 }
 0x22f   :  { %v926_v28 = vadd.f32 0.00028619796, %v925_v39  ;;  %v937_v7 = vadd.f32 0.001143296, %v936_v60  ;;  %v2383_v61 = vmul.f32 0.70710677, %v2370_v47 }
 0x230   :  { %1542 = vrcp.f32 %v2361_v41  ;;  %v902_v54 = vmul.f32 %v901_v11, %v2340_v55  ;;  %v1003_v10 = vmul.f32 %v2375_v9, %v2375_v9  ;;  %v890_v36 = vadd.f32 0.05243302, %v889_v53 }
 0x231   :  { %v927_v56 = vmul.f32 %v926_v28, %v2358_v51  ;;  %v938_v62 = vmul.f32 %v937_v7, %v2358_v51  ;;  %v963_v24 = vmul.f32 %v2383_v61, %v2383_v61  ;;  %v875_v45 = vand.u32 2147483647, %v2361_v41 }
 0x232   :  { %v903_v48 = vadd.f32 0.4994258, %v902_v54  ;;  %v2386_v35 = vmin.f32 %v1003_v10, 16.0  ;;  %v877_v34 = vand.u32 2147483648, %v2361_v41  ;;  %v891_v2 = vmul.f32 %v890_v36, %v2340_v55 }
 0x233   :  { %v928_v30 = vadd.f32 0.0036580483, %v927_v56  ;;  %v939_v27 = vadd.f32 0.014752088, %v938_v62  ;;  %v558_v25 = vpop.f32.mrf.mxu3  ;;  %v2406_v19 = vmin.f32 %v963_v24, 16.0  ;;  %vm871_vm2 = vweird.f32 %v2361_v41 }
 0x234   :  { %v904_v6 = vmul.f32 %v903_v48, %v2340_v55  ;;  %v1005_v57 = vmul.f32 2.1237322e-06, %v2386_v35  ;;  %v1016_v38 = vmul.f32 3.8918573e-05, %v2386_v35  ;;  %v854_v10 = vadd.f32 1.1283791, %v853_v33 }
 0x235   :  { %v940_v4 = vmul.f32 %v939_v27, %v2358_v51  ;;  %v929_v40 = vmul.f32 %v928_v30, %v2358_v51  ;;  %v965_v46 = vmul.f32 2.1237322e-06, %v2406_v19  ;;  %v976_v53 = vmul.f32 3.8918573e-05, %v2406_v19 }
 0x236   :  { %v1543_v17 = vpop.eup %1542  ;;  %v2391_v42 = vadd.f32 1.0, %v904_v6  ;;  %v1006_v60 = vadd.f32 0.00028619796, %v1005_v57  ;;  %v1017_v23 = vadd.f32 0.001143296, %v1016_v38  ;;  %vm876_vm4 = vcmp.eq.f32.partialorder %v875_v45, 8.507059e+37 }
 0x237   :  { %v867_v16 = vmul.f32 %v1543_v17, %v2361_v41  ;;  %v941_v11 = vadd.f32 0.112945676, %v940_v4  ;;  %vm872_vm15 = vweird.f32 %v1543_v17  ;;  %v930_v48 = vadd.f32 0.05243302, %v929_v40 }
 0x238   :  { %1544 = vrcp.f32 %v2391_v42  ;;  %v1007_v28 = vmul.f32 %v1006_v60, %v2386_v35  ;;  %v1018_v7 = vmul.f32 %v1017_v23, %v2386_v35  ;;  %v966_v56 = vadd.f32 0.00028619796, %v965_v46  ;;  %vm2418_vm3 = vmor %vm871_vm2, %vm872_vm15 }
 0x239   :  { %v868_v63 = vsub.f32 1.0, %v867_v16  ;;  %v942_v37 = vmul.f32 %v941_v11, %v2358_v51  ;;  %v878_v16 = vor.u32 1.1754944e-38, %v877_v34  ;;  %v892_v36 = vadd.f32 0.18741608, %v891_v2 }
 0x23a   :  { %v1019_v30 = vadd.f32 0.014752088, %v1018_v7  ;;  %v1008_v24 = vadd.f32 0.0036580483, %v1007_v28  ;;  %v967_v33 = vmul.f32 %v966_v56, %v2406_v19  ;;  %v977_v40 = vadd.f32 0.001143296, %v976_v53 }
 0x23b   :  { %v869_v39 = vmul.f32 %v1543_v17, %v868_v63  ;;  %v943_v6 = vadd.f32 0.4994258, %v942_v37  ;;  %v931_v63 = vmul.f32 %v930_v48, %v2358_v51  ;;  %v561_v60 = vpop.f32.mrf.mxu3  ;;  %v2438_v37 = vmul.f32 0.5, %v2346_v31 }
 0x23c   :  { %v1020_v57 = vmul.f32 %v1019_v30, %v2386_v35  ;;  %v1009_v34 = vmul.f32 %v1008_v24, %v2386_v35  ;;  %v968_v2 = vadd.f32 0.0036580483, %v967_v33  ;;  %v978_v46 = vmul.f32 %v977_v40, %v2406_v19 }
 0x23d   :  { %v870_v54 = vadd.f32 %v1543_v17, %v869_v39  ;;  %v944_v4 = vmul.f32 %v943_v6, %v2358_v51  ;;  %v855_v39 = vmul.f32 %v854_v10, %v2322_v58  ;;  %v2444_v58 = vld [vmem:[%s2803_s5] ss:$0 sm:$0xff]  ;;  %v932_v48 = vadd.f32 0.18741608, %v931_v63 }
 0x23e   :  { %v2416_v62 = vpop.eup %1544  ;;  %v1021_v11 = vadd.f32 0.112945676, %v1020_v57  ;;  %v2447_v28 = vadd.f32 %v2444_v58, %v558_v25  ;;  %v2451_v53 = vadd.f32 %v2444_v58, %v561_v60  ;;  %v969_v31 = vmul.f32 %v968_v2, %v2406_v19 }
 0x23f   :  { %v874_v27 = vsel %vm2418_vm3, %v1543_v17, %v870_v54  ;;  %v907_v41 = vmul.f32 %v2416_v62, %v2391_v42  ;;  %v2431_v45 = vadd.f32 1.0, %v944_v4  ;;  %v893_v54 = vmul.f32 %v892_v36, %v2340_v55 }
 0x240   :  { %v879_v17 = vsel %vm876_vm4, %v878_v16, %v874_v27  ;;  %v1022_v56 = vmul.f32 %v1021_v11, %v2386_v35  ;;  %vm912_vm5 = vweird.f32 %v2416_v62  ;;  %v979_v10 = vadd.f32 0.014752088, %v978_v46 }
 0x241   :  { %v908_v38 = vsub.f32 1.0, %v907_v41  ;;  %1546 = vrcp.f32 %v2431_v45  ;;  %v880_v7 = vmul.f32 %v879_v17, %v855_v39  ;;  %vm911_vm6 = vweird.f32 %v2391_v42 }
 0x242   :  { %v917_v12 = vand.u32 2147483648, %v2391_v42  ;;  %v1010_v25 = vadd.f32 0.05243302, %v1009_v34  ;;  %v1023_v6 = vadd.f32 0.4994258, %v1022_v56  ;;  %v980_v41 = vmul.f32 %v979_v10, %v2406_v19  ;;  %vm2463_vm7 = vmor %vm911_vm6, %vm912_vm5 }
 0x243   :  { %v909_v23 = vmul.f32 %v2416_v62, %v908_v38  ;;  %v915_v30 = vand.u32 2147483647, %v2391_v42  ;;  %v970_v27 = vadd.f32 0.05243302, %v969_v31  ;;  %v2461_v24 = vmul.f32 0.70710677, %v2447_v28 }
 0x244   :  { %v1447_v16 = vclamps-f32 %v880_v7, 1.0  ;;  %v894_v36 = vadd.f32 1.1283791, %v893_v54  ;;  %v933_v57 = vmul.f32 %v932_v48, %v2358_v51  ;;  %v1024_v38 = vmul.f32 %v1023_v6, %v2386_v35 }
 0x245   :  { %v910_v55 = vadd.f32 %v2416_v62, %v909_v23  ;;  %v981_v33 = vadd.f32 0.112945676, %v980_v41  ;;  %v1043_v40 = vmul.f32 %v2461_v24, %v2461_v24  ;;  %v2477_v39 = vmul.f32 0.70710677, %v2451_v53 }
 0x246   :  { %v918_v17 = vor.u32 1.1754944e-38, %v917_v12  ;;  %v1011_v51 = vmul.f32 %v1010_v25, %v2386_v35  ;;  %v971_v60 = vmul.f32 %v970_v27, %v2406_v19  ;;  %vm916_vm8 = vcmp.eq.f32.partialorder %v915_v30, 8.507059e+37 }
 0x247   :  { %v2469_v63 = vpop.eup %1546  ;;  %v914_v42 = vsel %vm2463_vm7, %v2416_v62, %v910_v55  ;;  %v2483_v23 = vadd.f32 1.0, %v1024_v38  ;;  %v982_v62 = vmul.f32 %v981_v33, %v2406_v19  ;;  %v2486_v34 = vmin.f32 %v1043_v40, 16.0 }
 0x248   :  { %v947_v11 = vmul.f32 %v2469_v63, %v2431_v45  ;;  %v919_v2 = vsel %vm916_vm8, %v918_v17, %v914_v42  ;;  %v2489_v54 = vmul.f32 0.5, %v2370_v47  ;;  %v1083_v7 = vmul.f32 %v2477_v39, %v2477_v39  ;;  %v563_v17 = vpop.f32.mrf.mxu3 }
 0x249   :  { %v1249_v48 = vadd.f32 1.0, %v1447_v16  ;;  %v895_v56 = vmul.f32 %v894_v36, %v2334_v8  ;;  %v934_v55 = vadd.f32 1.1283791, %v933_v57  ;;  %1548 = vrcp.f32 %v2483_v23 }
 0x24a   :  { %v948_v46 = vsub.f32 1.0, %v947_v11  ;;  %v1012_v10 = vadd.f32 0.18741608, %v1011_v51  ;;  %v972_v12 = vadd.f32 0.18741608, %v971_v60  ;;  %vm951_vm9 = vweird.f32 %v2431_v45 }
 0x24b   :  { %v983_v25 = vadd.f32 0.4994258, %v982_v62  ;;  %v920_v6 = vmul.f32 %v919_v2, %v895_v56  ;;  %v1045_v47 = vmul.f32 2.1237322e-06, %v2486_v34  ;;  %v1056_v30 = vmul.f32 3.8918573e-05, %v2486_v34 }
 0x24c   :  { %v949_v31 = vmul.f32 %v2469_v63, %v948_v46  ;;  %v955_v27 = vand.u32 2147483647, %v2431_v45  ;;  %v957_v41 = vand.u32 2147483648, %v2431_v45  ;;  %v2502_v16 = vmin.f32 %v1083_v7, 16.0 }
 0x24d   :  { %v984_v8 = vmul.f32 %v983_v25, %v2406_v19  ;;  %vm952_vm10 = vweird.f32 %v2469_v63  ;;  %v1046_v4 = vadd.f32 0.00028619796, %v1045_v47  ;;  %v1057_v57 = vadd.f32 0.001143296, %v1056_v30 }
 0x24e   :  { %v950_v36 = vadd.f32 %v2469_v63, %v949_v31  ;;  %v1013_v38 = vmul.f32 %v1012_v10, %v2386_v35  ;;  %v973_v42 = vmul.f32 %v972_v12, %v2406_v19  ;;  %v1085_v40 = vmul.f32 2.1237322e-06, %v2502_v16  ;;  %vm2519_vm11 = vmor %vm951_vm9, %vm952_vm10 }
 0x24f   :  { %v2508_v33 = vadd.f32 1.0, %v984_v8  ;;  %v2511_v11 = vpop.eup %1548  ;;  %v1448_v51 = vclamps-f32 %v920_v6, 1.0  ;;  %v1047_v60 = vmul.f32 %v1046_v4, %v2486_v34  ;;  %v1058_v62 = vmul.f32 %v1057_v57, %v2486_v34 }
 0x250   :  { %v1096_v2 = vmul.f32 3.8918573e-05, %v2502_v16  ;;  %v935_v46 = vmul.f32 %v934_v55, %v2350_v59  ;;  %vm956_vm12 = vcmp.eq.f32.partialorder %v955_v27, 8.507059e+37  ;;  %v958_v19 = vor.u32 1.1754944e-38, %v957_v41 }
 0x251   :  { %1550 = vrcp.f32 %v2508_v33  ;;  %v954_v7 = vsel %vm2519_vm11, %v2469_v63, %v950_v36  ;;  %v1027_v56 = vmul.f32 %v2511_v11, %v2483_v23  ;;  %v1048_v31 = vadd.f32 0.0036580483, %v1047_v60 }
 0x252   :  { %v2530_v59 = vadd.f32 %v2444_v58, %v563_v17  ;;  %v2533_v45 = vmul.f32 %v1249_v48, %v2397_v50  ;;  %v974_v55 = vadd.f32 1.1283791, %v973_v42  ;;  %v1059_v10 = vadd.f32 0.014752088, %v1058_v62 }
 0x253   :  { %v1086_v12 = vadd.f32 0.00028619796, %v1085_v40  ;;  %v1250_v25 = vadd.f32 1.0, %v1448_v51  ;;  %v1014_v6 = vadd.f32 1.1283791, %v1013_v38  ;;  %v1049_v47 = vmul.f32 %v1048_v31, %v2486_v34 }
 0x254   :  { %v1097_v30 = vadd.f32 0.001143296, %v1096_v2  ;;  %v959_v27 = vsel %vm956_vm12, %v958_v19, %v954_v7  ;;  %v1060_v41 = vmul.f32 %v1059_v10, %v2486_v34  ;;  %v1028_v36 = vsub.f32 1.0, %v1027_v56 }
 0x255   :  { %v1087_v8 = vmul.f32 %v1086_v12, %v2502_v16  ;;  %v1050_v4 = vadd.f32 0.05243302, %v1049_v47  ;;  %v2541_v48 = vmul.f32 0.70710677, %v2530_v59  ;;  %v1037_v38 = vand.u32 2147483648, %v2483_v23 }
 0x256   :  { %v1098_v50 = vmul.f32 %v1097_v30, %v2502_v16  ;;  %v975_v42 = vmul.f32 %v974_v55, %v2383_v61  ;;  %v1061_v40 = vadd.f32 0.112945676, %v1060_v41  ;;  %v960_v51 = vmul.f32 %v959_v27, %v935_v46  ;;  %v566_v56 = vpop.f32.mrf.mxu3 }
 0x257   :  { %v1551_v57 = vpop.eup %1550  ;;  %v1088_v17 = vadd.f32 0.0036580483, %v1087_v8  ;;  %vm1031_vm13 = vweird.f32 %v2483_v23  ;;  %v1051_v62 = vmul.f32 %v1050_v4, %v2486_v34  ;;  %v2548_v35 = vpop.f32.mrf.mxu1  ;;  %vm1032_vm14 = vweird.f32 %v2511_v11 }
 0x258   :  { %v987_v60 = vmul.f32 %v1551_v57, %v2508_v33  ;;  %v1099_v2 = vadd.f32 0.014752088, %v1098_v50  ;;  %v995_v19 = vand.u32 2147483647, %v2508_v33  ;;  %v1062_v7 = vmul.f32 %v1061_v40, %v2486_v34  ;;  %vm2582_vm5 = vmor %vm1031_vm13, %vm1032_vm14 }
 0x259   :  { %v1123_v61 = vmul.f32 %v2541_v48, %v2541_v48  ;;  %v1029_v46 = vmul.f32 %v2511_v11, %v1028_v36  ;;  %vm991_vm15 = vweird.f32 %v2508_v33  ;;  %v997_v10 = vand.u32 2147483648, %v2508_v33 }
 0x25a   :  { %v988_v31 = vsub.f32 1.0, %v987_v60  ;;  %v1100_v55 = vmul.f32 %v1099_v2, %v2502_v16  ;;  %v1063_v12 = vadd.f32 0.4994258, %v1062_v7  ;;  %v1089_v47 = vmul.f32 %v1088_v17, %v2502_v16 }
 0x25b   :  { %v2560_v30 = vmin.f32 %v1123_v61, 16.0  ;;  %vm992_vm2 = vweird.f32 %v1551_v57  ;;  %v1052_v41 = vadd.f32 0.18741608, %v1051_v62  ;;  %v1449_v4 = vclamps-f32 %v960_v51, 1.0 }
 0x25c   :  { %v989_v27 = vmul.f32 %v1551_v57, %v988_v31  ;;  %v1101_v8 = vadd.f32 0.112945676, %v1100_v55  ;;  %vm2562_vm3 = vcmp.eq.f32.partialorder %v995_v19, 8.507059e+37  ;;  %v1064_v36 = vmul.f32 %v1063_v12, %v2486_v34  ;;  %vm993_vm4 = vmor %vm991_vm15, %vm992_vm2 }
 0x25d   :  { %v1125_v40 = vmul.f32 2.1237322e-06, %v2560_v30  ;;  %v1030_v60 = vadd.f32 %v2511_v11, %v1029_v46  ;;  %v1136_v7 = vmul.f32 3.8918573e-05, %v2560_v30  ;;  %v998_v62 = vor.u32 1.1754944e-38, %v997_v10 }
 0x25e   :  { %v990_v2 = vadd.f32 %v1551_v57, %v989_v27  ;;  %v1102_v17 = vmul.f32 %v1101_v8, %v2502_v16  ;;  %v2573_v51 = vadd.f32 1.0, %v1064_v36  ;;  %v1090_v19 = vadd.f32 0.05243302, %v1089_v47  ;;  %v568_v50 = vpop.f32.mrf.mxu3 }
 0x25f   :  { %v1126_v61 = vadd.f32 0.00028619796, %v1125_v40  ;;  %v1053_v55 = vmul.f32 %v1052_v41, %v2486_v34  ;;  %v1137_v63 = vadd.f32 0.001143296, %v1136_v7  ;;  %v1266_v46 = vmul.f32 %v1250_v25, %v2400_v13 }
 0x260   :  { %v994_v31 = vsel %vm993_vm4, %v1551_v57, %v990_v2  ;;  %v1103_v12 = vadd.f32 0.4994258, %v1102_v17  ;;  %v1015_v27 = vmul.f32 %v1014_v6, %v2375_v9  ;;  %1552 = vrcp.f32 %v2573_v51  ;;  %v1355_v6 = vpop.f32.mrf.mxu1 }
 0x261   :  { %v999_v10 = vsel %vm2562_vm3, %v998_v62, %v994_v31  ;;  %v1034_v34 = vsel %vm2582_vm5, %v2511_v11, %v1030_v60  ;;  %v1038_v13 = vor.u32 1.1754944e-38, %v1037_v38  ;;  %v2593_v9 = vadd.f32 %v2444_v58, %v566_v56 }
 0x262   :  { %v1000_v25 = vmul.f32 %v999_v10, %v975_v42  ;;  %v1251_v57 = vadd.f32 1.0, %v1449_v4  ;;  %v1104_v47 = vmul.f32 %v1103_v12, %v2502_v16  ;;  %v1127_v41 = vmul.f32 %v1126_v61, %v2560_v30 }
 0x263   :  { %v1138_v8 = vmul.f32 %v1137_v63, %v2560_v30  ;;  %v2835_v36 = vand.u32 2147483647, %v2483_v23  ;;  %v1054_v2 = vadd.f32 1.1283791, %v1053_v55  ;;  %v1091_v11 = vmul.f32 %v1090_v19, %v2502_v16  ;;  %v2615_v19 = vld [vmem:[%s2805_s7] ss:$0 sm:$0xff] }
 0x264   :  { %v1450_v40 = vclamps-f32 %v1000_v25, 1.0  ;;  %v2601_v42 = vadd.f32 1.0, %v1104_v47  ;;  %v1128_v56 = vadd.f32 0.0036580483, %v1127_v41  ;;  %v2604_v17 = vmul.f32 0.70710677, %v2593_v9 }
 0x265   :  { %vm1036_vm6 = vcmp.eq.f32.partialorder %v2835_v36, 8.507059e+37  ;;  %v1139_v60 = vadd.f32 0.014752088, %v1138_v8  ;;  %v2607_v7 = vadd.f32 %v2444_v58, %v568_v50  ;;  %v1278_v63 = vpack.c.bf16 %v1266_v46, %v2533_v45 }
 0x266   :  { %v1039_v38 = vsel %vm1036_vm6, %v1038_v13, %v1034_v34  ;;  %v1252_v4 = vadd.f32 1.0, %v1450_v40  ;;  %v1553_v23 = vpop.eup %1552  ;;  %v1267_v62 = vmul.f32 %v1251_v57, %v2438_v37  ;;  %1554 = vrcp.f32 %v2601_v42 }
 0x267   :  { %v1040_v61 = vmul.f32 %v1039_v38, %v1015_v27  ;;  %v1067_v55 = vmul.f32 %v1553_v23, %v2573_v51  ;;  %v1092_v12 = vadd.f32 0.18741608, %v1091_v11  ;;  %1476 = vmatmul.msk.bf16.gmra.mxu1 %vm1319_vm1, %v1278_v63  ;;  %v1055_v58 = vmul.f32 %v1054_v2, %v2461_v24 }
 0x268   :  { %v1268_v31 = vmul.f32 %v1252_v4, %v2489_v54  ;;  %v1075_v45 = vand.u32 2147483647, %v2573_v51  ;;  %v1140_v37 = vmul.f32 %v1139_v60, %v2560_v30  ;;  %v1163_v46 = vmul.f32 %v2604_v17, %v2604_v17 }
 0x269   :  { %v1068_v33 = vsub.f32 1.0, %v1067_v55  ;;  %v1077_v10 = vand.u32 2147483648, %v2573_v51  ;;  %v1129_v27 = vmul.f32 %v1128_v56, %v2560_v30  ;;  %v2628_v54 = vmul.f32 0.70710677, %v2607_v7 }
 0x26a   :  { %v1141_v34 = vadd.f32 0.112945676, %v1140_v37  ;;  %v2630_v13 = vmin.f32 %v1163_v46, 16.0  ;;  %v1354_v24 = vadd.f32 %v2615_v19, %v2548_v35  ;;  %v1356_v25 = vadd.f32 %v2615_v19, %v1355_v6  ;;  %v1358_v8 = vpop.f32.mrf.mxu1 }
 0x26b   :  { %v1069_v57 = vmul.f32 %v1553_v23, %v1068_v33  ;;  %vm1072_vm7 = vweird.f32 %v1553_v23  ;;  %v1203_v47 = vmul.f32 %v2628_v54, %v2628_v54  ;;  %v1279_v41 = vpack.c.bf16 %v1268_v31, %v1267_v62 }
 0x26c   :  { %v2637_v50 = vpop.eup %1554  ;;  %vm1071_vm8 = vweird.f32 %v2573_v51  ;;  %v1142_v36 = vmul.f32 %v1141_v34, %v2560_v30  ;;  %v1176_v40 = vmul.f32 3.8918573e-05, %v2630_v13  ;;  %v1393_v2 = vadd.f32 %v1354_v24, %v1623_v5 }
 0x26d   :  { %v1070_v35 = vadd.f32 %v1553_v23, %v1069_v57  ;;  %v1078_v11 = vor.u32 1.1754944e-38, %v1077_v10  ;;  %v1107_v6 = vmul.f32 %v2637_v50, %v2601_v42  ;;  %v1130_v38 = vadd.f32 0.05243302, %v1129_v27  ;;  %1477 = vmatmul.msk.bf16.vlgmr.msra.gmra.mxu2 %vm1319_vm1, %v1279_v41  ;;  %vm1073_vm9 = vmor %vm1071_vm8, %vm1072_vm7 }
 0x26e   :  { %v1143_v56 = vadd.f32 0.4994258, %v1142_v36  ;;  %v1165_v60 = vmul.f32 2.1237322e-06, %v2630_v13  ;;  %v1177_v51 = vadd.f32 0.001143296, %v1176_v40  ;;  %v1394_v4 = vadd.f32 %v1356_v25, %v1657_v18 }
 0x26f   :  { %v1074_v63 = vsel %vm1073_vm9, %v1553_v23, %v1070_v35  ;;  %vm1076_vm10 = vcmp.eq.f32.partialorder %v1075_v45, 8.507059e+37  ;;  %v1108_v62 = vsub.f32 1.0, %v1107_v6  ;;  %v2649_v5 = vmin.f32 %v1203_v47, 16.0  ;;  %1409 = vst.msk [vmem:[%s2806_s8] sm:$0xff] %vm80_vm0, %v1393_v2 }
 0x270   :  { %v1451_v31 = vclamps-f32 %v1040_v61, 1.0  ;;  %v1079_v55 = vsel %vm1076_vm10, %v1078_v11, %v1074_v63  ;;  %v1144_v37 = vmul.f32 %v1143_v56, %v2560_v30  ;;  %v1178_v46 = vmul.f32 %v1177_v51, %v2630_v13  ;;  %1410 = vst.msk [vmem:[%s2806_s8 + $0x8] sm:$0xff] %vm80_vm0, %v1394_v4 }
 0x271   :  { %v1080_v18 = vmul.f32 %v1079_v55, %v1055_v58  ;;  %v1093_v23 = vmul.f32 %v1092_v12, %v2502_v16  ;;  %v1131_v45 = vmul.f32 %v1130_v38, %v2560_v30  ;;  %v1109_v33 = vmul.f32 %v2637_v50, %v1108_v62 }
 0x272   :  { %v2664_v10 = vadd.f32 1.0, %v1144_v37  ;;  %v1166_v61 = vadd.f32 0.00028619796, %v1165_v60  ;;  %v1179_v27 = vadd.f32 0.014752088, %v1178_v46  ;;  %v581_v34 = vmul.f32 0.5, %v2365_v29  ;;  %v1360_v40 = vpop.f32.mrf.mxu1 }
 0x273   :  { %v1452_v24 = vclamps-f32 %v1080_v18, 1.0  ;;  %v1205_v25 = vmul.f32 2.1237322e-06, %v2649_v5  ;;  %v1253_v57 = vadd.f32 1.0, %v1451_v31  ;;  %v582_v47 = vmul.f32 0.5, %v2447_v28 }
 0x274   :  { %1556 = vrcp.f32 %v2664_v10  ;;  %v1359_v16 = vadd.f32 %v2615_v19, %v1358_v8  ;;  %v1094_v58 = vadd.f32 1.1283791, %v1093_v23  ;;  %v1132_v41 = vadd.f32 0.18741608, %v1131_v45 }
 0x275   :  { %v1254_v12 = vadd.f32 1.0, %v1452_v24  ;;  %v1180_v36 = vmul.f32 %v1179_v27, %v2630_v13  ;;  %v1110_v2 = vadd.f32 %v2637_v50, %v1109_v33  ;;  %vm1111_vm11 = vweird.f32 %v2601_v42 }
 0x276   :  { %vm1112_vm12 = vweird.f32 %v2637_v50  ;;  %v1167_v29 = vmul.f32 %v1166_v61, %v2630_v13  ;;  %v1117_v28 = vand.u32 2147483648, %v2601_v42  ;;  %v1206_v6 = vadd.f32 0.00028619796, %v1205_v25 }
 0x277   :  { %v1270_v35 = vmul.f32 %v1254_v12, %v582_v47  ;;  %v1181_v11 = vadd.f32 0.112945676, %v1180_v36  ;;  %v1115_v8 = vand.u32 2147483647, %v2601_v42  ;;  %v1216_v38 = vmul.f32 3.8918573e-05, %v2649_v5  ;;  %vm2681_vm13 = vmor %vm1111_vm11, %vm1112_vm12 }
 0x278   :  { %v1395_v56 = vadd.f32 %v1359_v16, %v1618_v3  ;;  %v1361_v60 = vadd.f32 %v2615_v19, %v1360_v40  ;;  %v1269_v51 = vmul.f32 %v1253_v57, %v581_v34  ;;  %v1133_v63 = vmul.f32 %v1132_v41, %v2560_v30 }
 0x279   :  { %v1182_v62 = vmul.f32 %v1181_v11, %v2630_v13  ;;  %v1114_v42 = vsel %vm2681_vm13, %v2637_v50, %v1110_v2  ;;  %v1168_v55 = vadd.f32 0.0036580483, %v1167_v29  ;;  %v1217_v37 = vadd.f32 0.001143296, %v1216_v38 }
 0x27a   :  { %v1557_v31 = vpop.eup %1556  ;;  %1411 = vst.msk [vmem:[%s2806_s8 + $0x10] sm:$0xff] %vm80_vm0, %v1395_v56  ;;  %v1396_v3 = vadd.f32 %v1361_v60, %v1649_v15  ;;  %v1118_v46 = vor.u32 1.1754944e-38, %v1117_v28  ;;  %v1207_v30 = vmul.f32 %v1206_v6, %v2649_v5  ;;  %v1280_v23 = vpack.c.bf16 %v1270_v35, %v1269_v51 }
 0x27b   :  { %v1147_v18 = vmul.f32 %v1557_v31, %v2664_v10  ;;  %v1095_v45 = vmul.f32 %v1094_v58, %v2477_v39  ;;  %vm1116_vm14 = vcmp.eq.f32.partialorder %v1115_v8, 8.507059e+37  ;;  %v1183_v33 = vadd.f32 0.4994258, %v1182_v62 }
 0x27c   :  { %v1218_v50 = vmul.f32 %v1217_v37, %v2649_v5  ;;  %1412 = vst.msk [vmem:[%s2806_s8 + $0x18] sm:$0xff] %vm80_vm0, %v1396_v3  ;;  %v1119_v61 = vsel %vm1116_vm14, %v1118_v46, %v1114_v42  ;;  %v1134_v27 = vadd.f32 1.1283791, %v1133_v63  ;;  %v1155_v34 = vand.u32 2147483647, %v2664_v10 }
 0x27d   :  { %v1148_v15 = vsub.f32 1.0, %v1147_v18  ;;  %1478 = vmatmul.msk.bf16.gmra.mxu2 %vm1319_vm1, %v1280_v23  ;;  %v1157_v24 = vand.u32 2147483648, %v2664_v10  ;;  %v1169_v39 = vmul.f32 %v1168_v55, %v2630_v13  ;;  %v1184_v25 = vmul.f32 %v1183_v33, %v2630_v13 }
 0x27e   :  { %v1219_v57 = vadd.f32 0.014752088, %v1218_v50  ;;  %vm1152_vm15 = vweird.f32 %v1557_v31  ;;  %v1208_v16 = vadd.f32 0.0036580483, %v1207_v30  ;;  %v1120_v58 = vmul.f32 %v1119_v61, %v1095_v45 }
 0x27f   :  { %v1149_v47 = vmul.f32 %v1557_v31, %v1148_v15  ;;  %v1185_v41 = vadd.f32 1.0, %v1184_v25  ;;  %v1135_v2 = vmul.f32 %v1134_v27, %v2541_v48  ;;  %vm1151_vm2 = vweird.f32 %v2664_v10 }
 0x280   :  { %v1363_v12 = vpop.f32.mrf.mxu1  ;;  %v1220_v36 = vmul.f32 %v1219_v57, %v2649_v5  ;;  %vm1153_vm3 = vmor %vm1151_vm2, %vm1152_vm15  ;;  %vm1156_vm4 = vcmp.eq.f32.partialorder %v1155_v34, 8.507059e+37  ;;  %v1158_v35 = vor.u32 1.1754944e-38, %v1157_v24  ;;  %v1170_v28 = vadd.f32 0.05243302, %v1169_v39 }
 0x281   :  { %v1364_v40 = vadd.f32 %v2615_v19, %v1363_v12  ;;  %v1150_v29 = vadd.f32 %v1557_v31, %v1149_v47  ;;  %1558 = vrcp.f32 %v1185_v41  ;;  %v1209_v6 = vmul.f32 %v1208_v16, %v2649_v5 }
 0x282   :  { %v1221_v8 = vadd.f32 0.112945676, %v1220_v36  ;;  %v1453_v56 = vclamps-f32 %v1120_v58, 1.0  ;;  %v1171_v48 = vmul.f32 %v1170_v28, %v2630_v13  ;;  %v584_v37 = vmul.f32 0.5, %v2530_v59 }
 0x283   :  { %v1154_v11 = vsel %vm1153_vm3, %v1557_v31, %v1150_v29  ;;  %v1397_v38 = vadd.f32 %v1364_v40, %v1647_v14  ;;  %v1210_v63 = vadd.f32 0.05243302, %v1209_v6  ;;  %v583_v30 = vmul.f32 0.5, %v2451_v53 }
 0x284   :  { %v1159_v60 = vsel %vm1156_vm4, %v1158_v35, %v1154_v11  ;;  %v1222_v4 = vmul.f32 %v1221_v8, %v2649_v5  ;;  %v1255_v55 = vadd.f32 1.0, %v1453_v56  ;;  %v1172_v23 = vadd.f32 0.18741608, %v1171_v48 }
 0x285   :  { %v1160_v51 = vmul.f32 %v1159_v60, %v1135_v2  ;;  %1413 = vst.msk [vmem:[%s2806_s8 + $0x20] sm:$0xff] %vm80_vm0, %v1397_v38  ;;  %v1211_v61 = vmul.f32 %v1210_v63, %v2649_v5  ;;  %v1197_v39 = vand.u32 2147483648, %v1185_v41  ;;  %vm1191_vm6 = vweird.f32 %v1185_v41 }
 0x286   :  { %v1223_v62 = vadd.f32 0.4994258, %v1222_v4  ;;  %v1271_v15 = vmul.f32 %v1255_v55, %v583_v30  ;;  %v1173_v34 = vmul.f32 %v1172_v23, %v2630_v13  ;;  %v1195_v25 = vand.u32 2147483647, %v1185_v41 }
 0x287   :  { %v1454_v10 = vclamps-f32 %v1160_v51, 1.0  ;;  %v1559_v42 = vpop.eup %1558  ;;  %v1198_v12 = vor.u32 1.1754944e-38, %v1197_v39  ;;  %v585_v48 = vmul.f32 0.5, %v2593_v9 }
 0x288   :  { %v1365_v31 = vpop.f32.mrf.mxu1  ;;  %v1187_v46 = vmul.f32 %v1559_v42, %v1185_v41  ;;  %v1224_v18 = vmul.f32 %v1223_v62, %v2649_v5  ;;  %vm1192_vm5 = vweird.f32 %v1559_v42  ;;  %v1174_v57 = vadd.f32 1.1283791, %v1173_v34 }
 0x289   :  { %v1366_v14 = vadd.f32 %v2615_v19, %v1365_v31  ;;  %v1256_v3 = vadd.f32 1.0, %v1454_v10  ;;  %vm1193_vm7 = vmor %vm1191_vm6, %vm1192_vm5  ;;  %vm1196_vm8 = vcmp.eq.f32.partialorder %v1195_v25, 8.507059e+37  ;;  %v586_v10 = vmul.f32 0.5, %v2607_v7 }
 0x28a   :  { %v1188_v50 = vsub.f32 1.0, %v1187_v46  ;;  %v1225_v27 = vadd.f32 1.0, %v1224_v18  ;;  %v1175_v13 = vmul.f32 %v1174_v57, %v2604_v17 }
 0x28b   :  { %v1398_v45 = vadd.f32 %v1366_v14, %v1661_v20  ;;  %v1272_v33 = vmul.f32 %v1256_v3, %v584_v37  ;;  %v1212_v20 = vadd.f32 0.18741608, %v1211_v61 }
 0x28c   :  { %v1189_v59 = vmul.f32 %v1559_v42, %v1188_v50  ;;  %1560 = vrcp.f32 %v1225_v27  ;;  %v1237_v35 = vand.u32 2147483648, %v1225_v27  ;;  %v1235_v41 = vand.u32 2147483647, %v1225_v27 }
 0x28d   :  { %1414 = vst.msk [vmem:[%s2806_s8 + $0x28] sm:$0xff] %vm80_vm0, %v1398_v45  ;;  %v1281_v53 = vpack.c.bf16 %v1272_v33, %v1271_v15  ;;  %v1213_v58 = vmul.f32 %v1212_v20, %v2649_v5  ;;  %vm1231_vm10 = vweird.f32 %v1225_v27 }
 0x28e   :  { %v1190_v24 = vadd.f32 %v1559_v42, %v1189_v59  ;;  %v1238_v8 = vor.u32 1.1754944e-38, %v1237_v35  ;;  %vm1236_vm12 = vcmp.eq.f32.partialorder %v1235_v41, 8.507059e+37 }
 0x28f   :  { %1479 = vmatmul.msk.bf16.gmra.mxu2 %vm1319_vm1, %v1281_v53  ;;  %v1214_v29 = vadd.f32 1.1283791, %v1213_v58 }
 0x290   :  { %v1194_v47 = vsel %vm1193_vm7, %v1559_v42, %v1190_v24 }
 0x291   :  { %v1199_v40 = vsel %vm1196_vm8, %v1198_v12, %v1194_v47  ;;  %v1215_v56 = vmul.f32 %v1214_v29, %v2628_v54 }
 0x292   :  { %v1561_v16 = vpop.eup %1560  ;;  %v1200_v28 = vmul.f32 %v1199_v40, %v1175_v13 }
 0x293   :  { %v1227_v36 = vmul.f32 %v1561_v16, %v1225_v27  ;;  %vm1232_vm9 = vweird.f32 %v1561_v16 }
 0x294   :  { %vm1233_vm11 = vmor %vm1231_vm10, %vm1232_vm9  ;;  %v1455_v38 = vclamps-f32 %v1200_v28, 1.0 }
 0x295   :  { %v1228_v2 = vsub.f32 1.0, %v1227_v36 }
 0x296   :  { %v1257_v4 = vadd.f32 1.0, %v1455_v38 }
 0x297   :  { %v1229_v11 = vmul.f32 %v1561_v16, %v1228_v2 }
 0x298   :  { %v1273_v62 = vmul.f32 %v1257_v4, %v585_v48 }
 0x299   :  { %v1230_v6 = vadd.f32 %v1561_v16, %v1229_v11 }
 0x29b   :  { %v1234_v5 = vsel %vm1233_vm11, %v1561_v16, %v1230_v6 }
 0x29c   :  { %v1239_v60 = vsel %vm1236_vm12, %v1238_v8, %v1234_v5 }
 0x29d   :  { %v1240_v51 = vmul.f32 %v1239_v60, %v1215_v56 }
 0x29f   :  { %v1456_v17 = vclamps-f32 %v1240_v51, 1.0 }
 0x2a1   :  { %v1258_v63 = vadd.f32 1.0, %v1456_v17 }
 0x2a3   :  { %v1274_v31 = vmul.f32 %v1258_v63, %v586_v10 }
 0x2a5   :  { %v1282_v42 = vpack.c.bf16 %v1274_v31, %v1273_v62 }
 0x2a7   :  { %1480 = vmatmul.msk.bf16.gmra.mxu2 %vm1319_vm1, %v1282_v42 }
 0x2e4   :  { %v1368_v55 = vpop.f32.mrf.mxu1 }
 0x2e5   :  { %v1369_v14 = vadd.f32 %v2615_v19, %v1368_v55 }
 0x2e7   :  { %v1399_v54 = vadd.f32 %v1369_v14, %v1675_v26 }
 0x2e9   :  { %1415 = vst.msk [vmem:[%s2806_s8 + $0x30] sm:$0xff] %vm80_vm0, %v1399_v54 }
 0x2ec   :  { %v1370_v37 = vpop.f32.mrf.mxu1 }
 0x2ed   :  { %v1371_v9 = vadd.f32 %v2615_v19, %v1370_v37 }
 0x2ef   :  { %v1400_v7 = vadd.f32 %v1371_v9, %v1697_v49 }
 0x2f0   :  { %v1373_v3 = vpop.f32.mrf.mxu2 }
 0x2f1   :  { %1416 = vst.msk [vmem:[%s2806_s8 + $0x38] sm:$0xff] %vm80_vm0, %v1400_v7  ;;  %v1374_v46 = vadd.f32 %v2615_v19, %v1373_v3 }
 0x2f3   :  { %v1401_v26 = vadd.f32 %v1374_v46, %v1731_v1 }
 0x2f5   :  { %1417 = vst.msk [vmem:[%s2806_s8 + $0x40] sm:$0xff] %vm80_vm0, %v1401_v26 }
 0x2f8   :  { %v1375_v18 = vpop.f32.mrf.mxu2 }
 0x2f9   :  { %v1376_v30 = vadd.f32 %v2615_v19, %v1375_v18 }
 0x2fb   :  { %v1402_v49 = vadd.f32 %v1376_v30, %v1761_v22 }
 0x2fd   :  { %1418 = vst.msk [vmem:[%s2806_s8 + $0x48] sm:$0xff] %vm80_vm0, %v1402_v49 }
 0x300   :  { %v1378_v23 = vpop.f32.mrf.mxu2 }
 0x301   :  { %v1379_v45 = vadd.f32 %v2615_v19, %v1378_v23 }
 0x303   :  { %v1403_v1 = vadd.f32 %v1379_v45, %v1729_v0 }
 0x305   :  { %1419 = vst.msk [vmem:[%s2806_s8 + $0x50] sm:$0xff] %vm80_vm0, %v1403_v1 }
 0x308   :  { %v1380_v33 = vpop.f32.mrf.mxu2 }
 0x309   :  { %v1381_v50 = vadd.f32 %v2615_v19, %v1380_v33 }
 0x30b   :  { %v1404_v22 = vadd.f32 %v1381_v50, %v1759_v21 }
 0x30d   :  { %1420 = vst.msk [vmem:[%s2806_s8 + $0x58] sm:$0xff] %vm80_vm0, %v1404_v22 }
 0x312   :  { %v1383_v61 = vpop.f32.mrf.mxu2 }
 0x313   :  { %v1384_v27 = vadd.f32 %v2615_v19, %v1383_v61 }
 0x315   :  { %v1405_v0 = vadd.f32 %v1384_v27, %v1782_v32 }
 0x317   :  { %1421 = vst.msk [vmem:[%s2806_s8 + $0x60] sm:$0xff] %vm80_vm0, %v1405_v0 }
 0x31a   :  { %v1385_v15 = vpop.f32.mrf.mxu2 }
 0x31b   :  { %v1386_v59 = vadd.f32 %v2615_v19, %v1385_v15 }
 0x31d   :  { %v1406_v21 = vadd.f32 %v1386_v59, %v1804_v44 }
 0x31f   :  { %1422 = vst.msk [vmem:[%s2806_s8 + $0x68] sm:$0xff] %vm80_vm0, %v1406_v21 }
 0x32a   :  { %v1388_v34 = vpop.f32.mrf.mxu2 }
 0x32b   :  { %v1389_v53 = vadd.f32 %v2615_v19, %v1388_v34 }
 0x32d   :  { %v1407_v32 = vadd.f32 %v1389_v53, %v1816_v52 }
 0x32f   :  { %1423 = vst.msk [vmem:[%s2806_s8 + $0x70] sm:$0xff] %vm80_vm0, %v1407_v32 }
 0x332   :  { %v1390_v24 = vpop.f32.mrf.mxu2 }
 0x333   :  { %v1391_v39 = vadd.f32 %v2615_v19, %v1390_v24 }
 0x335   :  { %v1408_v44 = vadd.f32 %v1391_v39, %v1802_v43 }
 0x337   :  { %1424 = vst.msk [vmem:[%s2806_s8 + $0x78] sm:$0xff] %vm80_vm0, %v1408_v44 }

// kernel: _lambda_.16
= control target key start
LH: loop header
LB: loop body
LE: loop exit
PB: predicated region body
PF: predicated region fallthrough
CT: control target
= control target key end

     0   :  { %vm32_vm0 = vcmask 130048   ;;  %v487_v32 = vmov 16.0   ;;  %s1012_s0 = inlined_call_operand.vmem [shape: f32[128,16], index: 0, kind: input, shape index: {}]   ;;  %s1013_s1 = inlined_call_operand.vmem [shape: f32[1,16], index: 1, kind: input, shape index: {}]   ;;  %s1014_s2 = inlined_call_operand.vmem [shape: f32[1,16], index: 2, kind: input, shape index: {}]   ;;  %s1015_s3 = inlined_call_operand.vmem [shape: f32[128,16], index: 3, kind: output, shape index: {}]  }
   0x1   :  { %v511_v0 = vld [vmem:[%s1012_s0 + $0x20] sm:$0xff]  ;;  %v516_v1 = vld [vmem:[%s1012_s0 + $0x10] sm:$0xff]  ;;  %v532_v6 = vld [vmem:[%s1012_s0 + $0x28] sm:$0xff]  ;;  %453 = vrcp.f32 %v487_v32 }
   0x2   :  { %v521_v2 = vld [vmem:[%s1012_s0] sm:$0xff]  ;;  %v45_v3 = vsel %vm32_vm0, %v511_v0, 0.0  ;;  %v39_v4 = vsel %vm32_vm0, %v516_v1, 0.0  ;;  %v537_v7 = vld [vmem:[%s1012_s0 + $0x18] sm:$0xff]  ;;  %v542_v8 = vld [vmem:[%s1012_s0 + $0x8] sm:$0xff]  ;;  %v48_v9 = vsel %vm32_vm0, %v532_v6, 0.0 }
   0x3   :  { %v33_v5 = vsel %vm32_vm0, %v521_v2, 0.0  ;;  %46 = vadd.xlane.f32.xlu2 %v45_v3  ;;  %40 = vadd.xlane.f32.xlu1 %v39_v4  ;;  %v42_v10 = vsel %vm32_vm0, %v537_v7, 0.0  ;;  %v36_v11 = vsel %vm32_vm0, %v542_v8, 0.0  ;;  %v553_v12 = vld [vmem:[%s1012_s0 + $0x40] sm:$0xff]  ;;  %v558_v13 = vld [vmem:[%s1012_s0 + $0x38] sm:$0xff]  ;;  %v563_v14 = vld [vmem:[%s1012_s0 + $0x30] sm:$0xff] }
   0x4   :  { %34 = vadd.xlane.f32.xlu0 %v33_v5  ;;  %v57_v15 = vsel %vm32_vm0, %v553_v12, 0.0  ;;  %v54_v16 = vsel %vm32_vm0, %v558_v13, 0.0  ;;  %v51_v17 = vsel %vm32_vm0, %v563_v14, 0.0  ;;  %v574_v18 = vld [vmem:[%s1012_s0 + $0x58] sm:$0xff]  ;;  %v579_v19 = vld [vmem:[%s1012_s0 + $0x50] sm:$0xff]  ;;  %v584_v20 = vld [vmem:[%s1012_s0 + $0x48] sm:$0xff] }
   0x5   :  { %v66_v21 = vsel %vm32_vm0, %v574_v18, 0.0  ;;  %v63_v22 = vsel %vm32_vm0, %v579_v19, 0.0  ;;  %v60_v23 = vsel %vm32_vm0, %v584_v20, 0.0  ;;  %v595_v24 = vld [vmem:[%s1012_s0 + $0x70] sm:$0xff]  ;;  %v600_v25 = vld [vmem:[%s1012_s0 + $0x68] sm:$0xff]  ;;  %v605_v26 = vld [vmem:[%s1012_s0 + $0x60] sm:$0xff] }
   0x6   :  { %v75_v27 = vsel %vm32_vm0, %v595_v24, 0.0  ;;  %v72_v28 = vsel %vm32_vm0, %v600_v25, 0.0  ;;  %v69_v29 = vsel %vm32_vm0, %v605_v26, 0.0  ;;  %v616_v30 = vld [vmem:[%s1012_s0 + $0x78] sm:$0xff] }
   0x7   :  { %v78_v31 = vsel %vm32_vm0, %v616_v30, 0.0  ;;  %v454_v33 = vpop.eup %453 }
   0x8   :  { %v82_v34 = vmul.f32 16.0, %v454_v33  ;;  %vm86_vm1 = vweird.f32 %v454_v33 }
   0xa   :  { %v83_v35 = vsub.f32 1.0, %v82_v34 }
   0xb   :  { %49 = vadd.xlane.f32.xlu2 %v48_v9  ;;  %43 = vadd.xlane.f32.xlu1 %v42_v10 }
   0xc   :  { %37 = vadd.xlane.f32.xlu0 %v36_v11  ;;  %v84_v36 = vmul.f32 %v454_v33, %v83_v35 }
   0xe   :  { %v85_v37 = vadd.f32 %v454_v33, %v84_v36 }
  0x10   :  { %v620_v38 = vsel %vm86_vm1, %v454_v33, %v85_v37 }
  0x13   :  { %58 = vadd.xlane.f32.xlu2 %v57_v15  ;;  %55 = vadd.xlane.f32.xlu1 %v54_v16 }
  0x14   :  { %52 = vadd.xlane.f32.xlu0 %v51_v17 }
  0x1b   :  { %67 = vadd.xlane.f32.xlu2 %v66_v21  ;;  %64 = vadd.xlane.f32.xlu1 %v63_v22 }
  0x1c   :  { %61 = vadd.xlane.f32.xlu0 %v60_v23 }
  0x23   :  { %76 = vadd.xlane.f32.xlu2 %v75_v27  ;;  %73 = vadd.xlane.f32.xlu1 %v72_v28 }
  0x24   :  { %70 = vadd.xlane.f32.xlu0 %v69_v29 }
  0x2c   :  { %79 = vadd.xlane.f32.xlu0 %v78_v31 }
  0x76   :  { %v47_v39 = vpop.xlane.xlu2 %46  ;;  %v41_v40 = vpop.xlane.xlu1 %40 }
  0x77   :  { %v90_v41 = vmul.f32 %v620_v38, %v41_v40  ;;  %v35_v42 = vpop.xlane.xlu0 %34  ;;  %v92_v58 = vmul.f32 %v620_v38, %v47_v39 }
  0x78   :  { %v88_v43 = vmul.f32 %v620_v38, %v35_v42 }
  0x79   :  { %v625_v44 = vsub.f32 %v516_v1, %v90_v41 }
  0x7a   :  { %v628_v45 = vsub.f32 %v521_v2, %v88_v43  ;;  %v658_v2 = vsub.f32 %v511_v0, %v92_v58 }
  0x7b   :  { %v122_v46 = vmul.f32 %v625_v44, %v625_v44 }
  0x7c   :  { %v120_v47 = vmul.f32 %v628_v45, %v628_v45  ;;  %v124_v11 = vmul.f32 %v658_v2, %v658_v2 }
  0x7d   :  { %v142_v48 = vsel %vm32_vm0, %v122_v46, 0.0 }
  0x7e   :  { %v50_v49 = vpop.xlane.xlu2 %49  ;;  %v44_v50 = vpop.xlane.xlu1 %43  ;;  %143 = vadd.xlane.f32.xlu0 %v142_v48  ;;  %v136_v51 = vsel %vm32_vm0, %v120_v47, 0.0 }
  0x7f   :  { %v93_v52 = vmul.f32 %v620_v38, %v50_v49  ;;  %v91_v53 = vmul.f32 %v620_v38, %v44_v50  ;;  %137 = vadd.xlane.f32.xlu1 %v136_v51  ;;  %v38_v54 = vpop.xlane.xlu0 %37 }
  0x80   :  { %v89_v55 = vmul.f32 %v620_v38, %v38_v54 }
  0x81   :  { %v640_v56 = vsub.f32 %v532_v6, %v93_v52  ;;  %v643_v57 = vsub.f32 %v537_v7, %v91_v53 }
  0x82   :  { %v647_v59 = vsub.f32 %v542_v8, %v89_v55 }
  0x83   :  { %v125_v60 = vmul.f32 %v640_v56, %v640_v56  ;;  %v123_v61 = vmul.f32 %v643_v57, %v643_v57 }
  0x84   :  { %v121_v62 = vmul.f32 %v647_v59, %v647_v59 }
  0x85   :  { %v151_v63 = vsel %vm32_vm0, %v125_v60, 0.0  ;;  %v145_v1 = vsel %vm32_vm0, %v123_v61, 0.0 }
  0x86   :  { %v59_v3 = vpop.xlane.xlu2 %58  ;;  %152 = vadd.xlane.f32.xlu0 %v151_v63  ;;  %v139_v4 = vsel %vm32_vm0, %v121_v62, 0.0  ;;  %v56_v5 = vpop.xlane.xlu1 %55 }
  0x87   :  { %v96_v6 = vmul.f32 %v620_v38, %v59_v3  ;;  %146 = vadd.xlane.f32.xlu1 %v145_v1  ;;  %140 = vadd.xlane.f32.xlu2 %v139_v4  ;;  %v53_v7 = vpop.xlane.xlu0 %52  ;;  %v95_v9 = vmul.f32 %v620_v38, %v56_v5 }
  0x88   :  { %v94_v8 = vmul.f32 %v620_v38, %v53_v7 }
  0x89   :  { %v665_v10 = vsub.f32 %v553_v12, %v96_v6  ;;  %v675_v16 = vsub.f32 %v558_v13, %v95_v9  ;;  %v148_v12 = vsel %vm32_vm0, %v124_v11, 0.0 }
  0x8a   :  { %v668_v0 = vsub.f32 %v563_v14, %v94_v8 }
  0x8b   :  { %v128_v15 = vmul.f32 %v665_v10, %v665_v10  ;;  %v127_v31 = vmul.f32 %v675_v16, %v675_v16 }
  0x8c   :  { %v126_v17 = vmul.f32 %v668_v0, %v668_v0 }
  0x8d   :  { %v160_v21 = vsel %vm32_vm0, %v128_v15, 0.0  ;;  %v157_v36 = vsel %vm32_vm0, %v127_v31, 0.0 }
  0x8e   :  { %v68_v22 = vpop.xlane.xlu2 %67  ;;  %161 = vadd.xlane.f32.xlu0 %v160_v21  ;;  %v154_v14 = vsel %vm32_vm0, %v126_v17, 0.0  ;;  %v65_v23 = vpop.xlane.xlu1 %64 }
  0x8f   :  { %v99_v27 = vmul.f32 %v620_v38, %v68_v22  ;;  %149 = vadd.xlane.f32.xlu2 %v148_v12  ;;  %155 = vadd.xlane.f32.xlu1 %v154_v14  ;;  %v62_v28 = vpop.xlane.xlu0 %61  ;;  %v98_v29 = vmul.f32 %v620_v38, %v65_v23 }
  0x90   :  { %v97_v13 = vmul.f32 %v620_v38, %v62_v28 }
  0x91   :  { %v688_v32 = vsub.f32 %v574_v18, %v99_v27  ;;  %v696_v35 = vsub.f32 %v579_v19, %v98_v29 }
  0x92   :  { %v691_v33 = vsub.f32 %v584_v20, %v97_v13 }
  0x93   :  { %v131_v34 = vmul.f32 %v688_v32, %v688_v32  ;;  %v130_v46 = vmul.f32 %v696_v35, %v696_v35 }
  0x94   :  { %v129_v37 = vmul.f32 %v691_v33, %v691_v33 }
  0x95   :  { %v169_v39 = vsel %vm32_vm0, %v131_v34, 0.0  ;;  %v166_v51 = vsel %vm32_vm0, %v130_v46, 0.0 }
  0x96   :  { %v77_v40 = vpop.xlane.xlu2 %76  ;;  %170 = vadd.xlane.f32.xlu0 %v169_v39  ;;  %v163_v18 = vsel %vm32_vm0, %v129_v37, 0.0  ;;  %v74_v41 = vpop.xlane.xlu1 %73 }
  0x97   :  { %v102_v20 = vmul.f32 %v620_v38, %v77_v40  ;;  %158 = vadd.xlane.f32.xlu2 %v157_v36  ;;  %164 = vadd.xlane.f32.xlu1 %v163_v18  ;;  %v71_v42 = vpop.xlane.xlu0 %70  ;;  %v101_v43 = vmul.f32 %v620_v38, %v74_v41 }
  0x98   :  { %v100_v19 = vmul.f32 %v620_v38, %v71_v42 }
  0x99   :  { %v709_v47 = vsub.f32 %v595_v24, %v102_v20  ;;  %v717_v50 = vsub.f32 %v600_v25, %v101_v43 }
  0x9a   :  { %v712_v48 = vsub.f32 %v605_v26, %v100_v19 }
  0x9b   :  { %v134_v49 = vmul.f32 %v709_v47, %v709_v47  ;;  %v133_v55 = vmul.f32 %v717_v50, %v717_v50 }
  0x9c   :  { %v132_v52 = vmul.f32 %v712_v48, %v712_v48 }
  0x9d   :  { %v178_v53 = vsel %vm32_vm0, %v134_v49, 0.0  ;;  %v175_v58 = vsel %vm32_vm0, %v133_v55, 0.0 }
  0x9e   :  { %179 = vadd.xlane.f32.xlu0 %v178_v53  ;;  %v172_v24 = vsel %vm32_vm0, %v132_v52, 0.0 }
  0x9f   :  { %167 = vadd.xlane.f32.xlu2 %v166_v51  ;;  %173 = vadd.xlane.f32.xlu1 %v172_v24  ;;  %v80_v26 = vpop.xlane.xlu0 %79  ;;  %v764_v51 = vld [vmem:[%s1013_s1] ss:$0 sm:$0xff] }
  0xa0   :  { %v103_v54 = vmul.f32 %v620_v38, %v80_v26 }
  0xa2   :  { %v728_v25 = vsub.f32 %v616_v30, %v103_v54 }
  0xa4   :  { %v135_v60 = vmul.f32 %v728_v25, %v728_v25 }
  0xa6   :  { %v181_v61 = vsel %vm32_vm0, %v135_v60, 0.0  ;;  %v779_v60 = vld [vmem:[%s1014_s2] ss:$0 sm:$0xff] }
  0xa7   :  { %176 = vadd.xlane.f32.xlu2 %v175_v58  ;;  %182 = vadd.xlane.f32.xlu1 %v181_v61 }
  0xf1   :  { %v144_v62 = vpop.xlane.xlu0 %143 }
  0xf2   :  { %v138_v63 = vpop.xlane.xlu1 %137  ;;  %v186_v1 = vmul.f32 %v144_v62, %v620_v38 }
  0xf3   :  { %v184_v3 = vmul.f32 %v138_v63, %v620_v38 }
  0xf4   :  { %v202_v4 = vadd.f32 1e-05, %v186_v1 }
  0xf5   :  { %v200_v5 = vadd.f32 1e-05, %v184_v3 }
  0xf6   :  { %455 = vrsqrt.f32 %v202_v4  ;;  %vm242_vm4 = vweird.f32 %v202_v4 }
  0xf7   :  { %457 = vrsqrt.f32 %v200_v5  ;;  %vm222_vm5 = vweird.f32 %v200_v5 }
  0xf9   :  { %v153_v30 = vpop.xlane.xlu0 %152 }
  0xfa   :  { %v147_v6 = vpop.xlane.xlu1 %146  ;;  %v141_v7 = vpop.xlane.xlu2 %140  ;;  %v189_v8 = vmul.f32 %v153_v30, %v620_v38 }
  0xfb   :  { %v187_v9 = vmul.f32 %v147_v6, %v620_v38  ;;  %v185_v11 = vmul.f32 %v141_v7, %v620_v38 }
  0xfc   :  { %v456_v15 = vpop.eup %455  ;;  %v739_v17 = vadd.f32 1e-05, %v189_v8 }
  0xfd   :  { %v458_v21 = vpop.eup %457  ;;  %v237_v22 = vmul.f32 %v456_v15, %v202_v4  ;;  %v741_v12 = vadd.f32 1e-05, %v187_v9  ;;  %v743_v14 = vadd.f32 1e-05, %v185_v11  ;;  %vm243_vm2 = vweird.f32 %v456_v15 }
  0xfe   :  { %v217_v23 = vmul.f32 %v458_v21, %v200_v5  ;;  %459 = vrsqrt.f32 %v739_v17  ;;  %vm223_vm3 = vweird.f32 %v458_v21  ;;  %vm244_vm6 = vmor %vm242_vm4, %vm243_vm2  ;;  %vm272_vm8 = vweird.f32 %v739_v17 }
  0xff   :  { %v238_v27 = vmul.f32 %v456_v15, %v237_v22  ;;  %461 = vrsqrt.f32 %v741_v12  ;;  %vm224_vm7 = vmor %vm222_vm5, %vm223_vm3  ;;  %vm252_vm12 = vweird.f32 %v741_v12  ;;  %vm232_vm13 = vweird.f32 %v743_v14 }
 0x100   :  { %v218_v28 = vmul.f32 %v458_v21, %v217_v23  ;;  %463 = vrsqrt.f32 %v743_v14 }
 0x101   :  { %v239_v13 = vmul.f32 0.5, %v238_v27  ;;  %v162_v29 = vpop.xlane.xlu0 %161 }
 0x102   :  { %v219_v31 = vmul.f32 0.5, %v218_v28  ;;  %v150_v34 = vpop.xlane.xlu2 %149  ;;  %v156_v36 = vpop.xlane.xlu1 %155  ;;  %v192_v18 = vmul.f32 %v162_v29, %v620_v38 }
 0x103   :  { %v240_v37 = vsub.f32 1.5, %v239_v13  ;;  %v188_v39 = vmul.f32 %v150_v34, %v620_v38  ;;  %v190_v40 = vmul.f32 %v156_v36, %v620_v38 }
 0x104   :  { %v751_v41 = vpop.eup %459  ;;  %v220_v20 = vsub.f32 1.5, %v219_v31  ;;  %v774_v58 = vadd.f32 1e-05, %v192_v18 }
 0x105   :  { %v753_v42 = vpop.eup %461  ;;  %v241_v19 = vmul.f32 %v456_v15, %v240_v37  ;;  %v267_v43 = vmul.f32 %v751_v41, %v739_v17  ;;  %v757_v46 = vadd.f32 1e-05, %v188_v39  ;;  %v769_v24 = vadd.f32 1e-05, %v190_v40 }
 0x106   :  { %v759_v49 = vpop.eup %463  ;;  %v221_v52 = vmul.f32 %v458_v21, %v220_v20  ;;  %v247_v53 = vmul.f32 %v753_v42, %v741_v12  ;;  %vm273_vm9 = vweird.f32 %v751_v41  ;;  %vm253_vm10 = vweird.f32 %v753_v42 }
 0x107   :  { %v245_v26 = vsel %vm244_vm6, %v456_v15, %v241_v19  ;;  %v227_v54 = vmul.f32 %v759_v49, %v743_v14  ;;  %v268_v55 = vmul.f32 %v751_v41, %v267_v43  ;;  %465 = vrsqrt.f32 %v757_v46  ;;  %vm274_vm14 = vmor %vm272_vm8, %vm273_vm9 }
 0x108   :  { %v225_v61 = vsel %vm224_vm7, %v458_v21, %v221_v52  ;;  %v378_v62 = vmul.f32 %v245_v26, %v625_v44  ;;  %v248_v63 = vmul.f32 %v753_v42, %v247_v53  ;;  %467 = vrsqrt.f32 %v769_v24  ;;  %vm254_vm15 = vmor %vm252_vm12, %vm253_vm10 }
 0x109   :  { %v376_v1 = vmul.f32 %v225_v61, %v628_v45  ;;  %v228_v3 = vmul.f32 %v759_v49, %v227_v54  ;;  %v269_v4 = vmul.f32 0.5, %v268_v55  ;;  %469 = vrsqrt.f32 %v774_v58  ;;  %v171_v27 = vpop.xlane.xlu0 %170 }
 0x10a   :  { %v397_v5 = vmul.f32 %v764_v51, %v378_v62  ;;  %v249_v30 = vmul.f32 0.5, %v248_v63  ;;  %v159_v6 = vpop.xlane.xlu2 %158  ;;  %v165_v15 = vpop.xlane.xlu1 %164  ;;  %vm233_vm11 = vweird.f32 %v759_v49  ;;  %vm262_vm1 = vweird.f32 %v757_v46 }
 0x10b   :  { %v395_v44 = vmul.f32 %v764_v51, %v376_v1  ;;  %v229_v7 = vmul.f32 0.5, %v228_v3  ;;  %v270_v8 = vsub.f32 1.5, %v269_v4  ;;  %v191_v11 = vmul.f32 %v159_v6, %v620_v38  ;;  %vm234_vm2 = vmor %vm232_vm13, %vm233_vm11 }
 0x10c   :  { %v416_v45 = vadd.f32 %v779_v60, %v397_v5  ;;  %v250_v9 = vsub.f32 1.5, %v249_v30  ;;  %v193_v17 = vmul.f32 %v165_v15, %v620_v38  ;;  %v195_v39 = vmul.f32 %v171_v27, %v620_v38 }
 0x10d   :  { %v414_v21 = vadd.f32 %v779_v60, %v395_v44  ;;  %v230_v22 = vsub.f32 1.5, %v229_v7  ;;  %v271_v23 = vmul.f32 %v751_v41, %v270_v8  ;;  %v798_v28 = vpop.eup %465  ;;  %v811_v29 = vadd.f32 1e-05, %v191_v11 }
 0x10e   :  { %432 = vst.msk [vmem:[%s1015_s3 + $0x10] sm:$0xff] %vm32_vm0, %v416_v45  ;;  %v251_v13 = vmul.f32 %v753_v42, %v250_v9  ;;  %v257_v14 = vmul.f32 %v798_v28, %v757_v46  ;;  %v825_v34 = vpop.eup %467  ;;  %vm282_vm3 = vweird.f32 %v769_v24  ;;  %vm263_vm4 = vweird.f32 %v798_v28 }
 0x10f   :  { %430 = vst.msk [vmem:[%s1015_s3] sm:$0xff] %vm32_vm0, %v414_v21  ;;  %v231_v31 = vmul.f32 %v759_v49, %v230_v22  ;;  %v275_v12 = vsel %vm274_vm14, %v751_v41, %v271_v23  ;;  %471 = vrsqrt.f32 %v811_v29  ;;  %v470_v40 = vpop.eup %469  ;;  %v277_v19 = vmul.f32 %v825_v34, %v769_v24  ;;  %vm264_vm7 = vmor %vm262_vm1, %vm263_vm4 }
 0x110   :  { %v255_v36 = vsel %vm254_vm15, %v753_v42, %v251_v13  ;;  %v381_v37 = vmul.f32 %v275_v12, %v640_v56  ;;  %v258_v20 = vmul.f32 %v798_v28, %v257_v14  ;;  %v297_v56 = vmul.f32 %v470_v40, %v774_v58 }
 0x111   :  { %v379_v18 = vmul.f32 %v255_v36, %v643_v57  ;;  %v235_v41 = vsel %vm234_vm2, %v759_v49, %v231_v31  ;;  %v278_v57 = vmul.f32 %v825_v34, %v277_v19  ;;  %v850_v1 = vadd.f32 1e-05, %v195_v39  ;;  %v180_v9 = vpop.xlane.xlu0 %179 }
 0x112   :  { %v377_v42 = vmul.f32 %v235_v41, %v647_v59  ;;  %v400_v43 = vmul.f32 %v764_v51, %v381_v37  ;;  %v168_v52 = vpop.xlane.xlu2 %167  ;;  %v259_v26 = vmul.f32 0.5, %v258_v20  ;;  %v298_v55 = vmul.f32 %v470_v40, %v297_v56  ;;  %v174_v30 = vpop.xlane.xlu1 %173 }
 0x113   :  { %v398_v53 = vmul.f32 %v764_v51, %v379_v18  ;;  %v847_v59 = vadd.f32 1e-05, %v193_v17  ;;  %v279_v63 = vmul.f32 0.5, %v278_v57  ;;  %vm302_vm5 = vweird.f32 %v774_v58 }
 0x114   :  { %v396_v49 = vmul.f32 %v764_v51, %v377_v42  ;;  %v419_v54 = vadd.f32 %v779_v60, %v400_v43  ;;  %v260_v62 = vsub.f32 1.5, %v259_v26  ;;  %v299_v5 = vmul.f32 0.5, %v298_v55 }
 0x115   :  { %v417_v61 = vadd.f32 %v779_v60, %v398_v53  ;;  %v852_v3 = vpop.eup %471  ;;  %473 = vrsqrt.f32 %v847_v59  ;;  %v280_v44 = vsub.f32 1.5, %v279_v63  ;;  %vm283_vm6 = vweird.f32 %v825_v34 }
 0x116   :  { %v415_v4 = vadd.f32 %v779_v60, %v396_v49  ;;  %435 = vst.msk [vmem:[%s1015_s3 + $0x28] sm:$0xff] %vm32_vm0, %v419_v54  ;;  %v261_v6 = vmul.f32 %v798_v28, %v260_v62  ;;  %v287_v7 = vmul.f32 %v852_v3, %v811_v29  ;;  %v300_v8 = vsub.f32 1.5, %v299_v5  ;;  %vm284_vm9 = vmor %vm282_vm3, %vm283_vm6 }
 0x117   :  { %433 = vst.msk [vmem:[%s1015_s3 + $0x18] sm:$0xff] %vm32_vm0, %v417_v61  ;;  %vm303_vm8 = vweird.f32 %v470_v40  ;;  %475 = vrsqrt.f32 %v850_v1  ;;  %v194_v45 = vmul.f32 %v168_v52, %v620_v38  ;;  %v281_v15 = vmul.f32 %v825_v34, %v280_v44 }
 0x118   :  { %431 = vst.msk [vmem:[%s1015_s3 + $0x8] sm:$0xff] %vm32_vm0, %v415_v4  ;;  %v265_v11 = vsel %vm264_vm7, %v798_v28, %v261_v6  ;;  %v288_v21 = vmul.f32 %v852_v3, %v287_v7  ;;  %v196_v22 = vmul.f32 %v174_v30, %v620_v38  ;;  %v301_v46 = vmul.f32 %v470_v40, %v300_v8  ;;  %vm304_vm11 = vmor %vm302_vm5, %vm303_vm8 }
 0x119   :  { %v380_v23 = vmul.f32 %v265_v11, %v658_v2  ;;  %vm292_vm10 = vweird.f32 %v811_v29  ;;  %v887_v27 = vadd.f32 1e-05, %v194_v45  ;;  %v285_v13 = vsel %vm284_vm9, %v825_v34, %v281_v15 }
 0x11a   :  { %v289_v28 = vmul.f32 0.5, %v288_v21  ;;  %v892_v31 = vadd.f32 1e-05, %v196_v22  ;;  %v198_v12 = vmul.f32 %v180_v9, %v620_v38  ;;  %v177_v14 = vpop.xlane.xlu2 %176  ;;  %v382_v17 = vmul.f32 %v285_v13, %v668_v0  ;;  %v183_v57 = vpop.xlane.xlu1 %182 }
 0x11b   :  { %v474_v2 = vpop.eup %473  ;;  %v399_v24 = vmul.f32 %v764_v51, %v380_v23  ;;  %v305_v36 = vsel %vm304_vm11, %v470_v40, %v301_v46  ;;  %477 = vrsqrt.f32 %v887_v27  ;;  %vm293_vm12 = vweird.f32 %v852_v3 }
 0x11c   :  { %v384_v37 = vmul.f32 %v305_v36, %v665_v10  ;;  %v290_v34 = vsub.f32 1.5, %v289_v28  ;;  %v307_v58 = vmul.f32 %v474_v2, %v847_v59  ;;  %v401_v41 = vmul.f32 %v764_v51, %v382_v17  ;;  %vm294_vm13 = vmor %vm292_vm10, %vm293_vm12 }
 0x11d   :  { %v476_v39 = vpop.eup %475  ;;  %v418_v18 = vadd.f32 %v779_v60, %v399_v24  ;;  %479 = vrsqrt.f32 %v892_v31  ;;  %v197_v20 = vmul.f32 %v177_v14, %v620_v38  ;;  %vm312_vm14 = vweird.f32 %v847_v59 }
 0x11e   :  { %v403_v0 = vmul.f32 %v764_v51, %v384_v37  ;;  %v291_v40 = vmul.f32 %v852_v3, %v290_v34  ;;  %v308_v19 = vmul.f32 %v474_v2, %v307_v58  ;;  %v327_v10 = vmul.f32 %v476_v39, %v850_v1 }
 0x11f   :  { %434 = vst.msk [vmem:[%s1015_s3 + $0x20] sm:$0xff] %vm32_vm0, %v418_v18  ;;  %v420_v42 = vadd.f32 %v779_v60, %v401_v41  ;;  %v916_v43 = vadd.f32 1e-05, %v198_v12  ;;  %vm332_vm15 = vweird.f32 %v850_v1  ;;  %v927_v54 = vadd.f32 1e-05, %v197_v20 }
 0x120   :  { %v422_v56 = vadd.f32 %v779_v60, %v403_v0  ;;  %v295_v52 = vsel %vm294_vm13, %v852_v3, %v291_v40  ;;  %v309_v53 = vmul.f32 0.5, %v308_v19  ;;  %v328_v26 = vmul.f32 %v476_v39, %v327_v10 }
 0x121   :  { %v478_v49 = vpop.eup %477  ;;  %436 = vst.msk [vmem:[%s1015_s3 + $0x30] sm:$0xff] %vm32_vm0, %v420_v42  ;;  %v383_v29 = vmul.f32 %v295_v52, %v675_v16  ;;  %481 = vrsqrt.f32 %v916_v43  ;;  %vm313_vm1 = vweird.f32 %v474_v2  ;;  %vm333_vm2 = vweird.f32 %v476_v39 }
 0x122   :  { %438 = vst.msk [vmem:[%s1015_s3 + $0x40] sm:$0xff] %vm32_vm0, %v422_v56  ;;  %v310_v55 = vsub.f32 1.5, %v309_v53  ;;  %v329_v61 = vmul.f32 0.5, %v328_v26  ;;  %v317_v62 = vmul.f32 %v478_v49, %v887_v27  ;;  %483 = vrsqrt.f32 %v927_v54  ;;  %vm314_vm3 = vmor %vm312_vm14, %vm313_vm1 }
 0x123   :  { %v480_v63 = vpop.eup %479  ;;  %v402_v3 = vmul.f32 %v764_v51, %v383_v29  ;;  %v199_v16 = vmul.f32 %v183_v57, %v620_v38  ;;  %vm334_vm4 = vmor %vm332_vm15, %vm333_vm2  ;;  %vm323_vm5 = vweird.f32 %v478_v49  ;;  %vm322_vm6 = vweird.f32 %v887_v27 }
 0x124   :  { %v311_v4 = vmul.f32 %v474_v2, %v310_v55  ;;  %v330_v5 = vsub.f32 1.5, %v329_v61  ;;  %v318_v30 = vmul.f32 %v478_v49, %v317_v62  ;;  %v337_v6 = vmul.f32 %v480_v63, %v892_v31  ;;  %vm324_vm8 = vmor %vm322_vm6, %vm323_vm5 }
 0x125   :  { %v421_v44 = vadd.f32 %v779_v60, %v402_v3  ;;  %v941_v7 = vadd.f32 1e-05, %v199_v16  ;;  %vm343_vm7 = vweird.f32 %v480_v63  ;;  %vm342_vm9 = vweird.f32 %v892_v31 }
 0x126   :  { %v315_v8 = vsel %vm314_vm3, %v474_v2, %v311_v4  ;;  %v331_v45 = vmul.f32 %v476_v39, %v330_v5  ;;  %v319_v9 = vmul.f32 0.5, %v318_v30  ;;  %v338_v11 = vmul.f32 %v480_v63, %v337_v6  ;;  %vm344_vm10 = vmor %vm342_vm9, %vm343_vm7 }
 0x127   :  { %v482_v15 = vpop.eup %481  ;;  %437 = vst.msk [vmem:[%s1015_s3 + $0x38] sm:$0xff] %vm32_vm0, %v421_v44  ;;  %v385_v38 = vmul.f32 %v315_v8, %v691_v33  ;;  %485 = vrsqrt.f32 %v941_v7  ;;  %vm362_vm11 = vweird.f32 %v916_v43  ;;  %vm352_vm15 = vweird.f32 %v927_v54 }
 0x128   :  { %v335_v59 = vsel %vm334_vm4, %v476_v39, %v331_v45  ;;  %v320_v21 = vsub.f32 1.5, %v319_v9  ;;  %v339_v22 = vmul.f32 0.5, %v338_v11  ;;  %v357_v23 = vmul.f32 %v482_v15, %v916_v43  ;;  %v484_v46 = vpop.eup %483 }
 0x129   :  { %v404_v13 = vmul.f32 %v764_v51, %v385_v38  ;;  %v387_v28 = vmul.f32 %v335_v59, %v688_v32  ;;  %v347_v14 = vmul.f32 %v484_v46, %v927_v54  ;;  %vm363_vm12 = vweird.f32 %v482_v15 }
 0x12a   :  { %v321_v33 = vmul.f32 %v478_v49, %v320_v21  ;;  %v340_v12 = vsub.f32 1.5, %v339_v22  ;;  %v358_v1 = vmul.f32 %v482_v15, %v357_v23  ;;  %vm353_vm13 = vweird.f32 %v484_v46  ;;  %vm364_vm14 = vmor %vm362_vm11, %vm363_vm12 }
 0x12b   :  { %v423_v2 = vadd.f32 %v779_v60, %v404_v13  ;;  %v406_v24 = vmul.f32 %v764_v51, %v387_v28  ;;  %v348_v32 = vmul.f32 %v484_v46, %v347_v14  ;;  %vm354_vm1 = vmor %vm352_vm15, %vm353_vm13  ;;  %vm372_vm3 = vweird.f32 %v941_v7 }
 0x12c   :  { %v325_v17 = vsel %vm324_vm8, %v478_v49, %v321_v33  ;;  %v341_v36 = vmul.f32 %v480_v63, %v340_v12  ;;  %v359_v37 = vmul.f32 0.5, %v358_v1 }
 0x12d   :  { %v486_v34 = vpop.eup %485  ;;  %439 = vst.msk [vmem:[%s1015_s3 + $0x48] sm:$0xff] %vm32_vm0, %v423_v2  ;;  %v425_v27 = vadd.f32 %v779_v60, %v406_v24  ;;  %v386_v58 = vmul.f32 %v325_v17, %v696_v35  ;;  %v349_v18 = vmul.f32 0.5, %v348_v32 }
 0x12e   :  { %v345_v31 = vsel %vm344_vm10, %v480_v63, %v341_v36  ;;  %v360_v39 = vsub.f32 1.5, %v359_v37  ;;  %v367_v41 = vmul.f32 %v486_v34, %v941_v7  ;;  %vm373_vm2 = vweird.f32 %v486_v34 }
 0x12f   :  { %441 = vst.msk [vmem:[%s1015_s3 + $0x58] sm:$0xff] %vm32_vm0, %v425_v27  ;;  %v405_v20 = vmul.f32 %v764_v51, %v386_v58  ;;  %v388_v0 = vmul.f32 %v345_v31, %v712_v48  ;;  %v350_v40 = vsub.f32 1.5, %v349_v18  ;;  %vm374_vm4 = vmor %vm372_vm3, %vm373_vm2 }
 0x130   :  { %v361_v35 = vmul.f32 %v482_v15, %v360_v39  ;;  %v368_v19 = vmul.f32 %v486_v34, %v367_v41 }
 0x131   :  { %v424_v10 = vadd.f32 %v779_v60, %v405_v20  ;;  %v407_v42 = vmul.f32 %v764_v51, %v388_v0  ;;  %v351_v52 = vmul.f32 %v484_v46, %v350_v40 }
 0x132   :  { %v365_v56 = vsel %vm364_vm14, %v482_v15, %v361_v35  ;;  %v369_v53 = vmul.f32 0.5, %v368_v19 }
 0x133   :  { %440 = vst.msk [vmem:[%s1015_s3 + $0x50] sm:$0xff] %vm32_vm0, %v424_v10  ;;  %v426_v48 = vadd.f32 %v779_v60, %v407_v42  ;;  %v390_v26 = vmul.f32 %v365_v56, %v709_v47  ;;  %v355_v57 = vsel %vm354_vm1, %v484_v46, %v351_v52 }
 0x134   :  { %v370_v49 = vsub.f32 1.5, %v369_v53  ;;  %v389_v29 = vmul.f32 %v355_v57, %v717_v50 }
 0x135   :  { %442 = vst.msk [vmem:[%s1015_s3 + $0x60] sm:$0xff] %vm32_vm0, %v426_v48  ;;  %v409_v43 = vmul.f32 %v764_v51, %v390_v26 }
 0x136   :  { %v371_v54 = vmul.f32 %v486_v34, %v370_v49  ;;  %v408_v47 = vmul.f32 %v764_v51, %v389_v29 }
 0x137   :  { %v428_v55 = vadd.f32 %v779_v60, %v409_v43 }
 0x138   :  { %v375_v61 = vsel %vm374_vm4, %v486_v34, %v371_v54  ;;  %v427_v62 = vadd.f32 %v779_v60, %v408_v47 }
 0x139   :  { %444 = vst.msk [vmem:[%s1015_s3 + $0x70] sm:$0xff] %vm32_vm0, %v428_v55  ;;  %v391_v63 = vmul.f32 %v375_v61, %v728_v25 }
 0x13a   :  { %443 = vst.msk [vmem:[%s1015_s3 + $0x68] sm:$0xff] %vm32_vm0, %v427_v62 }
 0x13b   :  { %v410_v50 = vmul.f32 %v764_v51, %v391_v63 }
 0x13d   :  { %v429_v3 = vadd.f32 %v779_v60, %v410_v50 }
 0x13f   :  { %445 = vst.msk [vmem:[%s1015_s3 + $0x78] sm:$0xff] %vm32_vm0, %v429_v3 }

// kernel: _lambda_.17
= control target key start
LH: loop header
LB: loop body
LE: loop exit
PB: predicated region body
PF: predicated region fallthrough
CT: control target
= control target key end

     0   :  { %s592_s12 = smov 0   ;;  %s594_s13 = smov 0   ;;  %s752_s0 = inlined_call_operand.vmem [shape: f32[2,5,2,5,2,16], index: 0, kind: input, shape index: {}]   ;;  %s753_s1 = inlined_call_operand.vmem [shape: f32[4,2,2,16], index: 1, kind: input, shape index: {}]   ;;  %s754_s2 = inlined_call_operand.vmem [shape: f32[2,2,16], index: 2, kind: input, shape index: {}]   ;;  %s755_s3 = inlined_call_operand.vmem [shape: f32[2,5,2,5,2,16], index: 3, kind: output, shape index: {}]  }
   0x1   :  { %s596_s14 = smov 0   ;;  %s598_s15 = smov 0  }
   0x2   :  { %s600_s16 = smov 0   ;;  %s602_s17 = smov 0  }
   0x3   :  { %s604_s18 = smov 0   ;;  %s606_s19 = smov 0  }
   0x4   :  { %s608_s20 = smov 0  }
   0x5 LB: > { %s25_s21 = sadd.s32 1, %s558_s17  ;;  %s28_s22 = sadd.s32 1, %s562_s18  ;;  %s570_s20 = sphi %s608_s20, %s13_s20   ;;  %s566_s19 = sphi %s606_s19, %s765_s19   ;;  %s562_s18 = sphi %s604_s18, %s764_s18   ;;  %s558_s17 = sphi %s602_s17, %s763_s17   ;;  %s554_s16 = sphi %s600_s16, %s762_s16   ;;  %s550_s15 = sphi %s598_s15, %s761_s15   ;;  %s546_s14 = sphi %s596_s14, %s760_s14   ;;  %s542_s13 = sphi %s594_s13, %s759_s13   ;;  %s538_s12 = sphi %s592_s12, %s758_s12  }
   0x6   : > { %p26_p0 = scmp.ge.s32.totalorder %s25_s21, 5  ;;  %s405_s23 = sadd.s32 4294967295, %s570_s20  }
   0x7   : > { %s32_s24 = sadd.s32 1, %s566_s19  ;;  %p50_p1 = scmp.ne.s32.totalorder %s542_s13, %s538_s12 }
   0x8   : > { %s767_s21 = smov (%p26_p0, %s25_s21), 0  ;;  %s769_s22 = smov (!%p26_p0, %s28_s22), %s562_s18 }
   0x9   : > { %p30_p2 = scmp.ge.s32.totalorder %s769_s22, 5  ;;  %p51_p3 = scmp.eq.s32.totalorder %s570_s20, 0 }
   0xa   : > { %p126_p4 = scmp.eq.s32.totalorder %s405_s23, 49  ;;  %s39_s28 = ssub.s32 %s558_s17, %s767_s21 }
   0xb   : > { %s771_s22 = smov (%p30_p2, %s769_s22), 0  ;;  %s773_s24 = smov (!%p30_p2, %s32_s24), %s566_s19 }
   0xc   : > { %p650_p5 = por %p51_p3, %p50_p1  ;;  %p34_p6 = scmp.ge.s32.totalorder %s773_s24, 2 }
   0xd   : > { %p654_p7 = por %p126_p4, %p50_p1  ;;  %s37_s27 = ssub.s32 %s562_s18, %s771_s22 }
   0xe   : > { %s775_s24 = smov (%p34_p6, %s773_s24), 0  ;;  %s43_s5 = sadd.s32 1, %s542_s13 }
   0xf   : > { %s36_s29 = ssub.s32 %s566_s19, %s775_s24  ;;  %p408_p9 = scmp.ge.s32.totalorder %s570_s20, 50 }
  0x10   : > { %s38_s30 = sor.u32 %s37_s27, %s36_s29 }
  0x11   : > { %s40_s4 = sor.u32 %s39_s28, %s38_s30  ;;  %154 = sbr.rel (%p408_p9) target bundleno = 32 (0x20), region = 24 }
  0x12   : > { %p41_p8 = scmp.eq.s32.totalorder %s40_s4, 0 }
  0x14   : > { %s668_s6 = scalar_select %p41_p8, %s542_s13, %s43_s5  }
  0x16   : > { %157 = sbr.rel (!%p650_p5) target bundleno = 32 (0x20), region = 28  ;;  %s159_s7 = sand.u32 (%p650_p5), 1, %s542_s13  }
  0x17   : > { %s424_s8 = smul.u32 (%p650_p5), 10, %s562_s18  ;;  %s409_s9 = sshll.u32 (%p650_p5), %s159_s7, 2 }
  0x18   : > { %s425_s10 = smul.u32 (%p650_p5), 50, %s566_s19  ;;  %s161_s4 = scalar_lea.vmem (%p650_p5), [#allocation2], %s409_s9 }
  0x19   : > { %s163_s11 = sadd.s32 (%p650_p5), %s558_s17, %s424_s8 }
  0x1a   : > { %s165_s23 = sadd.s32 (%p650_p5), %s425_s10, %s163_s11 }
  0x1b   : > { %s410_s27 = sshll.u32 %s165_s23, 1 }
  0x1c   : > { %s167_s30 = scalar_lea.vmem %s752_s0, %s410_s27 }
  0x1d   : > { %v184_v0 = vld [vmem:[%s167_s30] sm:$0x3]  ;;  %v186_v1 = vld [vmem:[%s167_s30 + $0xa] sm:$0x3] }
  0x1e   : > { %185 = vst [vmem:[%s161_s4] sm:$0x3] %v184_v0 }
  0x1f   : > { %187 = vst [vmem:[%s161_s4 + $0x2] sm:$0x3] %v186_v1 }
  0x20 PF: > { %p411_p10 = scmp.ge.s32.totalorder %s570_s20, 1  ;;  %p206_p11 = scmp.lt.s32.totalorder %s570_s20, 51 }
  0x22   : > { %p207_p12 = pnand %p411_p10, %p206_p11 }
  0x23   : > { %s213_s25 = sand.u32 (!%p207_p12), 1, %s538_s12  }
  0x24   : > { %210 = sbr.rel (%p207_p12) target bundleno = 66 (0x42), region = 62  ;;  %s683_s5 = sshll.u32 (!%p207_p12), %s213_s25, 2 }
  0x25   : > { %s215_s27 = scalar_lea.vmem (!%p207_p12), [#allocation2], %s683_s5  ;;  %s234_s12 = scalar_lea.vmem (!%p207_p12), [#allocation3], %s683_s5 }
  0x29   : > { %v239_v2 = vld [vmem:[%s753_s1] sm:$0x3]  ;;  %v240_v3 = vld [vmem:[%s753_s1 + $0x2] sm:$0x3]  ;;  %v414_v4 = vld [vmem:[%s753_s1 + $0x4] sm:$0x3] }
  0x2a   : > { %v235_v5 = vld [vmem:[%s215_s27] sm:$0x3]  ;;  %v236_v6 = vld [vmem:[%s215_s27 + $0x2] sm:$0x3]  ;;  %v416_v13 = vld [vmem:[%s753_s1 + $0x8] sm:$0x3] }
  0x2b   : > { %v237_v7 = vld [vmem:[%s754_s2] sm:$0x3]  ;;  %v415_v8 = vld [vmem:[%s753_s1 + $0x6] sm:$0x3]  ;;  %v238_v9 = vld [vmem:[%s754_s2 + $0x2] sm:$0x3] }
  0x2c   : > { %v241_v10 = vperm.slane %v235_v5, 0  ;;  %v249_v11 = vperm.slane %v235_v5, 1  ;;  %v257_v12 = vperm.slane %v236_v6, 0  ;;  %v417_v14 = vld [vmem:[%s753_s1 + $0xa] sm:$0x3]  ;;  %v265_v15 = vperm.slane %v236_v6, 1 }
  0x2d   : > { %v418_v20 = vld [vmem:[%s753_s1 + $0xc] sm:$0x3]  ;;  %v419_v21 = vld [vmem:[%s753_s1 + $0xe] sm:$0x3]  ;;  %vm270_vm0 = vcmask 123904   ;;  %s426_s29 = smul.u32 (%p654_p7), 10, %s550_s15 }
  0x2e   : > { %v242_v16 = vmul.f32 %v241_v10, %v239_v2  ;;  %v243_v17 = vmul.f32 %v241_v10, %v240_v3  ;;  %v250_v18 = vmul.f32 %v414_v4, %v249_v11  ;;  %v251_v19 = vmul.f32 %v415_v8, %v249_v11  ;;  %s427_s30 = smul.u32 (%p654_p7), 50, %s554_s16 }
  0x2f   : > { %v258_v24 = vmul.f32 %v416_v13, %v257_v12  ;;  %v259_v25 = vmul.f32 %v417_v14, %v257_v12  ;;  %v266_v27 = vmul.f32 %v418_v20, %v265_v15  ;;  %v267_v29 = vmul.f32 %v419_v21, %v265_v15  ;;  %s281_s4 = sadd.s32 (%p654_p7), %s546_s14, %s426_s29 }
  0x30   : > { %v244_v22 = vadd.f32 %v242_v16, %v237_v7  ;;  %v245_v23 = vadd.f32 %v243_v17, %v238_v9  ;;  %s283_s25 = sadd.s32 (%p654_p7), %s427_s30, %s281_s4 }
  0x31   : > { %s421_s7 = sshll.u32 (%p654_p7), %s283_s25, 1 }
  0x32   : > { %v252_v26 = vadd.f32 %v250_v18, %v244_v22  ;;  %v253_v28 = vadd.f32 %v251_v19, %v245_v23  ;;  %s285_s10 = scalar_lea.vmem (%p654_p7), %s755_s3, %s421_s7 }
  0x34   : > { %v260_v30 = vadd.f32 %v258_v24, %v252_v26  ;;  %v261_v31 = vadd.f32 %v259_v25, %v253_v28 }
  0x35   : > { %279 = sbr.rel (!%p654_p7) target bundleno = 66 (0x42), region = 70 }
  0x36   : > { %v268_v32 = vadd.f32 %v266_v27, %v260_v30  ;;  %v269_v33 = vadd.f32 %v267_v29, %v261_v31 }
  0x38   : > { %271 = vst.msk [vmem:[%s234_s12] sm:$0x3] %vm270_vm0, %v268_v32 }
  0x39   : > { %272 = vst.msk [vmem:[%s234_s12 + $0x2] sm:$0x3] %vm270_vm0, %v269_v33 }
  0x3f   : > { %v302_v34 = vld [vmem:[%s234_s12] sm:$0x3] }
  0x40   : > { %v304_v35 = vld [vmem:[%s234_s12 + $0x2] sm:$0x3]  ;;  %303 = vst [vmem:[%s285_s10] sm:$0x3] %v302_v34 }
  0x41   : > { %305 = vst [vmem:[%s285_s10 + $0xa] sm:$0x3] %v304_v35 }
  0x42 PF: > { %s13_s20 = sadd.s32 1, %s570_s20   ;;  %s758_s12 = smov %s542_s13 }
  0x43   : > { %p10_p13 = scmp.ge.s32.totalorder %s13_s20, 52   ;;  %s759_s13 = smov %s668_s6 }
  0x44   : > { %s760_s14 = smov %s558_s17  ;;  %s761_s15 = smov %s562_s18 }
  0x45   : > { %s762_s16 = smov %s566_s19  ;;  %s763_s17 = smov %s767_s21 }
  0x46   : > { %s764_s18 = smov %s771_s22  ;;  %s765_s19 = smov %s775_s24 }
  0x47   :  { %12 = sbr.rel (!%p10_p13) target bundleno = 5 (0x5), region = 138 }

// kernel: _lambda_.22
= control target key start
LH: loop header
LB: loop body
LE: loop exit
PB: predicated region body
PF: predicated region fallthrough
CT: control target
= control target key end

     0   :  { %vm20_vm0 = vcmask 261120   ;;  %v151_v8 = vmov 32.0   ;;  %s229_s0 = inlined_call_operand.vmem [shape: f32[32,32], index: 0, kind: input, shape index: {}]   ;;  %s230_s1 = inlined_call_operand.vmem [shape: f32[1,32], index: 1, kind: input, shape index: {}]   ;;  %s231_s2 = inlined_call_operand.vmem [shape: f32[1,32], index: 2, kind: input, shape index: {}]   ;;  %s232_s3 = inlined_call_operand.vmem [shape: f32[32,32], index: 3, kind: output, shape index: {}]  }
   0x1   :  { %v16_v0 = vld [vmem:[%s229_s0 + $0x10] sm:$0xff]  ;;  %v14_v1 = vld [vmem:[%s229_s0] sm:$0xff]  ;;  %v17_v4 = vld [vmem:[%s229_s0 + $0x18] sm:$0xff]  ;;  %141 = vrcp.f32 %v151_v8 }
   0x2   :  { %v27_v2 = vsel %vm20_vm0, %v16_v0, 0.0  ;;  %v21_v3 = vsel %vm20_vm0, %v14_v1, 0.0  ;;  %v15_v5 = vld [vmem:[%s229_s0 + $0x8] sm:$0xff]  ;;  %v30_v6 = vsel %vm20_vm0, %v17_v4, 0.0  ;;  %v139_v61 = vld [vmem:[%s230_s1] ss:$0 sm:$0xff] }
   0x3   :  { %28 = vadd.xlane.f32.xlu1 %v27_v2  ;;  %22 = vadd.xlane.f32.xlu0 %v21_v3  ;;  %v24_v7 = vsel %vm20_vm0, %v15_v5, 0.0  ;;  %v140_v2 = vld [vmem:[%s231_s2] ss:$0 sm:$0xff] }
   0x7   :  { %v142_v9 = vpop.eup %141 }
   0x8   :  { %v34_v10 = vmul.f32 32.0, %v142_v9  ;;  %vm38_vm1 = vweird.f32 %v142_v9 }
   0xa   :  { %v35_v11 = vsub.f32 1.0, %v34_v10 }
   0xb   :  { %31 = vadd.xlane.f32.xlu1 %v30_v6  ;;  %25 = vadd.xlane.f32.xlu0 %v24_v7 }
   0xc   :  { %v36_v12 = vmul.f32 %v142_v9, %v35_v11 }
   0xe   :  { %v37_v13 = vadd.f32 %v142_v9, %v36_v12 }
  0x10   :  { %v39_v14 = vsel %vm38_vm1, %v142_v9, %v37_v13 }
  0x76   :  { %v29_v15 = vpop.xlane.xlu1 %28  ;;  %v23_v16 = vpop.xlane.xlu0 %22 }
  0x77   :  { %v42_v17 = vmul.f32 %v39_v14, %v29_v15  ;;  %v40_v18 = vmul.f32 %v39_v14, %v23_v16 }
  0x79   :  { %v188_v19 = vsub.f32 %v16_v0, %v42_v17  ;;  %v44_v20 = vsub.f32 %v14_v1, %v40_v18 }
  0x7b   :  { %v50_v21 = vmul.f32 %v188_v19, %v188_v19  ;;  %v48_v22 = vmul.f32 %v44_v20, %v44_v20 }
  0x7d   :  { %v58_v23 = vsel %vm20_vm0, %v50_v21, 0.0  ;;  %v52_v24 = vsel %vm20_vm0, %v48_v22, 0.0 }
  0x7e   :  { %v32_v25 = vpop.xlane.xlu1 %31  ;;  %59 = vadd.xlane.f32.xlu0 %v58_v23  ;;  %53 = vadd.xlane.f32.xlu2 %v52_v24  ;;  %v26_v26 = vpop.xlane.xlu0 %25 }
  0x7f   :  { %v43_v27 = vmul.f32 %v39_v14, %v32_v25  ;;  %v41_v28 = vmul.f32 %v39_v14, %v26_v26 }
  0x81   :  { %v194_v29 = vsub.f32 %v17_v4, %v43_v27  ;;  %v196_v30 = vsub.f32 %v15_v5, %v41_v28 }
  0x83   :  { %v51_v31 = vmul.f32 %v194_v29, %v194_v29  ;;  %v49_v32 = vmul.f32 %v196_v30, %v196_v30 }
  0x85   :  { %v61_v33 = vsel %vm20_vm0, %v51_v31, 0.0  ;;  %v55_v34 = vsel %vm20_vm0, %v49_v32, 0.0 }
  0x86   :  { %62 = vadd.xlane.f32.xlu1 %v61_v33  ;;  %56 = vadd.xlane.f32.xlu2 %v55_v34 }
  0xf1   :  { %v54_v35 = vpop.xlane.xlu2 %53  ;;  %v60_v36 = vpop.xlane.xlu0 %59 }
  0xf2   :  { %v64_v37 = vmul.f32 %v54_v35, %v39_v14  ;;  %v66_v38 = vmul.f32 %v60_v36, %v39_v14 }
  0xf4   :  { %v68_v39 = vadd.f32 1e-05, %v64_v37  ;;  %v70_v40 = vadd.f32 1e-05, %v66_v38 }
  0xf6   :  { %143 = vrsqrt.f32 %v68_v39  ;;  %vm78_vm4 = vweird.f32 %v68_v39  ;;  %vm98_vm6 = vweird.f32 %v70_v40 }
  0xf7   :  { %145 = vrsqrt.f32 %v70_v40 }
  0xf9   :  { %v63_v41 = vpop.xlane.xlu1 %62  ;;  %v57_v42 = vpop.xlane.xlu2 %56 }
  0xfa   :  { %v67_v43 = vmul.f32 %v63_v41, %v39_v14  ;;  %v65_v44 = vmul.f32 %v57_v42, %v39_v14 }
  0xfc   :  { %v144_v45 = vpop.eup %143  ;;  %v71_v46 = vadd.f32 1e-05, %v67_v43  ;;  %v69_v47 = vadd.f32 1e-05, %v65_v44 }
  0xfd   :  { %v146_v48 = vpop.eup %145  ;;  %v73_v49 = vmul.f32 %v144_v45, %v68_v39  ;;  %vm79_vm2 = vweird.f32 %v144_v45 }
  0xfe   :  { %v93_v50 = vmul.f32 %v146_v48, %v70_v40  ;;  %147 = vrsqrt.f32 %v71_v46  ;;  %vm99_vm3 = vweird.f32 %v146_v48  ;;  %vm80_vm5 = vmor %vm78_vm4, %vm79_vm2  ;;  %vm108_vm10 = vweird.f32 %v71_v46 }
  0xff   :  { %v74_v51 = vmul.f32 %v144_v45, %v73_v49  ;;  %149 = vrsqrt.f32 %v69_v47  ;;  %vm100_vm7 = vmor %vm98_vm6, %vm99_vm3  ;;  %vm88_vm12 = vweird.f32 %v69_v47 }
 0x100   :  { %v94_v52 = vmul.f32 %v146_v48, %v93_v50 }
 0x101   :  { %v75_v53 = vmul.f32 0.5, %v74_v51 }
 0x102   :  { %v95_v54 = vmul.f32 0.5, %v94_v52 }
 0x103   :  { %v76_v55 = vsub.f32 1.5, %v75_v53 }
 0x104   :  { %v148_v56 = vpop.eup %147  ;;  %v96_v57 = vsub.f32 1.5, %v95_v54 }
 0x105   :  { %v150_v58 = vpop.eup %149  ;;  %v77_v59 = vmul.f32 %v144_v45, %v76_v55  ;;  %v103_v60 = vmul.f32 %v148_v56, %v71_v46  ;;  %vm109_vm8 = vweird.f32 %v148_v56 }
 0x106   :  { %v97_v62 = vmul.f32 %v146_v48, %v96_v57  ;;  %v83_v63 = vmul.f32 %v150_v58, %v69_v47  ;;  %vm89_vm9 = vweird.f32 %v150_v58  ;;  %vm110_vm11 = vmor %vm108_vm10, %vm109_vm8 }
 0x107   :  { %v81_v0 = vsel %vm80_vm5, %v144_v45, %v77_v59  ;;  %v104_v1 = vmul.f32 %v148_v56, %v103_v60  ;;  %vm90_vm13 = vmor %vm88_vm12, %vm89_vm9 }
 0x108   :  { %v112_v3 = vmul.f32 %v81_v0, %v44_v20  ;;  %v101_v4 = vsel %vm100_vm7, %v146_v48, %v97_v62  ;;  %v84_v5 = vmul.f32 %v150_v58, %v83_v63 }
 0x109   :  { %v114_v6 = vmul.f32 %v101_v4, %v188_v19  ;;  %v105_v7 = vmul.f32 0.5, %v104_v1 }
 0x10a   :  { %v119_v8 = vmul.f32 %v139_v61, %v112_v3  ;;  %v85_v9 = vmul.f32 0.5, %v84_v5 }
 0x10b   :  { %v121_v10 = vmul.f32 %v139_v61, %v114_v6  ;;  %v106_v11 = vsub.f32 1.5, %v105_v7 }
 0x10c   :  { %v126_v12 = vadd.f32 %v140_v2, %v119_v8  ;;  %v86_v13 = vsub.f32 1.5, %v85_v9 }
 0x10d   :  { %v128_v14 = vadd.f32 %v140_v2, %v121_v10  ;;  %v107_v15 = vmul.f32 %v148_v56, %v106_v11 }
 0x10e   :  { %130 = vst.msk [vmem:[%s232_s3] sm:$0xff] %vm20_vm0, %v126_v12  ;;  %v87_v16 = vmul.f32 %v150_v58, %v86_v13 }
 0x10f   :  { %132 = vst.msk [vmem:[%s232_s3 + $0x10] sm:$0xff] %vm20_vm0, %v128_v14  ;;  %v111_v17 = vsel %vm110_vm11, %v148_v56, %v107_v15 }
 0x110   :  { %v115_v18 = vmul.f32 %v111_v17, %v194_v29  ;;  %v91_v19 = vsel %vm90_vm13, %v150_v58, %v87_v16 }
 0x111   :  { %v113_v20 = vmul.f32 %v91_v19, %v196_v30 }
 0x112   :  { %v122_v21 = vmul.f32 %v139_v61, %v115_v18 }
 0x113   :  { %v120_v22 = vmul.f32 %v139_v61, %v113_v20 }
 0x114   :  { %v129_v23 = vadd.f32 %v140_v2, %v122_v21 }
 0x115   :  { %v127_v24 = vadd.f32 %v140_v2, %v120_v22 }
 0x116   :  { %133 = vst.msk [vmem:[%s232_s3 + $0x18] sm:$0xff] %vm20_vm0, %v129_v23 }
 0x117   :  { %131 = vst.msk [vmem:[%s232_s3 + $0x8] sm:$0xff] %vm20_vm0, %v127_v24 }

// kernel: _lambda_.19
= control target key start
LH: loop header
LB: loop body
LE: loop exit
PB: predicated region body
PF: predicated region fallthrough
CT: control target
= control target key end

     0   :  { %vm24_vm0 = vcmask 523264   ;;  %v241_v8 = vmov 64.0   ;;  %vm193_vm14 = vcmask 261120   ;;  %s339_s0 = inlined_call_operand.vmem [shape: f32[32,64], index: 0, kind: input, shape index: {}]   ;;  %s340_s1 = inlined_call_operand.vmem [shape: f32[1,64], index: 1, kind: input, shape index: {}]   ;;  %s341_s2 = inlined_call_operand.vmem [shape: f32[1,64], index: 2, kind: input, shape index: {}]   ;;  %s342_s3 = inlined_call_operand.vmem [shape: bf16[64,32], index: 3, kind: input, shape index: {}]   ;;  %s343_s4 = inlined_call_operand.vmem [shape: f32[32,32], index: 4, kind: output, shape index: {}]  }
   0x1   :  { %v20_v0 = vld [vmem:[%s339_s0 + $0x10] sm:$0xff]  ;;  %v18_v1 = vld [vmem:[%s339_s0] sm:$0xff]  ;;  %v21_v4 = vld [vmem:[%s339_s0 + $0x18] sm:$0xff]  ;;  %231 = vrcp.f32 %v241_v8 }
   0x2   :  { %v31_v2 = vsel %vm24_vm0, %v20_v0, 0.0  ;;  %v25_v3 = vsel %vm24_vm0, %v18_v1, 0.0  ;;  %v19_v5 = vld [vmem:[%s339_s0 + $0x8] sm:$0xff]  ;;  %v34_v6 = vsel %vm24_vm0, %v21_v4, 0.0  ;;  %v223_v35 = vld [vmem:[%s342_s3 + $0x18] sm:$0xff]  ;;  %v222_v36 = vld [vmem:[%s342_s3 + $0x10] sm:$0xff] }
   0x3   :  { %32 = vadd.xlane.f32.xlu1 %v31_v2  ;;  %26 = vadd.xlane.f32.xlu0 %v25_v3  ;;  %v28_v7 = vsel %vm24_vm0, %v19_v5, 0.0  ;;  %v221_v37 = vld [vmem:[%s342_s3 + $0x8] sm:$0xff]  ;;  %v220_v42 = vld [vmem:[%s342_s3] sm:$0xff] }
   0x4   :  { %178 = vmatpush.bf16.msra.mxu0 %v223_v35  ;;  %224 = vmatpush.bf16.msra.mxu1 %v223_v35 }
   0x7   :  { %v232_v9 = vpop.eup %231 }
   0x8   :  { %v38_v10 = vmul.f32 64.0, %v232_v9  ;;  %vm42_vm1 = vweird.f32 %v232_v9  ;;  %179 = vmatpush.bf16.msra.mxu0 %v222_v36  ;;  %225 = vmatpush.bf16.msra.mxu1 %v222_v36 }
   0xa   :  { %v39_v11 = vsub.f32 1.0, %v38_v10 }
   0xb   :  { %35 = vadd.xlane.f32.xlu1 %v34_v6  ;;  %29 = vadd.xlane.f32.xlu0 %v28_v7 }
   0xc   :  { %v40_v12 = vmul.f32 %v232_v9, %v39_v11  ;;  %180 = vmatpush.bf16.msra.mxu0 %v221_v37  ;;  %226 = vmatpush.bf16.msra.mxu1 %v221_v37 }
   0xe   :  { %v41_v13 = vadd.f32 %v232_v9, %v40_v12  ;;  %v229_v12 = vld [vmem:[%s340_s1] ss:$0 sm:$0xff] }
  0x10   :  { %v43_v14 = vsel %vm42_vm1, %v232_v9, %v41_v13  ;;  %181 = vmatpush.bf16.msra.mxu0 %v220_v42  ;;  %227 = vmatpush.bf16.msra.mxu1 %v220_v42 }
  0x76   :  { %v33_v15 = vpop.xlane.xlu1 %32  ;;  %v27_v16 = vpop.xlane.xlu0 %26 }
  0x77   :  { %v46_v17 = vmul.f32 %v43_v14, %v33_v15  ;;  %v44_v18 = vmul.f32 %v43_v14, %v27_v16 }
  0x79   :  { %v283_v19 = vsub.f32 %v20_v0, %v46_v17  ;;  %v285_v20 = vsub.f32 %v18_v1, %v44_v18 }
  0x7b   :  { %v54_v21 = vmul.f32 %v283_v19, %v283_v19  ;;  %v52_v22 = vmul.f32 %v285_v20, %v285_v20 }
  0x7d   :  { %v62_v23 = vsel %vm24_vm0, %v54_v21, 0.0  ;;  %v56_v24 = vsel %vm24_vm0, %v52_v22, 0.0 }
  0x7e   :  { %v36_v25 = vpop.xlane.xlu1 %35  ;;  %63 = vadd.xlane.f32.xlu0 %v62_v23  ;;  %57 = vadd.xlane.f32.xlu2 %v56_v24  ;;  %v30_v26 = vpop.xlane.xlu0 %29 }
  0x7f   :  { %v47_v27 = vmul.f32 %v43_v14, %v36_v25  ;;  %v45_v28 = vmul.f32 %v43_v14, %v30_v26 }
  0x81   :  { %v293_v29 = vsub.f32 %v21_v4, %v47_v27  ;;  %v295_v30 = vsub.f32 %v19_v5, %v45_v28 }
  0x83   :  { %v55_v31 = vmul.f32 %v293_v29, %v293_v29  ;;  %v53_v32 = vmul.f32 %v295_v30, %v295_v30 }
  0x85   :  { %v65_v33 = vsel %vm24_vm0, %v55_v31, 0.0  ;;  %v59_v34 = vsel %vm24_vm0, %v53_v32, 0.0 }
  0x86   :  { %66 = vadd.xlane.f32.xlu1 %v65_v33  ;;  %60 = vadd.xlane.f32.xlu2 %v59_v34 }
  0xf1   :  { %v58_v38 = vpop.xlane.xlu2 %57  ;;  %v64_v39 = vpop.xlane.xlu0 %63 }
  0xf2   :  { %v68_v40 = vmul.f32 %v58_v38, %v43_v14  ;;  %v70_v41 = vmul.f32 %v64_v39, %v43_v14 }
  0xf4   :  { %v72_v43 = vadd.f32 1e-05, %v68_v40  ;;  %v74_v44 = vadd.f32 1e-05, %v70_v41 }
  0xf6   :  { %233 = vrsqrt.f32 %v72_v43  ;;  %vm102_vm4 = vweird.f32 %v74_v44  ;;  %vm82_vm5 = vweird.f32 %v72_v43 }
  0xf7   :  { %235 = vrsqrt.f32 %v74_v44 }
  0xf9   :  { %v67_v45 = vpop.xlane.xlu1 %66  ;;  %v61_v46 = vpop.xlane.xlu2 %60 }
  0xfa   :  { %v71_v47 = vmul.f32 %v67_v45, %v43_v14  ;;  %v69_v48 = vmul.f32 %v61_v46, %v43_v14 }
  0xfc   :  { %v234_v49 = vpop.eup %233  ;;  %v75_v50 = vadd.f32 1e-05, %v71_v47  ;;  %v73_v51 = vadd.f32 1e-05, %v69_v48 }
  0xfd   :  { %v236_v52 = vpop.eup %235  ;;  %v77_v53 = vmul.f32 %v234_v49, %v72_v43  ;;  %vm83_vm3 = vweird.f32 %v234_v49 }
  0xfe   :  { %v97_v54 = vmul.f32 %v236_v52, %v74_v44  ;;  %237 = vrsqrt.f32 %v75_v50  ;;  %vm103_vm2 = vweird.f32 %v236_v52  ;;  %vm84_vm7 = vmor %vm82_vm5, %vm83_vm3  ;;  %vm112_vm10 = vweird.f32 %v75_v50 }
  0xff   :  { %v78_v55 = vmul.f32 %v234_v49, %v77_v53  ;;  %239 = vrsqrt.f32 %v73_v51  ;;  %vm104_vm6 = vmor %vm102_vm4, %vm103_vm2  ;;  %vm92_vm12 = vweird.f32 %v73_v51 }
 0x100   :  { %v98_v56 = vmul.f32 %v236_v52, %v97_v54 }
 0x101   :  { %v79_v57 = vmul.f32 0.5, %v78_v55 }
 0x102   :  { %v99_v58 = vmul.f32 0.5, %v98_v56 }
 0x103   :  { %v80_v59 = vsub.f32 1.5, %v79_v57 }
 0x104   :  { %v238_v60 = vpop.eup %237  ;;  %v100_v61 = vsub.f32 1.5, %v99_v58 }
 0x105   :  { %v240_v62 = vpop.eup %239  ;;  %v107_v63 = vmul.f32 %v238_v60, %v75_v50  ;;  %v81_v0 = vmul.f32 %v234_v49, %v80_v59  ;;  %vm113_vm8 = vweird.f32 %v238_v60 }
 0x106   :  { %v101_v1 = vmul.f32 %v236_v52, %v100_v61  ;;  %v87_v2 = vmul.f32 %v240_v62, %v73_v51  ;;  %vm93_vm9 = vweird.f32 %v240_v62  ;;  %vm114_vm11 = vmor %vm112_vm10, %vm113_vm8 }
 0x107   :  { %v108_v3 = vmul.f32 %v238_v60, %v107_v63  ;;  %v85_v7 = vsel %vm84_vm7, %v234_v49, %v81_v0  ;;  %vm94_vm13 = vmor %vm92_vm12, %vm93_vm9 }
 0x108   :  { %v88_v4 = vmul.f32 %v240_v62, %v87_v2  ;;  %v105_v5 = vsel %vm104_vm6, %v236_v52, %v101_v1  ;;  %v116_v13 = vmul.f32 %v85_v7, %v285_v20 }
 0x109   :  { %v109_v6 = vmul.f32 0.5, %v108_v3  ;;  %v118_v10 = vmul.f32 %v105_v5, %v283_v19  ;;  %v230_v19 = vld [vmem:[%s341_s2] ss:$0 sm:$0xff] }
 0x10a   :  { %v89_v8 = vmul.f32 0.5, %v88_v4  ;;  %v123_v23 = vmul.f32 %v229_v12, %v116_v13 }
 0x10b   :  { %v110_v9 = vsub.f32 1.5, %v109_v6  ;;  %v125_v21 = vmul.f32 %v229_v12, %v118_v10 }
 0x10c   :  { %v90_v11 = vsub.f32 1.5, %v89_v8  ;;  %v130_v27 = vadd.f32 %v230_v19, %v123_v23 }
 0x10d   :  { %v111_v14 = vmul.f32 %v238_v60, %v110_v9  ;;  %v132_v25 = vadd.f32 %v230_v19, %v125_v21 }
 0x10e   :  { %v91_v15 = vmul.f32 %v240_v62, %v90_v11 }
 0x10f   :  { %v115_v16 = vsel %vm114_vm11, %v238_v60, %v111_v14 }
 0x110   :  { %v119_v17 = vmul.f32 %v115_v16, %v293_v29  ;;  %v95_v18 = vsel %vm94_vm13, %v240_v62, %v91_v15 }
 0x111   :  { %v117_v22 = vmul.f32 %v95_v18, %v295_v30 }
 0x112   :  { %v126_v24 = vmul.f32 %v229_v12, %v119_v17 }
 0x113   :  { %v124_v20 = vmul.f32 %v229_v12, %v117_v22 }
 0x114   :  { %v133_v26 = vadd.f32 %v230_v19, %v126_v24 }
 0x115   :  { %v131_v28 = vadd.f32 %v230_v19, %v124_v20 }
 0x116   :  { %v135_v31 = vpack.c.bf16 %v133_v26, %v132_v25 }
 0x117   :  { %v134_v32 = vpack.c.bf16 %v131_v28, %v130_v27 }
 0x118   :  { %219 = vmatmul.msk.bf16.vlgmr.msra.gmra.mxu1 %vm24_vm0, %v135_v31 }
 0x119   :  { %218 = vmatmul.msk.bf16.vlgmr.msra.gmra.mxu0 %vm24_vm0, %v134_v32 }
 0x195   :  { %v188_v29 = vpop.f32.mrf.mxu1 }
 0x196   :  { %v183_v33 = vpop.f32.mrf.mxu0  ;;  %196 = vst.msk [vmem:[%s343_s4 + $0x10] sm:$0xff] %vm193_vm14, %v188_v29 }
 0x197   :  { %194 = vst.msk [vmem:[%s343_s4] sm:$0xff] %vm193_vm14, %v183_v33 }
 0x19d   :  { %v190_v30 = vpop.f32.mrf.mxu1 }
 0x19e   :  { %v185_v34 = vpop.f32.mrf.mxu0  ;;  %197 = vst.msk [vmem:[%s343_s4 + $0x18] sm:$0xff] %vm193_vm14, %v190_v30 }
 0x19f   :  { %195 = vst.msk [vmem:[%s343_s4 + $0x8] sm:$0xff] %vm193_vm14, %v185_v34 }

// kernel: _lambda_.20
= control target key start
LH: loop header
LB: loop body
LE: loop exit
PB: predicated region body
PF: predicated region fallthrough
CT: control target
= control target key end

     0   :  { %s729_s18 = smov 0   ;;  %s731_s19 = smov 0   ;;  %s901_s0 = inlined_call_operand.vmem [shape: f32[2,2,2,2,2,32], index: 0, kind: input, shape index: {}]   ;;  %s902_s1 = inlined_call_operand.vmem [shape: f32[1,32], index: 1, kind: input, shape index: {}]   ;;  %s903_s2 = inlined_call_operand.vmem [shape: f32[1,32], index: 2, kind: input, shape index: {}]   ;;  %s904_s3 = inlined_call_operand.vmem [shape: f32[4,2,2,32], index: 3, kind: input, shape index: {}]   ;;  %s905_s4 = inlined_call_operand.vmem [shape: f32[2,2,32], index: 4, kind: input, shape index: {}]   ;;  %s906_s5 = inlined_call_operand.vmem [shape: f32[2,2,2,2,2,32], index: 5, kind: output, shape index: {}]  }
   0x1   :  { %s733_s20 = smov 0   ;;  %s735_s21 = smov 0  }
   0x2   :  { %s737_s22 = smov 0   ;;  %s739_s23 = smov 0  }
   0x3   :  { %s741_s24 = smov 0   ;;  %s743_s25 = smov 0  }
   0x4   :  { %s745_s26 = smov 0  }
   0x5 LB: > { %s27_s27 = sadd.s32 1, %s684_s23  ;;  %s30_s28 = sadd.s32 1, %s688_s24  ;;  %s696_s26 = sphi %s745_s26, %s15_s26   ;;  %s692_s25 = sphi %s743_s25, %s919_s25   ;;  %s688_s24 = sphi %s741_s24, %s918_s24   ;;  %s684_s23 = sphi %s739_s23, %s917_s23   ;;  %s680_s22 = sphi %s737_s22, %s916_s22   ;;  %s676_s21 = sphi %s735_s21, %s915_s21   ;;  %s672_s20 = sphi %s733_s20, %s914_s20   ;;  %s668_s19 = sphi %s731_s19, %s913_s19   ;;  %s664_s18 = sphi %s729_s18, %s912_s18  }
   0x6   : > { %p28_p0 = scmp.ge.s32.totalorder %s27_s27, 2  ;;  %s522_s29 = sadd.s32 4294967295, %s696_s26  }
   0x7   : > { %s34_s30 = sadd.s32 1, %s692_s25  ;;  %p52_p1 = scmp.ne.s32.totalorder %s668_s19, %s664_s18 }
   0x8   : > { %s921_s27 = smov (%p28_p0, %s27_s27), 0  ;;  %s923_s28 = smov (!%p28_p0, %s30_s28), %s688_s24 }
   0x9   : > { %p32_p2 = scmp.ge.s32.totalorder %s923_s28, 2  ;;  %p53_p3 = scmp.eq.s32.totalorder %s696_s26, 0 }
   0xa   : > { %p170_p4 = scmp.eq.s32.totalorder %s522_s29, 7  ;;  %s41_s9 = ssub.s32 %s684_s23, %s921_s27 }
   0xb   : > { %s925_s28 = smov (%p32_p2, %s923_s28), 0  ;;  %s927_s30 = smov (!%p32_p2, %s34_s30), %s692_s25 }
   0xc   : > { %p787_p5 = por %p53_p3, %p52_p1  ;;  %p36_p6 = scmp.ge.s32.totalorder %s927_s30, 2 }
   0xd   : > { %p791_p7 = por %p170_p4, %p52_p1  ;;  %s39_s8 = ssub.s32 %s688_s24, %s925_s28 }
   0xe   : > { %s929_s30 = smov (%p36_p6, %s927_s30), 0  ;;  %s45_s13 = sadd.s32 1, %s668_s19 }
   0xf   : > { %910 = sst [smem:[#allocation4_spill]] %s929_s30  ;;  %s38_s10 = ssub.s32 %s692_s25, %s929_s30 }
  0x10   : > { %s40_s11 = sor.u32 %s39_s8, %s38_s10  ;;  %p525_p9 = scmp.ge.s32.totalorder %s696_s26, 8 }
  0x11   : > { %s42_s12 = sor.u32 %s41_s9, %s40_s11 }
  0x12   : > { %p43_p8 = scmp.eq.s32.totalorder %s42_s12, 0  ;;  %204 = sbr.rel (%p525_p9) target bundleno = 32 (0x20), region = 32 }
  0x14   : > { %s805_s14 = scalar_select %p43_p8, %s668_s19, %s45_s13  }
  0x17   : > { %207 = sbr.rel (!%p787_p5) target bundleno = 32 (0x20), region = 36  ;;  %s209_s15 = sand.u32 (%p787_p5), 1, %s668_s19  }
  0x18   : > { %s527_s16 = sshll.u32 (%p787_p5), %s688_s24, 2  ;;  %s526_s17 = sshll.u32 (%p787_p5), %s209_s15, 2 }
  0x19   : > { %s213_s29 = sadd.s32 (%p787_p5), %s684_s23, %s527_s16  ;;  %s528_s8 = sshll.u32 (%p787_p5), %s692_s25, 3 }
  0x1a   : > { %s215_s9 = sadd.s32 (%p787_p5), %s528_s8, %s213_s29  ;;  %s211_s30 = scalar_lea.vmem (%p787_p5), [#allocation2], %s526_s17 }
  0x1b   : > { %s529_s10 = sshll.u32 (%p787_p5), %s215_s9, 1 }
  0x1c   : > { %s217_s13 = scalar_lea.vmem %s901_s0, %s529_s10 }
  0x1d   : > { %v234_v0 = vld [vmem:[%s217_s13] sm:$0x3]  ;;  %v236_v1 = vld [vmem:[%s217_s13 + $0x4] sm:$0x3] }
  0x1e   : > { %235 = vst [vmem:[%s211_s30] sm:$0x3] %v234_v0 }
  0x1f   : > { %237 = vst [vmem:[%s211_s30 + $0x2] sm:$0x3] %v236_v1 }
  0x20 PF: > { %p530_p10 = scmp.ge.s32.totalorder %s696_s26, 1  ;;  %p256_p11 = scmp.lt.s32.totalorder %s696_s26, 9 }
  0x22   : > { %p257_p12 = pnand %p530_p10, %p256_p11 }
  0x23   : > { %s263_s6 = sand.u32 (!%p257_p12), 1, %s664_s18  }
  0x24   : > { %260 = sbr.rel (%p257_p12) target bundleno = 336 (0x150), region = 70  ;;  %s820_s15 = sshll.u32 (!%p257_p12), %s263_s6, 2 }
  0x25   : > { %s265_s16 = scalar_lea.vmem (!%p257_p12), [#allocation2], %s820_s15  ;;  %s288_s18 = scalar_lea.vmem (!%p257_p12), [#allocation3], %s820_s15 }
  0x29   : > { %vm293_vm0 = vcmask 254976   ;;  %v289_v2 = vld [vmem:[%s265_s16] sm:$0x3]  ;;  %v290_v4 = vld [vmem:[%s265_s16 + $0x2] sm:$0x3]  ;;  %v698_v6 = vmov 32.0  }
  0x2a   : > { %v294_v3 = vsel %vm293_vm0, %v289_v2, 0.0  ;;  %v297_v5 = vsel %vm293_vm0, %v290_v4, 0.0  ;;  %620 = vrcp.f32 %v698_v6  ;;  %v618_v37 = vld [vmem:[%s902_s1] ss:$0 sm:$0xff]  ;;  %v358_v48 = vld [vmem:[%s904_s3 + $0x2] sm:$0x3] }
  0x2b   : > { %295 = vadd.xlane.f32.xlu0 %v294_v3  ;;  %v619_v40 = vld [vmem:[%s903_s2] ss:$0 sm:$0xff]  ;;  %v356_v55 = vld [vmem:[%s905_s4 + $0x2] sm:$0x3]  ;;  %v533_v58 = vld [vmem:[%s904_s3 + $0x4] sm:$0x3] }
  0x2c   : > { %v357_v47 = vld [vmem:[%s904_s3] sm:$0x3]  ;;  %v534_v59 = vld [vmem:[%s904_s3 + $0x6] sm:$0x3]  ;;  %v535_v63 = vld [vmem:[%s904_s3 + $0x8] sm:$0x3] }
  0x2d   : > { %v355_v54 = vld [vmem:[%s905_s4] sm:$0x3]  ;;  %v536_v0 = vld [vmem:[%s904_s3 + $0xa] sm:$0x3]  ;;  %v538_v6 = vld [vmem:[%s904_s3 + $0xe] sm:$0x3] }
  0x2e   : > { %s540_s30 = sshll.u32 (%p791_p7), %s676_s21, 2  ;;  %s541_s17 = sshll.u32 (%p791_p7), %s680_s22, 3 }
  0x2f   : > { %s398_s29 = sadd.s32 (%p791_p7), %s672_s20, %s540_s30 }
  0x30   : > { %v621_v7 = vpop.eup %620  ;;  %s400_s8 = sadd.s32 (%p791_p7), %s541_s17, %s398_s29 }
  0x31   : > { %v301_v8 = vmul.f32 32.0, %v621_v7  ;;  %vm305_vm1 = vweird.f32 %v621_v7  ;;  %s542_s9 = sshll.u32 (%p791_p7), %s400_s8, 1 }
  0x32   : > { %s402_s15 = scalar_lea.vmem (%p791_p7), %s906_s5, %s542_s9 }
  0x33   : > { %298 = vadd.xlane.f32.xlu0 %v297_v5  ;;  %v302_v9 = vsub.f32 1.0, %v301_v8  ;;  %v537_v5 = vld [vmem:[%s904_s3 + $0xc] sm:$0x3] }
  0x35   : > { %v303_v10 = vmul.f32 %v621_v7, %v302_v9 }
  0x37   : > { %v304_v11 = vadd.f32 %v621_v7, %v303_v10 }
  0x39   : > { %v306_v12 = vsel %vm305_vm1, %v621_v7, %v304_v11 }
  0x9e   : > { %v296_v13 = vpop.xlane.xlu0 %295 }
  0x9f   : > { %v307_v14 = vmul.f32 %v306_v12, %v296_v13 }
  0xa1   : > { %v309_v15 = vsub.f32 %v289_v2, %v307_v14 }
  0xa3   : > { %v311_v16 = vmul.f32 %v309_v15, %v309_v15 }
  0xa5   : > { %v313_v17 = vsel %vm293_vm0, %v311_v16, 0.0 }
  0xa6   : > { %314 = vadd.xlane.f32.xlu1 %v313_v17  ;;  %v299_v18 = vpop.xlane.xlu0 %298 }
  0xa7   : > { %v308_v19 = vmul.f32 %v306_v12, %v299_v18 }
  0xa9   : > { %v310_v20 = vsub.f32 %v290_v4, %v308_v19 }
  0xab   : > { %v312_v21 = vmul.f32 %v310_v20, %v310_v20 }
  0xad   : > { %v316_v22 = vsel %vm293_vm0, %v312_v21, 0.0 }
  0xae   : > { %317 = vadd.xlane.f32.xlu1 %v316_v22 }
 0x119   : > { %v315_v23 = vpop.xlane.xlu1 %314 }
 0x11a   : > { %v319_v24 = vmul.f32 %v315_v23, %v306_v12 }
 0x11c   : > { %v321_v25 = vadd.f32 1e-05, %v319_v24 }
 0x11e   : > { %622 = vrsqrt.f32 %v321_v25  ;;  %vm329_vm3 = vweird.f32 %v321_v25 }
 0x121   : > { %v318_v26 = vpop.xlane.xlu1 %317 }
 0x122   : > { %v320_v27 = vmul.f32 %v318_v26, %v306_v12 }
 0x124   : > { %v623_v28 = vpop.eup %622  ;;  %v322_v29 = vadd.f32 1e-05, %v320_v27 }
 0x125   : > { %v324_v30 = vmul.f32 %v623_v28, %v321_v25  ;;  %vm330_vm2 = vweird.f32 %v623_v28 }
 0x126   : > { %624 = vrsqrt.f32 %v322_v29  ;;  %vm331_vm4 = vmor %vm329_vm3, %vm330_vm2  ;;  %vm339_vm6 = vweird.f32 %v322_v29 }
 0x127   : > { %v325_v31 = vmul.f32 %v623_v28, %v324_v30 }
 0x129   : > { %v326_v32 = vmul.f32 0.5, %v325_v31 }
 0x12b   : > { %v327_v33 = vsub.f32 1.5, %v326_v32 }
 0x12c   : > { %v625_v34 = vpop.eup %624 }
 0x12d   : > { %v328_v35 = vmul.f32 %v623_v28, %v327_v33  ;;  %v334_v36 = vmul.f32 %v625_v34, %v322_v29  ;;  %vm340_vm5 = vweird.f32 %v625_v34 }
 0x12e   : > { %vm341_vm7 = vmor %vm339_vm6, %vm340_vm5 }
 0x12f   : > { %v332_v38 = vsel %vm331_vm4, %v623_v28, %v328_v35  ;;  %v335_v39 = vmul.f32 %v625_v34, %v334_v36 }
 0x130   : > { %v343_v41 = vmul.f32 %v332_v38, %v309_v15 }
 0x131   : > { %v336_v42 = vmul.f32 0.5, %v335_v39 }
 0x132   : > { %v348_v43 = vmul.f32 %v618_v37, %v343_v41 }
 0x133   : > { %v337_v44 = vsub.f32 1.5, %v336_v42 }
 0x134   : > { %v353_v45 = vadd.f32 %v619_v40, %v348_v43 }
 0x135   : > { %v338_v46 = vmul.f32 %v625_v34, %v337_v44 }
 0x136   : > { %v359_v49 = vperm.slane %v353_v45, 0  ;;  %v367_v56 = vperm.slane %v353_v45, 1 }
 0x137   : > { %v342_v50 = vsel %vm341_vm7, %v625_v34, %v338_v46 }
 0x138   : > { %v360_v51 = vmul.f32 %v359_v49, %v357_v47  ;;  %v361_v52 = vmul.f32 %v359_v49, %v358_v48  ;;  %v344_v53 = vmul.f32 %v342_v50, %v310_v20  ;;  %v368_v1 = vmul.f32 %v533_v58, %v367_v56 }
 0x139   : > { %v369_v2 = vmul.f32 %v534_v59, %v367_v56 }
 0x13a   : > { %v349_v57 = vmul.f32 %v618_v37, %v344_v53  ;;  %v362_v60 = vadd.f32 %v360_v51, %v355_v54  ;;  %v363_v61 = vadd.f32 %v361_v52, %v356_v55 }
 0x13c   : > { %v354_v62 = vadd.f32 %v619_v40, %v349_v57  ;;  %v370_v7 = vadd.f32 %v368_v1, %v362_v60  ;;  %v371_v8 = vadd.f32 %v369_v2, %v363_v61 }
 0x13e   : > { %v375_v3 = vperm.slane %v354_v62, 0  ;;  %v383_v4 = vperm.slane %v354_v62, 1 }
 0x140   : > { %v376_v9 = vmul.f32 %v535_v63, %v375_v3  ;;  %v377_v10 = vmul.f32 %v536_v0, %v375_v3  ;;  %v384_v13 = vmul.f32 %v537_v5, %v383_v4  ;;  %v385_v14 = vmul.f32 %v538_v6, %v383_v4 }
 0x142   : > { %v378_v11 = vadd.f32 %v376_v9, %v370_v7  ;;  %v379_v12 = vadd.f32 %v377_v10, %v371_v8 }
 0x143   : > { %396 = sbr.rel (!%p791_p7) target bundleno = 336 (0x150), region = 78 }
 0x144   : > { %v386_v15 = vadd.f32 %v384_v13, %v378_v11  ;;  %v387_v16 = vadd.f32 %v385_v14, %v379_v12 }
 0x146   : > { %388 = vst.msk [vmem:[%s288_s18] sm:$0x3] %vm293_vm0, %v386_v15 }
 0x147   : > { %389 = vst.msk [vmem:[%s288_s18 + $0x2] sm:$0x3] %vm293_vm0, %v387_v16 }
 0x14d   : > { %v419_v17 = vld [vmem:[%s288_s18] sm:$0x3] }
 0x14e   : > { %v421_v18 = vld [vmem:[%s288_s18 + $0x2] sm:$0x3]  ;;  %420 = vst [vmem:[%s402_s15] sm:$0x3] %v419_v17 }
 0x14f   : > { %422 = vst [vmem:[%s402_s15 + $0x4] sm:$0x3] %v421_v18 }
 0x150 PF: > { %s15_s26 = sadd.s32 1, %s696_s26   ;;  %s911_s7 = sld [smem:[#allocation4_spill]] }
 0x151   : > { %p12_p13 = scmp.ge.s32.totalorder %s15_s26, 10   ;;  %s912_s18 = smov %s668_s19 }
 0x152   : > { %s913_s19 = smov %s805_s14  ;;  %s914_s20 = smov %s684_s23 }
 0x153   : > { %s915_s21 = smov %s688_s24  ;;  %s916_s22 = smov %s692_s25 }
 0x154   : > { %s917_s23 = smov %s921_s27  ;;  %s918_s24 = smov %s925_s28 }
 0x155   :  { %14 = sbr.rel (!%p12_p13) target bundleno = 5 (0x5), region = 146 }
 0x156   : > { %s919_s25 = smov %s911_s7 }

// kernel: _lambda_.21
= control target key start
LH: loop header
LB: loop body
LE: loop exit
PB: predicated region body
PF: predicated region fallthrough
CT: control target
= control target key end

     0   :  { %vm44_vm0 = vcmask 261120   ;;  %v565_v16 = vmov 32.0   ;;  %s827_s0 = inlined_call_operand.vmem [shape: f32[32,32], index: 0, kind: input, shape index: {}]   ;;  %s828_s1 = inlined_call_operand.vmem [shape: f32[32,32], index: 1, kind: input, shape index: {}]   ;;  %s829_s2 = inlined_call_operand.vmem [shape: f32[1,32], index: 2, kind: input, shape index: {}]   ;;  %s830_s3 = inlined_call_operand.vmem [shape: f32[1,32], index: 3, kind: input, shape index: {}]   ;;  %s831_s5 = inlined_call_operand.vmem [shape: f32[1,128], index: 5, kind: input, shape index: {}]   ;;  %s832_s4 = inlined_call_operand.vmem [shape: bf16[32,128], index: 4, kind: input, shape index: {}]   ;;  %s833_s7 = inlined_call_operand.vmem [shape: f32[1,32], index: 7, kind: input, shape index: {}]   ;;  %s834_s6 = inlined_call_operand.vmem [shape: bf16[128,32], index: 6, kind: input, shape index: {}]   ;;  %s835_s8 = inlined_call_operand.vmem [shape: f32[32,32], index: 8, kind: output, shape index: {}]  }
   0x1   :  { %v32_v0 = vld [vmem:[%s827_s0 + $0x10] sm:$0xff]  ;;  %v30_v2 = vld [vmem:[%s827_s0] sm:$0xff]  ;;  %v33_v6 = vld [vmem:[%s827_s0 + $0x18] sm:$0xff]  ;;  %547 = vrcp.f32 %v565_v16 }
   0x2   :  { %v36_v1 = vld [vmem:[%s828_s1 + $0x10] sm:$0xff]  ;;  %v34_v4 = vld [vmem:[%s828_s1] sm:$0xff]  ;;  %v37_v7 = vld [vmem:[%s828_s1 + $0x18] sm:$0xff] }
   0x3   :  { %v620_v3 = vadd.f32 %v36_v1, %v32_v0  ;;  %v625_v5 = vadd.f32 %v34_v4, %v30_v2  ;;  %v31_v9 = vld [vmem:[%s827_s0 + $0x8] sm:$0xff]  ;;  %v643_v12 = vadd.f32 %v37_v7, %v33_v6  ;;  %v524_v46 = vld [vmem:[%s832_s4] sm:$0xff] }
   0x4   :  { %v35_v10 = vld [vmem:[%s828_s1 + $0x8] sm:$0xff] }
   0x5   :  { %v51_v8 = vsel %vm44_vm0, %v620_v3, 0.0  ;;  %v45_v11 = vsel %vm44_vm0, %v625_v5, 0.0  ;;  %v645_v13 = vadd.f32 %v35_v10, %v31_v9  ;;  %v54_v14 = vsel %vm44_vm0, %v643_v12, 0.0  ;;  %v525_v43 = vld [vmem:[%s832_s4 + $0x8] sm:$0xff] }
   0x6   :  { %52 = vadd.xlane.f32.xlu1 %v51_v8  ;;  %46 = vadd.xlane.f32.xlu0 %v45_v11 }
   0x7   :  { %v48_v15 = vsel %vm44_vm0, %v645_v13, 0.0  ;;  %v548_v17 = vpop.eup %547  ;;  %188 = vmatpush.bf16.msra.mxu0 %v525_v43  ;;  %v545_v43 = vld [vmem:[%s831_s5] ss:$0 sm:$0xff] }
   0x8   :  { %v58_v18 = vmul.f32 32.0, %v548_v17  ;;  %vm62_vm1 = vweird.f32 %v548_v17 }
   0xa   :  { %v59_v19 = vsub.f32 1.0, %v58_v18 }
   0xb   :  { %189 = vmatpush.bf16.msra.mxu0 %v524_v46 }
   0xc   :  { %v60_v20 = vmul.f32 %v548_v17, %v59_v19 }
   0xe   :  { %55 = vadd.xlane.f32.xlu1 %v54_v14  ;;  %49 = vadd.xlane.f32.xlu0 %v48_v15  ;;  %v61_v21 = vadd.f32 %v548_v17, %v60_v20 }
  0x10   :  { %v63_v22 = vsel %vm62_vm1, %v548_v17, %v61_v21  ;;  %v543_v17 = vld [vmem:[%s829_s2] ss:$0 sm:$0xff] }
  0x79   :  { %v53_v23 = vpop.xlane.xlu1 %52  ;;  %v47_v25 = vpop.xlane.xlu0 %46 }
  0x7a   :  { %v66_v24 = vmul.f32 %v63_v22, %v53_v23  ;;  %v64_v26 = vmul.f32 %v63_v22, %v47_v25 }
  0x7c   :  { %v652_v27 = vsub.f32 %v620_v3, %v66_v24  ;;  %v655_v28 = vsub.f32 %v625_v5, %v64_v26  ;;  %v544_v24 = vld [vmem:[%s830_s3] ss:$0 sm:$0xff] }
  0x7e   :  { %v74_v29 = vmul.f32 %v652_v27, %v652_v27  ;;  %v72_v30 = vmul.f32 %v655_v28, %v655_v28 }
  0x80   :  { %v82_v31 = vsel %vm44_vm0, %v74_v29, 0.0  ;;  %v76_v33 = vsel %vm44_vm0, %v72_v30, 0.0 }
  0x81   :  { %v56_v32 = vpop.xlane.xlu1 %55  ;;  %83 = vadd.xlane.f32.xlu0 %v82_v31  ;;  %77 = vadd.xlane.f32.xlu2 %v76_v33  ;;  %v50_v35 = vpop.xlane.xlu0 %49 }
  0x82   :  { %v67_v34 = vmul.f32 %v63_v22, %v56_v32  ;;  %v65_v36 = vmul.f32 %v63_v22, %v50_v35 }
  0x84   :  { %v664_v37 = vsub.f32 %v643_v12, %v67_v34  ;;  %v667_v38 = vsub.f32 %v645_v13, %v65_v36 }
  0x86   :  { %v75_v39 = vmul.f32 %v664_v37, %v664_v37  ;;  %v73_v40 = vmul.f32 %v667_v38, %v667_v38 }
  0x88   :  { %v85_v41 = vsel %vm44_vm0, %v75_v39, 0.0  ;;  %v79_v42 = vsel %vm44_vm0, %v73_v40, 0.0 }
  0x89   :  { %86 = vadd.xlane.f32.xlu1 %v85_v41  ;;  %80 = vadd.xlane.f32.xlu2 %v79_v42 }
  0xf4   :  { %v78_v44 = vpop.xlane.xlu2 %77  ;;  %v84_v45 = vpop.xlane.xlu0 %83 }
  0xf5   :  { %v88_v47 = vmul.f32 %v78_v44, %v63_v22  ;;  %v90_v49 = vmul.f32 %v84_v45, %v63_v22  ;;  %v533_v45 = vld [vmem:[%s834_s6 + $0x38] sm:$0xff] }
  0xf6   :  { %447 = vmatpush.bf16.msra.mxu1 %v533_v45  ;;  %534 = vmatpush.bf16.msra.mxu2 %v533_v45 }
  0xf7   :  { %v92_v48 = vadd.f32 1e-05, %v88_v47  ;;  %v94_v50 = vadd.f32 1e-05, %v90_v49 }
  0xf9   :  { %549 = vrsqrt.f32 %v92_v48  ;;  %vm102_vm3 = vweird.f32 %v92_v48  ;;  %vm122_vm10 = vweird.f32 %v94_v50 }
  0xfa   :  { %551 = vrsqrt.f32 %v94_v50 }
  0xfc   :  { %v87_v51 = vpop.xlane.xlu1 %86  ;;  %v81_v53 = vpop.xlane.xlu2 %80 }
  0xfd   :  { %v91_v52 = vmul.f32 %v87_v51, %v63_v22  ;;  %v89_v54 = vmul.f32 %v81_v53, %v63_v22 }
  0xff   :  { %v95_v55 = vadd.f32 1e-05, %v91_v52  ;;  %v550_v56 = vpop.eup %549  ;;  %v93_v57 = vadd.f32 1e-05, %v89_v54 }
 0x100   :  { %v97_v58 = vmul.f32 %v550_v56, %v92_v48  ;;  %v552_v61 = vpop.eup %551  ;;  %vm103_vm2 = vweird.f32 %v550_v56 }
 0x101   :  { %553 = vrsqrt.f32 %v95_v55  ;;  %v117_v4 = vmul.f32 %v552_v61, %v94_v50  ;;  %vm104_vm4 = vmor %vm102_vm3, %vm103_vm2  ;;  %vm112_vm6 = vweird.f32 %v93_v57  ;;  %vm132_vm8 = vweird.f32 %v95_v55  ;;  %v531_v50 = vld [vmem:[%s834_s6 + $0x28] sm:$0xff] }
 0x102   :  { %555 = vrsqrt.f32 %v93_v57  ;;  %v98_v59 = vmul.f32 %v550_v56, %v97_v58  ;;  %vm123_vm11 = vweird.f32 %v552_v61 }
 0x103   :  { %v118_v10 = vmul.f32 %v552_v61, %v117_v4  ;;  %vm124_vm13 = vmor %vm122_vm10, %vm123_vm11 }
 0x104   :  { %v99_v60 = vmul.f32 0.5, %v98_v59 }
 0x105   :  { %v119_v18 = vmul.f32 0.5, %v118_v10  ;;  %v528_v10 = vld [vmem:[%s834_s6 + $0x10] sm:$0xff] }
 0x106   :  { %v100_v63 = vsub.f32 1.5, %v99_v60 }
 0x107   :  { %v554_v62 = vpop.eup %553  ;;  %v120_v25 = vsub.f32 1.5, %v119_v18 }
 0x108   :  { %v556_v0 = vpop.eup %555  ;;  %v127_v1 = vmul.f32 %v554_v62, %v95_v55  ;;  %v101_v2 = vmul.f32 %v550_v56, %v100_v63  ;;  %vm133_vm9 = vweird.f32 %v554_v62  ;;  %v529_v63 = vld [vmem:[%s834_s6 + $0x18] sm:$0xff] }
 0x109   :  { %v107_v6 = vmul.f32 %v556_v0, %v93_v57  ;;  %vm113_vm5 = vweird.f32 %v556_v0  ;;  %vm134_vm12 = vmor %vm132_vm8, %vm133_vm9  ;;  %v121_v31 = vmul.f32 %v552_v61, %v120_v25 }
 0x10a   :  { %v128_v7 = vmul.f32 %v554_v62, %v127_v1  ;;  %v105_v9 = vsel %vm104_vm4, %v550_v56, %v101_v2  ;;  %vm114_vm7 = vmor %vm112_vm6, %vm113_vm5  ;;  %v530_v56 = vld [vmem:[%s834_s6 + $0x20] sm:$0xff] }
 0x10b   :  { %v108_v8 = vmul.f32 %v556_v0, %v107_v6  ;;  %v136_v16 = vmul.f32 %v105_v9, %v655_v28  ;;  %v125_v34 = vsel %vm124_vm13, %v552_v61, %v121_v31 }
 0x10c   :  { %v129_v14 = vmul.f32 0.5, %v128_v7  ;;  %v138_v36 = vmul.f32 %v125_v34, %v652_v27 }
 0x10d   :  { %v109_v11 = vmul.f32 0.5, %v108_v8  ;;  %v143_v23 = vmul.f32 %v543_v17, %v136_v16 }
 0x10e   :  { %v130_v20 = vsub.f32 1.5, %v129_v14  ;;  %v145_v39 = vmul.f32 %v543_v17, %v138_v36 }
 0x10f   :  { %v110_v15 = vsub.f32 1.5, %v109_v11  ;;  %v150_v29 = vadd.f32 %v544_v24, %v143_v23 }
 0x110   :  { %v131_v28 = vmul.f32 %v554_v62, %v130_v20  ;;  %v152_v41 = vadd.f32 %v544_v24, %v145_v39 }
 0x111   :  { %v111_v19 = vmul.f32 %v556_v0, %v110_v15 }
 0x112   :  { %v135_v33 = vsel %vm134_vm12, %v554_v62, %v131_v28 }
 0x113   :  { %v115_v21 = vsel %vm114_vm7, %v556_v0, %v111_v19  ;;  %v139_v35 = vmul.f32 %v135_v33, %v664_v37  ;;  %v532_v37 = vld [vmem:[%s834_s6 + $0x30] sm:$0xff] }
 0x114   :  { %v137_v22 = vmul.f32 %v115_v21, %v667_v38  ;;  %448 = vmatpush.bf16.msra.mxu1 %v532_v37  ;;  %535 = vmatpush.bf16.msra.mxu2 %v532_v37 }
 0x115   :  { %v146_v38 = vmul.f32 %v543_v17, %v139_v35 }
 0x116   :  { %v144_v26 = vmul.f32 %v543_v17, %v137_v22  ;;  %v527_v17 = vld [vmem:[%s834_s6 + $0x8] sm:$0xff] }
 0x117   :  { %v153_v40 = vadd.f32 %v544_v24, %v146_v38 }
 0x118   :  { %v151_v30 = vadd.f32 %v544_v24, %v144_v26  ;;  %449 = vmatpush.bf16.msra.mxu1 %v531_v50  ;;  %536 = vmatpush.bf16.msra.mxu2 %v531_v50 }
 0x119   :  { %v155_v42 = vpack.c.bf16 %v153_v40, %v152_v41 }
 0x11a   :  { %v154_v32 = vpack.c.bf16 %v151_v30, %v150_v29  ;;  %v526_v29 = vld [vmem:[%s834_s6] sm:$0xff] }
 0x11c   :  { %486 = vmatmul.msk.bf16.vlgmr.msra.gmra.mxu0 %vm44_vm0, %v154_v32  ;;  %450 = vmatpush.bf16.msra.mxu1 %v530_v56 }
 0x11d   :  { %537 = vmatpush.bf16.msra.mxu2 %v530_v56 }
 0x120   :  { %451 = vmatpush.bf16.msra.mxu1 %v529_v63 }
 0x121   :  { %538 = vmatpush.bf16.msra.mxu2 %v529_v63 }
 0x124   :  { %452 = vmatpush.bf16.msra.mxu1 %v528_v10 }
 0x125   :  { %539 = vmatpush.bf16.msra.mxu2 %v528_v10 }
 0x128   :  { %453 = vmatpush.bf16.msra.mxu1 %v527_v17 }
 0x129   :  { %540 = vmatpush.bf16.msra.mxu2 %v527_v17 }
 0x12c   :  { %487 = vmatmul.msk.bf16.gmra.mxu0 %vm44_vm0, %v155_v42  ;;  %454 = vmatpush.bf16.msra.mxu1 %v526_v29 }
 0x12d   :  { %541 = vmatpush.bf16.msra.mxu2 %v526_v29 }
 0x199   :  { %v191_v44 = vpop.f32.mrf.mxu0 }
 0x19a   :  { %v699_v46 = vadd.f32 %v545_v43, %v191_v44 }
 0x19c   :  { %v702_v27 = vmul.f32 0.70710677, %v699_v46 }
 0x19e   :  { %v209_v47 = vmul.f32 %v702_v27, %v702_v27 }
 0x1a0   :  { %v709_v48 = vmin.f32 %v209_v47, 16.0 }
 0x1a1   :  { %v193_v49 = vpop.f32.mrf.mxu0 }
 0x1a2   :  { %v211_v51 = vmul.f32 2.1237322e-06, %v709_v48  ;;  %v715_v52 = vadd.f32 %v545_v43, %v193_v49  ;;  %v222_v53 = vmul.f32 3.8918573e-05, %v709_v48 }
 0x1a4   :  { %v212_v54 = vadd.f32 0.00028619796, %v211_v51  ;;  %v719_v55 = vmul.f32 0.70710677, %v715_v52  ;;  %v223_v57 = vadd.f32 0.001143296, %v222_v53 }
 0x1a6   :  { %v249_v58 = vmul.f32 %v719_v55, %v719_v55  ;;  %v224_v59 = vmul.f32 %v223_v57, %v709_v48  ;;  %v213_v60 = vmul.f32 %v212_v54, %v709_v48 }
 0x1a8   :  { %v728_v61 = vmin.f32 %v249_v58, 16.0  ;;  %v225_v0 = vadd.f32 0.014752088, %v224_v59  ;;  %v214_v7 = vadd.f32 0.0036580483, %v213_v60 }
 0x1a9   :  { %v196_v62 = vpop.f32.mrf.mxu0 }
 0x1aa   :  { %v251_v1 = vmul.f32 2.1237322e-06, %v728_v61  ;;  %v734_v2 = vadd.f32 %v545_v43, %v196_v62  ;;  %v262_v4 = vmul.f32 3.8918573e-05, %v728_v61  ;;  %v226_v6 = vmul.f32 %v225_v0, %v709_v48 }
 0x1ab   :  { %v215_v19 = vmul.f32 %v214_v7, %v709_v48 }
 0x1ac   :  { %v252_v8 = vadd.f32 0.00028619796, %v251_v1  ;;  %v739_v9 = vmul.f32 0.70710677, %v734_v2  ;;  %v227_v11 = vadd.f32 0.112945676, %v226_v6 }
 0x1ad   :  { %v263_v15 = vadd.f32 0.001143296, %v262_v4  ;;  %v216_v32 = vadd.f32 0.05243302, %v215_v19 }
 0x1ae   :  { %v253_v14 = vmul.f32 %v252_v8, %v728_v61  ;;  %v289_v16 = vmul.f32 %v739_v9, %v739_v9  ;;  %v228_v18 = vmul.f32 %v227_v11, %v709_v48 }
 0x1af   :  { %v264_v21 = vmul.f32 %v263_v15, %v728_v61  ;;  %v217_v42 = vmul.f32 %v216_v32, %v709_v48 }
 0x1b0   :  { %v254_v20 = vadd.f32 0.0036580483, %v253_v14  ;;  %v753_v22 = vmin.f32 %v289_v16, 16.0  ;;  %v229_v24 = vadd.f32 0.4994258, %v228_v18 }
 0x1b1   :  { %v198_v23 = vpop.f32.mrf.mxu0  ;;  %v265_v26 = vadd.f32 0.014752088, %v264_v21  ;;  %v218_v54 = vadd.f32 0.18741608, %v217_v42 }
 0x1b2   :  { %v755_v25 = vadd.f32 %v545_v43, %v198_v23  ;;  %v291_v28 = vmul.f32 2.1237322e-06, %v753_v22  ;;  %v230_v30 = vmul.f32 %v229_v24, %v709_v48  ;;  %v302_v31 = vmul.f32 3.8918573e-05, %v753_v22 }
 0x1b3   :  { %v255_v33 = vmul.f32 %v254_v20, %v728_v61  ;;  %v266_v34 = vmul.f32 %v265_v26, %v728_v61  ;;  %v219_v8 = vmul.f32 %v218_v54, %v709_v48 }
 0x1b4   :  { %v292_v35 = vadd.f32 0.00028619796, %v291_v28  ;;  %v766_v36 = vmul.f32 0.70710677, %v755_v25  ;;  %v231_v38 = vadd.f32 1.0, %v230_v30 }
 0x1b5   :  { %v267_v39 = vadd.f32 0.112945676, %v266_v34  ;;  %v303_v40 = vadd.f32 0.001143296, %v302_v31  ;;  %v256_v43 = vadd.f32 0.05243302, %v255_v33 }
 0x1b6   :  { %v329_v41 = vmul.f32 %v766_v36, %v766_v36  ;;  %557 = vrcp.f32 %v231_v38  ;;  %v293_v45 = vmul.f32 %v292_v35, %v753_v22  ;;  %v243_v15 = vand.u32 2147483648, %v231_v38 }
 0x1b7   :  { %v268_v44 = vmul.f32 %v267_v39, %v728_v61  ;;  %v304_v47 = vmul.f32 %v303_v40, %v753_v22  ;;  %v257_v56 = vmul.f32 %v256_v43, %v728_v61  ;;  %v241_v20 = vand.u32 2147483647, %v231_v38 }
 0x1b8   :  { %v773_v37 = vmin.f32 %v329_v41, 16.0  ;;  %v294_v59 = vadd.f32 0.0036580483, %v293_v45  ;;  %vm237_vm15 = vweird.f32 %v231_v38  ;;  %v220_v26 = vadd.f32 1.1283791, %v219_v8 }
 0x1b9   :  { %v269_v49 = vadd.f32 0.4994258, %v268_v44  ;;  %v305_v51 = vadd.f32 0.014752088, %v304_v47  ;;  %v258_v11 = vadd.f32 0.18741608, %v257_v56 }
 0x1ba   :  { %v331_v50 = vmul.f32 2.1237322e-06, %v773_v37  ;;  %v342_v53 = vmul.f32 3.8918573e-05, %v773_v37  ;;  %v295_v14 = vmul.f32 %v294_v59, %v753_v22  ;;  %v244_v33 = vor.u32 1.1754944e-38, %v243_v15 }
 0x1bb   :  { %v270_v57 = vmul.f32 %v269_v49, %v728_v61  ;;  %v306_v62 = vmul.f32 %v305_v51, %v753_v22  ;;  %v259_v48 = vmul.f32 %v258_v11, %v728_v61  ;;  %vm242_vm2 = vcmp.eq.f32.partialorder %v241_v20, 8.507059e+37 }
 0x1bc   :  { %v558_v58 = vpop.eup %557  ;;  %v332_v60 = vadd.f32 0.00028619796, %v331_v50  ;;  %v343_v63 = vadd.f32 0.001143296, %v342_v53  ;;  %v296_v28 = vadd.f32 0.05243302, %v295_v14  ;;  %v221_v41 = vmul.f32 %v220_v26, %v702_v27 }
 0x1bd   :  { %v233_v0 = vmul.f32 %v558_v58, %v231_v38  ;;  %v271_v1 = vadd.f32 1.0, %v270_v57  ;;  %v307_v6 = vadd.f32 0.112945676, %v306_v62  ;;  %vm238_vm14 = vweird.f32 %v558_v58 }
 0x1be   :  { %v333_v4 = vmul.f32 %v332_v60, %v773_v37  ;;  %v344_v7 = vmul.f32 %v343_v63, %v773_v37  ;;  %vm239_vm1 = vmor %vm237_vm15, %vm238_vm14  ;;  %v260_v42 = vadd.f32 1.1283791, %v259_v48  ;;  %v297_v61 = vmul.f32 %v296_v28, %v753_v22 }
 0x1bf   :  { %v234_v10 = vsub.f32 1.0, %v233_v0  ;;  %559 = vrcp.f32 %v271_v1  ;;  %v308_v16 = vmul.f32 %v307_v6, %v753_v22  ;;  %v281_v45 = vand.u32 2147483647, %v271_v1 }
 0x1c0   :  { %v334_v17 = vadd.f32 0.0036580483, %v333_v4  ;;  %v345_v19 = vadd.f32 0.014752088, %v344_v7  ;;  %v283_v47 = vand.u32 2147483648, %v271_v1  ;;  %vm277_vm4 = vweird.f32 %v271_v1 }
 0x1c1   :  { %v235_v18 = vmul.f32 %v558_v58, %v234_v10  ;;  %v309_v21 = vadd.f32 0.4994258, %v308_v16  ;;  %v261_v56 = vmul.f32 %v260_v42, %v719_v55  ;;  %v298_v57 = vadd.f32 0.18741608, %v297_v61 }
 0x1c2   :  { %v346_v24 = vmul.f32 %v345_v19, %v773_v37  ;;  %v335_v31 = vmul.f32 %v334_v17, %v773_v37  ;;  %vm282_vm6 = vcmp.eq.f32.partialorder %v281_v45, 8.507059e+37  ;;  %v284_v27 = vor.u32 1.1754944e-38, %v283_v47 }
 0x1c3   :  { %v236_v23 = vadd.f32 %v558_v58, %v235_v18  ;;  %v310_v29 = vmul.f32 %v309_v21, %v753_v22  ;;  %v201_v11 = vmul.f32 0.5, %v699_v46  ;;  %v202_v14 = vmul.f32 0.5, %v715_v52 }
 0x1c4   :  { %v347_v34 = vadd.f32 0.112945676, %v346_v24  ;;  %v336_v44 = vadd.f32 0.05243302, %v335_v31  ;;  %v204_v45 = vmul.f32 0.5, %v755_v25 }
 0x1c5   :  { %v560_v30 = vpop.eup %559  ;;  %v240_v32 = vsel %vm239_vm1, %v558_v58, %v236_v23  ;;  %v311_v40 = vadd.f32 1.0, %v310_v29 }
 0x1c6   :  { %v273_v35 = vmul.f32 %v560_v30, %v271_v1  ;;  %v245_v39 = vsel %vm242_vm2, %v244_v33, %v240_v32  ;;  %v348_v38 = vmul.f32 %v347_v34, %v773_v37  ;;  %vm278_vm3 = vweird.f32 %v560_v30 }
 0x1c7   :  { %561 = vrcp.f32 %v311_v40  ;;  %v246_v49 = vmul.f32 %v245_v39, %v221_v41  ;;  %vm279_vm5 = vmor %vm277_vm4, %vm278_vm3  ;;  %v337_v58 = vmul.f32 %v336_v44, %v773_v37  ;;  %v299_v1 = vmul.f32 %v298_v57, %v753_v22 }
 0x1c8   :  { %v274_v43 = vsub.f32 1.0, %v273_v35  ;;  %v349_v51 = vadd.f32 0.4994258, %v348_v38  ;;  %v323_v15 = vand.u32 2147483648, %v311_v40  ;;  %v321_v18 = vand.u32 2147483647, %v311_v40 }
 0x1c9   :  { %v488_v59 = vclamps-f32 %v246_v49, 1.0  ;;  %v338_v7 = vadd.f32 0.18741608, %v337_v58  ;;  %v300_v19 = vadd.f32 1.1283791, %v299_v1  ;;  %vm317_vm8 = vweird.f32 %v311_v40 }
 0x1ca   :  { %v275_v50 = vmul.f32 %v560_v30, %v274_v43  ;;  %v350_v54 = vmul.f32 %v349_v51, %v773_v37  ;;  %v324_v26 = vor.u32 1.1754944e-38, %v323_v15  ;;  %vm322_vm10 = vcmp.eq.f32.partialorder %v321_v18, 8.507059e+37 }
 0x1cb   :  { %v369_v10 = vadd.f32 1.0, %v488_v59  ;;  %v339_v21 = vmul.f32 %v338_v7, %v773_v37  ;;  %v301_v52 = vmul.f32 %v300_v19, %v739_v9  ;;  %v203_v44 = vmul.f32 0.5, %v734_v2 }
 0x1cc   :  { %v276_v53 = vadd.f32 %v560_v30, %v275_v50  ;;  %v351_v62 = vadd.f32 1.0, %v350_v54 }
 0x1cd   :  { %v562_v63 = vpop.eup %561  ;;  %v373_v23 = vmul.f32 %v369_v10, %v201_v11  ;;  %v340_v31 = vadd.f32 1.1283791, %v339_v21 }
 0x1ce   :  { %v280_v60 = vsel %vm279_vm5, %v560_v30, %v276_v53  ;;  %v313_v6 = vmul.f32 %v562_v63, %v311_v40  ;;  %563 = vrcp.f32 %v351_v62  ;;  %vm318_vm7 = vweird.f32 %v562_v63 }
 0x1cf   :  { %v285_v0 = vsel %vm282_vm6, %v284_v27, %v280_v60  ;;  %vm319_vm9 = vmor %vm317_vm8, %vm318_vm7  ;;  %v363_v32 = vand.u32 2147483648, %v351_v62  ;;  %v361_v37 = vand.u32 2147483647, %v351_v62  ;;  %vm357_vm12 = vweird.f32 %v351_v62 }
 0x1d0   :  { %v286_v4 = vmul.f32 %v285_v0, %v261_v56  ;;  %v314_v55 = vsub.f32 1.0, %v313_v6  ;;  %v341_v40 = vmul.f32 %v340_v31, %v766_v36  ;;  %v546_v36 = vld [vmem:[%s833_s7] ss:$0 sm:$0xff] }
 0x1d1   :  { %v364_v39 = vor.u32 1.1754944e-38, %v363_v32  ;;  %vm362_vm14 = vcmp.eq.f32.partialorder %v361_v37, 8.507059e+37 }
 0x1d2   :  { %v489_v8 = vclamps-f32 %v286_v4, 1.0  ;;  %v315_v17 = vmul.f32 %v562_v63, %v314_v55 }
 0x1d4   :  { %v370_v16 = vadd.f32 1.0, %v489_v8  ;;  %v564_v20 = vpop.eup %563  ;;  %v316_v24 = vadd.f32 %v562_v63, %v315_v17 }
 0x1d5   :  { %v353_v48 = vmul.f32 %v564_v20, %v351_v62  ;;  %vm358_vm11 = vweird.f32 %v564_v20 }
 0x1d6   :  { %v374_v22 = vmul.f32 %v370_v16, %v202_v14  ;;  %v320_v46 = vsel %vm319_vm9, %v562_v63, %v316_v24  ;;  %vm359_vm13 = vmor %vm357_vm12, %vm358_vm11 }
 0x1d7   :  { %v325_v29 = vsel %vm322_vm10, %v324_v26, %v320_v46  ;;  %v354_v30 = vsub.f32 1.0, %v353_v48 }
 0x1d8   :  { %v377_v28 = vpack.c.bf16 %v374_v22, %v373_v23  ;;  %v326_v33 = vmul.f32 %v325_v29, %v301_v52 }
 0x1d9   :  { %v355_v34 = vmul.f32 %v564_v20, %v354_v30 }
 0x1da   :  { %455 = vmatmul.bf16.vlgmr.msra.gmra.mxu1 %v377_v28  ;;  %v490_v38 = vclamps-f32 %v326_v33, 1.0 }
 0x1db   :  { %v356_v35 = vadd.f32 %v564_v20, %v355_v34 }
 0x1dc   :  { %v371_v43 = vadd.f32 1.0, %v490_v38 }
 0x1dd   :  { %v360_v41 = vsel %vm359_vm13, %v564_v20, %v356_v35 }
 0x1de   :  { %v365_v42 = vsel %vm362_vm14, %v364_v39, %v360_v41  ;;  %v375_v49 = vmul.f32 %v371_v43, %v203_v44 }
 0x1df   :  { %v366_v9 = vmul.f32 %v365_v42, %v341_v40 }
 0x1e1   :  { %v491_v61 = vclamps-f32 %v366_v9, 1.0 }
 0x1e3   :  { %v372_v47 = vadd.f32 1.0, %v491_v61 }
 0x1e5   :  { %v376_v50 = vmul.f32 %v372_v47, %v204_v45 }
 0x1e7   :  { %v378_v51 = vpack.c.bf16 %v376_v50, %v375_v49 }
 0x1e9   :  { %460 = vmatmul.bf16.vlgmr.msra.gmra.mxu2 %v378_v51 }
 0x257   :  { %v456_v53 = vpop.f32.mrf.mxu1 }
 0x258   :  { %v457_v54 = vadd.f32 %v546_v36, %v456_v53 }
 0x25a   :  { %v466_v56 = vadd.f32 %v457_v54, %v625_v5 }
 0x25c   :  { %470 = vst.msk [vmem:[%s835_s8] sm:$0xff] %vm44_vm0, %v466_v56 }
 0x25f   :  { %v458_v2 = vpop.f32.mrf.mxu1 }
 0x260   :  { %v459_v25 = vadd.f32 %v546_v36, %v458_v2 }
 0x262   :  { %v467_v57 = vadd.f32 %v459_v25, %v645_v13 }
 0x264   :  { %471 = vst.msk [vmem:[%s835_s8 + $0x8] sm:$0xff] %vm44_vm0, %v467_v57 }
 0x26c   :  { %v461_v27 = vpop.f32.mrf.mxu2 }
 0x26d   :  { %v462_v58 = vadd.f32 %v546_v36, %v461_v27 }
 0x26f   :  { %v468_v59 = vadd.f32 %v462_v58, %v620_v3 }
 0x271   :  { %472 = vst.msk [vmem:[%s835_s8 + $0x10] sm:$0xff] %vm44_vm0, %v468_v59 }
 0x274   :  { %v463_v5 = vpop.f32.mrf.mxu2 }
 0x275   :  { %v464_v60 = vadd.f32 %v546_v36, %v463_v5 }
 0x277   :  { %v469_v62 = vadd.f32 %v464_v60, %v643_v12 }
 0x279   :  { %473 = vst.msk [vmem:[%s835_s8 + $0x18] sm:$0xff] %vm44_vm0, %v469_v62 }

// kernel: _lambda_.23
= control target key start
LH: loop header
LB: loop body
LE: loop exit
PB: predicated region body
PF: predicated region fallthrough
CT: control target
= control target key end

     0   :  { %s592_s12 = smov 0   ;;  %s594_s13 = smov 0   ;;  %s752_s0 = inlined_call_operand.vmem [shape: f32[2,3,2,3,2,32], index: 0, kind: input, shape index: {}]   ;;  %s753_s1 = inlined_call_operand.vmem [shape: f32[4,2,2,32], index: 1, kind: input, shape index: {}]   ;;  %s754_s2 = inlined_call_operand.vmem [shape: f32[2,2,32], index: 2, kind: input, shape index: {}]   ;;  %s755_s3 = inlined_call_operand.vmem [shape: f32[2,3,2,3,2,32], index: 3, kind: output, shape index: {}]  }
   0x1   :  { %s596_s14 = smov 0   ;;  %s598_s15 = smov 0  }
   0x2   :  { %s600_s16 = smov 0   ;;  %s602_s17 = smov 0  }
   0x3   :  { %s604_s18 = smov 0   ;;  %s606_s19 = smov 0  }
   0x4   :  { %s608_s20 = smov 0  }
   0x5 LB: > { %s25_s21 = sadd.s32 1, %s558_s17  ;;  %s28_s22 = sadd.s32 1, %s562_s18  ;;  %s570_s20 = sphi %s608_s20, %s13_s20   ;;  %s566_s19 = sphi %s606_s19, %s765_s19   ;;  %s562_s18 = sphi %s604_s18, %s764_s18   ;;  %s558_s17 = sphi %s602_s17, %s763_s17   ;;  %s554_s16 = sphi %s600_s16, %s762_s16   ;;  %s550_s15 = sphi %s598_s15, %s761_s15   ;;  %s546_s14 = sphi %s596_s14, %s760_s14   ;;  %s542_s13 = sphi %s594_s13, %s759_s13   ;;  %s538_s12 = sphi %s592_s12, %s758_s12  }
   0x6   : > { %p26_p0 = scmp.ge.s32.totalorder %s25_s21, 3  ;;  %s405_s23 = sadd.s32 4294967295, %s570_s20  }
   0x7   : > { %s32_s24 = sadd.s32 1, %s566_s19  ;;  %p50_p1 = scmp.ne.s32.totalorder %s542_s13, %s538_s12 }
   0x8   : > { %s767_s21 = smov (%p26_p0, %s25_s21), 0  ;;  %s769_s22 = smov (!%p26_p0, %s28_s22), %s562_s18 }
   0x9   : > { %p30_p2 = scmp.ge.s32.totalorder %s769_s22, 3  ;;  %p51_p3 = scmp.eq.s32.totalorder %s570_s20, 0 }
   0xa   : > { %p126_p4 = scmp.eq.s32.totalorder %s405_s23, 17  ;;  %s39_s28 = ssub.s32 %s558_s17, %s767_s21 }
   0xb   : > { %s771_s22 = smov (%p30_p2, %s769_s22), 0  ;;  %s773_s24 = smov (!%p30_p2, %s32_s24), %s566_s19 }
   0xc   : > { %p650_p5 = por %p51_p3, %p50_p1  ;;  %p34_p6 = scmp.ge.s32.totalorder %s773_s24, 2 }
   0xd   : > { %p654_p7 = por %p126_p4, %p50_p1  ;;  %s37_s27 = ssub.s32 %s562_s18, %s771_s22 }
   0xe   : > { %s775_s24 = smov (%p34_p6, %s773_s24), 0  ;;  %s43_s5 = sadd.s32 1, %s542_s13 }
   0xf   : > { %s36_s29 = ssub.s32 %s566_s19, %s775_s24  ;;  %p408_p9 = scmp.ge.s32.totalorder %s570_s20, 18 }
  0x10   : > { %s38_s30 = sor.u32 %s37_s27, %s36_s29 }
  0x11   : > { %s40_s4 = sor.u32 %s39_s28, %s38_s30  ;;  %154 = sbr.rel (%p408_p9) target bundleno = 32 (0x20), region = 24 }
  0x12   : > { %p41_p8 = scmp.eq.s32.totalorder %s40_s4, 0 }
  0x14   : > { %s668_s6 = scalar_select %p41_p8, %s542_s13, %s43_s5  }
  0x16   : > { %157 = sbr.rel (!%p650_p5) target bundleno = 32 (0x20), region = 28  ;;  %s159_s7 = sand.u32 (%p650_p5), 1, %s542_s13  }
  0x17   : > { %s424_s8 = smul.u32 (%p650_p5), 6, %s562_s18  ;;  %s409_s9 = sshll.u32 (%p650_p5), %s159_s7, 2 }
  0x18   : > { %s425_s10 = smul.u32 (%p650_p5), 18, %s566_s19  ;;  %s161_s4 = scalar_lea.vmem (%p650_p5), [#allocation2], %s409_s9 }
  0x19   : > { %s163_s11 = sadd.s32 (%p650_p5), %s558_s17, %s424_s8 }
  0x1a   : > { %s165_s23 = sadd.s32 (%p650_p5), %s425_s10, %s163_s11 }
  0x1b   : > { %s410_s27 = sshll.u32 %s165_s23, 1 }
  0x1c   : > { %s167_s30 = scalar_lea.vmem %s752_s0, %s410_s27 }
  0x1d   : > { %v184_v0 = vld [vmem:[%s167_s30] sm:$0x3]  ;;  %v186_v1 = vld [vmem:[%s167_s30 + $0x6] sm:$0x3] }
  0x1e   : > { %185 = vst [vmem:[%s161_s4] sm:$0x3] %v184_v0 }
  0x1f   : > { %187 = vst [vmem:[%s161_s4 + $0x2] sm:$0x3] %v186_v1 }
  0x20 PF: > { %p411_p10 = scmp.ge.s32.totalorder %s570_s20, 1  ;;  %p206_p11 = scmp.lt.s32.totalorder %s570_s20, 19 }
  0x22   : > { %p207_p12 = pnand %p411_p10, %p206_p11 }
  0x23   : > { %s213_s25 = sand.u32 (!%p207_p12), 1, %s538_s12  }
  0x24   : > { %210 = sbr.rel (%p207_p12) target bundleno = 66 (0x42), region = 62  ;;  %s683_s5 = sshll.u32 (!%p207_p12), %s213_s25, 2 }
  0x25   : > { %s215_s27 = scalar_lea.vmem (!%p207_p12), [#allocation2], %s683_s5  ;;  %s234_s12 = scalar_lea.vmem (!%p207_p12), [#allocation3], %s683_s5 }
  0x29   : > { %v239_v2 = vld [vmem:[%s753_s1] sm:$0x3]  ;;  %v240_v3 = vld [vmem:[%s753_s1 + $0x2] sm:$0x3]  ;;  %v414_v4 = vld [vmem:[%s753_s1 + $0x4] sm:$0x3] }
  0x2a   : > { %v235_v5 = vld [vmem:[%s215_s27] sm:$0x3]  ;;  %v236_v6 = vld [vmem:[%s215_s27 + $0x2] sm:$0x3]  ;;  %v416_v13 = vld [vmem:[%s753_s1 + $0x8] sm:$0x3] }
  0x2b   : > { %v237_v7 = vld [vmem:[%s754_s2] sm:$0x3]  ;;  %v415_v8 = vld [vmem:[%s753_s1 + $0x6] sm:$0x3]  ;;  %v238_v9 = vld [vmem:[%s754_s2 + $0x2] sm:$0x3] }
  0x2c   : > { %v241_v10 = vperm.slane %v235_v5, 0  ;;  %v249_v11 = vperm.slane %v235_v5, 1  ;;  %v257_v12 = vperm.slane %v236_v6, 0  ;;  %v417_v14 = vld [vmem:[%s753_s1 + $0xa] sm:$0x3]  ;;  %v265_v15 = vperm.slane %v236_v6, 1 }
  0x2d   : > { %v418_v20 = vld [vmem:[%s753_s1 + $0xc] sm:$0x3]  ;;  %v419_v21 = vld [vmem:[%s753_s1 + $0xe] sm:$0x3]  ;;  %vm270_vm0 = vcmask 254976   ;;  %s426_s29 = smul.u32 (%p654_p7), 6, %s550_s15 }
  0x2e   : > { %v242_v16 = vmul.f32 %v241_v10, %v239_v2  ;;  %v243_v17 = vmul.f32 %v241_v10, %v240_v3  ;;  %v250_v18 = vmul.f32 %v414_v4, %v249_v11  ;;  %v251_v19 = vmul.f32 %v415_v8, %v249_v11  ;;  %s427_s30 = smul.u32 (%p654_p7), 18, %s554_s16 }
  0x2f   : > { %v258_v24 = vmul.f32 %v416_v13, %v257_v12  ;;  %v259_v25 = vmul.f32 %v417_v14, %v257_v12  ;;  %v266_v27 = vmul.f32 %v418_v20, %v265_v15  ;;  %v267_v29 = vmul.f32 %v419_v21, %v265_v15  ;;  %s281_s4 = sadd.s32 (%p654_p7), %s546_s14, %s426_s29 }
  0x30   : > { %v244_v22 = vadd.f32 %v242_v16, %v237_v7  ;;  %v245_v23 = vadd.f32 %v243_v17, %v238_v9  ;;  %s283_s25 = sadd.s32 (%p654_p7), %s427_s30, %s281_s4 }
  0x31   : > { %s421_s7 = sshll.u32 (%p654_p7), %s283_s25, 1 }
  0x32   : > { %v252_v26 = vadd.f32 %v250_v18, %v244_v22  ;;  %v253_v28 = vadd.f32 %v251_v19, %v245_v23  ;;  %s285_s10 = scalar_lea.vmem (%p654_p7), %s755_s3, %s421_s7 }
  0x34   : > { %v260_v30 = vadd.f32 %v258_v24, %v252_v26  ;;  %v261_v31 = vadd.f32 %v259_v25, %v253_v28 }
  0x35   : > { %279 = sbr.rel (!%p654_p7) target bundleno = 66 (0x42), region = 70 }
  0x36   : > { %v268_v32 = vadd.f32 %v266_v27, %v260_v30  ;;  %v269_v33 = vadd.f32 %v267_v29, %v261_v31 }
  0x38   : > { %271 = vst.msk [vmem:[%s234_s12] sm:$0x3] %vm270_vm0, %v268_v32 }
  0x39   : > { %272 = vst.msk [vmem:[%s234_s12 + $0x2] sm:$0x3] %vm270_vm0, %v269_v33 }
  0x3f   : > { %v302_v34 = vld [vmem:[%s234_s12] sm:$0x3] }
  0x40   : > { %v304_v35 = vld [vmem:[%s234_s12 + $0x2] sm:$0x3]  ;;  %303 = vst [vmem:[%s285_s10] sm:$0x3] %v302_v34 }
  0x41   : > { %305 = vst [vmem:[%s285_s10 + $0x6] sm:$0x3] %v304_v35 }
  0x42 PF: > { %s13_s20 = sadd.s32 1, %s570_s20   ;;  %s758_s12 = smov %s542_s13 }
  0x43   : > { %p10_p13 = scmp.ge.s32.totalorder %s13_s20, 20   ;;  %s759_s13 = smov %s668_s6 }
  0x44   : > { %s760_s14 = smov %s558_s17  ;;  %s761_s15 = smov %s562_s18 }
  0x45   : > { %s762_s16 = smov %s566_s19  ;;  %s763_s17 = smov %s767_s21 }
  0x46   : > { %s764_s18 = smov %s771_s22  ;;  %s765_s19 = smov %s775_s24 }
  0x47   :  { %12 = sbr.rel (!%p10_p13) target bundleno = 5 (0x5), region = 138 }

// kernel: _lambda_.25
= control target key start
LH: loop header
LB: loop body
LE: loop exit
PB: predicated region body
PF: predicated region fallthrough
CT: control target
= control target key end

     0   :  { %10 = vsyncpa [#allocation3], 0  ;;  %s684_s0 = inlined_call_operand.vmem [shape: f32[2,16,32], index: 0, kind: input, shape index: {}]   ;;  %s685_s1 = inlined_call_operand.vmem [shape: f32[1,32], index: 1, kind: input, shape index: {}]   ;;  %s686_s2 = inlined_call_operand.vmem [shape: f32[1,32], index: 2, kind: input, shape index: {}]   ;;  %s687_s3 = inlined_call_operand.vmem [shape: bf16[32,10], index: 3, kind: input, shape index: {}]   ;;  %s688_s4 = inlined_call_operand.vmem [shape: f32[1,10], index: 4, kind: input, shape index: {}]   ;;  %s689_s5 = inlined_call_operand.hbm [shape: f32[2,1,10], index: 5, kind: output, shape index: {}]  }
   0x1   :  { %12 = vsyncpa [#allocation3 + $0x1], 0  ;;  %s577_s18 = smov 0   ;;  %s579_s19 = smov 0  }
   0x2   :  { %s581_s20 = smov 0   ;;  %s583_s21 = smov 0  }
   0x3 LB: > { %s598_s22 = sadd.s32 4294967295, %s543_s21   ;;  %s410_s23 = sadd.s32 4294967294, %s543_s21   ;;  %s543_s21 = sphi %s583_s21, %s695_s21   ;;  %s539_s20 = sphi %s581_s20, %s694_s20   ;;  %s535_s19 = sphi %s579_s19, %s693_s19   ;;  %s531_s18 = sphi %s577_s18, %s692_s18  }
   0x4   : > { %s602_s24 = sadd.s32 1, %s543_s21   ;;  %s135_s25 = sadd.s32 1, %s539_s20 }
   0x5   : > { %s132_s26 = ssub.s32 %s543_s21, %s602_s24  ;;  %p145_p0 = scmp.ne.s32.totalorder %s539_s20, %s535_s19 }
   0x6   : > { %p133_p1 = scmp.eq.s32.totalorder %s132_s26, 0  ;;  %p146_p2 = scmp.eq.s32.totalorder %s598_s22, 1 }
   0x7   : > { %p151_p3 = scmp.ne.s32.totalorder %s535_s19, %s531_s18  ;;  %p152_p4 = scmp.eq.s32.totalorder %s410_s23, 1 }
   0x8   : > { %s613_s27 = scalar_select %p133_p1, %s539_s20, %s135_s25  }
   0x9   : > { %p615_p5 = por %p146_p2, %p145_p0  ;;  %p619_p6 = por %p152_p4, %p151_p3 }
   0xa   : > { %p413_p7 = scmp.ge.s32.totalorder %s543_s21, 1  ;;  %p190_p8 = scmp.lt.s32.totalorder %s543_s21, 3 }
   0xc   : > { %p191_p9 = pnand %p413_p7, %p190_p8 }
   0xd   : > { %p217_p10 = scmp.lt.s32.totalorder (!%p191_p9), %s598_s22, 1  ;;  %s215_s23 = sand.u32 (!%p191_p9), 1, %s535_s19  }
   0xe   : > { %194 = sbr.rel (%p191_p9) target bundleno = 453 (0x1c5), region = 40  ;;  %s216_s8 = scalar_lea.vmem (!%p191_p9), [#allocation2], %s215_s23 }
   0xf   : > { %s343_s11 = scalar_lea.sflag (!%p191_p9), [#allocation3], %s215_s23  ;;  %s501_s15 = scalar_lea.hbm (!%p191_p9), %s689_s5, 2 }
  0x13   : > { %s218_s30 = scalar_select %p217_p10, %s598_s22, 1  ;;  %vm227_vm0 = vcmask 261120   ;;  %v545_v4 = vmov 32.0   ;;  %v429_v24 = vld [vmem:[%s687_s3 + $0x8] sm:$0xff]  ;;  %v428_v25 = vld [vmem:[%s687_s3] sm:$0xff]  ;;  %v546_v40 = vmov 16.0  }
  0x14   : > { %473 = vrcp.f32 %v545_v4  ;;  %333 = vmatpush.bf16.msra.mxu0 %v429_v24  ;;  %v471_v41 = vld [vmem:[%s685_s1] ss:$0 sm:$0xff]  ;;  %vm340_vm9 = vcmask 73728  }
  0x15   : > { %s427_s6 = sshll.u32 %s218_s30, 4  ;;  %v472_v45 = vld [vmem:[%s686_s2] ss:$0 sm:$0xff]  ;;  %s351_s30 = scalar_lea.hbm %s689_s5, %s598_s22 }
  0x16   : > { %s221_s9 = scalar_lea.vmem %s684_s0, %s427_s6  ;;  %s355_s10 = sshll.u32 %s351_s30, 4  ;;  %s356_s10 = int_to_ptr.hbm [resolvable:$true] %s355_s10 }
  0x17   : > { %v223_v0 = vld [vmem:[%s221_s9] sm:$0xff]  ;;  %v224_v2 = vld [vmem:[%s221_s9 + $0x8] sm:$0xff]  ;;  %s353_s9 = sshll.u32 %s216_s8, 4  ;;  %s495_s12 = sshra.s32 %s356_s10, 4  ;;  %s354_s9 = int_to_ptr.vmem [resolvable:$true] %s353_s9  ;;  %s496_s12 = int_to_ptr.hbm [resolvable:$true] %s495_s12 }
  0x18   : > { %v228_v1 = vsel %vm227_vm0, %v223_v0, 0.0  ;;  %v231_v3 = vsel %vm227_vm0, %v224_v2, 0.0  ;;  %334 = vmatpush.bf16.msra.mxu0 %v428_v25  ;;  %s497_s13 = scalar_lea.hbm %s496_s12, 1  ;;  %p502_p0 = scmp.lt.s32.totalorder %s496_s12, %s689_s5 }
  0x19   : > { %229 = vadd.xlane.f32.xlu0 %v228_v1  ;;  %p498_p11 = scmp.ne.s32.totalorder %s496_s12, %s497_s13  ;;  %p503_p1 = scmp.lt.s32.totalorder %s501_s15, %s497_s13 }
  0x1a   : > { %v474_v5 = vpop.eup %473 }
  0x1b   : > { %v235_v6 = vmul.f32 32.0, %v474_v5  ;;  %vm239_vm1 = vweird.f32 %v474_v5  ;;  %p499_p12 = pnand %p498_p11, %p615_p5  ;;  %p504_p2 = por %p503_p1, %p502_p0 }
  0x1d   : > { %v236_v7 = vsub.f32 1.0, %v235_v6  ;;  %p500_p13 = pneg %p499_p12 }
  0x1f   : > { %v237_v8 = vmul.f32 %v474_v5, %v236_v7  ;;  %p505_p3 = pnand %p504_p2, %p500_p13 }
  0x21   : > { %232 = vadd.xlane.f32.xlu0 %v231_v3  ;;  %v238_v9 = vadd.f32 %v474_v5, %v237_v8 }
  0x23   : > { %v240_v10 = vsel %vm239_vm1, %v474_v5, %v238_v9  ;;  %v311_v5 = vld [vmem:[%s688_s4] sm:$0x1] }
  0x8c   : > { %v230_v11 = vpop.xlane.xlu0 %229 }
  0x8d   : > { %v241_v12 = vmul.f32 %v240_v10, %v230_v11 }
  0x8f   : > { %v243_v13 = vsub.f32 %v223_v0, %v241_v12 }
  0x91   : > { %v245_v14 = vmul.f32 %v243_v13, %v243_v13 }
  0x93   : > { %v247_v15 = vsel %vm227_vm0, %v245_v14, 0.0 }
  0x94   : > { %248 = vadd.xlane.f32.xlu1 %v247_v15  ;;  %v233_v16 = vpop.xlane.xlu0 %232 }
  0x95   : > { %v242_v17 = vmul.f32 %v240_v10, %v233_v16 }
  0x97   : > { %v244_v18 = vsub.f32 %v224_v2, %v242_v17 }
  0x99   : > { %v246_v19 = vmul.f32 %v244_v18, %v244_v18 }
  0x9b   : > { %v250_v20 = vsel %vm227_vm0, %v246_v19, 0.0 }
  0x9c   : > { %251 = vadd.xlane.f32.xlu1 %v250_v20 }
 0x107   : > { %v249_v21 = vpop.xlane.xlu1 %248 }
 0x108   : > { %v253_v22 = vmul.f32 %v249_v21, %v240_v10 }
 0x10a   : > { %v255_v23 = vadd.f32 1e-05, %v253_v22 }
 0x10c   : > { %475 = vrsqrt.f32 %v255_v23  ;;  %vm263_vm3 = vweird.f32 %v255_v23 }
 0x10f   : > { %v252_v26 = vpop.xlane.xlu1 %251 }
 0x110   : > { %v254_v27 = vmul.f32 %v252_v26, %v240_v10 }
 0x112   : > { %v476_v28 = vpop.eup %475  ;;  %v256_v29 = vadd.f32 1e-05, %v254_v27 }
 0x113   : > { %v258_v30 = vmul.f32 %v476_v28, %v255_v23  ;;  %vm264_vm2 = vweird.f32 %v476_v28 }
 0x114   : > { %477 = vrsqrt.f32 %v256_v29  ;;  %vm265_vm4 = vmor %vm263_vm3, %vm264_vm2  ;;  %vm273_vm6 = vweird.f32 %v256_v29 }
 0x115   : > { %v259_v31 = vmul.f32 %v476_v28, %v258_v30  ;;  %479 = vrcp.f32 %v546_v40 }
 0x117   : > { %v260_v32 = vmul.f32 0.5, %v259_v31 }
 0x119   : > { %v261_v33 = vsub.f32 1.5, %v260_v32 }
 0x11a   : > { %v478_v34 = vpop.eup %477 }
 0x11b   : > { %v262_v35 = vmul.f32 %v476_v28, %v261_v33  ;;  %v268_v36 = vmul.f32 %v478_v34, %v256_v29  ;;  %vm274_vm5 = vweird.f32 %v478_v34  ;;  %v480_v47 = vpop.eup %479 }
 0x11c   : > { %vm275_vm7 = vmor %vm273_vm6, %vm274_vm5  ;;  %v299_v52 = vmul.f32 16.0, %v480_v47  ;;  %vm303_vm8 = vweird.f32 %v480_v47 }
 0x11d   : > { %v266_v37 = vsel %vm265_vm4, %v476_v28, %v262_v35  ;;  %v269_v38 = vmul.f32 %v478_v34, %v268_v36 }
 0x11e   : > { %v277_v42 = vmul.f32 %v266_v37, %v243_v13  ;;  %v300_v56 = vsub.f32 1.0, %v299_v52 }
 0x11f   : > { %v270_v39 = vmul.f32 0.5, %v269_v38 }
 0x120   : > { %v282_v46 = vmul.f32 %v471_v41, %v277_v42  ;;  %v301_v59 = vmul.f32 %v480_v47, %v300_v56 }
 0x121   : > { %v271_v43 = vsub.f32 1.5, %v270_v39 }
 0x122   : > { %v287_v50 = vadd.f32 %v472_v45, %v282_v46  ;;  %v302_v62 = vadd.f32 %v480_v47, %v301_v59 }
 0x123   : > { %v272_v44 = vmul.f32 %v478_v34, %v271_v43 }
 0x124   : > { %v289_v54 = vsel %vm227_vm0, %v287_v50, 0.0  ;;  %v304_v1 = vsel %vm303_vm8, %v480_v47, %v302_v62 }
 0x125   : > { %v276_v48 = vsel %vm275_vm7, %v478_v34, %v272_v44 }
 0x126   : > { %v278_v49 = vmul.f32 %v276_v48, %v244_v18 }
 0x128   : > { %v283_v51 = vmul.f32 %v471_v41, %v278_v49 }
 0x12a   : > { %v288_v53 = vadd.f32 %v472_v45, %v283_v51 }
 0x12c   : > { %v290_v55 = vsel %vm227_vm0, %v288_v53, 0.0 }
 0x12d   : > { %v291_v57 = vadd.f32 %v290_v55, %v289_v54 }
 0x12f   : > { %v292_v58 = vrot.slane %v291_v57, 4 }
 0x131   : > { %v293_v60 = vadd.f32 %v292_v58, %v291_v57 }
 0x133   : > { %v294_v61 = vrot.slane %v293_v60, 2 }
 0x135   : > { %v295_v63 = vadd.f32 %v294_v61, %v293_v60 }
 0x137   : > { %v296_v0 = vrot.slane %v295_v63, 1 }
 0x139   : > { %v297_v2 = vadd.f32 %v296_v0, %v295_v63 }
 0x13b   : > { %v305_v3 = vmul.f32 %v304_v1, %v297_v2 }
 0x13d   : > { %v306_v4 = vpack.c.bf16 %v305_v3, %v305_v3 }
 0x13f   : > { %424 = vmatmul.msk.bf16.vlgmr.msra.gmra.mxu0 %vm227_vm0, %v306_v4 }
 0x1bc   : > { %v336_v6 = vpop.f32.mrf.mxu0 }
 0x1bd   : > { %v337_v7 = vadd.f32 %v336_v6, %v311_v5 }
 0x1bf   : > { %341 = vst.msk [vmem:[%s216_s8] sm:$0x1] %vm340_vm9, %v337_v7 }
 0x1c0   : > { %508 = shalt.err (!%p505_p3)
}
 0x1c1   : > { %430 = dma.vmem_to_hbm [thread:$0]  (%p615_p5), %s354_s9, 16, %s356_s10, %s343_s11  }
 0x1c4   : > { %v338_v8 = vpop.f32.mrf.mxu0 }
 0x1c5 PF: > { %p436_p4 = scmp.ge.s32.totalorder %s543_s21, 2  ;;  %s367_s23 = sand.u32 1, %s531_s18  }
 0x1c6   : > { %s368_s25 = scalar_lea.sflag [#allocation3], %s367_s23 }
 0x1c7   : > { %p433_p7 = pnand %p436_p4, %p619_p6 }
 0x1c9   : > { %p434_p8 = pneg %p433_p7 }
 0x1cb   : > { %526 = dma.done.wait (%p434_p8), %s368_s25, 16  }
 0x1cc   : > { %528 = vsyncadd (%p434_p8), %s368_s25, 4294967280  ;;  %p15_p9 = scmp.ge.s32.totalorder %s602_s24, 4   ;;  %s692_s18 = smov %s535_s19 }
 0x1cd   : > { %s693_s19 = smov %s539_s20  ;;  %s694_s20 = smov %s613_s27 }
 0x1ce   : > { %s695_s21 = smov %s602_s24  ;;  %17 = sbr.rel (!%p15_p9) target bundleno = 3 (0x3), region = 75 }
 0x1d3   :  { %373 = vsyncpa [#allocation3], 1 }
 0x1d4   :  { %375 = vsyncpa [#allocation3 + $0x1], 1 }

</bundles_post_ra>
